<compile_context>
chip_gen: v5e
topology: v5e:2x2
jax: 0.10.0
libtpu: 0.0.40
codegen_flags: <defaults>
</compile_context>

<pallas_src>
import jax
import jax.numpy as jnp
from jax.experimental import pallas as pl
from jax.experimental.pallas import tpu as pltpu

FLO_DIM = 16     # flo_conv output channels
HID_DIM = 128    # HiddenEncoder output channels
OUT_DIM = 94     # final conv output channels (module output = 94 + 2 flow)
OUT_PAD = 128    # lane-dense padded output channel count


def _pad_hw(x):
    """Zero-pad (H, W, C) by 1 on each spatial side -> (H+2, W+2, C)."""
    H, W, C = x.shape
    zr = jnp.zeros((1, W, C), x.dtype)
    x = jnp.concatenate([zr, x, zr], axis=0)
    zc = jnp.zeros((H + 2, 1, C), x.dtype)
    x = jnp.concatenate([zc, x, zc], axis=1)
    return x


def _im2col3x3(x):
    """x: (H, W, C) -> (H*W, 9*C) im2col matrix (tap-major, then channel)."""
    H, W, C = x.shape
    xp = _pad_hw(x)
    cols = [xp[dy:dy + H, dx:dx + W, :].reshape(H * W, C)
            for dy in range(3) for dx in range(3)]
    return jnp.concatenate(cols, axis=-1)


def motion_encoder_kernel(flow_ref, corr_ref,
                          w_flo_ref, b_flo_ref,
                          w_hid_ref, b_hid_ref,
                          w_out_ref, b_out_ref,
                          inject_ref,
                          out_ref):
    _, H, W, _ = flow_ref.shape
    HW = H * W

    flow = flow_ref[0]                                   # (H, W, 2)  f32
    corr = corr_ref[0].astype(jnp.float32)               # (H, W, Cc)

    # flo = relu(flo_conv(flow)) : one im2col matmul, K = 18
    flo_cols = _im2col3x3(flow).astype(jnp.bfloat16)     # (HW, 18)
    flo = jnp.dot(flo_cols, w_flo_ref[...], preferred_element_type=jnp.float32)
    flo = jnp.maximum(flo + b_flo_ref[...], 0.0)         # (HW, 16)  f32

    # HiddenEncoder with depthwise3x3 and 1x1 fused into one 9-tap weight:
    # one im2col matmul over cat([corr, flo]), K = 9 * Cm
    cor_flo = jnp.concatenate([corr, flo.reshape(H, W, FLO_DIM)], axis=-1)
    hid_cols = _im2col3x3(cor_flo).astype(jnp.bfloat16)  # (HW, 9*Cm)
    x = jnp.dot(hid_cols, w_hid_ref[...], preferred_element_type=jnp.float32)
    x = jnp.maximum(x + b_hid_ref[...], 0.0)             # (HW, 128) f32 (ReLU)

    # final 3x3 conv, 128 -> 128-padded output (cols 94..127 have zero weights)
    out_cols = _im2col3x3(x.reshape(H, W, HID_DIM)).astype(jnp.bfloat16)  # (HW, 1152)
    out = jnp.dot(out_cols, w_out_ref[...], preferred_element_type=jnp.float32)
    out = out + b_out_ref[...]

    # inject flow (f32, exact) into channels 94:96 so the store stays lane-dense
    out = out + jnp.dot(flow.reshape(HW, 2), inject_ref[...],
                        preferred_element_type=jnp.float32)

    out_ref[0] = out.reshape(H, W, OUT_PAD)


def motion_encoder(flow_nchw, corr_nchw, params):
    """flow: (B, 2, H, W), corr: (B, Cc, H, W) NCHW (PyTorch convention).
    Returns (B, 96, H, W) NCHW, matching MotionEncoder.forward."""
    B, _, H, W = flow_nchw.shape
    Cc = corr_nchw.shape[1]
    Cm = Cc + FLO_DIM

    flow = jnp.transpose(flow_nchw, (0, 2, 3, 1)).astype(jnp.float32)   # NHWC f32
    corr = jnp.transpose(corr_nchw, (0, 2, 3, 1)).astype(jnp.bfloat16)  # NHWC bf16

    # ---- weight prep (plain JAX glue) ----
    # flo_conv: OIHW (16,2,3,3) -> im2col weight (9*2, 16)
    w_flo = jnp.transpose(params['w_flo'], (2, 3, 1, 0)).reshape(9 * 2, FLO_DIM)
    w_flo = w_flo.astype(jnp.bfloat16)
    b_flo = params['b_flo'].reshape(1, FLO_DIM).astype(jnp.float32)

    # fused HiddenEncoder weight: w_hid[t, c, j] = w_dw[t, c] * w_pw[c, j]
    w_dw_taps = jnp.transpose(params['w_dw'][:, 0, :, :], (1, 2, 0)).reshape(9, Cm)
    w_pw = jnp.transpose(params['w_pw'][:, :, 0, 0], (1, 0))            # (Cm, 128)
    w_hid = (w_dw_taps[:, :, None] * w_pw[None, :, :]).reshape(9 * Cm, HID_DIM)
    w_hid = w_hid.astype(jnp.bfloat16)
    b_hid = (params['b_dw'] @ w_pw + params['b_pw']).reshape(1, HID_DIM)
    b_hid = b_hid.astype(jnp.float32)

    # final conv: OIHW (94,128,3,3) -> im2col weight (9*128, 94), pad Cout to 128
    w_out = jnp.transpose(params['w_out'], (2, 3, 1, 0)).reshape(9 * HID_DIM, OUT_DIM)
    w_out = jnp.pad(w_out, ((0, 0), (0, OUT_PAD - OUT_DIM))).astype(jnp.bfloat16)
    b_out = jnp.pad(params['b_out'], (0, OUT_PAD - OUT_DIM)).reshape(1, OUT_PAD)
    b_out = b_out.astype(jnp.float32)

    # constant that places flow's 2 channels at output columns 94, 95
    inject = jnp.zeros((2, OUT_PAD), jnp.float32)
    inject = inject.at[0, OUT_DIM].set(1.0).at[1, OUT_DIM + 1].set(1.0)

    flops = 2 * B * H * W * (9 * 2 * FLO_DIM + 9 * Cm * HID_DIM
                             + 9 * HID_DIM * OUT_PAD + 2 * OUT_PAD)
    bytes_accessed = (B * H * W * (2 * 4 + Cc * 2 + OUT_PAD * 4)
                      + 2 * (9 * 2 * FLO_DIM + 9 * Cm * HID_DIM + 9 * HID_DIM * OUT_PAD)
                      + 4 * (FLO_DIM + HID_DIM + OUT_PAD + 2 * OUT_PAD))

    out_nhwc = pl.pallas_call(
        motion_encoder_kernel,
        out_shape=jax.ShapeDtypeStruct((B, H, W, OUT_PAD), jnp.float32),
        grid_spec=pltpu.PrefetchScalarGridSpec(
            num_scalar_prefetch=0,
            grid=(B,),
            in_specs=[
                pl.BlockSpec((1, H, W, 2), lambda b: (b, 0, 0, 0)),
                pl.BlockSpec((1, H, W, Cc), lambda b: (b, 0, 0, 0)),
                pl.BlockSpec((9 * 2, FLO_DIM), lambda b: (0, 0)),
                pl.BlockSpec((1, FLO_DIM), lambda b: (0, 0)),
                pl.BlockSpec((9 * Cm, HID_DIM), lambda b: (0, 0)),
                pl.BlockSpec((1, HID_DIM), lambda b: (0, 0)),
                pl.BlockSpec((9 * HID_DIM, OUT_PAD), lambda b: (0, 0)),
                pl.BlockSpec((1, OUT_PAD), lambda b: (0, 0)),
                pl.BlockSpec((2, OUT_PAD), lambda b: (0, 0)),
            ],
            out_specs=pl.BlockSpec((1, H, W, OUT_PAD), lambda b: (b, 0, 0, 0)),
        ),
        compiler_params=pltpu.CompilerParams(
            dimension_semantics=("parallel",),
            vmem_limit_bytes=48 * 1024 * 1024),
        cost_estimate=pl.CostEstimate(flops=flops, transcendentals=0,
                                      bytes_accessed=bytes_accessed),
    )(flow, corr, w_flo, b_flo, w_hid, b_hid, w_out, b_out, inject)

    out = out_nhwc[..., :OUT_DIM + 2]            # slice back to 96 channels
    return jnp.transpose(out, (0, 3, 1, 2))      # back to NCHW


def ref_motion_encoder(flow, corr, params):
    """Pure-JAX reference (lax.conv), NCHW, same semantics as the PyTorch module."""
    def conv(x, w, b, groups=1):
        y = jax.lax.conv_general_dilated(
            x, w, window_strides=(1, 1), padding='SAME',
            dimension_numbers=('NCHW', 'OIHW', 'NCHW'),
            feature_group_count=groups)
        return y + b[None, :, None, None]

    flo = jax.nn.relu(conv(flow, params['w_flo'], params['b_flo']))
    cf = jnp.concatenate([corr, flo], axis=1)
    x = conv(cf, params['w_dw'], params['b_dw'], groups=cf.shape[1])  # depthwise
    x = conv(x, params['w_pw'], params['b_pw'])                       # 1x1
    x = jax.nn.relu(x)
    out = conv(x, params['w_out'], params['b_out'])                   # 3x3 -> 94
    return jnp.concatenate([out, flow], axis=1)


if __name__ == "__main__":
    key = jax.random.PRNGKey(0)
    # args.corr_levels = 1, args.corr_radius = 1  -> cor_dim = 1 * (2*1+1)^2 = 9
    corr_levels, corr_radius = 1, 1
    cor_dim = corr_levels * (2 * corr_radius + 1) ** 2
    Cm = cor_dim + FLO_DIM  # 25
    B, H, W = 2, 16, 16

    ks = jax.random.split(key, 10)
    params = {
        'w_flo': jax.random.normal(ks[0], (FLO_DIM, 2, 3, 3), jnp.float32) * 0.1,
        'b_flo': jax.random.normal(ks[1], (FLO_DIM,), jnp.float32) * 0.1,
        'w_dw':  jax.random.normal(ks[2], (Cm, 1, 3, 3), jnp.float32) * 0.1,
        'b_dw':  jax.random.normal(ks[3], (Cm,), jnp.float32) * 0.1,
        'w_pw':  jax.random.normal(ks[4], (HID_DIM, Cm, 1, 1), jnp.float32) * 0.1,
        'b_pw':  jax.random.normal(ks[5], (HID_DIM,), jnp.float32) * 0.1,
        'w_out': jax.random.normal(ks[6], (OUT_DIM, HID_DIM, 3, 3), jnp.float32) * 0.1,
        'b_out': jax.random.normal(ks[7], (OUT_DIM,), jnp.float32) * 0.1,
    }
    flow = jax.random.normal(ks[8], (B, 2, H, W), jnp.float32)
    corr = jax.random.normal(ks[9], (B, cor_dim, H, W), jnp.float32)

    out = jax.block_until_ready(motion_encoder(flow, corr, params))
    ref = jax.block_until_ready(ref_motion_encoder(flow, corr, params))

    assert out.shape == (B, OUT_DIM + 2, H, W), out.shape
    max_err = float(jnp.max(jnp.abs(out - ref)))
    # bf16 MXU operands with f32 accumulation -> slightly looser tolerance than f32.
    assert jnp.allclose(out, ref, atol=5e-2, rtol=5e-2), f"max_err={max_err}"
    print("KERNEL_OK")
</pallas_src>

<mosaic_0001>
module attributes {stable_mosaic.version = 11 : i64} {
  func.func @motion_encoder_kernel(%arg0: i32, %arg1: memref<1x16x16x2xf32, #tpu.memory_space<vmem>>, %arg2: memref<1x16x16x9xbf16, #tpu.memory_space<vmem>>, %arg3: memref<18x16xbf16, #tpu.memory_space<vmem>>, %arg4: memref<1x16xf32, #tpu.memory_space<vmem>>, %arg5: memref<225x128xbf16, #tpu.memory_space<vmem>>, %arg6: memref<1x128xf32, #tpu.memory_space<vmem>>, %arg7: memref<1152x128xbf16, #tpu.memory_space<vmem>>, %arg8: memref<1x128xf32, #tpu.memory_space<vmem>>, %arg9: memref<2x128xf32, #tpu.memory_space<vmem>>, %arg10: memref<1x16x16x128xf32, #tpu.memory_space<vmem>>) attributes {dimension_semantics = [#tpu.dimension_semantics<parallel>], iteration_bounds = array<i64: 2>, scalar_prefetch = 0 : i64, scratch_operands = 0 : i64, tpu.core_type = #tpu.core_type<tc>, window_params = [{transform_indices = @transform_0, window_bounds = array<i64: 1, 16, 16, 2>}, {transform_indices = @transform_1, window_bounds = array<i64: 1, 16, 16, 9>}, {pipeline_mode = #tpu.pipeline_mode<synchronous>, transform_indices = @transform_2, window_bounds = array<i64: 18, 16>}, {pipeline_mode = #tpu.pipeline_mode<synchronous>, transform_indices = @transform_3, window_bounds = array<i64: 1, 16>}, {pipeline_mode = #tpu.pipeline_mode<synchronous>, transform_indices = @transform_4, window_bounds = array<i64: 225, 128>}, {pipeline_mode = #tpu.pipeline_mode<synchronous>, transform_indices = @transform_5, window_bounds = array<i64: 1, 128>}, {pipeline_mode = #tpu.pipeline_mode<synchronous>, transform_indices = @transform_6, window_bounds = array<i64: 1152, 128>}, {pipeline_mode = #tpu.pipeline_mode<synchronous>, transform_indices = @transform_7, window_bounds = array<i64: 1, 128>}, {pipeline_mode = #tpu.pipeline_mode<synchronous>, transform_indices = @transform_8, window_bounds = array<i64: 2, 128>}, {transform_indices = @transform_9, window_bounds = array<i64: 1, 16, 16, 128>}]} {
    %c0 = arith.constant 0 : index
    %c0_0 = arith.constant 0 : index
    %c0_1 = arith.constant 0 : index
    %c0_2 = arith.constant 0 : index
    %0 = vector.load %arg1[%c0, %c0_0, %c0_1, %c0_2] : memref<1x16x16x2xf32, #tpu.memory_space<vmem>>, vector<1x16x16x2xf32>
    %1 = vector.shape_cast %0 : vector<1x16x16x2xf32> to vector<16x16x2xf32>
    %c0_3 = arith.constant 0 : index
    %c0_4 = arith.constant 0 : index
    %c0_5 = arith.constant 0 : index
    %c0_6 = arith.constant 0 : index
    %2 = vector.load %arg2[%c0_3, %c0_4, %c0_5, %c0_6] : memref<1x16x16x9xbf16, #tpu.memory_space<vmem>>, vector<1x16x16x9xbf16>
    %3 = vector.shape_cast %2 : vector<1x16x16x9xbf16> to vector<16x16x9xbf16>
    %4 = arith.extf %3 : vector<16x16x9xbf16> to vector<16x16x9xf32>
    %cst = arith.constant 0.000000e+00 : f32
    %5 = vector.broadcast %cst : f32 to vector<1x16x2xf32>
    %6 = tpu.concatenate %5, %1, %5 in 0 : vector<1x16x2xf32>, vector<16x16x2xf32>, vector<1x16x2xf32> -> vector<18x16x2xf32>
    %cst_7 = arith.constant 0.000000e+00 : f32
    %7 = vector.broadcast %cst_7 : f32 to vector<18x1x2xf32>
    %8 = tpu.concatenate %7, %6, %7 in 1 : vector<18x1x2xf32>, vector<18x16x2xf32>, vector<18x1x2xf32> -> vector<18x18x2xf32>
    %9 = vector.extract_strided_slice %8 {offsets = [0, 0, 0], sizes = [16, 16, 2], strides = [1, 1, 1]} : vector<18x18x2xf32> to vector<16x16x2xf32>
    %10 = vector.shape_cast %9 : vector<16x16x2xf32> to vector<256x2xf32>
    %11 = vector.extract_strided_slice %8 {offsets = [0, 1, 0], sizes = [16, 16, 2], strides = [1, 1, 1]} : vector<18x18x2xf32> to vector<16x16x2xf32>
    %12 = vector.shape_cast %11 : vector<16x16x2xf32> to vector<256x2xf32>
    %13 = vector.extract_strided_slice %8 {offsets = [0, 2, 0], sizes = [16, 16, 2], strides = [1, 1, 1]} : vector<18x18x2xf32> to vector<16x16x2xf32>
    %14 = vector.shape_cast %13 : vector<16x16x2xf32> to vector<256x2xf32>
    %15 = vector.extract_strided_slice %8 {offsets = [1, 0, 0], sizes = [16, 16, 2], strides = [1, 1, 1]} : vector<18x18x2xf32> to vector<16x16x2xf32>
    %16 = vector.shape_cast %15 : vector<16x16x2xf32> to vector<256x2xf32>
    %17 = vector.extract_strided_slice %8 {offsets = [1, 1, 0], sizes = [16, 16, 2], strides = [1, 1, 1]} : vector<18x18x2xf32> to vector<16x16x2xf32>
    %18 = vector.shape_cast %17 : vector<16x16x2xf32> to vector<256x2xf32>
    %19 = vector.extract_strided_slice %8 {offsets = [1, 2, 0], sizes = [16, 16, 2], strides = [1, 1, 1]} : vector<18x18x2xf32> to vector<16x16x2xf32>
    %20 = vector.shape_cast %19 : vector<16x16x2xf32> to vector<256x2xf32>
    %21 = vector.extract_strided_slice %8 {offsets = [2, 0, 0], sizes = [16, 16, 2], strides = [1, 1, 1]} : vector<18x18x2xf32> to vector<16x16x2xf32>
    %22 = vector.shape_cast %21 : vector<16x16x2xf32> to vector<256x2xf32>
    %23 = vector.extract_strided_slice %8 {offsets = [2, 1, 0], sizes = [16, 16, 2], strides = [1, 1, 1]} : vector<18x18x2xf32> to vector<16x16x2xf32>
    %24 = vector.shape_cast %23 : vector<16x16x2xf32> to vector<256x2xf32>
    %25 = vector.extract_strided_slice %8 {offsets = [2, 2, 0], sizes = [16, 16, 2], strides = [1, 1, 1]} : vector<18x18x2xf32> to vector<16x16x2xf32>
    %26 = vector.shape_cast %25 : vector<16x16x2xf32> to vector<256x2xf32>
    %27 = tpu.concatenate %10, %12, %14, %16, %18, %20, %22, %24, %26 in 1 : vector<256x2xf32>, vector<256x2xf32>, vector<256x2xf32>, vector<256x2xf32>, vector<256x2xf32>, vector<256x2xf32>, vector<256x2xf32>, vector<256x2xf32>, vector<256x2xf32> -> vector<256x18xf32>
    %28 = arith.truncf %27 : vector<256x18xf32> to vector<256x18xbf16>
    %c0_8 = arith.constant 0 : index
    %c0_9 = arith.constant 0 : index
    %29 = vector.load %arg3[%c0_8, %c0_9] : memref<18x16xbf16, #tpu.memory_space<vmem>>, vector<18x16xbf16>
    %cst_10 = arith.constant dense<0.000000e+00> : vector<256x16xf32>
    %30 = tpu.matmul %28, %29, %cst_10 {dimension_numbers = #tpu.dot_dimension_numbers<[1], [0], [0], [1], [0, 0, 1, 1], [], []>} : vector<256x18xbf16>, vector<18x16xbf16>, vector<256x16xf32> -> vector<256x16xf32>
    %c0_11 = arith.constant 0 : index
    %c0_12 = arith.constant 0 : index
    %31 = vector.load %arg4[%c0_11, %c0_12] : memref<1x16xf32, #tpu.memory_space<vmem>>, vector<1x16xf32>
    %32 = vector.broadcast %31 : vector<1x16xf32> to vector<256x16xf32>
    %33 = arith.addf %30, %32 : vector<256x16xf32>
    %cst_13 = arith.constant 0.000000e+00 : f32
    %34 = vector.broadcast %cst_13 : f32 to vector<256x16xf32>
    %35 = arith.maximumf %33, %34 : vector<256x16xf32>
    %36 = vector.shape_cast %35 : vector<256x16xf32> to vector<16x16x16xf32>
    %37 = tpu.concatenate %4, %36 in 2 : vector<16x16x9xf32>, vector<16x16x16xf32> -> vector<16x16x25xf32>
    %cst_14 = arith.constant 0.000000e+00 : f32
    %38 = vector.broadcast %cst_14 : f32 to vector<1x16x25xf32>
    %39 = tpu.concatenate %38, %37, %38 in 0 : vector<1x16x25xf32>, vector<16x16x25xf32>, vector<1x16x25xf32> -> vector<18x16x25xf32>
    %cst_15 = arith.constant 0.000000e+00 : f32
    %40 = vector.broadcast %cst_15 : f32 to vector<18x1x25xf32>
    %41 = tpu.concatenate %40, %39, %40 in 1 : vector<18x1x25xf32>, vector<18x16x25xf32>, vector<18x1x25xf32> -> vector<18x18x25xf32>
    %42 = vector.extract_strided_slice %41 {offsets = [0, 0, 0], sizes = [16, 16, 25], strides = [1, 1, 1]} : vector<18x18x25xf32> to vector<16x16x25xf32>
    %43 = vector.shape_cast %42 : vector<16x16x25xf32> to vector<256x25xf32>
    %44 = vector.extract_strided_slice %41 {offsets = [0, 1, 0], sizes = [16, 16, 25], strides = [1, 1, 1]} : vector<18x18x25xf32> to vector<16x16x25xf32>
    %45 = vector.shape_cast %44 : vector<16x16x25xf32> to vector<256x25xf32>
    %46 = vector.extract_strided_slice %41 {offsets = [0, 2, 0], sizes = [16, 16, 25], strides = [1, 1, 1]} : vector<18x18x25xf32> to vector<16x16x25xf32>
    %47 = vector.shape_cast %46 : vector<16x16x25xf32> to vector<256x25xf32>
    %48 = vector.extract_strided_slice %41 {offsets = [1, 0, 0], sizes = [16, 16, 25], strides = [1, 1, 1]} : vector<18x18x25xf32> to vector<16x16x25xf32>
    %49 = vector.shape_cast %48 : vector<16x16x25xf32> to vector<256x25xf32>
    %50 = vector.extract_strided_slice %41 {offsets = [1, 1, 0], sizes = [16, 16, 25], strides = [1, 1, 1]} : vector<18x18x25xf32> to vector<16x16x25xf32>
    %51 = vector.shape_cast %50 : vector<16x16x25xf32> to vector<256x25xf32>
    %52 = vector.extract_strided_slice %41 {offsets = [1, 2, 0], sizes = [16, 16, 25], strides = [1, 1, 1]} : vector<18x18x25xf32> to vector<16x16x25xf32>
    %53 = vector.shape_cast %52 : vector<16x16x25xf32> to vector<256x25xf32>
    %54 = vector.extract_strided_slice %41 {offsets = [2, 0, 0], sizes = [16, 16, 25], strides = [1, 1, 1]} : vector<18x18x25xf32> to vector<16x16x25xf32>
    %55 = vector.shape_cast %54 : vector<16x16x25xf32> to vector<256x25xf32>
    %56 = vector.extract_strided_slice %41 {offsets = [2, 1, 0], sizes = [16, 16, 25], strides = [1, 1, 1]} : vector<18x18x25xf32> to vector<16x16x25xf32>
    %57 = vector.shape_cast %56 : vector<16x16x25xf32> to vector<256x25xf32>
    %58 = vector.extract_strided_slice %41 {offsets = [2, 2, 0], sizes = [16, 16, 25], strides = [1, 1, 1]} : vector<18x18x25xf32> to vector<16x16x25xf32>
    %59 = vector.shape_cast %58 : vector<16x16x25xf32> to vector<256x25xf32>
    %60 = tpu.concatenate %43, %45, %47, %49, %51, %53, %55, %57, %59 in 1 : vector<256x25xf32>, vector<256x25xf32>, vector<256x25xf32>, vector<256x25xf32>, vector<256x25xf32>, vector<256x25xf32>, vector<256x25xf32>, vector<256x25xf32>, vector<256x25xf32> -> vector<256x225xf32>
    %61 = arith.truncf %60 : vector<256x225xf32> to vector<256x225xbf16>
    %c0_16 = arith.constant 0 : index
    %c0_17 = arith.constant 0 : index
    %62 = vector.load %arg5[%c0_16, %c0_17] : memref<225x128xbf16, #tpu.memory_space<vmem>>, vector<225x128xbf16>
    %cst_18 = arith.constant dense<0.000000e+00> : vector<256x128xf32>
    %63 = tpu.matmul %61, %62, %cst_18 {dimension_numbers = #tpu.dot_dimension_numbers<[1], [0], [0], [1], [0, 0, 1, 1], [], []>} : vector<256x225xbf16>, vector<225x128xbf16>, vector<256x128xf32> -> vector<256x128xf32>
    %c0_19 = arith.constant 0 : index
    %c0_20 = arith.constant 0 : index
    %64 = vector.load %arg6[%c0_19, %c0_20] : memref<1x128xf32, #tpu.memory_space<vmem>>, vector<1x128xf32>
    %65 = vector.broadcast %64 : vector<1x128xf32> to vector<256x128xf32>
    %66 = arith.addf %63, %65 : vector<256x128xf32>
    %cst_21 = arith.constant 0.000000e+00 : f32
    %67 = vector.broadcast %cst_21 : f32 to vector<256x128xf32>
    %68 = arith.maximumf %66, %67 : vector<256x128xf32>
    %69 = vector.shape_cast %68 : vector<256x128xf32> to vector<16x16x128xf32>
    %cst_22 = arith.constant 0.000000e+00 : f32
    %70 = vector.broadcast %cst_22 : f32 to vector<1x16x128xf32>
    %71 = tpu.concatenate %70, %69, %70 in 0 : vector<1x16x128xf32>, vector<16x16x128xf32>, vector<1x16x128xf32> -> vector<18x16x128xf32>
    %cst_23 = arith.constant 0.000000e+00 : f32
    %72 = vector.broadcast %cst_23 : f32 to vector<18x1x128xf32>
    %73 = tpu.concatenate %72, %71, %72 in 1 : vector<18x1x128xf32>, vector<18x16x128xf32>, vector<18x1x128xf32> -> vector<18x18x128xf32>
    %74 = vector.extract_strided_slice %73 {offsets = [0, 0, 0], sizes = [16, 16, 128], strides = [1, 1, 1]} : vector<18x18x128xf32> to vector<16x16x128xf32>
    %75 = vector.shape_cast %74 : vector<16x16x128xf32> to vector<256x128xf32>
    %76 = vector.extract_strided_slice %73 {offsets = [0, 1, 0], sizes = [16, 16, 128], strides = [1, 1, 1]} : vector<18x18x128xf32> to vector<16x16x128xf32>
    %77 = vector.shape_cast %76 : vector<16x16x128xf32> to vector<256x128xf32>
    %78 = vector.extract_strided_slice %73 {offsets = [0, 2, 0], sizes = [16, 16, 128], strides = [1, 1, 1]} : vector<18x18x128xf32> to vector<16x16x128xf32>
    %79 = vector.shape_cast %78 : vector<16x16x128xf32> to vector<256x128xf32>
    %80 = vector.extract_strided_slice %73 {offsets = [1, 0, 0], sizes = [16, 16, 128], strides = [1, 1, 1]} : vector<18x18x128xf32> to vector<16x16x128xf32>
    %81 = vector.shape_cast %80 : vector<16x16x128xf32> to vector<256x128xf32>
    %82 = vector.extract_strided_slice %73 {offsets = [1, 1, 0], sizes = [16, 16, 128], strides = [1, 1, 1]} : vector<18x18x128xf32> to vector<16x16x128xf32>
    %83 = vector.shape_cast %82 : vector<16x16x128xf32> to vector<256x128xf32>
    %84 = vector.extract_strided_slice %73 {offsets = [1, 2, 0], sizes = [16, 16, 128], strides = [1, 1, 1]} : vector<18x18x128xf32> to vector<16x16x128xf32>
    %85 = vector.shape_cast %84 : vector<16x16x128xf32> to vector<256x128xf32>
    %86 = vector.extract_strided_slice %73 {offsets = [2, 0, 0], sizes = [16, 16, 128], strides = [1, 1, 1]} : vector<18x18x128xf32> to vector<16x16x128xf32>
    %87 = vector.shape_cast %86 : vector<16x16x128xf32> to vector<256x128xf32>
    %88 = vector.extract_strided_slice %73 {offsets = [2, 1, 0], sizes = [16, 16, 128], strides = [1, 1, 1]} : vector<18x18x128xf32> to vector<16x16x128xf32>
    %89 = vector.shape_cast %88 : vector<16x16x128xf32> to vector<256x128xf32>
    %90 = vector.extract_strided_slice %73 {offsets = [2, 2, 0], sizes = [16, 16, 128], strides = [1, 1, 1]} : vector<18x18x128xf32> to vector<16x16x128xf32>
    %91 = vector.shape_cast %90 : vector<16x16x128xf32> to vector<256x128xf32>
    %92 = tpu.concatenate %75, %77, %79, %81, %83, %85, %87, %89, %91 in 1 : vector<256x128xf32>, vector<256x128xf32>, vector<256x128xf32>, vector<256x128xf32>, vector<256x128xf32>, vector<256x128xf32>, vector<256x128xf32>, vector<256x128xf32>, vector<256x128xf32> -> vector<256x1152xf32>
    %93 = arith.truncf %92 : vector<256x1152xf32> to vector<256x1152xbf16>
    %c0_24 = arith.constant 0 : index
    %c0_25 = arith.constant 0 : index
    %94 = vector.load %arg7[%c0_24, %c0_25] : memref<1152x128xbf16, #tpu.memory_space<vmem>>, vector<1152x128xbf16>
    %cst_26 = arith.constant dense<0.000000e+00> : vector<256x128xf32>
    %95 = tpu.matmul %93, %94, %cst_26 {dimension_numbers = #tpu.dot_dimension_numbers<[1], [0], [0], [1], [0, 0, 1, 1], [], []>} : vector<256x1152xbf16>, vector<1152x128xbf16>, vector<256x128xf32> -> vector<256x128xf32>
    %c0_27 = arith.constant 0 : index
    %c0_28 = arith.constant 0 : index
    %96 = vector.load %arg8[%c0_27, %c0_28] : memref<1x128xf32, #tpu.memory_space<vmem>>, vector<1x128xf32>
    %97 = vector.broadcast %96 : vector<1x128xf32> to vector<256x128xf32>
    %98 = arith.addf %95, %97 : vector<256x128xf32>
    %99 = vector.shape_cast %1 : vector<16x16x2xf32> to vector<256x2xf32>
    %c0_29 = arith.constant 0 : index
    %c0_30 = arith.constant 0 : index
    %100 = vector.load %arg9[%c0_29, %c0_30] : memref<2x128xf32, #tpu.memory_space<vmem>>, vector<2x128xf32>
    %cst_31 = arith.constant dense<0.000000e+00> : vector<256x128xf32>
    %101 = tpu.matmul %99, %100, %cst_31 {dimension_numbers = #tpu.dot_dimension_numbers<[1], [0], [0], [1], [0, 0, 1, 1], [], []>} : vector<256x2xf32>, vector<2x128xf32>, vector<256x128xf32> -> vector<256x128xf32>
    %102 = arith.addf %98, %101 : vector<256x128xf32>
    %103 = vector.shape_cast %102 : vector<256x128xf32> to vector<16x16x128xf32>
    %c0_32 = arith.constant 0 : index
    %c0_33 = arith.constant 0 : index
    %c0_34 = arith.constant 0 : index
    %c0_35 = arith.constant 0 : index
    %104 = vector.load %arg10[%c0_32, %c0_33, %c0_34, %c0_35] : memref<1x16x16x128xf32, #tpu.memory_space<vmem>>, vector<1x16x16x128xf32>
    %105 = vector.shape_cast %104 : vector<1x16x16x128xf32> to vector<16x16x128xf32>
    %106 = vector.shape_cast %103 : vector<16x16x128xf32> to vector<1x16x16x128xf32>
    tpu.vector_store %arg10[%c0_32, %c0_33, %c0_34, %c0_35], %106 {strides = array<i32>} : memref<1x16x16x128xf32, #tpu.memory_space<vmem>>, vector<1x16x16x128xf32>,
    return
  }
  func.func @transform_0(%arg0: i32) -> (i32, i32, i32, i32) {
    %c0_i32 = arith.constant 0 : i32
    %c0_i32_0 = arith.constant 0 : i32
    %c0_i32_1 = arith.constant 0 : i32
    %c0_i32_2 = arith.constant 0 : i32
    return %arg0, %c0_i32, %c0_i32_0, %c0_i32_1 : i32, i32, i32, i32
  }
  func.func @transform_1(%arg0: i32) -> (i32, i32, i32, i32) {
    %c0_i32 = arith.constant 0 : i32
    %c0_i32_0 = arith.constant 0 : i32
    %c0_i32_1 = arith.constant 0 : i32
    %c0_i32_2 = arith.constant 0 : i32
    return %arg0, %c0_i32, %c0_i32_0, %c0_i32_1 : i32, i32, i32, i32
  }
  func.func @transform_2(%arg0: i32) -> (i32, i32) {
    %c0_i32 = arith.constant 0 : i32
    %c0_i32_0 = arith.constant 0 : i32
    %c0_i32_1 = arith.constant 0 : i32
    return %c0_i32, %c0_i32_0 : i32, i32
  }
  func.func @transform_3(%arg0: i32) -> (i32, i32) {
    %c0_i32 = arith.constant 0 : i32
    %c0_i32_0 = arith.constant 0 : i32
    %c0_i32_1 = arith.constant 0 : i32
    return %c0_i32, %c0_i32_0 : i32, i32
  }
  func.func @transform_4(%arg0: i32) -> (i32, i32) {
    %c0_i32 = arith.constant 0 : i32
    %c0_i32_0 = arith.constant 0 : i32
    %c0_i32_1 = arith.constant 0 : i32
    return %c0_i32, %c0_i32_0 : i32, i32
  }
  func.func @transform_5(%arg0: i32) -> (i32, i32) {
    %c0_i32 = arith.constant 0 : i32
    %c0_i32_0 = arith.constant 0 : i32
    %c0_i32_1 = arith.constant 0 : i32
    return %c0_i32, %c0_i32_0 : i32, i32
  }
  func.func @transform_6(%arg0: i32) -> (i32, i32) {
    %c0_i32 = arith.constant 0 : i32
    %c0_i32_0 = arith.constant 0 : i32
    %c0_i32_1 = arith.constant 0 : i32
    return %c0_i32, %c0_i32_0 : i32, i32
  }
  func.func @transform_7(%arg0: i32) -> (i32, i32) {
    %c0_i32 = arith.constant 0 : i32
    %c0_i32_0 = arith.constant 0 : i32
    %c0_i32_1 = arith.constant 0 : i32
    return %c0_i32, %c0_i32_0 : i32, i32
  }
  func.func @transform_8(%arg0: i32) -> (i32, i32) {
    %c0_i32 = arith.constant 0 : i32
    %c0_i32_0 = arith.constant 0 : i32
    %c0_i32_1 = arith.constant 0 : i32
    return %c0_i32, %c0_i32_0 : i32, i32
  }
  func.func @transform_9(%arg0: i32) -> (i32, i32, i32, i32) {
    %c0_i32 = arith.constant 0 : i32
    %c0_i32_0 = arith.constant 0 : i32
    %c0_i32_1 = arith.constant 0 : i32
    %c0_i32_2 = arith.constant 0 : i32
    return %arg0, %c0_i32, %c0_i32_0, %c0_i32_1 : i32, i32, i32, i32
  }
}

</mosaic_0001>

<bundles_post_ra>
// kernel: tpu_custom_call.1
= control target key start
LH: loop header
LB: loop body
LE: loop exit
PB: predicated region body
PF: predicated region fallthrough
CT: control target
= control target key end

     0   :  { %s12692_s0 = inlined_call_operand.vmem [shape: f32[2,16,16,2], index: 0, kind: input, shape index: {}]   ;;  %s12693_s1 = inlined_call_operand.vmem [shape: bf16[2,16,16,9], index: 1, kind: input, shape index: {}]   ;;  %s12694_s2 = inlined_call_operand.vmem [shape: bf16[18,16], index: 2, kind: input, shape index: {}]   ;;  %s12695_s3 = inlined_call_operand.vmem [shape: f32[1,16], index: 3, kind: input, shape index: {}]   ;;  %s12696_s4 = inlined_call_operand.vmem [shape: bf16[225,128], index: 4, kind: input, shape index: {}]   ;;  %s12697_s5 = inlined_call_operand.vmem [shape: f32[1,128], index: 5, kind: input, shape index: {}]   ;;  %s12698_s6 = inlined_call_operand.vmem [shape: bf16[1152,128], index: 6, kind: input, shape index: {}]   ;;  %s12699_s7 = inlined_call_operand.vmem [shape: f32[1,128], index: 7, kind: input, shape index: {}]   ;;  %s12700_s8 = inlined_call_operand.vmem [shape: f32[2,128], index: 8, kind: input, shape index: {}]   ;;  %s12701_s9 = inlined_call_operand.hbm [shape: f32[2,16,16,128], index: 9, kind: output, shape index: {}]  }
   0x1   :  { %12874 = sst [smem:[#allocation71_spill]] %s12692_s0 }
   0x2   :  { %12875 = sst [smem:[#allocation72_spill]] %s12693_s1 }
   0x3   :  { %12876 = sst [smem:[#allocation73_spill]] %s12694_s2 }
   0x4   :  { %12877 = sst [smem:[#allocation74_spill]] %s12696_s4 }
   0x5   :  { %14 = vsyncpa [#allocation3], 0 }
   0x6   :  { %16 = vsyncpa [#allocation3 + $0x1], 0  ;;  %s8596_s30 = smov 0   ;;  %s8598_s10 = smov 0  }
   0x7   :  { %s8600_s11 = smov 0   ;;  %s8602_s12 = smov 0  }
   0x8 LB: > { %s8617_s13 = sadd.s32 4294967295, %s8523_s12   ;;  %s6206_s14 = sadd.s32 4294967294, %s8523_s12   ;;  %s8523_s12 = sphi %s8602_s12, %s13205_s12   ;;  %s8519_s11 = sphi %s8600_s11, %s13204_s11   ;;  %s8515_s10 = sphi %s8598_s10, %s13203_s10   ;;  %s8511_s30 = sphi %s8596_s30, %s13202_s30  }
   0x9   : > { %s8621_s15 = sadd.s32 1, %s8523_s12   ;;  %s228_s16 = sadd.s32 1, %s8519_s11 }
   0xa   : > { %s225_s17 = ssub.s32 %s8523_s12, %s8621_s15  ;;  %p238_p0 = scmp.ne.s32.totalorder %s8519_s11, %s8515_s10 }
   0xb   : > { %p226_p1 = scmp.eq.s32.totalorder %s225_s17, 0  ;;  %p239_p2 = scmp.eq.s32.totalorder %s8617_s13, 1 }
   0xc   : > { %p244_p3 = scmp.ne.s32.totalorder %s8515_s10, %s8511_s30  ;;  %p245_p4 = scmp.eq.s32.totalorder %s6206_s14, 1 }
   0xd   : > { %s8632_s18 = scalar_select %p226_p1, %s8519_s11, %s228_s16  }
   0xe   : > { %p8634_p5 = por %p239_p2, %p238_p0  ;;  %p8638_p6 = por %p245_p4, %p244_p3 }
   0xf   : > { %12878 = sst [smem:[#allocation5_spill]] %s8632_s18  ;;  %p6209_p7 = scmp.ge.s32.totalorder %s8523_s12, 1 }
  0x10   : > { %p300_p8 = scmp.lt.s32.totalorder %s8523_s12, 3 }
  0x12   : > { %p301_p9 = pnand %p6209_p7, %p300_p8 }
  0x14   : > { %304 = sbr.rel (%p301_p9) target bundleno = 1941 (0x795), region = 56 }
  0x19   : > { %vm481_vm0 = vcmask 1040384   ;;  %p341_p10 = scmp.lt.s32.totalorder %s8617_s13, 1  ;;  %v8525_v0 = vmov 0.0   ;;  %vm647_vm1 = vcmask 1046528   ;;  %s12883_s0 = sld [smem:[#allocation71_spill]]  ;;  %vm728_vm2 = vcmask 1045504  }
  0x1a   : > { %v8645_v1 = vrot.slane %v8525_v0, 7  ;;  %s8526_s26 = smov 2   ;;  %s8527_s27 = smov 4   ;;  %vm12813_vm3 = vcmask 15360   ;;  %vm1622_vm4 = vcmask 31744   ;;  %vm1655_vm5 = vcmask 48128  }
  0x1b   : > { %s8648_s21 = scalar_select %p341_p10, %s8617_s13, 1  ;;  %vm1688_vm6 = vcmask 64512   ;;  %vm1721_vm7 = vcmask 80896   ;;  %vm1754_vm8 = vcmask 97280   ;;  %vm1787_vm9 = vcmask 113664  }
  0x1c   : > { %12881 = vst [vmem:[#allocation6_spill] sm:$0xff] %v8645_v1  ;;  %v8652_v2 = vsel %vm481_vm0, 0.0, %v8645_v1  ;;  %v8656_v3 = vsel %vm481_vm0, %v8645_v1, 0.0  ;;  %v649_v4 = vrot.slane %v8645_v1, 1  ;;  %s8528_s28 = smov 6   ;;  %s12794_s29 = smov 8  }
  0x1d   : > { %12882 = vst [vmem:[#allocation7_spill] sm:$0xff] %v8652_v2  ;;  %v648_v5 = vrot.slane %v8652_v2, 1  ;;  %v651_v6 = vrot.slane %v8656_v3, 1  ;;  %s6825_s22 = sshll.u32 %s8648_s21, 8  ;;  %s8530_s14 = smov 10   ;;  %vm1820_vm10 = vcmask 130048  }
  0x1e   : > { %s8531_s16 = smov 12   ;;  %s8532_s17 = smov 16   ;;  %vm1885_vm11 = vcmask 146432   ;;  %vm2186_vm12 = vcmask 72704   ;;  %vm3338_vm13 = vcmask 203776   ;;  %vm3371_vm14 = vcmask 408576  }
  0x1f   : > { %s8665_s25 = scalar_lea.vmem %s12883_s0, %s6825_s22  ;;  %v8668_v7 = vsel %vm647_vm1, %v648_v5, %v649_v4  ;;  %v8671_v8 = vsel %vm647_vm1, %v649_v4, %v651_v6  ;;  %s8533_s22 = smov 14   ;;  %vm3404_vm15 = vcmask 613376  }
  0x20   : > { %12884 = vst [vmem:[#allocation8_spill] sm:$0xff] %v8668_v7  ;;  %v358_v9 = vld [vmem:[%s8665_s25 + $0x30] sm:$0xff]  ;;  %v359_v10 = vld [vmem:[%s8665_s25 + $0x38] sm:$0xff]  ;;  %v8678_v12 = vpack.i.bf16 %v8671_v8, %v8668_v7  ;;  %v352_v17 = vld [vmem:[%s8665_s25] sm:$0xff]  ;;  %s12959_s2 = sld [smem:[#allocation73_spill]]  ;;  %s12795_s24 = smov 9  }
  0x21   : > { %12885 = vst [vmem:[#allocation9_spill] sm:$0xff] %v8671_v8  ;;  %v354_v11 = vld [vmem:[%s8665_s25 + $0x10] sm:$0xff]  ;;  %v493_v13 = vrot.slane %v358_v9, 7  ;;  %v494_v14 = vrot.slane %v359_v10, 7  ;;  %v355_v15 = vld [vmem:[%s8665_s25 + $0x18] sm:$0xff]  ;;  %v353_v18 = vld [vmem:[%s8665_s25 + $0x8] sm:$0xff] }
  0x22   : > { %12886 = vst [vmem:[#allocation10_spill] sm:$0xff] %v8678_v12  ;;  %v487_v16 = vrot.slane %v354_v11, 7  ;;  %v488_v19 = vrot.slane %v355_v15, 7  ;;  %v484_v20 = vrot.slane %v352_v17, 7  ;;  %v485_v21 = vrot.slane %v353_v18, 7  ;;  %7062 = vrot.lane.b32.xlu0 %v8678_v12, %s8526_s26  ;;  %v360_v38 = vld [vmem:[%s8665_s25 + $0x40] sm:$0xff] }
  0x23   : > { %v8686_v22 = vsel %vm481_vm0, %v493_v13, %v494_v14  ;;  %v8689_v23 = vsel %vm481_vm0, 0.0, %v493_v13  ;;  %v8692_v24 = vsel %vm481_vm0, %v494_v14, 0.0  ;;  %v361_v39 = vld [vmem:[%s8665_s25 + $0x48] sm:$0xff]  ;;  %v356_v44 = vld [vmem:[%s8665_s25 + $0x20] sm:$0xff]  ;;  %v362_v46 = vld [vmem:[%s8665_s25 + $0x50] sm:$0xff]  ;;  %v496_v53 = vrot.slane %v360_v38, 7 }
  0x24   : > { %v8695_v25 = vsel %vm481_vm0, 0.0, %v487_v16  ;;  %v668_v27 = vrot.slane %v8689_v23, 1  ;;  %v669_v28 = vrot.slane %v8686_v22, 1  ;;  %v671_v29 = vrot.slane %v8692_v24, 1  ;;  %v357_v45 = vld [vmem:[%s8665_s25 + $0x28] sm:$0xff]  ;;  %v363_v58 = vld [vmem:[%s8665_s25 + $0x58] sm:$0xff] }
  0x25   : > { %v8702_v30 = vsel %vm481_vm0, %v487_v16, %v488_v19  ;;  %v8705_v31 = vsel %vm481_vm0, %v488_v19, 0.0  ;;  %v658_v32 = vrot.slane %v8695_v25, 1  ;;  %v8709_v33 = vsel %vm481_vm0, %v484_v20, %v485_v21  ;;  %v366_v18 = vld [vmem:[%s8665_s25 + $0x70] sm:$0xff]  ;;  %v367_v19 = vld [vmem:[%s8665_s25 + $0x78] sm:$0xff]  ;;  %s13012_s1 = sld [smem:[#allocation72_spill]]  ;;  %s12811_s23 = smov 125  }
  0x26   : > { %v670_v34 = vsel %vm647_vm1, %v668_v27, %v669_v28  ;;  %v672_v35 = vsel %vm647_vm1, %v669_v28, %v671_v29  ;;  %v659_v36 = vrot.slane %v8702_v30, 1  ;;  %v661_v37 = vrot.slane %v8705_v31, 1  ;;  %v364_v29 = vld [vmem:[%s8665_s25 + $0x60] sm:$0xff]  ;;  %s13028_s4 = sld [smem:[#allocation74_spill]] }
  0x27   : > { %v8717_v40 = vpack.i.bf16 %v672_v35, %v670_v34  ;;  %v8721_v42 = vsel %vm481_vm0, 0.0, %v484_v20  ;;  %v8724_v43 = vsel %vm481_vm0, %v485_v21, 0.0  ;;  %v654_v50 = vrot.slane %v8709_v33, 1 }
  0x28   : > { %v660_v47 = vsel %vm647_vm1, %v658_v32, %v659_v36  ;;  %v662_v48 = vsel %vm647_vm1, %v659_v36, %v661_v37  ;;  %v653_v49 = vrot.slane %v8721_v42, 1  ;;  %v656_v52 = vrot.slane %v8724_v43, 1  ;;  %v365_v32 = vld [vmem:[%s8665_s25 + $0x68] sm:$0xff] }
  0x29   : > { %12887 = vst [vmem:[#allocation11_spill] sm:$0xff] %v8717_v40  ;;  %7082 = vrot.lane.b32.xlu2 %v8717_v40, %s8526_s26  ;;  %v8735_v51 = vpack.i.bf16 %v662_v48, %v660_v47  ;;  %v497_v54 = vrot.slane %v361_v39, 7  ;;  %v490_v56 = vrot.slane %v356_v44, 7  ;;  %v491_v57 = vrot.slane %v357_v45, 7 }
  0x2a   : > { %v655_v55 = vsel %vm647_vm1, %v653_v49, %v654_v50  ;;  %v499_v59 = vrot.slane %v362_v46, 7  ;;  %v657_v60 = vsel %vm647_vm1, %v654_v50, %v656_v52  ;;  %v8747_v62 = vsel %vm481_vm0, 0.0, %v496_v53  ;;  %v368_v50 = vld [vmem:[%s8665_s25 + $0x80] sm:$0xff] }
  0x2b   : > { %12888 = vst [vmem:[#allocation12_spill] sm:$0xff] %v8735_v51  ;;  %7072 = vrot.lane.b32.xlu1 %v8735_v51, %s8526_s26  ;;  %v8744_v61 = vsel %vm481_vm0, %v496_v53, %v497_v54  ;;  %v8750_v63 = vsel %vm481_vm0, %v497_v54, 0.0  ;;  %v8752_v0 = vpack.i.bf16 %v657_v60, %v655_v55  ;;  %v673_v4 = vrot.slane %v8747_v62, 1  ;;  %v369_v60 = vld [vmem:[%s8665_s25 + $0x88] sm:$0xff] }
  0x2c   : > { %v674_v5 = vrot.slane %v8744_v61, 1  ;;  %v676_v6 = vrot.slane %v8750_v63, 1  ;;  %v8758_v9 = vsel %vm481_vm0, %v490_v56, %v491_v57  ;;  %v8761_v10 = vsel %vm481_vm0, 0.0, %v490_v56 }
  0x2d   : > { %v8764_v11 = vsel %vm481_vm0, %v491_v57, 0.0  ;;  %v500_v13 = vrot.slane %v363_v58, 7  ;;  %7067 = vrot.lane.b32.xlu0 %v8752_v0, %s8526_s26  ;;  %v663_v16 = vrot.slane %v8761_v10, 1  ;;  %v664_v17 = vrot.slane %v8758_v9, 1 }
  0x2e   : > { %v675_v14 = vsel %vm647_vm1, %v673_v4, %v674_v5  ;;  %v677_v15 = vsel %vm647_vm1, %v674_v5, %v676_v6  ;;  %v666_v21 = vrot.slane %v8764_v11, 1  ;;  %v8781_v28 = vsel %vm481_vm0, 0.0, %v499_v59 }
  0x2f   : > { %v8774_v20 = vpack.i.bf16 %v677_v15, %v675_v14  ;;  %v8778_v27 = vsel %vm481_vm0, %v499_v59, %v500_v13  ;;  %v665_v34 = vsel %vm647_vm1, %v663_v16, %v664_v17  ;;  %v8787_v35 = vsel %vm481_vm0, %v500_v13, 0.0  ;;  %v372_v14 = vld [vmem:[%s8665_s25 + $0xa0] sm:$0xff]  ;;  %v373_v15 = vld [vmem:[%s8665_s25 + $0xa8] sm:$0xff] }
  0x30   : > { %12890 = vst [vmem:[#allocation14_spill] sm:$0xff] %v8778_v27  ;;  %v678_v36 = vrot.slane %v8781_v28, 1  ;;  %v679_v37 = vrot.slane %v8778_v27, 1  ;;  %v667_v38 = vsel %vm647_vm1, %v664_v17, %v666_v21  ;;  %v681_v39 = vrot.slane %v8787_v35, 1  ;;  %v370_v21 = vld [vmem:[%s8665_s25 + $0x90] sm:$0xff] }
  0x31   : > { %12889 = vst [vmem:[#allocation13_spill] sm:$0xff] %v8774_v20  ;;  %7087 = vrot.lane.b32.xlu2 %v8774_v20, %s8526_s26  ;;  %v505_v44 = vrot.slane %v366_v18, 7  ;;  %v506_v45 = vrot.slane %v367_v19, 7  ;;  %v8795_v46 = vpack.i.bf16 %v667_v38, %v665_v34  ;;  %v502_v48 = vrot.slane %v364_v29, 7 }
  0x32   : > { %v680_v47 = vsel %vm647_vm1, %v678_v36, %v679_v37  ;;  %v503_v49 = vrot.slane %v365_v32, 7  ;;  %v682_v52 = vsel %vm647_vm1, %v679_v37, %v681_v39  ;;  %v508_v13 = vrot.slane %v368_v50, 7 }
  0x33   : > { %v8801_v53 = vsel %vm481_vm0, %v505_v44, %v506_v45  ;;  %v8804_v54 = vsel %vm481_vm0, 0.0, %v505_v44  ;;  %v8807_v55 = vsel %vm481_vm0, %v506_v45, 0.0  ;;  %7077 = vrot.lane.b32.xlu1 %v8795_v46, %s8526_s26  ;;  %v8811_v56 = vpack.i.bf16 %v682_v52, %v680_v47  ;;  %v371_v45 = vld [vmem:[%s8665_s25 + $0x98] sm:$0xff] }
  0x34   : > { %12891 = vst [vmem:[#allocation15_spill] sm:$0xff] %v8801_v53  ;;  %v688_v57 = vrot.slane %v8804_v54, 1  ;;  %v689_v58 = vrot.slane %v8801_v53, 1  ;;  %v691_v59 = vrot.slane %v8807_v55, 1  ;;  %v8818_v4 = vsel %vm481_vm0, %v502_v48, %v503_v49 }
  0x35   : > { %12892 = vst [vmem:[#allocation16_spill] sm:$0xff] %v8804_v54  ;;  %v8821_v5 = vsel %vm481_vm0, 0.0, %v502_v48  ;;  %v8824_v6 = vsel %vm481_vm0, %v503_v49, 0.0  ;;  %7092 = vrot.lane.b32.xlu0 %v8811_v56, %s8526_s26  ;;  %v684_v19 = vrot.slane %v8818_v4, 1  ;;  %v509_v34 = vrot.slane %v369_v60, 7 }
  0x36   : > { %12893 = vst [vmem:[#allocation17_spill] sm:$0xff] %v8811_v56  ;;  %v690_v16 = vsel %vm647_vm1, %v688_v57, %v689_v58  ;;  %v692_v17 = vsel %vm647_vm1, %v689_v58, %v691_v59  ;;  %v683_v18 = vrot.slane %v8821_v5, 1  ;;  %v686_v32 = vrot.slane %v8824_v6, 1 }
  0x37   : > { %12894 = vst [vmem:[#allocation18_spill] sm:$0xff] %v8818_v4  ;;  %v8835_v29 = vpack.i.bf16 %v692_v17, %v690_v16  ;;  %v8839_v36 = vsel %vm481_vm0, 0.0, %v508_v13  ;;  %v514_v39 = vrot.slane %v372_v14, 7  ;;  %v515_v44 = vrot.slane %v373_v15, 7 }
  0x38   : > { %12895 = vst [vmem:[#allocation19_spill] sm:$0xff] %v8821_v5  ;;  %v685_v37 = vsel %vm647_vm1, %v683_v18, %v684_v19  ;;  %v693_v38 = vrot.slane %v8839_v36, 1  ;;  %v687_v47 = vsel %vm647_vm1, %v684_v19, %v686_v32  ;;  %v8848_v48 = vsel %vm481_vm0, %v508_v13, %v509_v34  ;;  %v375_v32 = vld [vmem:[%s8665_s25 + $0xb8] sm:$0xff] }
  0x39   : > { %12896 = vst [vmem:[#allocation20_spill] sm:$0xff] %v8835_v29  ;;  %7102 = vrot.lane.b32.xlu2 %v8835_v29, %s8526_s26  ;;  %v8851_v49 = vsel %vm481_vm0, %v509_v34, 0.0  ;;  %v511_v50 = vrot.slane %v370_v21, 7  ;;  %v8853_v52 = vpack.i.bf16 %v687_v47, %v685_v37  ;;  %v694_v57 = vrot.slane %v8848_v48, 1  ;;  %v374_v21 = vld [vmem:[%s8665_s25 + $0xb0] sm:$0xff]  ;;  %v376_v47 = vld [vmem:[%s8665_s25 + $0xc0] sm:$0xff] }
  0x3a   : > { %12897 = vst [vmem:[#allocation21_spill] sm:$0xff] %v8839_v36  ;;  %v696_v58 = vrot.slane %v8851_v49, 1  ;;  %v8858_v59 = vsel %vm481_vm0, %v514_v39, %v515_v44  ;;  %v8861_v60 = vsel %vm481_vm0, 0.0, %v514_v39  ;;  %v8864_v13 = vsel %vm481_vm0, %v515_v44, 0.0 }
  0x3b   : > { %12898 = vst [vmem:[#allocation22_spill] sm:$0xff] %v8848_v48  ;;  %v704_v14 = vrot.slane %v8858_v59, 1  ;;  %v512_v15 = vrot.slane %v371_v45, 7  ;;  %7097 = vrot.lane.b32.xlu1 %v8853_v52, %s8526_s26  ;;  %v695_v16 = vsel %vm647_vm1, %v693_v38, %v694_v57  ;;  %v703_v18 = vrot.slane %v8861_v60, 1  ;;  %v378_v38 = vld [vmem:[%s8665_s25 + $0xd0] sm:$0xff]  ;;  %v379_v45 = vld [vmem:[%s8665_s25 + $0xd8] sm:$0xff] }
  0x3c   : > { %12899 = vst [vmem:[#allocation23_spill] sm:$0xff] %v8853_v52  ;;  %v697_v17 = vsel %vm647_vm1, %v694_v57, %v696_v58  ;;  %v706_v19 = vrot.slane %v8864_v13, 1  ;;  %v8881_v39 = vsel %vm481_vm0, 0.0, %v511_v50  ;;  %v517_v41 = vrot.slane %v374_v21, 7 }
  0x3d   : > { %12900 = vst [vmem:[#allocation24_spill] sm:$0xff] %v8858_v59  ;;  %v8875_v34 = vpack.i.bf16 %v697_v17, %v695_v16  ;;  %v8878_v37 = vsel %vm481_vm0, %v511_v50, %v512_v15  ;;  %v8884_v44 = vsel %vm481_vm0, %v512_v15, 0.0  ;;  %v705_v57 = vsel %vm647_vm1, %v703_v18, %v704_v14  ;;  %v377_v18 = vld [vmem:[%s8665_s25 + $0xc8] sm:$0xff] }
  0x3e   : > { %12901 = vst [vmem:[#allocation25_spill] sm:$0xff] %v8861_v60  ;;  %v707_v58 = vsel %vm647_vm1, %v704_v14, %v706_v19  ;;  %v698_v16 = vrot.slane %v8881_v39, 1  ;;  %v699_v17 = vrot.slane %v8878_v37, 1  ;;  %v701_v15 = vrot.slane %v8884_v44, 1 }
  0x3f   : > { %12902 = vst [vmem:[#allocation26_spill] sm:$0xff] %v8875_v34  ;;  %7107 = vrot.lane.b32.xlu0 %v8875_v34, %s8526_s26  ;;  %v8895_v50 = vpack.i.bf16 %v707_v58, %v705_v57  ;;  %v518_v26 = vrot.slane %v375_v32, 7  ;;  %v523_v7 = vrot.slane %v378_v38, 7  ;;  %v524_v12 = vrot.slane %v379_v45, 7  ;;  %v381_v34 = vld [vmem:[%s8665_s25 + $0xe8] sm:$0xff] }
  0x40   : > { %12903 = vst [vmem:[#allocation27_spill] sm:$0xff] %v8878_v37  ;;  %v700_v8 = vsel %vm647_vm1, %v698_v16, %v699_v17  ;;  %v520_v29 = vrot.slane %v376_v47, 7  ;;  %v702_v14 = vsel %vm647_vm1, %v699_v17, %v701_v15  ;;  %v8907_v57 = vsel %vm481_vm0, 0.0, %v517_v41 }
  0x41   : > { %12904 = vst [vmem:[#allocation28_spill] sm:$0xff] %v8881_v39  ;;  %7117 = vrot.lane.b32.xlu2 %v8895_v50, %s8526_s26  ;;  %v8904_v19 = vsel %vm481_vm0, %v517_v41, %v518_v26  ;;  %v8910_v21 = vsel %vm481_vm0, %v518_v26, 0.0  ;;  %v8912_v32 = vpack.i.bf16 %v702_v14, %v700_v8  ;;  %v708_v38 = vrot.slane %v8907_v57, 1 }
  0x42   : > { %12905 = vst [vmem:[#allocation29_spill] sm:$0xff] %v8895_v50  ;;  %v709_v45 = vrot.slane %v8904_v19, 1  ;;  %v711_v47 = vrot.slane %v8910_v21, 1  ;;  %v8918_v58 = vsel %vm481_vm0, %v523_v7, %v524_v12  ;;  %v8921_v16 = vsel %vm481_vm0, 0.0, %v523_v7  ;;  %v380_v50 = vld [vmem:[%s8665_s25 + $0xe0] sm:$0xff] }
  0x43   : > { %12906 = vst [vmem:[#allocation30_spill] sm:$0xff] %v8904_v19  ;;  %v8924_v41 = vsel %vm481_vm0, %v524_v12, 0.0  ;;  %v521_v17 = vrot.slane %v377_v18, 7  ;;  %7112 = vrot.lane.b32.xlu1 %v8912_v32, %s8526_s26  ;;  %v718_v15 = vrot.slane %v8921_v16, 1  ;;  %v719_v14 = vrot.slane %v8918_v58, 1 }
  0x44   : > { %12907 = vst [vmem:[#allocation31_spill] sm:$0xff] %v8907_v57  ;;  %v710_v8 = vsel %vm647_vm1, %v708_v38, %v709_v45  ;;  %v712_v26 = vsel %vm647_vm1, %v709_v45, %v711_v47  ;;  %v721_v7 = vrot.slane %v8924_v41, 1  ;;  %v8941_v18 = vsel %vm481_vm0, 0.0, %v520_v29 }
  0x45   : > { %12908 = vst [vmem:[#allocation32_spill] sm:$0xff] %v8912_v32  ;;  %v8934_v52 = vpack.i.bf16 %v712_v26, %v710_v8  ;;  %v8938_v12 = vsel %vm481_vm0, %v520_v29, %v521_v17  ;;  %v720_v38 = vsel %vm647_vm1, %v718_v15, %v719_v14  ;;  %v8945_v45 = vsel %vm481_vm0, %v521_v17, 0.0 }
  0x46   : > { %12909 = vst [vmem:[#allocation33_spill] sm:$0xff] %v8918_v58  ;;  %v713_v47 = vrot.slane %v8941_v18, 1  ;;  %v714_v32 = vrot.slane %v8938_v12, 1  ;;  %v722_v8 = vsel %vm647_vm1, %v719_v14, %v721_v7  ;;  %v716_v26 = vrot.slane %v8945_v45, 1 }
  0x47   : > { %12910 = vst [vmem:[#allocation34_spill] sm:$0xff] %v8921_v16  ;;  %7122 = vrot.lane.b32.xlu0 %v8934_v52, %s8526_s26  ;;  %v526_v56 = vrot.slane %v380_v50, 7  ;;  %v527_v20 = vrot.slane %v381_v34, 7  ;;  %v8953_v29 = vpack.i.bf16 %v722_v8, %v720_v38  ;;  %v729_v17 = vrot.slane %v8652_v2, 2 }
  0x48   : > { %12911 = vst [vmem:[#allocation35_spill] sm:$0xff] %v8934_v52  ;;  %v715_v15 = vsel %vm647_vm1, %v713_v47, %v714_v32  ;;  %v717_v40 = vsel %vm647_vm1, %v714_v32, %v716_v26  ;;  %v730_v38 = vrot.slane %v8645_v1, 2  ;;  %v734_v47 = vrot.slane %v8721_v42, 2 }
  0x49   : > { %12912 = vst [vmem:[#allocation36_spill] sm:$0xff] %v8938_v12  ;;  %v8959_v51 = vsel %vm481_vm0, %v526_v56, %v527_v20  ;;  %v8962_v52 = vsel %vm481_vm0, 0.0, %v526_v56  ;;  %v8965_v14 = vsel %vm481_vm0, %v527_v20, 0.0  ;;  %7132 = vrot.lane.b32.xlu2 %v8953_v29, %s8526_s26  ;;  %v8969_v34 = vpack.i.bf16 %v717_v40, %v715_v15 }
  0x4a   : > { %12913 = vst [vmem:[#allocation37_spill] sm:$0xff] %v8941_v18  ;;  %v723_v50 = vrot.slane %v8962_v52, 1  ;;  %v724_v7 = vrot.slane %v8959_v51, 1  ;;  %v726_v32 = vrot.slane %v8965_v14, 1  ;;  %v735_v56 = vrot.slane %v8709_v33, 2 }
  0x4b   : > { %12914 = vst [vmem:[#allocation38_spill] sm:$0xff] %v8953_v29  ;;  %v737_v20 = vrot.slane %v8724_v43, 2  ;;  %7127 = vrot.lane.b32.xlu1 %v8969_v34, %s8526_s26  ;;  %v739_v26 = vrot.slane %v8695_v25, 2  ;;  %v740_v15 = vrot.slane %v8702_v30, 2  ;;  %v8987_v2 = vsel %vm728_vm2, %v729_v17, %v730_v38 }
  0x4c   : > { %12915 = vst [vmem:[#allocation39_spill] sm:$0xff] %v8959_v51  ;;  %v725_v40 = vsel %vm647_vm1, %v723_v50, %v724_v7  ;;  %v727_v8 = vsel %vm647_vm1, %v724_v7, %v726_v32  ;;  %v12919_v1 = vrot.slane %v8656_v3, 2  ;;  %v752_v7 = vrot.slane %v8692_v24, 2 }
  0x4d   : > { %12916 = vst [vmem:[#allocation40_spill] sm:$0xff] %v8962_v52  ;;  %v8984_v29 = vpack.i.bf16 %v727_v8, %v725_v40  ;;  %v738_v50 = vsel %vm728_vm2, %v735_v56, %v737_v20  ;;  %v741_v3 = vsel %vm728_vm2, %v739_v26, %v740_v15  ;;  %v744_v24 = vrot.slane %v8761_v10, 2 }
  0x4e   : > { %12917 = vst [vmem:[#allocation41_spill] sm:$0xff] %v8969_v34  ;;  %v8992_v43 = vsel %vm728_vm2, %v730_v38, %v12919_v1  ;;  %v736_v34 = vsel %vm728_vm2, %v734_v47, %v735_v56  ;;  %v12922_v1 = vrot.slane %v8705_v31, 2  ;;  %v749_v47 = vrot.slane %v8689_v23, 2 }
  0x4f   : > { %12918 = vst [vmem:[#allocation42_spill] sm:$0xff] %v8987_v2  ;;  %7137 = vrot.lane.b32.xlu0 %v8984_v29, %s8526_s26  ;;  %v9001_v32 = vpack.i.bf16 %v8992_v43, %v8987_v2  ;;  %v9003_v17 = vpack.i.bf16 %v738_v50, %v736_v34  ;;  %v750_v56 = vrot.slane %v8686_v22, 2  ;;  %v745_v20 = vrot.slane %v8758_v9, 2  ;;  %v9199_v2 = vld [vmem:[%s8665_s25 + $0xf8] sm:$0xff]  ;;  %s12805_s26 = smov 72  }
  0x50   : > { %12920 = vst [vmem:[#allocation43_spill] sm:$0xff] %v8992_v43  ;;  %v743_v38 = vsel %vm728_vm2, %v740_v15, %v12922_v1  ;;  %v747_v40 = vrot.slane %v8764_v11, 2  ;;  %v754_v26 = vrot.slane %v8747_v62, 2  ;;  %v755_v15 = vrot.slane %v8744_v61, 2 }
  0x51   : > { %12921 = vst [vmem:[#allocation44_spill] sm:$0xff] %v9001_v32  ;;  %7147 = vrot.lane.b32.xlu2 %v9003_v17, %s8527_s27  ;;  %v9016_v34 = vpack.i.bf16 %v743_v38, %v741_v3  ;;  %v751_v31 = vsel %vm728_vm2, %v749_v47, %v750_v56  ;;  %v753_v8 = vsel %vm728_vm2, %v750_v56, %v752_v7  ;;  %v757_v50 = vrot.slane %v8750_v63, 2 }
  0x52   : > { %v746_v11 = vsel %vm728_vm2, %v744_v24, %v745_v20  ;;  %v748_v1 = vsel %vm728_vm2, %v745_v20, %v747_v40  ;;  %v9027_v43 = vpack.i.bf16 %v753_v8, %v751_v31  ;;  %v764_v7 = vrot.slane %v8821_v5, 2 }
  0x53   : > { %7142 = vrot.lane.b32.xlu1 %v9001_v32, %s8527_s27  ;;  %v765_v3 = vrot.slane %v8818_v4, 2  ;;  %v767_v38 = vrot.slane %v8824_v6, 2  ;;  %v9034_v47 = vpack.i.bf16 %v748_v1, %v746_v11  ;;  %v756_v56 = vsel %vm728_vm2, %v754_v26, %v755_v15 }
  0x54   : > { %v758_v63 = vsel %vm728_vm2, %v755_v15, %v757_v50  ;;  %v759_v24 = vrot.slane %v8781_v28, 2  ;;  %v760_v20 = vrot.slane %v8778_v27, 2  ;;  %v762_v40 = vrot.slane %v8787_v35, 2 }
  0x55   : > { %v9043_v31 = vpack.i.bf16 %v758_v63, %v756_v56  ;;  %v766_v8 = vsel %vm728_vm2, %v764_v7, %v765_v3  ;;  %v768_v6 = vsel %vm728_vm2, %v765_v3, %v767_v38  ;;  %v769_v26 = vrot.slane %v8804_v54, 2 }
  0x56   : > { %v770_v15 = vrot.slane %v8801_v53, 2  ;;  %v772_v50 = vrot.slane %v8807_v55, 2  ;;  %v761_v35 = vsel %vm728_vm2, %v759_v24, %v760_v20  ;;  %v763_v11 = vsel %vm728_vm2, %v760_v20, %v762_v40 }
  0x57   : > { %7152 = vrot.lane.b32.xlu0 %v9016_v34, %s8527_s27  ;;  %v9054_v1 = vpack.i.bf16 %v768_v6, %v766_v8  ;;  %v779_v7 = vrot.slane %v8881_v39, 2  ;;  %v780_v3 = vrot.slane %v8878_v37, 2  ;;  %v782_v38 = vrot.slane %v8884_v44, 2 }
  0x58   : > { %v9061_v56 = vpack.i.bf16 %v763_v11, %v761_v35  ;;  %v771_v63 = vsel %vm728_vm2, %v769_v26, %v770_v15  ;;  %v773_v55 = vsel %vm728_vm2, %v770_v15, %v772_v50  ;;  %v774_v24 = vrot.slane %v8839_v36, 2 }
  0x59   : > { %7162 = vrot.lane.b32.xlu2 %v9027_v43, %s8527_s27  ;;  %v775_v20 = vrot.slane %v8848_v48, 2  ;;  %v777_v40 = vrot.slane %v8851_v49, 2  ;;  %v9070_v8 = vpack.i.bf16 %v773_v55, %v771_v63  ;;  %v781_v6 = vsel %vm728_vm2, %v779_v7, %v780_v3 }
  0x5a   : > { %v783_v44 = vsel %vm728_vm2, %v780_v3, %v782_v38  ;;  %v784_v26 = vrot.slane %v8861_v60, 2  ;;  %v785_v15 = vrot.slane %v8858_v59, 2  ;;  %v787_v50 = vrot.slane %v8864_v13, 2 }
  0x5b   : > { %7157 = vrot.lane.b32.xlu1 %v9034_v47, %s8527_s27  ;;  %v776_v49 = vsel %vm728_vm2, %v774_v24, %v775_v20  ;;  %v778_v35 = vsel %vm728_vm2, %v775_v20, %v777_v40  ;;  %v9081_v11 = vpack.i.bf16 %v783_v44, %v781_v6  ;;  %v794_v7 = vrot.slane %v8941_v18, 2 }
  0x5c   : > { %v795_v3 = vrot.slane %v8938_v12, 2  ;;  %v797_v38 = vrot.slane %v8945_v45, 2  ;;  %v9088_v63 = vpack.i.bf16 %v778_v35, %v776_v49  ;;  %v786_v55 = vsel %vm728_vm2, %v784_v26, %v785_v15 }
  0x5d   : > { %v788_v13 = vsel %vm728_vm2, %v785_v15, %v787_v50  ;;  %v789_v24 = vrot.slane %v8907_v57, 2  ;;  %v790_v20 = vrot.slane %v8904_v19, 2  ;;  %v792_v40 = vrot.slane %v8910_v21, 2 }
  0x5e   : > { %v9097_v6 = vpack.i.bf16 %v788_v13, %v786_v55  ;;  %v796_v44 = vsel %vm728_vm2, %v794_v7, %v795_v3  ;;  %v798_v45 = vsel %vm728_vm2, %v795_v3, %v797_v38  ;;  %v799_v26 = vrot.slane %v8921_v16, 2 }
  0x5f   : > { %7167 = vrot.lane.b32.xlu0 %v9043_v31, %s8527_s27  ;;  %v800_v15 = vrot.slane %v8918_v58, 2  ;;  %v802_v50 = vrot.slane %v8924_v41, 2  ;;  %v791_v21 = vsel %vm728_vm2, %v789_v24, %v790_v20  ;;  %v793_v49 = vsel %vm728_vm2, %v790_v20, %v792_v40 }
  0x60   : > { %v9108_v35 = vpack.i.bf16 %v798_v45, %v796_v44  ;;  %v9112_v7 = vpack.i.bf16 %v793_v49, %v791_v21  ;;  %v804_v55 = vrot.slane %v8962_v52, 2  ;;  %v805_v13 = vrot.slane %v8959_v51, 2 }
  0x61   : > { %7177 = vrot.lane.b32.xlu2 %v9054_v1, %s8527_s27  ;;  %v801_v3 = vsel %vm728_vm2, %v799_v26, %v800_v15  ;;  %v803_v38 = vsel %vm728_vm2, %v800_v15, %v802_v50  ;;  %v807_v41 = vrot.slane %v8965_v14, 2  ;;  %v7221_v44 = vpack.i.bf16 %v8709_v33, %v8721_v42 }
  0x62   : > { %v9121_v24 = vpack.i.bf16 %v803_v38, %v801_v3  ;;  %v806_v20 = vsel %vm728_vm2, %v804_v55, %v805_v13  ;;  %v7226_v14 = vpack.i.bf16 %v8702_v30, %v8695_v25  ;;  %v9140_v26 = vpack.i.bf16 %v8686_v22, %v8689_v23 }
  0x63   : > { %7172 = vrot.lane.b32.xlu1 %v9061_v56, %s8527_s27  ;;  %v808_v40 = vsel %vm728_vm2, %v805_v13, %v807_v41  ;;  %v9145_v15 = vpack.i.bf16 %v8758_v9, %v8761_v10  ;;  %v9153_v21 = vpack.i.bf16 %v8744_v61, %v8747_v62  ;;  %v9159_v49 = vpack.i.bf16 %v8818_v4, %v8821_v5 }
  0x64   : > { %v9131_v45 = vpack.i.bf16 %v808_v40, %v806_v20  ;;  %v9165_v3 = vpack.i.bf16 %v8778_v27, %v8781_v28  ;;  %v9173_v55 = vpack.i.bf16 %v8801_v53, %v8804_v54  ;;  %v9179_v13 = vpack.i.bf16 %v8878_v37, %v8881_v39 }
  0x65   : > { %v9185_v41 = vpack.i.bf16 %v8848_v48, %v8839_v36  ;;  %v9193_v40 = vpack.i.bf16 %v8858_v59, %v8861_v60  ;;  %v12749_v37 = vrot.slane %v9199_v2, 7  ;;  %v9212_v59 = vpack.i.bf16 %v8904_v19, %v8907_v57 }
  0x66   : > { %12923 = vst [vmem:[#allocation45_spill] sm:$0xff] %v9131_v45  ;;  %v9220_v36 = vpack.i.bf16 %v8918_v58, %v8921_v16 }
  0x67   : > { %7182 = vrot.lane.b32.xlu0 %v9070_v8, %s8527_s27 }
  0x69   : > { %7192 = vrot.lane.b32.xlu2 %v9081_v11, %s8527_s27 }
  0x6b   : > { %7187 = vrot.lane.b32.xlu1 %v9088_v63, %s8527_s27 }
  0x6f   : > { %7197 = vrot.lane.b32.xlu0 %v9097_v6, %s8527_s27 }
  0x71   : > { %7207 = vrot.lane.b32.xlu2 %v9108_v35, %s8527_s27 }
  0x73   : > { %7202 = vrot.lane.b32.xlu1 %v9112_v7, %s8527_s27 }
  0x77   : > { %7212 = vrot.lane.b32.xlu0 %v9121_v24, %s8527_s27 }
  0x79   : > { %7222 = vrot.lane.b32.xlu2 %v7221_v44, %s8528_s28  ;;  %v382_v44 = vld [vmem:[%s8665_s25 + $0xf0] sm:$0xff] }
  0x7a   : > { %v529_v39 = vrot.slane %v382_v44, 7 }
  0x7b   : > { %7217 = vrot.lane.b32.xlu1 %v9131_v45, %s8527_s27  ;;  %v9205_v45 = vpack.i.bf16 %v8938_v12, %v8941_v18 }
  0x7c   : > { %v9225_v18 = vsel %vm481_vm0, %v529_v39, %v12749_v37  ;;  %v9228_v44 = vsel %vm481_vm0, 0.0, %v529_v39  ;;  %v9244_v37 = vpack.i.bf16 %v8959_v51, %v8962_v52  ;;  %v12931_v52 = vld [vmem:[#allocation12_spill] sm:$0xff] }
  0x7d   : > { %12926 = vst [vmem:[#allocation48_spill] sm:$0xff] %v9225_v18  ;;  %v9236_v57 = vpack.i.bf16 %v9225_v18, %v9228_v44 }
  0x7e   : > { %12927 = vst [vmem:[#allocation49_spill] sm:$0xff] %v9228_v44 }
  0x7f   : > { %7227 = vrot.lane.b32.xlu0 %v7226_v14, %s8528_s28  ;;  %12928 = vst [vmem:[#allocation50_spill] sm:$0xff] %v9236_v57 }
  0x80   : > { %12929 = vst [vmem:[#allocation51_spill] sm:$0xff] %v9244_v37 }
  0x81   : > { %7237 = vrot.lane.b32.xlu2 %v9140_v26, %s8528_s28 }
  0x83   : > { %v9149_v50 = vpop.permute.xlu2 %7082  ;;  %7232 = vrot.lane.b32.xlu1 %v9145_v15, %s8528_s28 }
  0x87   : > { %7242 = vrot.lane.b32.xlu0 %v9153_v21, %s8528_s28 }
  0x89   : > { %7252 = vrot.lane.b32.xlu2 %v9159_v49, %s8528_s28 }
  0x8b   : > { %v9169_v38 = vpop.permute.xlu2 %7087  ;;  %7247 = vrot.lane.b32.xlu1 %v9165_v3, %s8528_s28 }
  0x8f   : > { %7257 = vrot.lane.b32.xlu0 %v9173_v55, %s8528_s28 }
  0x91   : > { %7267 = vrot.lane.b32.xlu2 %v9179_v13, %s8528_s28 }
  0x93   : > { %v9189_v20 = vpop.permute.xlu2 %7102  ;;  %7262 = vrot.lane.b32.xlu1 %v9185_v41, %s8528_s28 }
  0x94   : > { %12924 = vst [vmem:[#allocation46_spill] sm:$0xff] %v9189_v20  ;;  %v9201_v32 = vpop.permute.xlu0 %7062 }
  0x97   : > { %7272 = vrot.lane.b32.xlu0 %v9193_v40, %s8528_s28 }
  0x99   : > { %7282 = vrot.lane.b32.xlu2 %v9205_v45, %s8528_s28 }
  0x9b   : > { %v9216_v60 = vpop.permute.xlu2 %7117  ;;  %7277 = vrot.lane.b32.xlu1 %v9212_v59, %s8528_s28 }
  0x9c   : > { %12925 = vst [vmem:[#allocation47_spill] sm:$0xff] %v9216_v60 }
  0x9d   : > { %v9232_v12 = vpop.permute.xlu1 %7072 }
  0x9f   : > { %7287 = vrot.lane.b32.xlu0 %v9220_v36, %s8528_s28  ;;  %v9240_v16 = vpop.permute.xlu0 %7067 }
  0xa1   : > { %7297 = vrot.lane.b32.xlu2 %v9236_v57, %s8528_s28 }
  0xa3   : > { %7292 = vrot.lane.b32.xlu1 %v9244_v37, %s8528_s28  ;;  %v9250_v39 = vpop.permute.xlu2 %7132  ;;  %s12803_s28 = smov 100  }
  0xa4   : > { %12930 = vst [vmem:[#allocation52_spill] sm:$0xff] %v9250_v39  ;;  %v12933_v39 = vld [vmem:[#allocation11_spill] sm:$0xff] }
  0xa5   : > { %v9252_v58 = vpop.permute.xlu1 %7077 }
  0xa7   : > { %7302 = vrot.lane.b32.xlu0 %v8752_v0, %s12794_s29  ;;  %v9256_v19 = vpop.permute.xlu0 %7092  ;;  %v12935_v0 = vld [vmem:[#allocation13_spill] sm:$0xff] }
  0xa9   : > { %7312 = vrot.lane.b32.xlu2 %v8795_v46, %s12794_s29 }
  0xab   : > { %7307 = vrot.lane.b32.xlu1 %v12931_v52, %s12794_s29  ;;  %v9262_v51 = vpop.permute.xlu2 %7147 }
  0xad   : > { %v9264_v57 = vpop.permute.xlu1 %7097 }
  0xae   : > { %12932 = vst [vmem:[#allocation12_spill] sm:$0xff] %v9264_v57 }
  0xaf   : > { %7317 = vrot.lane.b32.xlu0 %v12933_v39, %s12794_s29 }
  0xb1   : > { %v9268_v37 = vpop.permute.xlu0 %7107  ;;  %7327 = vrot.lane.b32.xlu2 %v9003_v17, %s8530_s14 }
  0xb2   : > { %12934 = vst [vmem:[#allocation11_spill] sm:$0xff] %v9268_v37 }
  0xb3   : > { %7322 = vrot.lane.b32.xlu1 %v12935_v0, %s12794_s29  ;;  %v9274_v60 = vpop.permute.xlu2 %7162 }
  0xb5   : > { %v9276_v48 = vpop.permute.xlu1 %7112 }
  0xb6   : > { %12936 = vst [vmem:[#allocation13_spill] sm:$0xff] %v9276_v48 }
  0xb7   : > { %7332 = vrot.lane.b32.xlu0 %v7226_v14, %s8531_s16 }
  0xb9   : > { %v9279_v54 = vpop.permute.xlu0 %7122  ;;  %7342 = vrot.lane.b32.xlu2 %v9016_v34, %s8532_s17 }
  0xba   : > { %12937 = vst [vmem:[#allocation53_spill] sm:$0xff] %v9279_v54 }
  0xbb   : > { %7337 = vrot.lane.b32.xlu1 %v12931_v52, %s8533_s22  ;;  %v9285_v17 = vpop.permute.xlu2 %7177 }
  0xbc   : > { %12938 = vst [vmem:[#allocation54_spill] sm:$0xff] %v9285_v17 }
  0xbd   : > { %v9287_v37 = vpop.permute.xlu1 %7127 }
  0xbe   : > { %12939 = vst [vmem:[#allocation55_spill] sm:$0xff] %v9287_v37  ;;  %v12946_v37 = vld [vmem:[#allocation17_spill] sm:$0xff] }
  0xbf   : > { %7347 = vrot.lane.b32.xlu0 %v9016_v34, %s8530_s14 }
  0xc1   : > { %v9291_v48 = vpop.permute.xlu0 %7137  ;;  %7357 = vrot.lane.b32.xlu2 %v8795_v46, %s8533_s22 }
  0xc2   : > { %12940 = vst [vmem:[#allocation56_spill] sm:$0xff] %v9291_v48 }
  0xc3   : > { %7352 = vrot.lane.b32.xlu1 %v9145_v15, %s8531_s16  ;;  %v9297_v14 = vpop.permute.xlu2 %7192 }
  0xc4   : > { %12941 = vst [vmem:[#allocation57_spill] sm:$0xff] %v9297_v14 }
  0xc5   : > { %v9299_v54 = vpop.permute.xlu1 %7142 }
  0xc6   : > { %v7144_v20 = vunpack.i.l.bf16 %v9299_v54 }
  0xc7   : > { %7362 = vrot.lane.b32.xlu0 %v9034_v47, %s8532_s17 }
  0xc9   : > { %v9303_v52 = vpop.permute.xlu0 %7152  ;;  %7372 = vrot.lane.b32.xlu2 %v9140_v26, %s8531_s16 }
  0xcb   : > { %7367 = vrot.lane.b32.xlu1 %v9034_v47, %s8530_s14  ;;  %v9309_v34 = vpop.permute.xlu2 %7207 }
  0xcc   : > { %12942 = vst [vmem:[#allocation58_spill] sm:$0xff] %v9309_v34 }
  0xcd   : > { %v9311_v46 = vpop.permute.xlu1 %7157 }
  0xcf   : > { %7377 = vrot.lane.b32.xlu0 %v12933_v39, %s8533_s22 }
  0xd1   : > { %v9315_v15 = vpop.permute.xlu0 %7167  ;;  %7387 = vrot.lane.b32.xlu2 %v9027_v43, %s8530_s14 }
  0xd3   : > { %7382 = vrot.lane.b32.xlu1 %v9027_v43, %s8532_s17  ;;  %v9321_v48 = vpop.permute.xlu2 %7222 }
  0xd4   : > { %v7224_v5 = vunpack.i.l.bf16 %v9321_v48 }
  0xd5   : > { %v9323_v26 = vpop.permute.xlu1 %7172 }
  0xd7   : > { %7392 = vrot.lane.b32.xlu0 %v9153_v21, %s8531_s16 }
  0xd9   : > { %v9327_v47 = vpop.permute.xlu0 %7182  ;;  %7402 = vrot.lane.b32.xlu2 %v9043_v31, %s8532_s17 }
  0xda   : > { %12943 = vst [vmem:[#allocation59_spill] sm:$0xff] %v9327_v47 }
  0xdb   : > { %7397 = vrot.lane.b32.xlu1 %v12935_v0, %s8533_s22  ;;  %v9333_v39 = vpop.permute.xlu2 %7237 }
  0xdd   : > { %v9335_v34 = vpop.permute.xlu1 %7187 }
  0xde   : > { %12944 = vst [vmem:[#allocation60_spill] sm:$0xff] %v9335_v34  ;;  %v12960_v34 = vld [vmem:[#allocation26_spill] sm:$0xff] }
  0xdf   : > { %7407 = vrot.lane.b32.xlu0 %v9043_v31, %s8530_s14 }
  0xe1   : > { %v9339_v43 = vpop.permute.xlu0 %7197  ;;  %7417 = vrot.lane.b32.xlu2 %v12946_v37, %s8533_s22 }
  0xe2   : > { %12945 = vst [vmem:[#allocation61_spill] sm:$0xff] %v9339_v43 }
  0xe3   : > { %7412 = vrot.lane.b32.xlu1 %v9165_v3, %s8531_s16  ;;  %v9345_v21 = vpop.permute.xlu2 %7252 }
  0xe4   : > { %12947 = vst [vmem:[#allocation17_spill] sm:$0xff] %v9345_v21 }
  0xe5   : > { %v9347_v14 = vpop.permute.xlu1 %7202 }
  0xe6   : > { %12948 = vst [vmem:[#allocation62_spill] sm:$0xff] %v9347_v14 }
  0xe7   : > { %7422 = vrot.lane.b32.xlu0 %v9061_v56, %s8532_s17 }
  0xe9   : > { %v9351_v0 = vpop.permute.xlu0 %7212  ;;  %7432 = vrot.lane.b32.xlu2 %v9061_v56, %s8530_s14 }
  0xea   : > { %12949 = vst [vmem:[#allocation63_spill] sm:$0xff] %v9351_v0  ;;  %v12952_v0 = vld [vmem:[#allocation23_spill] sm:$0xff] }
  0xeb   : > { %7427 = vrot.lane.b32.xlu1 %v12946_v37, %s12794_s29  ;;  %v9357_v31 = vpop.permute.xlu2 %7267 }
  0xec   : > { %12950 = vst [vmem:[#allocation64_spill] sm:$0xff] %v9357_v31  ;;  %v12955_v31 = vld [vmem:[#allocation20_spill] sm:$0xff] }
  0xed   : > { %v9359_v43 = vpop.permute.xlu1 %7217 }
  0xee   : > { %12951 = vst [vmem:[#allocation65_spill] sm:$0xff] %v9359_v43 }
  0xef   : > { %7437 = vrot.lane.b32.xlu0 %v9159_v49, %s8531_s16 }
  0xf1   : > { %v9363_v3 = vpop.permute.xlu0 %7227  ;;  %7447 = vrot.lane.b32.xlu2 %v9054_v1, %s8532_s17 }
  0xf3   : > { %7442 = vrot.lane.b32.xlu1 %v12952_v0, %s8533_s22  ;;  %v9369_v14 = vpop.permute.xlu2 %7282 }
  0xf4   : > { %12953 = vst [vmem:[#allocation23_spill] sm:$0xff] %v9369_v14 }
  0xf5   : > { %v9371_v56 = vpop.permute.xlu1 %7232 }
  0xf7   : > { %7452 = vrot.lane.b32.xlu0 %v12952_v0, %s12794_s29 }
  0xf9   : > { %v9375_v37 = vpop.permute.xlu0 %7242  ;;  %7462 = vrot.lane.b32.xlu2 %v9173_v55, %s8531_s16 }
  0xfb   : > { %7457 = vrot.lane.b32.xlu1 %v9054_v1, %s8530_s14  ;;  %v9381_v49 = vpop.permute.xlu2 %7297 }
  0xfc   : > { %12954 = vst [vmem:[#allocation66_spill] sm:$0xff] %v9381_v49  ;;  %v1871_v49 = vld [vmem:[%s12959_s2 + $0x8] sm:$0x1] }
  0xfd   : > { %v9383_v43 = vpop.permute.xlu1 %7247 }
  0xff   : > { %7467 = vrot.lane.b32.xlu0 %v12955_v31, %s8533_s22 }
 0x101   : > { %v9387_v14 = vpop.permute.xlu0 %7257  ;;  %7477 = vrot.lane.b32.xlu2 %v12955_v31, %s12794_s29  ;;  %v1881_v31 = vunpack.c.l.b16 %v1871_v49  ;;  %v6827_v49 = vld [vmem:[%s12959_s2] sm:$0xff] }
 0x102   : > { %12956 = vst [vmem:[#allocation20_spill] sm:$0xff] %v9387_v14 }
 0x103   : > { %7472 = vrot.lane.b32.xlu1 %v9070_v8, %s8532_s17  ;;  %v9393_v0 = vpop.permute.xlu2 %7312  ;;  %v1883_v47 = vpack.c.b16 %v1881_v31, %v1881_v31 }
 0x105   : > { %v9395_v55 = vpop.permute.xlu1 %7262 }
 0x106   : > { %12957 = vst [vmem:[#allocation67_spill] sm:$0xff] %v9395_v55 }
 0x107   : > { %7482 = vrot.lane.b32.xlu0 %v9070_v8, %s8530_s14  ;;  %v1935_v8 = vsel %vm481_vm0, %v1883_v47, 0 }
 0x108   : > { %1943 = vmatpush.bf16.msra.mxu0 %v1935_v8  ;;  %6994 = vmatpush.bf16.msra.mxu1 %v1935_v8 }
 0x109   : > { %v9399_v1 = vpop.permute.xlu0 %7272  ;;  %7492 = vrot.lane.b32.xlu2 %v12960_v34, %s8533_s22  ;;  %6995 = vmatpush.bf16.msra.mxu2 %v1935_v8 }
 0x10a   : > { %12958 = vst [vmem:[#allocation68_spill] sm:$0xff] %v9399_v1  ;;  %6996 = vmatpush.bf16.msra.mxu3 %v1935_v8 }
 0x10b   : > { %7487 = vrot.lane.b32.xlu1 %v9185_v41, %s8531_s16  ;;  %v9408_v53 = vpop.permute.xlu2 %7327 }
 0x10c   : > { %1944 = vmatpush.bf16.msra.mxu0 %v6827_v49  ;;  %6997 = vmatpush.bf16.msra.mxu1 %v6827_v49 }
 0x10d   : > { %v9410_v55 = vpop.permute.xlu1 %7277  ;;  %6998 = vmatpush.bf16.msra.mxu2 %v6827_v49 }
 0x10e   : > { %12961 = vst [vmem:[#allocation26_spill] sm:$0xff] %v9410_v55  ;;  %6999 = vmatpush.bf16.msra.mxu3 %v6827_v49  ;;  %v7145_v55 = vunpack.i.h.bf16 %v9299_v54 }
 0x10f   : > { %7497 = vrot.lane.b32.xlu0 %v9088_v63, %s8532_s17 }
 0x111   : > { %v9415_v1 = vpop.permute.xlu0 %7287  ;;  %7507 = vrot.lane.b32.xlu2 %v9088_v63, %s8530_s14  ;;  %v12964_v63 = vld [vmem:[#allocation32_spill] sm:$0xff] }
 0x112   : > { %12962 = vst [vmem:[#allocation69_spill] sm:$0xff] %v9415_v1 }
 0x113   : > { %7502 = vrot.lane.b32.xlu1 %v12960_v34, %s12794_s29  ;;  %v9424_v41 = vpop.permute.xlu2 %7342 }
 0x115   : > { %v9426_v47 = vpop.permute.xlu1 %7292 }
 0x116   : > { %12963 = vst [vmem:[#allocation70_spill] sm:$0xff] %v9426_v47  ;;  %v7064_v47 = vunpack.i.l.bf16 %v9201_v32 }
 0x117   : > { %7512 = vrot.lane.b32.xlu0 %v9179_v13, %s8531_s16  ;;  %v7065_v13 = vunpack.i.h.bf16 %v9201_v32  ;;  %v12966_v32 = vld [vmem:[#allocation29_spill] sm:$0xff] }
 0x119   : > { %v7303_v31 = vpop.permute.xlu0 %7302  ;;  %7522 = vrot.lane.b32.xlu2 %v9081_v11, %s8532_s17 }
 0x11a   : > { %v7305_v57 = vunpack.i.h.bf16 %v7303_v31  ;;  %v7304_v27 = vunpack.i.l.bf16 %v7303_v31 }
 0x11b   : > { %7517 = vrot.lane.b32.xlu1 %v12964_v63, %s8533_s22  ;;  %v9434_v8 = vpop.permute.xlu2 %7357 }
 0x11d   : > { %v9436_v34 = vpop.permute.xlu1 %7307 }
 0x11f   : > { %7527 = vrot.lane.b32.xlu0 %v12964_v63, %s12794_s29  ;;  %v7225_v63 = vunpack.i.h.bf16 %v9321_v48 }
 0x121   : > { %v9440_v49 = vpop.permute.xlu0 %7317  ;;  %7537 = vrot.lane.b32.xlu2 %v9193_v40, %s8531_s16  ;;  %v12965_v40 = vld [vmem:[#allocation6_spill] sm:$0xff] }
 0x122   : > { %v1591_v14 = vsel %vm12813_vm3, %v12965_v40, %v7065_v13  ;;  %v7330_v13 = vunpack.i.h.bf16 %v9408_v53  ;;  %v7329_v40 = vunpack.i.l.bf16 %v9408_v53 }
 0x123   : > { %7532 = vrot.lane.b32.xlu1 %v9081_v11, %s8530_s14  ;;  %v9448_v1 = vpop.permute.xlu2 %7372  ;;  %v12967_v11 = vld [vmem:[#allocation7_spill] sm:$0xff]  ;;  %v1624_v54 = vsel %vm1622_vm4, %v1591_v14, %v7145_v55 }
 0x124   : > { %v1590_v17 = vsel %vm12813_vm3, %v12967_v11, %v7064_v47  ;;  %v1657_v18 = vsel %vm1655_vm5, %v1624_v54, %v7225_v63  ;;  %v7069_v54 = vunpack.i.l.bf16 %v9240_v16 }
 0x125   : > { %v9454_v4 = vpop.permute.xlu1 %7322  ;;  %v1623_v21 = vsel %vm1622_vm4, %v1590_v17, %v7144_v20  ;;  %v1690_v47 = vsel %vm1688_vm6, %v1657_v18, %v7305_v57 }
 0x126   : > { %v1656_v44 = vsel %vm1655_vm5, %v1623_v21, %v7224_v5  ;;  %v7345_v5 = vunpack.i.h.bf16 %v9424_v41  ;;  %v7344_v21 = vunpack.i.l.bf16 %v9424_v41  ;;  %v1723_v57 = vsel %vm1721_vm7, %v1690_v47, %v7330_v13 }
 0x127   : > { %7542 = vrot.lane.b32.xlu0 %v12966_v32, %s8533_s22  ;;  %v1689_v14 = vsel %vm1688_vm6, %v1656_v44, %v7304_v27  ;;  %v7070_v44 = vunpack.i.h.bf16 %v9240_v16  ;;  %v7150_v41 = vunpack.i.h.bf16 %v9262_v51  ;;  %v7149_v47 = vunpack.i.l.bf16 %v9262_v51 }
 0x128   : > { %v1722_v53 = vsel %vm1721_vm7, %v1689_v14, %v7329_v40  ;;  %v7229_v16 = vunpack.i.l.bf16 %v9363_v3 }
 0x129   : > { %v7333_v48 = vpop.permute.xlu0 %7332  ;;  %7552 = vrot.lane.b32.xlu2 %v12966_v32, %s12794_s29 }
 0x12a   : > { %v7335_v55 = vunpack.i.h.bf16 %v7333_v48  ;;  %v7334_v20 = vunpack.i.l.bf16 %v7333_v48 }
 0x12b   : > { %7547 = vrot.lane.b32.xlu1 %v9097_v6, %s8532_s17  ;;  %v9474_v17 = vpop.permute.xlu2 %7387 }
 0x12c   : > { %v1755_v63 = vsel %vm1754_vm8, %v1722_v53, %v7334_v20  ;;  %v1756_v32 = vsel %vm1754_vm8, %v1723_v57, %v7335_v55  ;;  %v12968_v20 = vld [vmem:[#allocation35_spill] sm:$0xff]  ;;  %v7230_v55 = vunpack.i.h.bf16 %v9363_v3  ;;  %v7310_v53 = vunpack.i.h.bf16 %v9436_v34 }
 0x12d   : > { %v7338_v31 = vpop.permute.xlu1 %7337  ;;  %v7309_v57 = vunpack.i.l.bf16 %v9436_v34 }
 0x12e   : > { %v7340_v27 = vunpack.i.h.bf16 %v7338_v31  ;;  %v7339_v18 = vunpack.i.l.bf16 %v7338_v31 }
 0x12f   : > { %7557 = vrot.lane.b32.xlu0 %v9097_v6, %s8530_s14 }
 0x130   : > { %v1788_v40 = vsel %vm1787_vm9, %v1755_v63, %v7339_v18  ;;  %v1789_v13 = vsel %vm1787_vm9, %v1756_v32, %v7340_v27 }
 0x131   : > { %v7348_v48 = vpop.permute.xlu0 %7347  ;;  %v1821_v14 = vsel %vm1820_vm10, %v1788_v40, %v7344_v21  ;;  %v1822_v6 = vsel %vm1820_vm10, %v1789_v13, %v7345_v5  ;;  %7567 = vrot.lane.b32.xlu2 %v12968_v20, %s8533_s22  ;;  %v1593_v5 = vsel %vm12813_vm3, %v8709_v33, %v7070_v44  ;;  %v1592_v21 = vsel %vm12813_vm3, %v8721_v42, %v7069_v54 }
 0x132   : > { %v1853_v31 = vpack.c.bf16 %v1822_v6, %v1821_v14  ;;  %v7350_v27 = vunpack.i.h.bf16 %v7348_v48  ;;  %v7349_v18 = vunpack.i.l.bf16 %v7348_v48  ;;  %v1625_v3 = vsel %vm1622_vm4, %v1592_v21, %v7149_v47 }
 0x133   : > { %7562 = vrot.lane.b32.xlu1 %v9212_v59, %s8531_s16  ;;  %v9500_v51 = vpop.permute.xlu2 %7402  ;;  %v1626_v63 = vsel %vm1622_vm4, %v1593_v5, %v7150_v41  ;;  %v1658_v32 = vsel %vm1655_vm5, %v1625_v3, %v7229_v16  ;;  %v7360_v44 = vunpack.i.h.bf16 %v9434_v8  ;;  %v7359_v54 = vunpack.i.l.bf16 %v9434_v8 }
 0x134   : > { %6219 = vmatmul.msk.bf16.vlgmr.msra.gmra.mxu0 %vm1885_vm11, %v1853_v31  ;;  %v1659_v59 = vsel %vm1655_vm5, %v1626_v63, %v7230_v55  ;;  %v1691_v33 = vsel %vm1688_vm6, %v1658_v32, %v7309_v57  ;;  %v7074_v5 = vunpack.i.l.bf16 %v9232_v12  ;;  %v7155_v3 = vunpack.i.h.bf16 %v9303_v52 }
 0x135   : > { %v7353_v34 = vpop.permute.xlu1 %7352  ;;  %v1692_v42 = vsel %vm1688_vm6, %v1659_v59, %v7310_v53  ;;  %v1724_v41 = vsel %vm1721_vm7, %v1691_v33, %v7349_v18  ;;  %v7234_v63 = vunpack.i.l.bf16 %v9371_v56 }
 0x136   : > { %v7355_v40 = vunpack.i.h.bf16 %v7353_v34  ;;  %v7354_v13 = vunpack.i.l.bf16 %v7353_v34  ;;  %v1725_v48 = vsel %vm1721_vm7, %v1692_v42, %v7350_v27  ;;  %v7075_v27 = vunpack.i.h.bf16 %v9232_v12 }
 0x137   : > { %7572 = vrot.lane.b32.xlu0 %v9112_v7, %s8532_s17  ;;  %v7314_v34 = vunpack.i.l.bf16 %v9393_v0  ;;  %v1594_v59 = vsel %vm12813_vm3, %v8695_v25, %v7074_v5  ;;  %v7315_v12 = vunpack.i.h.bf16 %v9393_v0 }
 0x138   : > { %v1757_v14 = vsel %vm1754_vm8, %v1724_v41, %v7354_v13  ;;  %v1758_v6 = vsel %vm1754_vm8, %v1725_v48, %v7355_v40  ;;  %v12969_v40 = vld [vmem:[#allocation41_spill] sm:$0xff]  ;;  %v7375_v41 = vunpack.i.h.bf16 %v9448_v1  ;;  %v7374_v48 = vunpack.i.l.bf16 %v9448_v1 }
 0x139   : > { %v7363_v47 = vpop.permute.xlu0 %7362  ;;  %7582 = vrot.lane.b32.xlu2 %v9112_v7, %s8530_s14  ;;  %v1790_v31 = vsel %vm1787_vm9, %v1757_v14, %v7359_v54  ;;  %v1791_v8 = vsel %vm1787_vm9, %v1758_v6, %v7360_v44 }
 0x13a   : > { %v7365_v55 = vunpack.i.h.bf16 %v7363_v47  ;;  %v7364_v16 = vunpack.i.l.bf16 %v7363_v47 }
 0x13b   : > { %7577 = vrot.lane.b32.xlu1 %v12968_v20, %s12794_s29  ;;  %v9527_v57 = vpop.permute.xlu2 %7417  ;;  %v7154_v20 = vunpack.i.l.bf16 %v9303_v52  ;;  %v1595_v52 = vsel %vm12813_vm3, %v8702_v30, %v7075_v27 }
 0x13c   : > { %v1823_v21 = vsel %vm1820_vm10, %v1790_v31, %v7364_v16  ;;  %v1824_v7 = vsel %vm1820_vm10, %v1791_v8, %v7365_v55 }
 0x13d   : > { %v7368_v53 = vpop.permute.xlu1 %7367  ;;  %v1854_v32 = vpack.c.bf16 %v1824_v7, %v1823_v21  ;;  %v1627_v13 = vsel %vm1622_vm4, %v1594_v59, %v7154_v20  ;;  %v7085_v21 = vunpack.i.h.bf16 %v9149_v50  ;;  %v7084_v7 = vunpack.i.l.bf16 %v9149_v50 }
 0x13e   : > { %v7370_v33 = vunpack.i.h.bf16 %v7368_v53  ;;  %v7369_v42 = vunpack.i.l.bf16 %v7368_v53  ;;  %v1660_v44 = vsel %vm1655_vm5, %v1627_v13, %v7234_v63  ;;  %v7090_v20 = vunpack.i.h.bf16 %v9169_v38 }
 0x13f   : > { %7587 = vrot.lane.b32.xlu0 %v9205_v45, %s8531_s16  ;;  %v7235_v45 = vunpack.i.h.bf16 %v9371_v56  ;;  %v1628_v56 = vsel %vm1622_vm4, %v1595_v52, %v7155_v3  ;;  %v1693_v0 = vsel %vm1688_vm6, %v1660_v44, %v7314_v34  ;;  %v7080_v63 = vunpack.i.h.bf16 %v9252_v58 }
 0x140   : > { %v1726_v14 = vsel %vm1721_vm7, %v1693_v0, %v7369_v42  ;;  %v7079_v50 = vunpack.i.l.bf16 %v9252_v58  ;;  %v7094_v59 = vunpack.i.l.bf16 %v9256_v19  ;;  %v7159_v52 = vunpack.i.l.bf16 %v9311_v46 }
 0x141   : > { %v7378_v18 = vpop.permute.xlu0 %7377  ;;  %7597 = vrot.lane.b32.xlu2 %v9108_v35, %s8532_s17  ;;  %v1661_v25 = vsel %vm1655_vm5, %v1628_v56, %v7235_v45  ;;  %v1759_v1 = vsel %vm1754_vm8, %v1726_v14, %v7374_v48  ;;  %v1597_v42 = vsel %vm12813_vm3, %v8758_v9, %v7080_v63  ;;  %v7160_v56 = vunpack.i.h.bf16 %v9311_v46 }
 0x142   : > { %v1694_v30 = vsel %vm1688_vm6, %v1661_v25, %v7315_v12  ;;  %v7380_v16 = vunpack.i.h.bf16 %v7378_v18  ;;  %v7379_v31 = vunpack.i.l.bf16 %v7378_v18  ;;  %v12970_v18 = vld [vmem:[#allocation38_spill] sm:$0xff]  ;;  %v1599_v12 = vsel %vm12813_vm3, %v8686_v22, %v7085_v21 }
 0x143   : > { %7592 = vrot.lane.b32.xlu1 %v12969_v40, %s8533_s22  ;;  %v9560_v47 = vpop.permute.xlu2 %7432  ;;  %v1727_v6 = vsel %vm1721_vm7, %v1694_v30, %v7370_v33  ;;  %v1601_v33 = vsel %vm12813_vm3, %v8744_v61, %v7090_v20  ;;  %v1596_v22 = vsel %vm12813_vm3, %v8761_v10, %v7079_v50  ;;  %v7240_v44 = vunpack.i.h.bf16 %v9333_v39 }
 0x144   : > { %6220 = vmatmul.msk.bf16.gmra.mxu0 %vm1885_vm11, %v1854_v32  ;;  %v1760_v5 = vsel %vm1754_vm8, %v1727_v6, %v7375_v41  ;;  %v1792_v3 = vsel %vm1787_vm9, %v1759_v1, %v7379_v31  ;;  %v7239_v61 = vunpack.i.l.bf16 %v9333_v39  ;;  %v7165_v9 = vunpack.i.h.bf16 %v9274_v60 }
 0x145   : > { %v7383_v54 = vpop.permute.xlu1 %7382  ;;  %v7320_v46 = vunpack.i.h.bf16 %v9440_v49  ;;  %v7164_v10 = vunpack.i.l.bf16 %v9274_v60  ;;  %v1629_v0 = vsel %vm1622_vm4, %v1596_v22, %v7159_v52  ;;  %v7390_v39 = vunpack.i.h.bf16 %v9474_v17 }
 0x146   : > { %v7385_v8 = vunpack.i.h.bf16 %v7383_v54  ;;  %v7384_v53 = vunpack.i.l.bf16 %v7383_v54  ;;  %v7319_v54 = vunpack.i.l.bf16 %v9440_v49  ;;  %v7389_v30 = vunpack.i.l.bf16 %v9474_v17 }
 0x147   : > { %7602 = vrot.lane.b32.xlu0 %v12969_v40, %s12794_s29  ;;  %v1598_v40 = vsel %vm12813_vm3, %v8689_v23, %v7084_v7  ;;  %v7095_v23 = vunpack.i.h.bf16 %v9256_v19  ;;  %v1630_v41 = vsel %vm1622_vm4, %v1597_v42, %v7160_v56  ;;  %v1662_v49 = vsel %vm1655_vm5, %v1629_v0, %v7239_v61 }
 0x148   : > { %v1825_v45 = vsel %vm1820_vm10, %v1792_v3, %v7384_v53  ;;  %v1663_v14 = vsel %vm1655_vm5, %v1630_v41, %v7240_v44  ;;  %v7170_v31 = vunpack.i.h.bf16 %v9315_v15  ;;  %v7169_v17 = vunpack.i.l.bf16 %v9315_v15 }
 0x149   : > { %v9564_v55 = vpop.permute.xlu0 %7392  ;;  %7612 = vrot.lane.b32.xlu2 %v9220_v36, %s8531_s16  ;;  %v7089_v36 = vunpack.i.l.bf16 %v9169_v38  ;;  %v1695_v53 = vsel %vm1688_vm6, %v1662_v49, %v7319_v54  ;;  %v1631_v1 = vsel %vm1622_vm4, %v1598_v40, %v7164_v10  ;;  %v7405_v7 = vunpack.i.h.bf16 %v9500_v51 }
 0x14a   : > { %v7394_v48 = vunpack.i.l.bf16 %v9564_v55  ;;  %v7250_v3 = vunpack.i.h.bf16 %v9383_v43  ;;  %v7245_v50 = vunpack.i.h.bf16 %v9375_v37  ;;  %v7325_v40 = vunpack.i.h.bf16 %v9454_v4 }
 0x14b   : > { %7607 = vrot.lane.b32.xlu1 %v9108_v35, %s8530_s14  ;;  %v1793_v35 = vsel %vm1787_vm9, %v1760_v5, %v7380_v16  ;;  %v9589_v38 = vpop.permute.xlu2 %7447  ;;  %v1600_v58 = vsel %vm12813_vm3, %v8747_v62, %v7089_v36  ;;  %v9613_v62 = vsel %vm12813_vm3, %v8781_v28, %v7094_v59  ;;  %v7395_v28 = vunpack.i.h.bf16 %v9564_v55 }
 0x14c   : > { %v1826_v34 = vsel %vm1820_vm10, %v1793_v35, %v7385_v8  ;;  %v1696_v8 = vsel %vm1688_vm6, %v1663_v14, %v7320_v46  ;;  %v1632_v55 = vsel %vm1622_vm4, %v1599_v12, %v7165_v9  ;;  %v1728_v5 = vsel %vm1721_vm7, %v1695_v53, %v7389_v30 }
 0x14d   : > { %v9574_v27 = vpop.permute.xlu1 %7397  ;;  %v1855_v13 = vpack.c.bf16 %v1826_v34, %v1825_v45  ;;  %v1729_v21 = vsel %vm1721_vm7, %v1696_v8, %v7390_v39  ;;  %v1761_v20 = vsel %vm1754_vm8, %v1728_v5, %v7394_v48  ;;  %v7249_v35 = vunpack.i.l.bf16 %v9383_v43 }
 0x14e   : > { %v7400_v6 = vunpack.i.h.bf16 %v9574_v27  ;;  %v7399_v60 = vunpack.i.l.bf16 %v9574_v27  ;;  %v7404_v27 = vunpack.i.l.bf16 %v9500_v51  ;;  %v1762_v15 = vsel %vm1754_vm8, %v1729_v21, %v7395_v28 }
 0x14f   : > { %7617 = vrot.lane.b32.xlu0 %v12970_v18, %s8533_s22  ;;  %v1634_v34 = vsel %vm1622_vm4, %v1601_v33, %v7170_v31  ;;  %v1633_v51 = vsel %vm1622_vm4, %v1600_v58, %v7169_v17  ;;  %v7244_v59 = vunpack.i.l.bf16 %v9375_v37  ;;  %v7174_v43 = vunpack.i.l.bf16 %v9323_v26 }
 0x150   : > { %v1794_v63 = vsel %vm1787_vm9, %v1761_v20, %v7399_v60  ;;  %v1795_v45 = vsel %vm1787_vm9, %v1762_v15, %v7400_v6  ;;  %v1666_v33 = vsel %vm1655_vm5, %v1633_v51, %v7249_v35  ;;  %v1667_v58 = vsel %vm1655_vm5, %v1634_v34, %v7250_v3 }
 0x151   : > { %v9586_v32 = vpop.permute.xlu0 %7407  ;;  %v1827_v42 = vsel %vm1820_vm10, %v1794_v63, %v7404_v27  ;;  %v1828_v56 = vsel %vm1820_vm10, %v1795_v45, %v7405_v7  ;;  %v7435_v22 = vunpack.i.h.bf16 %v9560_v47  ;;  %v7434_v37 = vunpack.i.l.bf16 %v9560_v47  ;;  %v12973_v27 = vld [vmem:[#allocation48_spill] sm:$0xff] }
 0x152   : > { %v1665_v61 = vsel %vm1655_vm5, %v1632_v55, %v7245_v50  ;;  %v7420_v0 = vunpack.i.h.bf16 %v9527_v57  ;;  %v1856_v39 = vpack.c.bf16 %v1828_v56, %v1827_v42  ;;  %v7419_v30 = vunpack.i.l.bf16 %v9527_v57 }
 0x153   : > { %7622 = vrot.lane.b32.xlu1 %v9121_v24, %s8532_s17  ;;  %v9645_v36 = vpop.permute.xlu2 %7462  ;;  %v1698_v10 = vsel %vm1688_vm6, %v1665_v61, %v7325_v40  ;;  %v12971_v28 = vrot.slane %v9199_v2, 7  ;;  %v7410_v14 = vunpack.i.h.bf16 %v9586_v32  ;;  %v7409_v49 = vunpack.i.l.bf16 %v9586_v32  ;;  %v12972_v32 = vld [vmem:[#allocation49_spill] sm:$0xff]  ;;  %v12975_v61 = vld [vmem:[#allocation14_spill] sm:$0xff] }
 0x154   : > { %6221 = vmatmul.msk.bf16.gmra.mxu0 %vm1885_vm11, %v1855_v13  ;;  %v7450_v57 = vunpack.i.h.bf16 %v9589_v38  ;;  %v7449_v31 = vunpack.i.l.bf16 %v9589_v38  ;;  %v811_v5 = vrot.slane %v12972_v32, 1  ;;  %v812_v20 = vrot.slane %v12973_v27, 1 }
 0x155   : > { %v9618_v25 = vpop.permute.xlu1 %7412  ;;  %v9679_v48 = vsel %vm481_vm0, %v12971_v28, 0.0  ;;  %v1731_v3 = vsel %vm1721_vm7, %v1698_v10, %v7410_v14 }
 0x156   : > { %v7415_v17 = vunpack.i.h.bf16 %v9618_v25  ;;  %v7414_v2 = vunpack.i.l.bf16 %v9618_v25  ;;  %v814_v15 = vrot.slane %v9679_v48, 1  ;;  %v813_v56 = vsel %vm647_vm1, %v811_v5, %v812_v20 }
 0x158   : > { %v1764_v34 = vsel %vm1754_vm8, %v1731_v3, %v7415_v17  ;;  %v12976_v17 = vld [vmem:[#allocation12_spill] sm:$0xff] }
 0x159   : > { %v9631_v16 = vpop.permute.xlu0 %7422 }
 0x15a   : > { %v7424_v42 = vunpack.i.l.bf16 %v9631_v16 }
 0x15b   : > { %7637 = vrot.lane.b32.xlu1 %v12970_v18, %s12794_s29  ;;  %v7324_v18 = vunpack.i.l.bf16 %v9454_v4  ;;  %v1664_v4 = vsel %vm1655_vm5, %v1631_v1, %v7244_v59  ;;  %v9690_v8 = vpop.permute.xlu2 %7477  ;;  %v7175_v59 = vunpack.i.h.bf16 %v9323_v26  ;;  %v7465_v26 = vunpack.i.h.bf16 %v9645_v36 }
 0x15d   : > { %v7428_v12 = vpop.permute.xlu1 %7427  ;;  %v1697_v54 = vsel %vm1688_vm6, %v1664_v4, %v7324_v18 }
 0x15e   : > { %v7430_v52 = vunpack.i.h.bf16 %v7428_v12  ;;  %v7429_v13 = vunpack.i.l.bf16 %v7428_v12  ;;  %v1730_v38 = vsel %vm1721_vm7, %v1697_v54, %v7409_v49  ;;  %v12974_v12 = vld [vmem:[#allocation17_spill] sm:$0xff] }
 0x15f   : > { %v1763_v45 = vsel %vm1754_vm8, %v1730_v38, %v7414_v2  ;;  %v7255_v40 = vunpack.i.h.bf16 %v12974_v12  ;;  %v7254_v18 = vunpack.i.l.bf16 %v12974_v12  ;;  %v7100_v2 = vunpack.i.h.bf16 %v12976_v17  ;;  %v12979_v12 = vld [vmem:[#allocation18_spill] sm:$0xff] }
 0x160   : > { %v1699_v9 = vsel %vm1688_vm6, %v1666_v33, %v7429_v13  ;;  %v1700_v46 = vsel %vm1688_vm6, %v1667_v58, %v7430_v52  ;;  %v7425_v13 = vunpack.i.h.bf16 %v9631_v16  ;;  %v815_v33 = vsel %vm647_vm1, %v812_v20, %v814_v15 }
 0x161   : > { %v7438_v44 = vpop.permute.xlu0 %7437  ;;  %v1732_v6 = vsel %vm1721_vm7, %v1699_v9, %v7434_v37  ;;  %v1733_v60 = vsel %vm1721_vm7, %v1700_v46, %v7435_v22  ;;  %v1796_v37 = vsel %vm1787_vm9, %v1763_v45, %v7419_v30  ;;  %v1603_v16 = vsel %vm12813_vm3, %v12975_v61, %v7095_v23 }
 0x162   : > { %v7440_v41 = vunpack.i.h.bf16 %v7438_v44  ;;  %v7439_v47 = vunpack.i.l.bf16 %v7438_v44  ;;  %v1797_v44 = vsel %vm1787_vm9, %v1764_v34, %v7420_v0  ;;  %v1636_v9 = vsel %vm1622_vm4, %v1603_v16, %v7175_v59 }
 0x163   : > { %7652 = vrot.lane.b32.xlu1 %v8984_v29, %s8533_s22  ;;  %v9728_v0 = vpop.permute.xlu2 %7492  ;;  %v7681_v19 = vpack.i.bf16 %v815_v33, %v813_v56  ;;  %v1829_v30 = vsel %vm1820_vm10, %v1796_v37, %v7424_v42  ;;  %v1830_v23 = vsel %vm1820_vm10, %v1797_v44, %v7425_v13  ;;  %v7479_v59 = vunpack.i.l.bf16 %v9690_v8 }
 0x164   : > { %6222 = vmatmul.msk.bf16.gmra.mxu0 %vm1885_vm11, %v1856_v39  ;;  %v1765_v21 = vsel %vm1754_vm8, %v1732_v6, %v7439_v47  ;;  %v1766_v7 = vsel %vm1754_vm8, %v1733_v60, %v7440_v41  ;;  %v1669_v39 = vsel %vm1655_vm5, %v1636_v9, %v7255_v40  ;;  %v1857_v49 = vpack.c.bf16 %v1830_v23, %v1829_v30 }
 0x165   : > { %v7443_v53 = vpop.permute.xlu1 %7442  ;;  %v1605_v40 = vsel %vm12813_vm3, %v12979_v12, %v7100_v2  ;;  %v7494_v37 = vunpack.i.l.bf16 %v9728_v0  ;;  %v12984_v2 = vld [vmem:[#allocation15_spill] sm:$0xff] }
 0x166   : > { %v7445_v55 = vunpack.i.h.bf16 %v7443_v53  ;;  %v7444_v1 = vunpack.i.l.bf16 %v7443_v53 }
 0x168   : > { %v1798_v35 = vsel %vm1787_vm9, %v1765_v21, %v7444_v1  ;;  %v1799_v63 = vsel %vm1787_vm9, %v1766_v7, %v7445_v55  ;;  %v7099_v1 = vunpack.i.l.bf16 %v12976_v17  ;;  %v12977_v7 = vld [vmem:[#allocation54_spill] sm:$0xff] }
 0x169   : > { %v7453_v25 = vpop.permute.xlu0 %7452  ;;  %v1831_v51 = vsel %vm1820_vm10, %v1798_v35, %v7449_v31  ;;  %v1832_v50 = vsel %vm1820_vm10, %v1799_v63, %v7450_v57  ;;  %v7180_v20 = vunpack.i.h.bf16 %v12977_v7  ;;  %v7179_v15 = vunpack.i.l.bf16 %v12977_v7  ;;  %v12978_v35 = vld [vmem:[#allocation20_spill] sm:$0xff] }
 0x16a   : > { %v1858_v52 = vpack.c.bf16 %v1832_v50, %v1831_v51  ;;  %v7455_v58 = vunpack.i.h.bf16 %v7453_v25  ;;  %v7454_v22 = vunpack.i.l.bf16 %v7453_v25  ;;  %v7260_v63 = vunpack.i.h.bf16 %v12978_v35 }
 0x16b   : > { %7667 = vrot.lane.b32.xlu1 %v8984_v29, %s12794_s29  ;;  %v1635_v29 = vsel %vm1622_vm4, %v9613_v62, %v7174_v43  ;;  %v7464_v62 = vunpack.i.l.bf16 %v9645_v36  ;;  %v7259_v45 = vunpack.i.l.bf16 %v12978_v35  ;;  %v7508_v34 = vpop.permute.xlu2 %7507  ;;  %v7480_v50 = vunpack.i.h.bf16 %v9690_v8 }
 0x16c   : > { %6224 = vmatmul.msk.bf16.vlgmr.msra.gmra.mxu1 %vm1885_vm11, %v1858_v52  ;;  %v1668_v46 = vsel %vm1655_vm5, %v1635_v29, %v7254_v18  ;;  %v1702_v41 = vsel %vm1688_vm6, %v1669_v39, %v7455_v58  ;;  %v12980_v18 = vld [vmem:[#allocation19_spill] sm:$0xff]  ;;  %v1638_v56 = vsel %vm1622_vm4, %v1605_v40, %v7180_v20 }
 0x16d   : > { %v7458_v4 = vpop.permute.xlu1 %7457  ;;  %v1701_v43 = vsel %vm1688_vm6, %v1668_v46, %v7454_v22  ;;  %v1604_v52 = vsel %vm12813_vm3, %v12980_v18, %v7099_v1  ;;  %v1671_v58 = vsel %vm1655_vm5, %v1638_v56, %v7260_v63  ;;  %v7495_v22 = vunpack.i.h.bf16 %v9728_v0 }
 0x16e   : > { %v7460_v54 = vunpack.i.h.bf16 %v7458_v4  ;;  %v7459_v10 = vunpack.i.l.bf16 %v7458_v4  ;;  %v1637_v33 = vsel %vm1622_vm4, %v1604_v52, %v7179_v15  ;;  %v1704_v16 = vsel %vm1688_vm6, %v1671_v58, %v7480_v50 }
 0x16f   : > { %v1670_v8 = vsel %vm1655_vm5, %v1637_v33, %v7259_v45 }
 0x170   : > { %v1734_v28 = vsel %vm1721_vm7, %v1701_v43, %v7459_v10  ;;  %v1735_v14 = vsel %vm1721_vm7, %v1702_v41, %v7460_v54  ;;  %v1703_v61 = vsel %vm1688_vm6, %v1670_v8, %v7479_v59  ;;  %v12982_v41 = vld [vmem:[#allocation59_spill] sm:$0xff] }
 0x171   : > { %v7468_v47 = vpop.permute.xlu0 %7467  ;;  %v1767_v57 = vsel %vm1754_vm8, %v1734_v28, %v7464_v62  ;;  %v1768_v36 = vsel %vm1754_vm8, %v1735_v14, %v7465_v26  ;;  %v12981_v26 = vld [vmem:[#allocation46_spill] sm:$0xff]  ;;  %v7184_v28 = vunpack.i.l.bf16 %v12982_v41 }
 0x172   : > { %v7470_v6 = vunpack.i.h.bf16 %v7468_v47  ;;  %v7469_v60 = vunpack.i.l.bf16 %v7468_v47  ;;  %v7105_v62 = vunpack.i.h.bf16 %v12981_v26  ;;  %v7104_v43 = vunpack.i.l.bf16 %v12981_v26  ;;  %v12989_v26 = vld [vmem:[#allocation22_spill] sm:$0xff] }
 0x173   : > { %7682 = vrot.lane.b32.xlu1 %v7681_v19, %s8533_s22  ;;  %v7185_v47 = vunpack.i.h.bf16 %v12982_v41  ;;  %v7523_v14 = vpop.permute.xlu2 %7522 }
 0x174   : > { %6223 = vmatmul.msk.bf16.gmra.mxu0 %vm1885_vm11, %v1857_v49  ;;  %v1800_v5 = vsel %vm1787_vm9, %v1767_v57, %v7469_v60  ;;  %v1801_v21 = vsel %vm1787_vm9, %v1768_v36, %v7470_v6  ;;  %v12983_v60 = vld [vmem:[#allocation67_spill] sm:$0xff]  ;;  %v7525_v40 = vunpack.i.h.bf16 %v7523_v14  ;;  %v7524_v18 = vunpack.i.l.bf16 %v7523_v14 }
 0x175   : > { %v7473_v31 = vpop.permute.xlu1 %7472  ;;  %v7265_v57 = vunpack.i.h.bf16 %v12983_v60  ;;  %v7264_v36 = vunpack.i.l.bf16 %v12983_v60 }
 0x176   : > { %v7475_v53 = vunpack.i.h.bf16 %v7473_v31  ;;  %v7474_v55 = vunpack.i.l.bf16 %v7473_v31 }
 0x178   : > { %v1833_v3 = vsel %vm1820_vm10, %v1800_v5, %v7474_v55  ;;  %v1834_v25 = vsel %vm1820_vm10, %v1801_v21, %v7475_v53  ;;  %v1607_v53 = vsel %vm12813_vm3, %v12984_v2, %v7105_v62  ;;  %v12985_v55 = vld [vmem:[#allocation16_spill] sm:$0xff] }
 0x179   : > { %v7483_v38 = vpop.permute.xlu0 %7482  ;;  %v1859_v51 = vpack.c.bf16 %v1834_v25, %v1833_v3  ;;  %v1606_v1 = vsel %vm12813_vm3, %v12985_v55, %v7104_v43  ;;  %v1640_v7 = vsel %vm1622_vm4, %v1607_v53, %v7185_v47  ;;  %v7510_v3 = vunpack.i.h.bf16 %v7508_v34  ;;  %v12990_v43 = vld [vmem:[#allocation21_spill] sm:$0xff] }
 0x17a   : > { %v7485_v13 = vunpack.i.h.bf16 %v7483_v38  ;;  %v7484_v42 = vunpack.i.l.bf16 %v7483_v38  ;;  %v1639_v20 = vsel %vm1622_vm4, %v1606_v1, %v7184_v28  ;;  %v1673_v38 = vsel %vm1655_vm5, %v1640_v7, %v7265_v57 }
 0x17b   : > { %7697 = vrot.lane.b32.xlu1 %v7681_v19, %s12794_s29  ;;  %v1672_v15 = vsel %vm1655_vm5, %v1639_v20, %v7264_v36  ;;  %v7509_v25 = vunpack.i.l.bf16 %v7508_v34  ;;  %v7538_v52 = vpop.permute.xlu2 %7537  ;;  %s13031_s29 = smov 75  }
 0x17c   : > { %6225 = vmatmul.msk.bf16.gmra.mxu1 %vm1885_vm11, %v1859_v51  ;;  %v1736_v9 = vsel %vm1721_vm7, %v1703_v61, %v7484_v42  ;;  %v1737_v46 = vsel %vm1721_vm7, %v1704_v16, %v7485_v13  ;;  %v12986_v61 = vld [vmem:[#allocation11_spill] sm:$0xff] }
 0x17d   : > { %v7488_v44 = vpop.permute.xlu1 %7487  ;;  %v7110_v16 = vunpack.i.h.bf16 %v12986_v61 }
 0x17e   : > { %v7490_v29 = vunpack.i.h.bf16 %v7488_v44  ;;  %v7489_v4 = vunpack.i.l.bf16 %v7488_v44 }
 0x17f   : > { %v1609_v62 = vsel %vm12813_vm3, %v12989_v26, %v7110_v16 }
 0x180   : > { %v1769_v54 = vsel %vm1754_vm8, %v1736_v9, %v7489_v4  ;;  %v1770_v10 = vsel %vm1754_vm8, %v1737_v46, %v7490_v29  ;;  %v7109_v29 = vunpack.i.l.bf16 %v12986_v61  ;;  %v12987_v9 = vld [vmem:[#allocation60_spill] sm:$0xff] }
 0x181   : > { %v7498_v39 = vpop.permute.xlu0 %7497  ;;  %v1802_v0 = vsel %vm1787_vm9, %v1769_v54, %v7494_v37  ;;  %v1803_v23 = vsel %vm1787_vm9, %v1770_v10, %v7495_v22  ;;  %v7190_v46 = vunpack.i.h.bf16 %v12987_v9  ;;  %v7189_v54 = vunpack.i.l.bf16 %v12987_v9  ;;  %v12988_v10 = vld [vmem:[#allocation64_spill] sm:$0xff] }
 0x182   : > { %v7500_v19 = vunpack.i.h.bf16 %v7498_v39  ;;  %v7499_v30 = vunpack.i.l.bf16 %v7498_v39  ;;  %v7270_v39 = vunpack.i.h.bf16 %v12988_v10  ;;  %v1608_v41 = vsel %vm12813_vm3, %v12990_v43, %v7109_v29  ;;  %v12995_v61 = vld [vmem:[#allocation28_spill] sm:$0xff] }
 0x183   : > { %v1641_v14 = vsel %vm1622_vm4, %v1608_v41, %v7189_v54 }
 0x184   : > { %v1835_v49 = vsel %vm1820_vm10, %v1802_v0, %v7499_v30  ;;  %v1836_v6 = vsel %vm1820_vm10, %v1803_v23, %v7500_v19  ;;  %v7269_v19 = vunpack.i.l.bf16 %v12988_v10 }
 0x185   : > { %v1860_v31 = vpack.c.bf16 %v1836_v6, %v1835_v49  ;;  %v7503_v17 = vpop.permute.xlu1 %7502  ;;  %v1642_v49 = vsel %vm1622_vm4, %v1609_v62, %v7190_v46  ;;  %v7553_v6 = vpop.permute.xlu2 %7552 }
 0x186   : > { %v7505_v5 = vunpack.i.h.bf16 %v7503_v17  ;;  %v7504_v21 = vunpack.i.l.bf16 %v7503_v17  ;;  %v1674_v60 = vsel %vm1655_vm5, %v1641_v14, %v7269_v19  ;;  %v1675_v57 = vsel %vm1655_vm5, %v1642_v49, %v7270_v39 }
 0x187   : > { %6226 = vmatmul.msk.bf16.vlgmr.msra.gmra.mxu2 %vm1885_vm11, %v1860_v31  ;;  %v7540_v31 = vunpack.i.h.bf16 %v7538_v52  ;;  %v7539_v17 = vunpack.i.l.bf16 %v7538_v52 }
 0x188   : > { %v1705_v63 = vsel %vm1688_vm6, %v1672_v15, %v7504_v21  ;;  %v1706_v45 = vsel %vm1688_vm6, %v1673_v38, %v7505_v5 }
 0x189   : > { %v7513_v35 = vpop.permute.xlu0 %7512  ;;  %v1738_v59 = vsel %vm1721_vm7, %v1705_v63, %v7509_v25  ;;  %v1739_v12 = vsel %vm1721_vm7, %v1706_v45, %v7510_v3 }
 0x18a   : > { %v7515_v51 = vunpack.i.h.bf16 %v7513_v35  ;;  %v7514_v50 = vunpack.i.l.bf16 %v7513_v35 }
 0x18c   : > { %v1771_v33 = vsel %vm1754_vm8, %v1738_v59, %v7514_v50  ;;  %v1772_v34 = vsel %vm1754_vm8, %v1739_v12, %v7515_v51  ;;  %v12991_v59 = vld [vmem:[#allocation13_spill] sm:$0xff] }
 0x18d   : > { %v7518_v13 = vpop.permute.xlu1 %7517  ;;  %v7568_v25 = vpop.permute.xlu2 %7567  ;;  %v7115_v12 = vunpack.i.h.bf16 %v12991_v59 }
 0x18e   : > { %v7520_v42 = vunpack.i.h.bf16 %v7518_v13  ;;  %v7519_v56 = vunpack.i.l.bf16 %v7518_v13  ;;  %v7570_v41 = vunpack.i.h.bf16 %v7568_v25 }
 0x190   : > { %v1804_v8 = vsel %vm1787_vm9, %v1771_v33, %v7519_v56  ;;  %v1805_v22 = vsel %vm1787_vm9, %v1772_v34, %v7520_v42  ;;  %v12993_v42 = vld [vmem:[#allocation68_spill] sm:$0xff] }
 0x191   : > { %v7528_v58 = vpop.permute.xlu0 %7527  ;;  %v1837_v37 = vsel %vm1820_vm10, %v1804_v8, %v7524_v18  ;;  %v1838_v44 = vsel %vm1820_vm10, %v1805_v22, %v7525_v40  ;;  %v7114_v40 = vunpack.i.l.bf16 %v12991_v59  ;;  %v12992_v18 = vld [vmem:[#allocation57_spill] sm:$0xff]  ;;  %v7275_v56 = vunpack.i.h.bf16 %v12993_v42  ;;  %v13000_v59 = vld [vmem:[#allocation24_spill] sm:$0xff] }
 0x192   : > { %v1861_v4 = vpack.c.bf16 %v1838_v44, %v1837_v37  ;;  %v7530_v30 = vunpack.i.h.bf16 %v7528_v58  ;;  %v7529_v0 = vunpack.i.l.bf16 %v7528_v58  ;;  %v7195_v52 = vunpack.i.h.bf16 %v12992_v18  ;;  %v12994_v37 = vld [vmem:[#allocation27_spill] sm:$0xff] }
 0x193   : > { %v7194_v13 = vunpack.i.l.bf16 %v12992_v18  ;;  %v7274_v33 = vunpack.i.l.bf16 %v12993_v42  ;;  %v7555_v58 = vunpack.i.h.bf16 %v7553_v6  ;;  %v7554_v8 = vunpack.i.l.bf16 %v7553_v6  ;;  %v13001_v42 = vld [vmem:[#allocation53_spill] sm:$0xff] }
 0x194   : > { %v1707_v2 = vsel %vm1688_vm6, %v1674_v60, %v7529_v0  ;;  %v1708_v53 = vsel %vm1688_vm6, %v1675_v57, %v7530_v30  ;;  %v1611_v44 = vsel %vm12813_vm3, %v12994_v37, %v7115_v12  ;;  %v1610_v16 = vsel %vm12813_vm3, %v12995_v61, %v7114_v40  ;;  %v12996_v57 = vld [vmem:[#allocation47_spill] sm:$0xff] }
 0x195   : > { %v7533_v23 = vpop.permute.xlu1 %7532  ;;  %v1644_v9 = vsel %vm1622_vm4, %v1611_v44, %v7195_v52  ;;  %v1643_v46 = vsel %vm1622_vm4, %v1610_v16, %v7194_v13  ;;  %v7583_v26 = vpop.permute.xlu2 %7582  ;;  %v9868_v52 = vld [vmem:[%s12695_s3] ss:$0 sm:$0xff] }
 0x196   : > { %v7535_v47 = vunpack.i.h.bf16 %v7533_v23  ;;  %v7534_v28 = vunpack.i.l.bf16 %v7533_v23  ;;  %v1677_v39 = vsel %vm1655_vm5, %v1644_v9, %v7275_v56  ;;  %v1676_v19 = vsel %vm1655_vm5, %v1643_v46, %v7274_v33 }
 0x197   : > { %6227 = vmatmul.msk.bf16.gmra.mxu2 %vm1885_vm11, %v1861_v4  ;;  %v1709_v0 = vsel %vm1688_vm6, %v1676_v19, %v7554_v8  ;;  %v1710_v23 = vsel %vm1688_vm6, %v1677_v39, %v7555_v58  ;;  %v7584_v18 = vunpack.i.l.bf16 %v7583_v26  ;;  %v7125_v56 = vunpack.i.h.bf16 %v13001_v42  ;;  %v13004_v19 = vld [vmem:[#allocation31_spill] sm:$0xff] }
 0x198   : > { %v1740_v55 = vsel %vm1721_vm7, %v1707_v2, %v7534_v28  ;;  %v1741_v1 = vsel %vm1721_vm7, %v1708_v53, %v7535_v47  ;;  %v7569_v47 = vunpack.i.l.bf16 %v7568_v25  ;;  %v12997_v2 = vld [vmem:[#allocation61_spill] sm:$0xff]  ;;  %v7124_v33 = vunpack.i.l.bf16 %v13001_v42 }
 0x199   : > { %v7543_v36 = vpop.permute.xlu0 %7542  ;;  %v1773_v20 = vsel %vm1754_vm8, %v1740_v55, %v7539_v17  ;;  %v1774_v15 = vsel %vm1754_vm8, %v1741_v1, %v7540_v31  ;;  %v7199_v53 = vunpack.i.l.bf16 %v12997_v2  ;;  %v7120_v55 = vunpack.i.h.bf16 %v12996_v57  ;;  %v12998_v1 = vld [vmem:[#allocation26_spill] sm:$0xff]  ;;  %v12999_v25 = vld [vmem:[#allocation25_spill] sm:$0xff] }
 0x19a   : > { %v7545_v5 = vunpack.i.h.bf16 %v7543_v36  ;;  %v7544_v21 = vunpack.i.l.bf16 %v7543_v36  ;;  %v7119_v36 = vunpack.i.l.bf16 %v12996_v57  ;;  %v7585_v61 = vunpack.i.h.bf16 %v7583_v26 }
 0x19b   : > { %v1613_v12 = vsel %vm12813_vm3, %v13000_v59, %v7120_v55 }
 0x19c   : > { %v1806_v63 = vsel %vm1787_vm9, %v1773_v20, %v7544_v21  ;;  %v1807_v45 = vsel %vm1787_vm9, %v1774_v15, %v7545_v5  ;;  %v7279_v5 = vunpack.i.l.bf16 %v12998_v1 }
 0x19d   : > { %v7548_v7 = vpop.permute.xlu1 %7547 }
 0x19e   : > { %v7550_v38 = vunpack.i.h.bf16 %v7548_v7  ;;  %v7549_v3 = vunpack.i.l.bf16 %v7548_v7  ;;  %v7200_v7 = vunpack.i.h.bf16 %v12997_v2 }
 0x1a0   : > { %v1839_v51 = vsel %vm1820_vm10, %v1806_v63, %v7549_v3  ;;  %v1840_v50 = vsel %vm1820_vm10, %v1807_v45, %v7550_v38  ;;  %v7280_v63 = vunpack.i.h.bf16 %v12998_v1 }
 0x1a1   : > { %v7558_v35 = vpop.permute.xlu0 %7557  ;;  %v1862_v34 = vpack.c.bf16 %v1840_v50, %v1839_v51  ;;  %v9860_v50 = vpop.permute.xlu2 %7597 }
 0x1a2   : > { %v7560_v29 = vunpack.i.h.bf16 %v7558_v35  ;;  %v7559_v4 = vunpack.i.l.bf16 %v7558_v35  ;;  %v1612_v35 = vsel %vm12813_vm3, %v12999_v25, %v7119_v36  ;;  %v7599_v55 = vunpack.i.l.bf16 %v9860_v50 }
 0x1a3   : > { %v1645_v45 = vsel %vm1622_vm4, %v1612_v35, %v7199_v53  ;;  %v7600_v53 = vunpack.i.h.bf16 %v9860_v50 }
 0x1a4   : > { %v1742_v62 = vsel %vm1721_vm7, %v1709_v0, %v7559_v4  ;;  %v1743_v43 = vsel %vm1721_vm7, %v1710_v23, %v7560_v29  ;;  %v1678_v40 = vsel %vm1655_vm5, %v1645_v45, %v7279_v5 }
 0x1a5   : > { %v7563_v22 = vpop.permute.xlu1 %7562 }
 0x1a6   : > { %v7565_v54 = vunpack.i.h.bf16 %v7563_v22  ;;  %v7564_v10 = vunpack.i.l.bf16 %v7563_v22  ;;  %v13002_v22 = vld [vmem:[#allocation62_spill] sm:$0xff] }
 0x1a7   : > { %6228 = vmatmul.msk.bf16.gmra.mxu2 %vm1885_vm11, %v1862_v34  ;;  %v1646_v34 = vsel %vm1622_vm4, %v1613_v12, %v7200_v7  ;;  %v7204_v37 = vunpack.i.l.bf16 %v13002_v22  ;;  %v7205_v16 = vunpack.i.h.bf16 %v13002_v22 }
 0x1a8   : > { %v1775_v28 = vsel %vm1754_vm8, %v1742_v62, %v7564_v10  ;;  %v1776_v14 = vsel %vm1754_vm8, %v1743_v43, %v7565_v54  ;;  %v1679_v44 = vsel %vm1655_vm5, %v1646_v34, %v7280_v63  ;;  %v13003_v10 = vld [vmem:[#allocation30_spill] sm:$0xff] }
 0x1a9   : > { %v7573_v30 = vpop.permute.xlu0 %7572  ;;  %v1808_v31 = vsel %vm1787_vm9, %v1775_v28, %v7569_v47  ;;  %v1809_v17 = vsel %vm1787_vm9, %v1776_v14, %v7570_v41  ;;  %v1615_v39 = vsel %vm12813_vm3, %v13003_v10, %v7125_v56  ;;  %v13005_v14 = vld [vmem:[#allocation23_spill] sm:$0xff]  ;;  %v7613_v5 = vpop.permute.xlu2 %7612 }
 0x1aa   : > { %v7575_v49 = vunpack.i.h.bf16 %v7573_v30  ;;  %v7574_v6 = vunpack.i.l.bf16 %v7573_v30  ;;  %v1614_v30 = vsel %vm12813_vm3, %v13004_v19, %v7124_v33  ;;  %v1648_v28 = vsel %vm1622_vm4, %v1615_v39, %v7205_v16 }
 0x1ab   : > { %v1647_v62 = vsel %vm1622_vm4, %v1614_v30, %v7204_v37  ;;  %v7615_v45 = vunpack.i.h.bf16 %v7613_v5  ;;  %v13006_v30 = vld [vmem:[#allocation45_spill] sm:$0xff] }
 0x1ac   : > { %v1841_v38 = vsel %vm1820_vm10, %v1808_v31, %v7574_v6  ;;  %v1842_v3 = vsel %vm1820_vm10, %v1809_v17, %v7575_v49  ;;  %v7285_v49 = vunpack.i.h.bf16 %v13005_v14  ;;  %v7284_v6 = vunpack.i.l.bf16 %v13005_v14 }
 0x1ad   : > { %v7578_v60 = vpop.permute.xlu1 %7577  ;;  %v1863_v13 = vpack.c.bf16 %v1842_v3, %v1841_v38 }
 0x1ae   : > { %v7579_v20 = vunpack.i.l.bf16 %v7578_v60  ;;  %v7580_v51 = vunpack.i.h.bf16 %v7578_v60  ;;  %v1680_v3 = vsel %vm1655_vm5, %v1647_v62, %v7284_v6  ;;  %v1681_v25 = vsel %vm1655_vm5, %v1648_v28, %v7285_v49 }
 0x1b0   : > { %v1711_v58 = vsel %vm1688_vm6, %v1678_v40, %v7579_v20  ;;  %v1712_v29 = vsel %vm1688_vm6, %v1679_v44, %v7580_v51  ;;  %v7614_v51 = vunpack.i.l.bf16 %v7613_v5  ;;  %v13010_v5 = vld [vmem:[#allocation44_spill] sm:$0xff] }
 0x1b1   : > { %v7588_v21 = vpop.permute.xlu0 %7587  ;;  %v1946_v15 = vpop.f32.mrf.mxu0  ;;  %v1744_v9 = vsel %vm1721_vm7, %v1711_v58, %v7584_v18  ;;  %v1745_v43 = vsel %vm1721_vm7, %v1712_v29, %v7585_v61 }
 0x1b2   : > { %v7589_v4 = vunpack.i.l.bf16 %v7588_v21  ;;  %v1947_v46 = vadd.f32 %v9868_v52, %v1946_v15  ;;  %v7590_v0 = vunpack.i.h.bf16 %v7588_v21 }
 0x1b4   : > { %v1777_v60 = vsel %vm1754_vm8, %v1744_v9, %v7589_v4  ;;  %v2026_v57 = vmax.f32 %v1947_v46, 0.0  ;;  %v1778_v2 = vsel %vm1754_vm8, %v1745_v43, %v7590_v0  ;;  %v13007_v43 = vld [vmem:[#allocation51_spill] sm:$0xff] }
 0x1b5   : > { %v7593_v8 = vpop.permute.xlu1 %7592 }
 0x1b6   : > { %v7594_v23 = vunpack.i.l.bf16 %v7593_v8  ;;  %v7595_v41 = vunpack.i.h.bf16 %v7593_v8 }
 0x1b7   : > { %6229 = vmatmul.msk.bf16.gmra.mxu2 %vm1885_vm11, %v1863_v13 }
 0x1b8   : > { %v1810_v21 = vsel %vm1787_vm9, %v1777_v60, %v7594_v23  ;;  %v1811_v38 = vsel %vm1787_vm9, %v1778_v2, %v7595_v41  ;;  %v817_v23 = vrot.slane %v12973_v27, 2 }
 0x1b9   : > { %v7603_v54 = vpop.permute.xlu0 %7602  ;;  %v1948_v26 = vpop.f32.mrf.mxu0  ;;  %v1843_v18 = vsel %vm1820_vm10, %v1810_v21, %v7599_v55  ;;  %v1844_v13 = vsel %vm1820_vm10, %v1811_v38, %v7600_v53 }
 0x1ba   : > { %v1949_v47 = vadd.f32 %v9868_v52, %v1948_v26  ;;  %v7605_v36 = vunpack.i.h.bf16 %v7603_v54  ;;  %v7604_v31 = vunpack.i.l.bf16 %v7603_v54  ;;  %v1864_v58 = vpack.c.bf16 %v1844_v13, %v1843_v18 }
 0x1bb   : > { %v819_v26 = vrot.slane %v9679_v48, 2 }
 0x1bc   : > { %v2027_v17 = vmax.f32 %v1949_v47, 0.0  ;;  %v1713_v35 = vsel %vm1688_vm6, %v1680_v3, %v7604_v31  ;;  %v1714_v63 = vsel %vm1688_vm6, %v1681_v25, %v7605_v36  ;;  %v13009_v36 = vld [vmem:[#allocation50_spill] sm:$0xff] }
 0x1bd   : > { %v7608_v1 = vpop.permute.xlu1 %7607  ;;  %v820_v28 = vsel %vm728_vm2, %v817_v23, %v819_v26 }
 0x1be   : > { %v7610_v7 = vunpack.i.h.bf16 %v7608_v1  ;;  %v7609_v20 = vunpack.i.l.bf16 %v7608_v1  ;;  %v7626_v15 = vpack.i.bf16 %v2027_v17, %v2026_v57 }
 0x1c0   : > { %7627 = vrot.lane.b32.xlu2 %v7626_v15, %s12795_s24  ;;  %v1746_v59 = vsel %vm1721_vm7, %v1713_v35, %v7609_v20  ;;  %v1747_v12 = vsel %vm1721_vm7, %v1714_v63, %v7610_v7  ;;  %v13011_v20 = vld [vmem:[#allocation6_spill] sm:$0xff] }
 0x1c1   : > { %v7618_v50 = vpop.permute.xlu0 %7617  ;;  %v1951_v40 = vpop.f32.mrf.mxu0  ;;  %v1779_v33 = vsel %vm1754_vm8, %v1746_v59, %v7614_v51  ;;  %v1780_v34 = vsel %vm1754_vm8, %v1747_v12, %v7615_v45  ;;  %v9946_v15 = vpack.i.bf16 %v13011_v20, %v12967_v11 }
 0x1c2   : > { %v7620_v42 = vunpack.i.h.bf16 %v7618_v50  ;;  %v7619_v56 = vunpack.i.l.bf16 %v7618_v50  ;;  %v1952_v16 = vadd.f32 %v9868_v52, %v1951_v40 }
 0x1c4   : > { %v1812_v44 = vsel %vm1787_vm9, %v1779_v33, %v7619_v56  ;;  %v1813_v61 = vsel %vm1787_vm9, %v1780_v34, %v7620_v42  ;;  %v2028_v10 = vmax.f32 %v1952_v16, 0.0 }
 0x1c5   : > { %v7623_v8 = vpop.permute.xlu1 %7622 }
 0x1c6   : > { %v7625_v22 = vunpack.i.h.bf16 %v7623_v8  ;;  %v7624_v37 = vunpack.i.l.bf16 %v7623_v8 }
 0x1c7   : > { %6230 = vmatmul.msk.bf16.gmra.mxu2 %vm1885_vm11, %v1864_v58 }
 0x1c8   : > { %7642 = vrot.lane.b32.xlu2 %v9121_v24, %s8530_s14  ;;  %v1845_v29 = vsel %vm1820_vm10, %v1812_v44, %v7624_v37  ;;  %v1846_v4 = vsel %vm1820_vm10, %v1813_v61, %v7625_v22  ;;  %v816_v24 = vrot.slane %v12972_v32, 2  ;;  %v13008_v32 = vld [vmem:[#allocation10_spill] sm:$0xff] }
 0x1c9   : > { %v1953_v9 = vpop.f32.mrf.mxu0  ;;  %v1865_v46 = vpack.c.bf16 %v1846_v4, %v1845_v29  ;;  %7712 = vrot.lane.b32.xlu1 %v13008_v32, %s8533_s22  ;;  %s12809_s22 = smov 47  }
 0x1ca   : > { %v1954_v54 = vadd.f32 %v9868_v52, %v1953_v9  ;;  %v818_v47 = vsel %vm728_vm2, %v816_v24, %v817_v23 }
 0x1cb   : > { %6231 = vmatmul.msk.bf16.vlgmr.msra.gmra.mxu3 %vm1885_vm11, %v1865_v46  ;;  %v7686_v49 = vpack.i.bf16 %v820_v28, %v818_v47 }
 0x1cc   : > { %v2029_v39 = vmax.f32 %v1954_v54, 0.0 }
 0x1ce   : > { %v7631_v19 = vpack.i.bf16 %v2029_v39, %v2028_v10 }
 0x1d0   : > { %7657 = vrot.lane.b32.xlu2 %v13006_v30, %s8532_s17  ;;  %7632 = vrot.lane.b32.xlu0 %v7631_v19, %s12795_s24 }
 0x1d1   : > { %v1956_v0 = vpop.f32.mrf.mxu0 }
 0x1d2   : > { %v1957_v62 = vadd.f32 %v9868_v52, %v1956_v0 }
 0x1d4   : > { %v2030_v27 = vmax.f32 %v1957_v62, 0.0 }
 0x1d8   : > { %7672 = vrot.lane.b32.xlu2 %v13006_v30, %s8530_s14  ;;  %7647 = vrot.lane.b32.xlu0 %v13007_v43, %s8531_s16 }
 0x1d9   : > { %v1958_v41 = vpop.f32.mrf.mxu0 }
 0x1da   : > { %v1959_v14 = vadd.f32 %v9868_v52, %v1958_v41 }
 0x1dc   : > { %v2031_v48 = vmax.f32 %v1959_v14, 0.0 }
 0x1de   : > { %v7661_v6 = vpack.i.bf16 %v2031_v48, %v2030_v27 }
 0x1e0   : > { %7687 = vrot.lane.b32.xlu2 %v7686_v49, %s8532_s17  ;;  %7662 = vrot.lane.b32.xlu0 %v7661_v6, %s12795_s24 }
 0x1e1   : > { %v1961_v60 = vpop.f32.mrf.mxu0 }
 0x1e2   : > { %v1962_v57 = vadd.f32 %v9868_v52, %v1961_v60 }
 0x1e4   : > { %v2032_v53 = vmax.f32 %v1962_v57, 0.0 }
 0x1e8   : > { %7702 = vrot.lane.b32.xlu2 %v7686_v49, %s8530_s14  ;;  %7677 = vrot.lane.b32.xlu0 %v13009_v36, %s8531_s16  ;;  %s12799_s14 = smov 25  }
 0x1e9   : > { %v1963_v31 = vpop.f32.mrf.mxu0  ;;  %v1971_v17 = vpop.f32.mrf.mxu1 }
 0x1ea   : > { %v1964_v2 = vadd.f32 %v9868_v52, %v1963_v31  ;;  %v1972_v59 = vadd.f32 %v9868_v52, %v1971_v17 }
 0x1ec   : > { %v2033_v55 = vmax.f32 %v1964_v2, 0.0  ;;  %v2036_v18 = vmax.f32 %v1972_v59, 0.0 }
 0x1ee   : > { %v7691_v1 = vpack.i.bf16 %v2033_v55, %v2032_v53  ;;  %v7638_v55 = vpop.permute.xlu1 %7637 }
 0x1f0   : > { %7692 = vrot.lane.b32.xlu0 %v7691_v1, %s12795_s24  ;;  %7717 = vrot.lane.b32.xlu2 %v13010_v5, %s8532_s17  ;;  %s6826_s17 = sshll.u32 %s8648_s21, 7  ;;  %s12797_s21 = smov 75   ;;  %v13013_v1 = vld [vmem:[#allocation55_spill] sm:$0xff] }
 0x1f1   : > { %v1966_v21 = vpop.f32.mrf.mxu0  ;;  %v1973_v7 = vpop.f32.mrf.mxu1  ;;  %s9969_s27 = scalar_lea.vmem %s13012_s1, %s6826_s17  ;;  %s12807_s17 = smov 22  }
 0x1f2   : > { %v1967_v38 = vadd.f32 %v9868_v52, %v1966_v21  ;;  %v1974_v51 = vadd.f32 %v9868_v52, %v1973_v7  ;;  %v6916_v4 = vld [vmem:[%s9969_s27] sm:$0xff]   ;;  %v7130_v21 = vunpack.i.h.bf16 %v13013_v1 }
 0x1f3   : > { %v6917_v9 = vunpack.c.l.bf16 %v6916_v4  ;;  %v6918_v46 = vunpack.c.h.bf16 %v6916_v4 }
 0x1f4   : > { %v2034_v63 = vmax.f32 %v1967_v38, 0.0  ;;  %v2037_v12 = vmax.f32 %v1974_v51, 0.0  ;;  %v6979_v38 = vld [vmem:[%s9969_s27 + $0x8] sm:$0xff]   ;;  %v13015_v51 = vld [vmem:[#allocation69_spill] sm:$0xff] }
 0x1f5   : > { %v6921_v59 = vunpack.c.l.bf16 %v6979_v38 }
 0x1f6   : > { %v7736_v42 = vpack.i.bf16 %v2037_v12, %v2036_v18  ;;  %v6922_v12 = vunpack.c.h.bf16 %v6979_v38 }
 0x1f8   : > { %7707 = vrot.lane.b32.xlu0 %v9946_v15, %s8531_s16  ;;  %s12801_s16 = smov 50  }
 0x1f9   : > { %v1968_v3 = vpop.f32.mrf.mxu0  ;;  %v1976_v25 = vpop.f32.mrf.mxu1 }
 0x1fa   : > { %v1969_v35 = vadd.f32 %v9868_v52, %v1968_v3  ;;  %v1977_v56 = vadd.f32 %v9868_v52, %v1976_v25  ;;  %v10007_v3 = vpop.permute.xlu1 %7652  ;;  %v7129_v25 = vunpack.i.l.bf16 %v13013_v1 }
 0x1fc   : > { %v2035_v45 = vmax.f32 %v1969_v35, 0.0  ;;  %v2038_v58 = vmax.f32 %v1977_v56, 0.0  ;;  %v13014_v35 = vld [vmem:[#allocation58_spill] sm:$0xff]  ;;  %v7289_v56 = vunpack.i.l.bf16 %v13015_v51 }
 0x1fe   : > { %v7726_v50 = vpack.i.bf16 %v2035_v45, %v2034_v63  ;;  %v7210_v63 = vunpack.i.h.bf16 %v13014_v35  ;;  %v7209_v45 = vunpack.i.l.bf16 %v13014_v35 }
 0x200   : > { %7727 = vrot.lane.b32.xlu2 %v7726_v50, %s12795_s24  ;;  %7722 = vrot.lane.b32.xlu0 %v13008_v32, %s12799_s14  ;;  %v7290_v50 = vunpack.i.h.bf16 %v13015_v51 }
 0x201   : > { %v1978_v40 = vpop.f32.mrf.mxu1 }
 0x202   : > { %v1979_v13 = vadd.f32 %v9868_v52, %v1978_v40  ;;  %v13016_v40 = vld [vmem:[#allocation52_spill] sm:$0xff] }
 0x203   : > { %v7135_v18 = vunpack.i.h.bf16 %v13016_v40 }
 0x204   : > { %v2039_v34 = vmax.f32 %v1979_v13, 0.0  ;;  %v13017_v13 = vld [vmem:[#allocation36_spill] sm:$0xff] }
 0x206   : > { %v7741_v8 = vpack.i.bf16 %v2039_v34, %v2038_v58  ;;  %v7640_v34 = vunpack.i.h.bf16 %v7638_v55  ;;  %v7639_v58 = vunpack.i.l.bf16 %v7638_v55 }
 0x208   : > { %7737 = vrot.lane.b32.xlu2 %v7736_v42, %s12795_s24  ;;  %7732 = vrot.lane.b32.xlu0 %v13010_v5, %s12801_s16  ;;  %v1617_v42 = vsel %vm12813_vm3, %v13017_v13, %v7130_v21 }
 0x209   : > { %v1650_v4 = vsel %vm1622_vm4, %v1617_v42, %v7210_v63 }
 0x20a   : > { %v1981_v33 = vpop.f32.mrf.mxu2 }
 0x20b   : > { %v1982_v22 = vadd.f32 %v9868_v52, %v1981_v33 }
 0x20d   : > { %v2040_v61 = vmax.f32 %v1982_v22, 0.0 }
 0x210   : > { %7742 = vrot.lane.b32.xlu2 %v7741_v8, %s12795_s24 }
 0x212   : > { %v1983_v37 = vpop.f32.mrf.mxu2 }
 0x213   : > { %v1984_v44 = vadd.f32 %v9868_v52, %v1983_v37  ;;  %v7134_v37 = vunpack.i.l.bf16 %v13016_v40 }
 0x215   : > { %v2041_v16 = vmax.f32 %v1984_v44, 0.0  ;;  %v13018_v44 = vld [vmem:[#allocation37_spill] sm:$0xff] }
 0x217   : > { %v7746_v29 = vpack.i.bf16 %v2041_v16, %v2040_v61  ;;  %v1616_v61 = vsel %vm12813_vm3, %v13018_v44, %v7129_v25  ;;  %v13019_v16 = vld [vmem:[#allocation56_spill] sm:$0xff] }
 0x219   : > { %7747 = vrot.lane.b32.xlu2 %v7746_v29, %s12795_s24  ;;  %v7140_v29 = vunpack.i.h.bf16 %v13019_v16 }
 0x21a   : > { %v7628_v54 = vpop.permute.xlu2 %7627 }
 0x21b   : > { %v7630_v10 = vunpack.i.h.bf16 %v7628_v54  ;;  %v7629_v39 = vunpack.i.l.bf16 %v7628_v54 }
 0x21d   : > { %v2188_v19 = vsel %vm2186_vm12, %v6918_v46, %v7630_v10  ;;  %v2187_v30 = vsel %vm2186_vm12, %v6917_v9, %v7629_v39  ;;  %v1649_v9 = vsel %vm1622_vm4, %v1616_v61, %v7209_v45  ;;  %v1683_v46 = vsel %vm1655_vm5, %v1650_v4, %v7290_v50 }
 0x21e   : > { %v2252_v0 = vrot.slane %v2188_v19, 7  ;;  %v2251_v24 = vrot.slane %v2187_v30, 7  ;;  %v1682_v39 = vsel %vm1655_vm5, %v1649_v9, %v7289_v56  ;;  %v7139_v56 = vunpack.i.l.bf16 %v13019_v16  ;;  %v13021_v9 = vld [vmem:[#allocation65_spill] sm:$0xff] }
 0x220   : > { %v2362_v23 = vsel %vm481_vm0, %v2252_v0, 0.0  ;;  %v9977_v26 = vsel %vm481_vm0, %v2251_v24, %v2252_v0  ;;  %v9980_v62 = vsel %vm481_vm0, 0.0, %v2251_v24  ;;  %v1715_v24 = vsel %vm1688_vm6, %v1682_v39, %v7639_v58 }
 0x221   : > { %v7751_v43 = vpack.i.bf16 %v9977_v26, %v9980_v62  ;;  %v2408_v41 = vrot.slane %v9980_v62, 1  ;;  %v2409_v47 = vrot.slane %v9977_v26, 1  ;;  %v2411_v28 = vrot.slane %v2362_v23, 1 }
 0x222   : > { %v9986_v14 = vpop.permute.xlu2 %7642  ;;  %v2483_v27 = vrot.slane %v9980_v62, 2  ;;  %v2484_v48 = vrot.slane %v9977_v26, 2  ;;  %v2486_v49 = vrot.slane %v2362_v23, 2  ;;  %v1716_v23 = vsel %vm1688_vm6, %v1683_v46, %v7640_v34  ;;  %v6980_v34 = vld [vmem:[%s9969_s27 + $0x10] sm:$0xff]  }
 0x223   : > { %7752 = vrot.lane.b32.xlu1 %v7751_v43, %s12797_s21  ;;  %v2410_v6 = vsel %vm647_vm1, %v2408_v41, %v2409_v47  ;;  %v2412_v60 = vsel %vm647_vm1, %v2409_v47, %v2411_v28  ;;  %v7644_v19 = vunpack.i.l.bf16 %v9986_v14  ;;  %v7655_v43 = vunpack.i.h.bf16 %v10007_v3 }
 0x224   : > { %v7761_v57 = vpack.i.bf16 %v2412_v60, %v2410_v6  ;;  %v2485_v36 = vsel %vm728_vm2, %v2483_v27, %v2484_v48  ;;  %v2487_v31 = vsel %vm728_vm2, %v2484_v48, %v2486_v49  ;;  %v7645_v41 = vunpack.i.h.bf16 %v9986_v14  ;;  %v10042_v6 = vpop.permute.xlu1 %7667 }
 0x225   : > { %v7756_v17 = vpack.i.bf16 %v2487_v31, %v2485_v36  ;;  %v7654_v47 = vunpack.i.l.bf16 %v10007_v3  ;;  %v1748_v31 = vsel %vm1721_vm7, %v1715_v24, %v7644_v19  ;;  %v7220_v46 = vunpack.i.h.bf16 %v13021_v9 }
 0x226   : > { %7762 = vrot.lane.b32.xlu2 %v7761_v57, %s12803_s28  ;;  %v1749_v38 = vsel %vm1721_vm7, %v1716_v23, %v7645_v41  ;;  %v6925_v19 = vunpack.c.l.bf16 %v6980_v34  ;;  %v13023_v23 = vld [vmem:[#allocation34_spill] sm:$0xff]  ;;  %v13024_v41 = vld [vmem:[#allocation39_spill] sm:$0xff] }
 0x227   : > { %7757 = vrot.lane.b32.xlu0 %v7756_v17, %s12811_s23 }
 0x22a   : > { %v9997_v2 = vpop.permute.xlu2 %7657 }
 0x22b   : > { %v7660_v3 = vunpack.i.h.bf16 %v9997_v2  ;;  %v7659_v63 = vunpack.i.l.bf16 %v9997_v2 }
 0x22f   : > { %7767 = vrot.lane.b32.xlu0 %v7761_v57, %s12799_s14 }
 0x232   : > { %v10000_v53 = vpop.permute.xlu2 %7672 }
 0x237   : > { %7772 = vrot.lane.b32.xlu0 %v7756_v17, %s12801_s16 }
 0x23a   : > { %v10004_v7 = vpop.permute.xlu2 %7687 }
 0x242   : > { %v7633_v33 = vpop.permute.xlu0 %7632  ;;  %v10033_v28 = vpop.permute.xlu2 %7702 }
 0x243   : > { %v7635_v8 = vunpack.i.h.bf16 %v7633_v33  ;;  %v7634_v22 = vunpack.i.l.bf16 %v7633_v33 }
 0x245   : > { %v2190_v54 = vsel %vm2186_vm12, %v6922_v12, %v7635_v8  ;;  %v2189_v10 = vsel %vm2186_vm12, %v6921_v59, %v7634_v22  ;;  %v13020_v8 = vld [vmem:[#allocation63_spill] sm:$0xff] }
 0x246   : > { %v2255_v30 = vrot.slane %v2190_v54, 7  ;;  %v2254_v0 = vrot.slane %v2189_v10, 7  ;;  %v7215_v22 = vunpack.i.h.bf16 %v13020_v8  ;;  %v7214_v4 = vunpack.i.l.bf16 %v13020_v8 }
 0x247   : > { %v7219_v54 = vunpack.i.l.bf16 %v13021_v9 }
 0x248   : > { %v2363_v27 = vsel %vm481_vm0, %v2255_v30, 0.0  ;;  %v10037_v48 = vsel %vm481_vm0, %v2254_v0, %v2255_v30  ;;  %v10040_v49 = vsel %vm481_vm0, 0.0, %v2254_v0  ;;  %v6926_v30 = vunpack.c.h.bf16 %v6980_v34  ;;  %v13022_v0 = vld [vmem:[#allocation33_spill] sm:$0xff] }
 0x249   : > { %v2416_v60 = vrot.slane %v2363_v27, 1  ;;  %v2491_v57 = vrot.slane %v2363_v27, 2  ;;  %v7776_v36 = vpack.i.bf16 %v10037_v48, %v10040_v49  ;;  %v2488_v14 = vrot.slane %v10040_v49, 2  ;;  %v13025_v27 = vld [vmem:[#allocation40_spill] sm:$0xff] }
 0x24a   : > { %v7648_v17 = vpop.permute.xlu0 %7647  ;;  %v2489_v55 = vrot.slane %v10037_v48, 2  ;;  %v2413_v1 = vrot.slane %v10040_v49, 1  ;;  %v2414_v21 = vrot.slane %v10037_v48, 1  ;;  %v10076_v10 = vpop.permute.xlu2 %7717  ;;  %v1619_v24 = vsel %vm12813_vm3, %v13022_v0, %v7135_v18 }
 0x24b   : > { %v7650_v25 = vunpack.i.h.bf16 %v7648_v17  ;;  %v7649_v35 = vunpack.i.l.bf16 %v7648_v17  ;;  %7777 = vrot.lane.b32.xlu1 %v7776_v36, %s12807_s17  ;;  %v7683_v17 = vpop.permute.xlu1 %7682 }
 0x24c   : > { %v2490_v45 = vsel %vm728_vm2, %v2488_v14, %v2489_v55  ;;  %v2492_v51 = vsel %vm728_vm2, %v2489_v55, %v2491_v57  ;;  %v2415_v50 = vsel %vm647_vm1, %v2413_v1, %v2414_v21  ;;  %v2417_v42 = vsel %vm647_vm1, %v2414_v21, %v2416_v60 }
 0x24d   : > { %v1782_v59 = vsel %vm1754_vm8, %v1749_v38, %v7650_v25  ;;  %v1781_v12 = vsel %vm1754_vm8, %v1748_v31, %v7649_v35  ;;  %v10060_v13 = vpack.i.bf16 %v2492_v51, %v2490_v45  ;;  %v7786_v33 = vpack.i.bf16 %v2417_v42, %v2415_v50  ;;  %v13026_v31 = vld [vmem:[#allocation70_spill] sm:$0xff] }
 0x24e   : > { %v1814_v2 = vsel %vm1787_vm9, %v1781_v12, %v7654_v47  ;;  %v1815_v58 = vsel %vm1787_vm9, %v1782_v59, %v7655_v43  ;;  %v1618_v43 = vsel %vm12813_vm3, %v13023_v23, %v7134_v37  ;;  %v1621_v47 = vsel %vm12813_vm3, %v13024_v41, %v7140_v29 }
 0x24f   : > { %7797 = vrot.lane.b32.xlu0 %v10060_v13, %s12811_s23  ;;  %v1847_v44 = vsel %vm1820_vm10, %v1814_v2, %v7659_v63  ;;  %v1848_v61 = vsel %vm1820_vm10, %v1815_v58, %v7660_v3  ;;  %7787 = vrot.lane.b32.xlu2 %v7786_v33, %s12809_s22  ;;  %v1620_v60 = vsel %vm12813_vm3, %v13025_v27, %v7139_v56  ;;  %v7294_v18 = vunpack.i.l.bf16 %v13026_v31 }
 0x250   : > { %v1866_v39 = vpack.c.bf16 %v1848_v61, %v1847_v44  ;;  %v1652_v14 = vsel %vm1622_vm4, %v1619_v24, %v7215_v22  ;;  %v1651_v37 = vsel %vm1622_vm4, %v1618_v43, %v7214_v4  ;;  %v1653_v16 = vsel %vm1622_vm4, %v1620_v60, %v7219_v54  ;;  %v6981_v60 = vld [vmem:[%s9969_s27 + $0x18] sm:$0xff]  }
 0x251   : > { %v10099_v29 = vsel %vm1622_vm4, %v1621_v47, %v7220_v46  ;;  %v7295_v1 = vunpack.i.h.bf16 %v13026_v31  ;;  %v7669_v21 = vunpack.i.l.bf16 %v10042_v6  ;;  %v7670_v25 = vunpack.i.h.bf16 %v10042_v6  ;;  %v6983_v47 = vld [vmem:[%s9969_s27 + $0x28] sm:$0xff]  }
 0x252   : > { %v7663_v57 = vpop.permute.xlu0 %7662  ;;  %6232 = vmatmul.msk.bf16.gmra.mxu3 %vm1885_vm11, %v1866_v39  ;;  %v1684_v51 = vsel %vm1655_vm5, %v1651_v37, %v7294_v18  ;;  %v7675_v50 = vunpack.i.h.bf16 %v10000_v53  ;;  %v7674_v59 = vunpack.i.l.bf16 %v10000_v53  ;;  %v7685_v8 = vunpack.i.h.bf16 %v7683_v17 }
 0x253   : > { %v7665_v40 = vunpack.i.h.bf16 %v7663_v57  ;;  %v7664_v55 = vunpack.i.l.bf16 %v7663_v57  ;;  %7782 = vrot.lane.b32.xlu1 %v7776_v36, %s12797_s21  ;;  %v13027_v36 = vld [vmem:[#allocation66_spill] sm:$0xff]  ;;  %v1685_v12 = vsel %vm1655_vm5, %v1652_v14, %v7295_v1  ;;  %v1717_v34 = vsel %vm1688_vm6, %v1684_v51, %v7669_v21  ;;  %v7698_v24 = vpop.permute.xlu1 %7697 }
 0x254   : > { %v7299_v45 = vunpack.i.l.bf16 %v13027_v36  ;;  %v1718_v53 = vsel %vm1688_vm6, %v1685_v12, %v7670_v25  ;;  %v7684_v22 = vunpack.i.l.bf16 %v7683_v17  ;;  %v1750_v9 = vsel %vm1721_vm7, %v1717_v34, %v7674_v59 }
 0x255   : > { %v2192_v38 = vsel %vm2186_vm12, %v6926_v30, %v7665_v40  ;;  %v2191_v3 = vsel %vm2186_vm12, %v6925_v19, %v7664_v55  ;;  %v7690_v46 = vunpack.i.h.bf16 %v10004_v7  ;;  %v7689_v39 = vunpack.i.l.bf16 %v10004_v7 }
 0x256   : > { %v2258_v35 = vrot.slane %v2192_v38, 7  ;;  %v2257_v63 = vrot.slane %v2191_v3, 7  ;;  %v7300_v31 = vunpack.i.h.bf16 %v13027_v36  ;;  %v1686_v18 = vsel %vm1655_vm5, %v1653_v16, %v7299_v45 }
 0x257   : > { %7807 = vrot.lane.b32.xlu0 %v7786_v33, %s12799_s14  ;;  %7802 = vrot.lane.b32.xlu2 %v7786_v33, %s12803_s28  ;;  %v1751_v33 = vsel %vm1721_vm7, %v1718_v53, %v7675_v50  ;;  %v7700_v55 = vunpack.i.h.bf16 %v7698_v24  ;;  %v7699_v37 = vunpack.i.l.bf16 %v7698_v24  ;;  %v6937_v1 = vunpack.c.l.bf16 %v6983_v47 }
 0x258   : > { %v2364_v42 = vsel %vm481_vm0, %v2258_v35, 0.0  ;;  %v10114_v56 = vsel %vm481_vm0, %v2257_v63, %v2258_v35  ;;  %v10117_v6 = vsel %vm481_vm0, 0.0, %v2257_v63  ;;  %v6938_v38 = vunpack.c.h.bf16 %v6983_v47 }
 0x259   : > { %v2421_v2 = vrot.slane %v2364_v42, 1  ;;  %v2418_v58 = vrot.slane %v10117_v6, 1  ;;  %v2419_v4 = vrot.slane %v10114_v56, 1  ;;  %v2496_v23 = vrot.slane %v2364_v42, 2 }
 0x25a   : > { %v10123_v44 = vpop.permute.xlu2 %7727  ;;  %v7678_v61 = vpop.permute.xlu0 %7677  ;;  %v2493_v14 = vrot.slane %v10117_v6, 2  ;;  %v2494_v7 = vrot.slane %v10114_v56, 2  ;;  %v6930_v3 = vunpack.c.h.bf16 %v6981_v60  ;;  %v7816_v16 = vpack.i.bf16 %v10114_v56, %v10117_v6 }
 0x25b   : > { %v7680_v54 = vunpack.i.h.bf16 %v7678_v61  ;;  %7792 = vrot.lane.b32.xlu1 %v10060_v13, %s12805_s26  ;;  %v7679_v19 = vunpack.i.l.bf16 %v7678_v61  ;;  %v2420_v30 = vsel %vm647_vm1, %v2418_v58, %v2419_v4  ;;  %v2422_v0 = vsel %vm647_vm1, %v2419_v4, %v2421_v2 }
 0x25c   : > { %v10135_v41 = vpack.i.bf16 %v2422_v0, %v2420_v30  ;;  %v7704_v35 = vunpack.i.l.bf16 %v10033_v28  ;;  %v6929_v36 = vunpack.c.l.bf16 %v6981_v60  ;;  %v2495_v51 = vsel %vm728_vm2, %v2493_v14, %v2494_v7 }
 0x25d   : > { %v1784_v43 = vsel %vm1754_vm8, %v1751_v33, %v7680_v54  ;;  %v1783_v27 = vsel %vm1754_vm8, %v1750_v9, %v7679_v19  ;;  %v2497_v50 = vsel %vm728_vm2, %v2494_v7, %v2496_v23  ;;  %v1687_v2 = vsel %vm1655_vm5, %v10099_v29, %v7300_v31 }
 0x25e   : > { %v1817_v57 = vsel %vm1787_vm9, %v1784_v43, %v7685_v8  ;;  %v1816_v17 = vsel %vm1787_vm9, %v1783_v27, %v7684_v22  ;;  %v1719_v58 = vsel %vm1688_vm6, %v1686_v18, %v7699_v37  ;;  %v7705_v53 = vunpack.i.h.bf16 %v10033_v28  ;;  %v6834_v8 = vld [vmem:[%s13028_s4 + $0x30] sm:$0xff]  ;;  %v6833_v27 = vld [vmem:[%s13028_s4 + $0x28] sm:$0xff] }
 0x25f   : > { %7812 = vrot.lane.b32.xlu0 %v10060_v13, %s12801_s16  ;;  %v1850_v40 = vsel %vm1820_vm10, %v1817_v57, %v7690_v46  ;;  %7827 = vrot.lane.b32.xlu2 %v10135_v41, %s12809_s22  ;;  %v1849_v21 = vsel %vm1820_vm10, %v1816_v17, %v7689_v39  ;;  %v6835_v13 = vld [vmem:[%s13028_s4 + $0x38] sm:$0xff]  ;;  %v10172_v9 = vpack.i.bf16 %v2497_v50, %v2495_v51  ;;  %v7713_v39 = vpop.permute.xlu1 %7712  ;;  %v7720_v17 = vunpack.i.h.bf16 %v10076_v10 }
 0x260   : > { %v1867_v25 = vpack.c.bf16 %v1850_v40, %v1849_v21  ;;  %3808 = vmatpush.bf16.msrb.mxu1 %v6835_v13  ;;  %v1720_v54 = vsel %vm1688_vm6, %v1687_v2, %v7700_v55  ;;  %v1752_v28 = vsel %vm1721_vm7, %v1719_v58, %v7704_v35  ;;  %v7715_v14 = vunpack.i.h.bf16 %v7713_v39  ;;  %v1986_v2 = vpop.f32.mrf.mxu2 }
 0x261   : > { %v1753_v23 = vsel %vm1721_vm7, %v1720_v54, %v7705_v53  ;;  %v7714_v7 = vunpack.i.l.bf16 %v7713_v39  ;;  %v7719_v40 = vunpack.i.l.bf16 %v10076_v10  ;;  %vm3437_vm4 = vcmask 818176  }
 0x262   : > { %v7738_v63 = vpop.permute.xlu2 %7737  ;;  %v7693_v45 = vpop.permute.xlu0 %7692  ;;  %6233 = vmatmul.msk.bf16.gmra.mxu3 %vm1885_vm11, %v1867_v25  ;;  %vm3470_vm5 = vcmask 1022976   ;;  %vm3503_vm6 = vcmask 179200   ;;  %vm3536_vm7 = vcmask 384000  }
 0x263   : > { %v7740_v59 = vunpack.i.h.bf16 %v7738_v63  ;;  %v7739_v12 = vunpack.i.l.bf16 %v7738_v63  ;;  %v7695_v42 = vunpack.i.h.bf16 %v7693_v45  ;;  %v7694_v34 = vunpack.i.l.bf16 %v7693_v45  ;;  %7817 = vrot.lane.b32.xlu1 %v7816_v16, %s12807_s17  ;;  %v6985_v45 = vld [vmem:[%s9969_s27 + $0x38] sm:$0xff]  }
 0x264   : > { %3809 = vmatpush.bf16.msrb.mxu1 %v6834_v8  ;;  %v6945_v58 = vunpack.c.l.bf16 %v6985_v45  ;;  %v6946_v53 = vunpack.c.h.bf16 %v6985_v45 }
 0x265   : > { %v2198_v22 = vsel %vm2186_vm12, %v6938_v38, %v7740_v59  ;;  %v2197_v61 = vsel %vm2186_vm12, %v6937_v1, %v7739_v12  ;;  %v2194_v4 = vsel %vm2186_vm12, %v6930_v3, %v7695_v42  ;;  %v2193_v29 = vsel %vm2186_vm12, %v6929_v36, %v7694_v34  ;;  %v6832_v3 = vld [vmem:[%s13028_s4 + $0x20] sm:$0xff] }
 0x266   : > { %v2267_v33 = vrot.slane %v2198_v22, 7  ;;  %v2266_v46 = vrot.slane %v2197_v61, 7  ;;  %v2261_v24 = vrot.slane %v2194_v4, 7  ;;  %v2260_v47 = vrot.slane %v2193_v29, 7  ;;  %v6982_v29 = vld [vmem:[%s9969_s27 + $0x20] sm:$0xff]  }
 0x267   : > { %7837 = vrot.lane.b32.xlu0 %v10172_v9, %s12811_s23  ;;  %7842 = vrot.lane.b32.xlu2 %v10135_v41, %s12803_s28 }
 0x268   : > { %v10180_v19 = vsel %vm481_vm0, %v2267_v33, 0.0  ;;  %v10183_v30 = vsel %vm481_vm0, %v2266_v46, %v2267_v33  ;;  %v10186_v0 = vsel %vm481_vm0, 0.0, %v2266_v46  ;;  %v2365_v1 = vsel %vm481_vm0, %v2261_v24, 0.0  ;;  %3810 = vmatpush.bf16.msrb.mxu1 %v6833_v27  ;;  %v6830_v46 = vld [vmem:[%s13028_s4 + $0x10] sm:$0xff] }
 0x269   : > { %v2436_v43 = vrot.slane %v10180_v19, 1  ;;  %v2433_v31 = vrot.slane %v10186_v0, 1  ;;  %v2434_v18 = vrot.slane %v10183_v30, 1  ;;  %v10209_v25 = vsel %vm481_vm0, %v2260_v47, %v2261_v24 }
 0x26a   : > { %v10195_v60 = vpop.permute.xlu2 %7742  ;;  %v7708_v57 = vpop.permute.xlu0 %7707  ;;  %v10212_v10 = vsel %vm481_vm0, 0.0, %v2260_v47  ;;  %v2426_v59 = vrot.slane %v2365_v1, 1  ;;  %v2424_v34 = vrot.slane %v10209_v25, 1  ;;  %v2501_v54 = vrot.slane %v2365_v1, 2  ;;  %v6828_v1 = vld [vmem:[%s13028_s4] sm:$0xff] }
 0x26b   : > { %v7710_v55 = vunpack.i.h.bf16 %v7708_v57  ;;  %v7709_v37 = vunpack.i.l.bf16 %v7708_v57  ;;  %7822 = vrot.lane.b32.xlu1 %v7816_v16, %s12797_s21  ;;  %v2435_v21 = vsel %vm647_vm1, %v2433_v31, %v2434_v18  ;;  %v2437_v38 = vsel %vm647_vm1, %v2434_v18, %v2436_v43  ;;  %s13030_s21 = smov 9  }
 0x26c   : > { %v10220_v36 = vpack.i.bf16 %v2437_v38, %v2435_v21  ;;  %v2423_v42 = vrot.slane %v10212_v10, 1  ;;  %3811 = vmatpush.bf16.msrb.mxu1 %v6832_v3  ;;  %v2427_v33 = vsel %vm647_vm1, %v2424_v34, %v2426_v59  ;;  %v2498_v24 = vrot.slane %v10212_v10, 2 }
 0x26d   : > { %v1786_v13 = vsel %vm1754_vm8, %v1753_v23, %v7710_v55  ;;  %v1785_v16 = vsel %vm1754_vm8, %v1752_v28, %v7709_v37  ;;  %v2499_v23 = vrot.slane %v10209_v25, 2  ;;  %v6933_v47 = vunpack.c.l.bf16 %v6982_v29  ;;  %v1988_v55 = vpop.f32.mrf.mxu2 }
 0x26e   : > { %v1818_v35 = vsel %vm1787_vm9, %v1785_v16, %v7714_v7  ;;  %v1819_v63 = vsel %vm1787_vm9, %v1786_v13, %v7715_v14  ;;  %v2425_v4 = vsel %vm647_vm1, %v2423_v42, %v2424_v34  ;;  %v6934_v27 = vunpack.c.h.bf16 %v6982_v29 }
 0x26f   : > { %7847 = vrot.lane.b32.xlu0 %v10135_v41, %s12799_s14  ;;  %v1851_v51 = vsel %vm1820_vm10, %v1818_v35, %v7719_v40  ;;  %v1852_v50 = vsel %vm1820_vm10, %v1819_v63, %v7720_v17  ;;  %7862 = vrot.lane.b32.xlu2 %v10220_v36, %s12809_s22  ;;  %v6831_v41 = vld [vmem:[%s13028_s4 + $0x18] sm:$0xff]  ;;  %v7876_v43 = vpack.i.bf16 %v2427_v33, %v2425_v4  ;;  %v7730_v57 = vunpack.i.h.bf16 %v10123_v44  ;;  %s13029_s14 = smov 25   ;;  %vm6595_vm10 = vmneg %vm481_vm0 }
 0x270   : > { %v1868_v12 = vpack.c.bf16 %v1852_v50, %v1851_v51  ;;  %3812 = vmatpush.bf16.msrb.mxu1 %v6831_v41  ;;  %v7729_v14 = vunpack.i.l.bf16 %v10123_v44  ;;  %v10252_v18 = vpack.i.bf16 %v10183_v30, %v10186_v0  ;;  %v2500_v17 = vsel %vm728_vm2, %v2498_v24, %v2499_v23 }
 0x271   : > { %v2502_v40 = vsel %vm728_vm2, %v2499_v23, %v2501_v54  ;;  %v2196_v44 = vsel %vm2186_vm12, %v6934_v27, %v7730_v57  ;;  %v1989_v16 = vadd.f32 %v9868_v52, %v1988_v55  ;;  %v1987_v59 = vadd.f32 %v9868_v52, %v1986_v2 }
 0x272   : > { %6234 = vmatmul.msk.bf16.gmra.mxu3 %vm1885_vm11, %v1868_v12  ;;  %v2195_v37 = vsel %vm2186_vm12, %v6933_v47, %v7729_v14  ;;  %v10275_v13 = vpack.i.bf16 %v2502_v40, %v2500_v17  ;;  %v2264_v35 = vrot.slane %v2196_v44, 7  ;;  %v7866_v12 = vpack.i.bf16 %v10209_v25, %v10212_v10 }
 0x273   : > { %v7748_v8 = vpop.permute.xlu2 %7747  ;;  %7832 = vrot.lane.b32.xlu1 %v10172_v9, %s12805_s26  ;;  %v2263_v63 = vrot.slane %v2195_v37, 7  ;;  %v2043_v42 = vmax.f32 %v1989_v16, 0.0  ;;  %v2042_v2 = vmax.f32 %v1987_v59, 0.0  ;;  %v7744_v27 = vunpack.i.l.bf16 %v10195_v60 }
 0x274   : > { %v7750_v22 = vunpack.i.h.bf16 %v7748_v8  ;;  %v7749_v61 = vunpack.i.l.bf16 %v7748_v8  ;;  %3813 = vmatpush.bf16.msrb.mxu1 %v6830_v46  ;;  %v2366_v34 = vsel %vm481_vm0, %v2264_v35, 0.0  ;;  %v2508_v59 = vrot.slane %v10186_v0, 2 }
 0x275   : > { %v10289_v41 = vsel %vm481_vm0, %v2263_v63, %v2264_v35  ;;  %v7906_v46 = vpack.i.bf16 %v2043_v42, %v2042_v2  ;;  %vm3569_vm8 = vcmask 588800   ;;  %vm3754_vm9 = vcmask 793600  }
 0x276   : > { %v2202_v28 = vsel %vm2186_vm12, %v6946_v53, %v7750_v22  ;;  %v2201_v39 = vsel %vm2186_vm12, %v6945_v58, %v7749_v61  ;;  %v10292_v58 = vsel %vm481_vm0, 0.0, %v2263_v63  ;;  %v6984_v53 = vld [vmem:[%s9969_s27 + $0x30] sm:$0xff]   ;;  %v7723_v22 = vpop.permute.xlu0 %7722  ;;  %v2506_v61 = vrot.slane %v2366_v34, 2 }
 0x277   : > { %7852 = vrot.lane.b32.xlu0 %v10172_v9, %s12801_s16  ;;  %v2273_v7 = vrot.slane %v2202_v28, 7  ;;  %v2272_v31 = vrot.slane %v2201_v39, 7  ;;  %7877 = vrot.lane.b32.xlu2 %v7876_v43, %s12809_s22  ;;  %v6829_v9 = vld [vmem:[%s13028_s4 + $0x8] sm:$0xff]  ;;  %v2503_v4 = vrot.slane %v10292_v58, 2  ;;  %v2504_v33 = vrot.slane %v10289_v41, 2 }
 0x278   : > { %3814 = vmatpush.bf16.msrb.mxu1 %v6829_v9  ;;  %v6942_v29 = vunpack.c.h.bf16 %v6984_v53  ;;  %v2431_v28 = vrot.slane %v2366_v34, 1  ;;  %v7745_v39 = vunpack.i.h.bf16 %v10195_v60  ;;  %v2428_v24 = vrot.slane %v10292_v58, 1 }
 0x279   : > { %v10267_v21 = vsel %vm481_vm0, %v2273_v7, 0.0  ;;  %v10270_v38 = vsel %vm481_vm0, %v2272_v31, %v2273_v7  ;;  %v10273_v3 = vsel %vm481_vm0, 0.0, %v2272_v31  ;;  %v2429_v23 = vrot.slane %v10289_v41, 1 }
 0x27a   : > { %v2446_v45 = vrot.slane %v10267_v21, 1  ;;  %v2443_v51 = vrot.slane %v10273_v3, 1  ;;  %v2444_v50 = vrot.slane %v10270_v38, 1  ;;  %v6941_v47 = vunpack.c.l.bf16 %v6984_v53 }
 0x27b   : > { %7857 = vrot.lane.b32.xlu1 %v10252_v18, %s12807_s17  ;;  %v2505_v57 = vsel %vm728_vm2, %v2503_v4, %v2504_v33  ;;  %v2507_v14 = vsel %vm728_vm2, %v2504_v33, %v2506_v61  ;;  %v2430_v7 = vsel %vm647_vm1, %v2428_v24, %v2429_v23  ;;  %v2432_v31 = vsel %vm647_vm1, %v2429_v23, %v2431_v28 }
 0x27c   : > { %3815 = vmatpush.bf16.msrb.mxu1 %v6828_v1  ;;  %v2445_v8 = vsel %vm647_vm1, %v2443_v51, %v2444_v50  ;;  %v2447_v52 = vsel %vm647_vm1, %v2444_v50, %v2446_v45  ;;  %v2199_v9 = vsel %vm2186_vm12, %v6941_v47, %v7744_v27  ;;  %v7725_v17 = vunpack.i.h.bf16 %v7723_v22  ;;  %v1991_v51 = vpop.f32.mrf.mxu2 }
 0x27d   : > { %v10301_v54 = vpack.i.bf16 %v2447_v52, %v2445_v8  ;;  %v10315_v40 = vpack.i.bf16 %v2507_v14, %v2505_v57  ;;  %v7724_v60 = vunpack.i.l.bf16 %v7723_v22  ;;  %v10319_v44 = vpack.i.bf16 %v2432_v31, %v2430_v7  ;;  %v3662_v14 = vld [vmem:[%s13028_s4 + $0x70] sm:$0x1] }
 0x27e   : > { %v7733_v37 = vpop.permute.xlu0 %7732  ;;  %v2511_v1 = vrot.slane %v10180_v19, 2  ;;  %v2269_v16 = vrot.slane %v2199_v9, 7  ;;  %v3340_v35 = vsel %vm3338_vm13, %v13011_v20, %v7725_v17  ;;  %v3724_v31 = vunpack.c.l.b16 %v3662_v14 }
 0x27f   : > { %7887 = vrot.lane.b32.xlu0 %v10275_v13, %s12811_s23  ;;  %7892 = vrot.lane.b32.xlu2 %v7876_v43, %s12803_s28  ;;  %v7735_v63 = vunpack.i.h.bf16 %v7733_v37  ;;  %v7734_v45 = vunpack.i.l.bf16 %v7733_v37  ;;  %v3339_v50 = vsel %vm3338_vm13, %v12967_v11, %v7724_v60  ;;  %v8543_v17 = vmov 0  }
 0x280   : > { %v10339_v34 = vsel %vm481_vm0, 0.0, %v2269_v16  ;;  %v7763_v53 = vpop.permute.xlu2 %7762  ;;  %v3804_v60 = vsel %vm481_vm0, 65535, %v8543_v17  ;;  %vm8544_vm11 = vmmov 1  }
 0x281   : > { %v3372_v11 = vsel %vm3371_vm14, %v3339_v50, %v7734_v45  ;;  %v3373_v8 = vsel %vm3371_vm14, %v3340_v35, %v7735_v63  ;;  %v7765_v33 = vunpack.i.h.bf16 %v7763_v53  ;;  %v3739_v35 = vpack.c.b16 %v3724_v31, %v3724_v31  ;;  %v10379_v50 = vld [vmem:[%s12695_s3] ss:$0 sm:$0xff]  ;;  %vm10888_vm3 = vmpackc.low %vm8544_vm11, %vm6595_vm10 }
 0x283   : > { %7867 = vrot.lane.b32.xlu1 %v7866_v12, %s12807_s17  ;;  %v3806_v45 = vand.u32 %v3804_v60, %v3739_v35 }
 0x285   : > { %3898 = vmatpush.bf16.msrb.mxu2 %v3806_v45 }
 0x287   : > { %7897 = vrot.lane.b32.xlu0 %v7876_v43, %s13029_s14  ;;  %7907 = vrot.lane.b32.xlu2 %v7906_v46, %s13030_s21  ;;  %v2200_v43 = vsel %vm2186_vm12, %v6942_v29, %v7745_v39  ;;  %v7764_v46 = vunpack.i.l.bf16 %v7763_v53  ;;  %v2438_v29 = vrot.slane %v10339_v34, 1  ;;  %v6841_v53 = vld [vmem:[%s13028_s4 + $0x68] sm:$0xff] }
 0x288   : > { %v2270_v55 = vrot.slane %v2200_v43, 7 }
 0x289   : > { %3899 = vmatpush.bf16.msrb.mxu2 %v6841_v53 }
 0x28a   : > { %v10331_v19 = vsel %vm481_vm0, %v2270_v55, 0.0  ;;  %v10336_v42 = vsel %vm481_vm0, %v2269_v16, %v2270_v55  ;;  %v1993_v55 = vpop.f32.mrf.mxu2 }
 0x28b   : > { %7872 = vrot.lane.b32.xlu1 %v7866_v12, %s13031_s29  ;;  %v2509_v12 = vrot.slane %v10183_v30, 2  ;;  %v2439_v28 = vrot.slane %v10336_v42, 1  ;;  %v2441_v39 = vrot.slane %v10331_v19, 1  ;;  %v10437_v60 = vpack.i.bf16 %v10336_v42, %v10339_v34 }
 0x28d   : > { %v2510_v61 = vsel %vm728_vm2, %v2508_v59, %v2509_v12  ;;  %v2512_v4 = vsel %vm728_vm2, %v2509_v12, %v2511_v1  ;;  %v2440_v9 = vsel %vm647_vm1, %v2438_v29, %v2439_v28  ;;  %v2442_v16 = vsel %vm647_vm1, %v2439_v28, %v2441_v39 }
 0x28e   : > { %v10356_v27 = vpack.i.bf16 %v2512_v4, %v2510_v61  ;;  %v1994_v59 = vadd.f32 %v10379_v50, %v1993_v55  ;;  %v10384_v12 = vpack.i.bf16 %v2442_v16, %v2440_v9  ;;  %v2513_v29 = vrot.slane %v10339_v34, 2 }
 0x28f   : > { %7927 = vrot.lane.b32.xlu0 %v10315_v40, %s12811_s23  ;;  %7917 = vrot.lane.b32.xlu2 %v10319_v44, %s12809_s22  ;;  %v2514_v28 = vrot.slane %v10336_v42, 2 }
 0x292   : > { %v1996_v4 = vpop.f32.mrf.mxu2 }
 0x293   : > { %7882 = vrot.lane.b32.xlu1 %v10275_v13, %s12805_s26  ;;  %v1997_v9 = vadd.f32 %v10379_v50, %v1996_v4 }
 0x295   : > { %v7753_v52 = vpop.permute.xlu1 %7752 }
 0x296   : > { %v7755_v2 = vunpack.i.h.bf16 %v7753_v52  ;;  %v7754_v22 = vunpack.i.l.bf16 %v7753_v52  ;;  %v2045_v52 = vmax.f32 %v1994_v59, 0.0 }
 0x297   : > { %7932 = vrot.lane.b32.xlu0 %v10275_v13, %s12801_s16  ;;  %7942 = vrot.lane.b32.xlu2 %v10319_v44, %s12803_s28  ;;  %s13033_s28 = smov 50   ;;  %s13037_s16 = smov 22  }
 0x298   : > { %v3405_v24 = vsel %vm3404_vm15, %v3372_v11, %v7754_v22  ;;  %v3406_v23 = vsel %vm3404_vm15, %v3373_v8, %v7755_v2  ;;  %v1992_v11 = vadd.f32 %v10379_v50, %v1991_v51  ;;  %v7911_v8 = vpack.i.bf16 %v10289_v41, %v10292_v58  ;;  %v6840_v2 = vld [vmem:[%s13028_s4 + $0x60] sm:$0xff]  ;;  %v6839_v51 = vld [vmem:[%s13028_s4 + $0x58] sm:$0xff] }
 0x299   : > { %v10354_v47 = vpop.permute.xlu0 %7757  ;;  %v3438_v13 = vsel %vm3437_vm4, %v3405_v24, %v7764_v46  ;;  %v3439_v57 = vsel %vm3437_vm4, %v3406_v23, %v7765_v33  ;;  %3900 = vmatpush.bf16.msrb.mxu2 %v6840_v2  ;;  %v6838_v46 = vld [vmem:[%s13028_s4 + $0x50] sm:$0xff]  ;;  %v6837_v24 = vld [vmem:[%s13028_s4 + $0x48] sm:$0xff] }
 0x29a   : > { %v7760_v43 = vunpack.i.h.bf16 %v10354_v47  ;;  %v7759_v7 = vunpack.i.l.bf16 %v10354_v47  ;;  %v2044_v22 = vmax.f32 %v1992_v11, 0.0 }
 0x29b   : > { %7902 = vrot.lane.b32.xlu1 %v10356_v27, %s12805_s26  ;;  %s13036_s26 = smov 47  }
 0x29c   : > { %v3471_v37 = vsel %vm3470_vm5, %v3438_v13, %v7759_v7  ;;  %v3472_v1 = vsel %vm3470_vm5, %v3439_v57, %v7760_v43  ;;  %v7971_v61 = vpack.i.bf16 %v2045_v52, %v2044_v22  ;;  %v2515_v13 = vsel %vm728_vm2, %v2513_v29, %v2514_v28  ;;  %v1998_v57 = vpop.f32.mrf.mxu2 }
 0x29d   : > { %v3602_v63 = vpack.c.bf16 %v3472_v1, %v3471_v37  ;;  %3901 = vmatpush.bf16.msrb.mxu2 %v6839_v51  ;;  %v1999_v31 = vadd.f32 %v10379_v50, %v1998_v57  ;;  %v2046_v1 = vmax.f32 %v1997_v9, 0.0  ;;  %v2521_v52 = vrot.slane %v10267_v21, 2 }
 0x29e   : > { %v2519_v51 = vrot.slane %v10270_v38, 2 }
 0x29f   : > { %3816 = vmatmul.bf16.vlgmr.msrb.gmra.mxu1 %v3602_v63  ;;  %7947 = vrot.lane.b32.xlu0 %v10356_v27, %s12811_s23  ;;  %s13034_s23 = smov 100   ;;  %v2047_v37 = vmax.f32 %v1999_v31, 0.0 }
 0x2a0   : > { %7957 = vrot.lane.b32.xlu2 %v10384_v12, %s12809_s22  ;;  %s13035_s22 = smov 125  }
 0x2a1   : > { %v7768_v39 = vpop.permute.xlu0 %7767  ;;  %3902 = vmatpush.bf16.msrb.mxu2 %v6838_v46  ;;  %v8016_v35 = vpack.i.bf16 %v2047_v37, %v2046_v1 }
 0x2a2   : > { %v7770_v63 = vunpack.i.h.bf16 %v7768_v39  ;;  %v7769_v45 = vunpack.i.l.bf16 %v7768_v39 }
 0x2a3   : > { %7912 = vrot.lane.b32.xlu1 %v7911_v8, %s12807_s17  ;;  %s13032_s17 = smov 72  }
 0x2a4   : > { %v3342_v2 = vsel %vm3338_vm13, %v9977_v26, %v7770_v63 }
 0x2a5   : > { %3903 = vmatpush.bf16.msrb.mxu2 %v6837_v24 }
 0x2a7   : > { %7962 = vrot.lane.b32.xlu0 %v10319_v44, %s13029_s14  ;;  %v2516_v44 = vrot.slane %v10331_v19, 2 }
 0x2a8   : > { %7972 = vrot.lane.b32.xlu2 %v7971_v61, %s13030_s21  ;;  %v2518_v61 = vrot.slane %v10273_v3, 2 }
 0x2a9   : > { %v10404_v33 = vpop.permute.xlu2 %7787  ;;  %v2517_v19 = vsel %vm728_vm2, %v2514_v28, %v2516_v44  ;;  %v7773_v17 = vpop.permute.xlu0 %7772 }
 0x2aa   : > { %v10427_v14 = vpack.i.bf16 %v2517_v19, %v2515_v13  ;;  %v7775_v53 = vunpack.i.h.bf16 %v7773_v17  ;;  %v7774_v11 = vunpack.i.l.bf16 %v7773_v17  ;;  %v2520_v9 = vsel %vm728_vm2, %v2518_v61, %v2519_v51 }
 0x2ab   : > { %7922 = vrot.lane.b32.xlu1 %v10315_v40, %s13032_s17  ;;  %v2522_v17 = vsel %vm728_vm2, %v2519_v51, %v2521_v52  ;;  %v7790_v63 = vunpack.i.h.bf16 %v10404_v33 }
 0x2ac   : > { %v3375_v46 = vsel %vm3371_vm14, %v3342_v2, %v7775_v53 }
 0x2af   : > { %7977 = vrot.lane.b32.xlu0 %v10315_v40, %s13033_s28  ;;  %v6836_v40 = vld [vmem:[%s13028_s4 + $0x40] sm:$0xff]  ;;  %s8481_s4 = scalar_lea.hbm %s12701_s9, 512 }
 0x2b0   : > { %7987 = vrot.lane.b32.xlu2 %v10220_v36, %s13034_s23  ;;  %3904 = vmatpush.bf16.msrb.mxu2 %v6836_v40 }
 0x2b1   : > { %v7803_v23 = vpop.permute.xlu2 %7802 }
 0x2b2   : > { %v7805_v28 = vunpack.i.h.bf16 %v7803_v23  ;;  %v7804_v39 = vunpack.i.l.bf16 %v7803_v23 }
 0x2b3   : > { %7937 = vrot.lane.b32.xlu1 %v7911_v8, %s13031_s29 }
 0x2b7   : > { %7992 = vrot.lane.b32.xlu0 %v10427_v14, %s13035_s22 }
 0x2b8   : > { %8002 = vrot.lane.b32.xlu2 %v10301_v54, %s13036_s26 }
 0x2b9   : > { %v10439_v55 = vpop.permute.xlu2 %7827 }
 0x2bb   : > { %7952 = vrot.lane.b32.xlu1 %v10437_v60, %s13037_s16 }
 0x2bd   : > { %v7778_v16 = vpop.permute.xlu1 %7777 }
 0x2be   : > { %v7780_v21 = vunpack.i.h.bf16 %v7778_v16  ;;  %v7779_v24 = vunpack.i.l.bf16 %v7778_v16 }
 0x2bf   : > { %8007 = vrot.lane.b32.xlu0 %v10220_v36, %s13029_s14  ;;  %v3341_v36 = vsel %vm3338_vm13, %v9980_v62, %v7769_v45  ;;  %v7789_v45 = vunpack.i.l.bf16 %v10404_v33 }
 0x2c0   : > { %8017 = vrot.lane.b32.xlu2 %v8016_v35, %s13030_s21  ;;  %v3374_v4 = vsel %vm3371_vm14, %v3341_v36, %v7774_v11  ;;  %v3505_v16 = vsel %vm3503_vm6, %v7760_v43, %v7780_v21  ;;  %v3504_v35 = vsel %vm3503_vm6, %v7759_v7, %v7779_v24  ;;  %v10491_v11 = vpack.i.bf16 %v2522_v17, %v2520_v9  ;;  %v6986_v9 = vld [vmem:[%s9969_s27 + $0x40] sm:$0xff]  }
 0x2c1   : > { %v10446_v59 = vpop.permute.xlu0 %7797  ;;  %v10448_v8 = vpop.permute.xlu2 %7842  ;;  %v3537_v2 = vsel %vm3536_vm7, %v3504_v35, %v7789_v45  ;;  %v3538_v43 = vsel %vm3536_vm7, %v3505_v16, %v7790_v63  ;;  %v6949_v45 = vunpack.c.l.bf16 %v6986_v9 }
 0x2c2   : > { %v7800_v26 = vunpack.i.h.bf16 %v10446_v59  ;;  %v7799_v62 = vunpack.i.l.bf16 %v10446_v59  ;;  %v7845_v21 = vunpack.i.h.bf16 %v10448_v8 }
 0x2c3   : > { %7967 = vrot.lane.b32.xlu1 %v10427_v14, %s13032_s17 }
 0x2c5   : > { %v7783_v22 = vpop.permute.xlu1 %7782 }
 0x2c6   : > { %v7785_v44 = vunpack.i.h.bf16 %v7783_v22  ;;  %v7784_v29 = vunpack.i.l.bf16 %v7783_v22  ;;  %v10501_v22 = vpack.i.bf16 %v10270_v38, %v10273_v3 }
 0x2c7   : > { %8022 = vrot.lane.b32.xlu0 %v10356_v27, %s13033_s28 }
 0x2c8   : > { %v3408_v13 = vsel %vm3404_vm15, %v3375_v46, %v7785_v44  ;;  %v3407_v19 = vsel %vm3404_vm15, %v3374_v4, %v7784_v29  ;;  %8032 = vrot.lane.b32.xlu2 %v10384_v12, %s13034_s23 }
 0x2c9   : > { %v7808_v57 = vpop.permute.xlu0 %7807  ;;  %v3440_v23 = vsel %vm3437_vm4, %v3407_v19, %v7804_v39  ;;  %v3441_v40 = vsel %vm3437_vm4, %v3408_v13, %v7805_v28  ;;  %v10479_v37 = vpop.permute.xlu2 %7862 }
 0x2ca   : > { %v3473_v27 = vsel %vm3470_vm5, %v3440_v23, %v7799_v62  ;;  %v3474_v31 = vsel %vm3470_vm5, %v3441_v40, %v7800_v26  ;;  %v7810_v46 = vunpack.i.h.bf16 %v7808_v57  ;;  %v7809_v44 = vunpack.i.l.bf16 %v7808_v57 }
 0x2cb   : > { %7982 = vrot.lane.b32.xlu1 %v10252_v18, %s13031_s29  ;;  %v3604_v1 = vpack.c.bf16 %v3474_v31, %v3473_v27  ;;  %v7844_v57 = vunpack.i.l.bf16 %v10448_v8 }
 0x2cc   : > { %v3344_v13 = vsel %vm3338_vm13, %v10037_v48, %v7810_v46 }
 0x2cd   : > { %v7793_v53 = vpop.permute.xlu1 %7792  ;;  %3821 = vmatmul.bf16.gmra.mxu1 %v3604_v1 }
 0x2ce   : > { %v7795_v18 = vunpack.i.h.bf16 %v7793_v53  ;;  %v7794_v52 = vunpack.i.l.bf16 %v7793_v53  ;;  %v6950_v53 = vunpack.c.h.bf16 %v6986_v9 }
 0x2cf   : > { %8037 = vrot.lane.b32.xlu0 %v10491_v11, %s13035_s22 }
 0x2d0   : > { %v3570_v47 = vsel %vm3569_vm8, %v3537_v2, %v7794_v52  ;;  %v3571_v7 = vsel %vm3569_vm8, %v3538_v43, %v7795_v18  ;;  %v2001_v18 = vpop.f32.mrf.mxu2 }
 0x2d1   : > { %v3603_v33 = vpack.c.bf16 %v3571_v7, %v3570_v47  ;;  %v7813_v36 = vpop.permute.xlu0 %7812  ;;  %v10503_v61 = vpop.permute.xlu2 %7877 }
 0x2d2   : > { %v7815_v29 = vunpack.i.h.bf16 %v7813_v36  ;;  %v7814_v28 = vunpack.i.l.bf16 %v7813_v36  ;;  %v7830_v36 = vunpack.i.h.bf16 %v10439_v55 }
 0x2d3   : > { %7997 = vrot.lane.b32.xlu1 %v10501_v22, %s13037_s16  ;;  %6291 = vmatmul.msk.bf16.vlgmr.msrb.gmra.mxu2 %vm3754_vm9, %v3603_v33 }
 0x2d4   : > { %v3377_v27 = vsel %vm3371_vm14, %v3344_v13, %v7815_v29 }
 0x2d5   : > { %v7818_v51 = vpop.permute.xlu1 %7817 }
 0x2d6   : > { %v7820_v31 = vunpack.i.h.bf16 %v7818_v51  ;;  %v7819_v17 = vunpack.i.l.bf16 %v7818_v51  ;;  %v7829_v51 = vunpack.i.l.bf16 %v10439_v55 }
 0x2d7   : > { %8052 = vrot.lane.b32.xlu0 %v10384_v12, %s13029_s14  ;;  %v3343_v12 = vsel %vm3338_vm13, %v10040_v49, %v7809_v44 }
 0x2d8   : > { %v3376_v40 = vsel %vm3371_vm14, %v3343_v12, %v7814_v28  ;;  %v3507_v43 = vsel %vm3503_vm6, %v7800_v26, %v7820_v31  ;;  %v3506_v47 = vsel %vm3503_vm6, %v7799_v62, %v7819_v17 }
 0x2d9   : > { %v10510_v4 = vpop.permute.xlu0 %7837  ;;  %v10512_v39 = vpop.permute.xlu2 %7892  ;;  %v3539_v59 = vsel %vm3536_vm7, %v3506_v47, %v7829_v51  ;;  %v3540_v62 = vsel %vm3536_vm7, %v3507_v43, %v7830_v36  ;;  %v2002_v36 = vadd.f32 %v10379_v50, %v2001_v18 }
 0x2da   : > { %v7839_v1 = vunpack.i.l.bf16 %v10510_v4  ;;  %v7840_v16 = vunpack.i.h.bf16 %v10510_v4 }
 0x2db   : > { %8012 = vrot.lane.b32.xlu1 %v10491_v11, %s13032_s17 }
 0x2dd   : > { %v7823_v24 = vpop.permute.xlu1 %7822 }
 0x2de   : > { %v7825_v19 = vunpack.i.h.bf16 %v7823_v24  ;;  %v7824_v23 = vunpack.i.l.bf16 %v7823_v24 }
 0x2df   : > { %8067 = vrot.lane.b32.xlu0 %v10427_v14, %s13033_s28 }
 0x2e0   : > { %v3409_v48 = vsel %vm3404_vm15, %v3376_v40, %v7824_v23  ;;  %v3410_v49 = vsel %vm3404_vm15, %v3377_v27, %v7825_v19 }
 0x2e1   : > { %v10531_v35 = vpop.permute.xlu0 %7847  ;;  %v3442_v8 = vsel %vm3437_vm4, %v3409_v48, %v7844_v57  ;;  %v3443_v63 = vsel %vm3437_vm4, %v3410_v49, %v7845_v21  ;;  %v7908_v52 = vpop.permute.xlu2 %7907 }
 0x2e2   : > { %v3475_v14 = vsel %vm3470_vm5, %v3442_v8, %v7839_v1  ;;  %v3476_v2 = vsel %vm3470_vm5, %v3443_v63, %v7840_v16  ;;  %v7910_v7 = vunpack.i.h.bf16 %v7908_v52  ;;  %v7909_v33 = vunpack.i.l.bf16 %v7908_v52  ;;  %v2003_v8 = vpop.f32.mrf.mxu2 }
 0x2e3   : > { %8027 = vrot.lane.b32.xlu1 %v10437_v60, %s13031_s29  ;;  %v3606_v60 = vpack.c.bf16 %v3476_v2, %v3475_v14  ;;  %v7849_v18 = vunpack.i.l.bf16 %v10531_v35 }
 0x2e4   : > { %v2204_v44 = vsel %vm2186_vm12, %v6950_v53, %v7910_v7  ;;  %v2203_v29 = vsel %vm2186_vm12, %v6949_v45, %v7909_v33  ;;  %v2004_v7 = vadd.f32 %v10379_v50, %v2003_v8 }
 0x2e5   : > { %v7833_v46 = vpop.permute.xlu1 %7832  ;;  %v2276_v24 = vrot.slane %v2204_v44, 7  ;;  %v2275_v26 = vrot.slane %v2203_v29, 7  ;;  %3826 = vmatmul.bf16.gmra.mxu1 %v3606_v60  ;;  %v2048_v29 = vmax.f32 %v2002_v36, 0.0 }
 0x2e6   : > { %v7835_v28 = vunpack.i.h.bf16 %v7833_v46  ;;  %v7834_v21 = vunpack.i.l.bf16 %v7833_v46  ;;  %v2049_v60 = vmax.f32 %v2004_v7, 0.0 }
 0x2e7   : > { %v2370_v55 = vsel %vm481_vm0, %v2276_v24, 0.0  ;;  %v10559_v19 = vsel %vm481_vm0, %v2275_v26, %v2276_v24  ;;  %v10562_v23 = vsel %vm481_vm0, 0.0, %v2275_v26  ;;  %v10604_v24 = vpop.f32.mrf.mxu3 }
 0x2e8   : > { %v3572_v13 = vsel %vm3569_vm8, %v3539_v59, %v7834_v21  ;;  %v3573_v12 = vsel %vm3569_vm8, %v3540_v62, %v7835_v28  ;;  %v2451_v40 = vrot.slane %v2370_v55, 1  ;;  %v2526_v27 = vrot.slane %v2370_v55, 2 }
 0x2e9   : > { %v7853_v57 = vpop.permute.xlu0 %7852  ;;  %v10564_v31 = vpop.permute.xlu2 %7917  ;;  %v10568_v9 = vpack.i.bf16 %v10559_v19, %v10562_v23  ;;  %v3605_v17 = vpack.c.bf16 %v3573_v12, %v3572_v13  ;;  %v2523_v48 = vrot.slane %v10562_v23, 2  ;;  %v2524_v49 = vrot.slane %v10559_v19, 2 }
 0x2ea   : > { %v2448_v53 = vrot.slane %v10562_v23, 1  ;;  %v2449_v14 = vrot.slane %v10559_v19, 1  ;;  %v8061_v28 = vpack.i.bf16 %v2049_v60, %v2048_v29  ;;  %v7850_v21 = vunpack.i.h.bf16 %v10531_v35 }
 0x2eb   : > { %8042 = vrot.lane.b32.xlu1 %v10568_v9, %s13037_s16  ;;  %6292 = vmatmul.msk.bf16.gmra.mxu2 %vm3754_vm9, %v3605_v17  ;;  %v2525_v63 = vsel %vm728_vm2, %v2523_v48, %v2524_v49  ;;  %v2527_v45 = vsel %vm728_vm2, %v2524_v49, %v2526_v27  ;;  %v7855_v26 = vunpack.i.h.bf16 %v7853_v57  ;;  %v7854_v59 = vunpack.i.l.bf16 %v7853_v57 }
 0x2ec   : > { %v10581_v2 = vpack.i.bf16 %v2527_v45, %v2525_v63  ;;  %v2450_v43 = vsel %vm647_vm1, %v2448_v53, %v2449_v14  ;;  %v2452_v47 = vsel %vm647_vm1, %v2449_v14, %v2451_v40  ;;  %v7895_v12 = vunpack.i.h.bf16 %v10512_v39  ;;  %v6987_v63 = vld [vmem:[%s9969_s27 + $0x48] sm:$0xff]  }
 0x2ed   : > { %v10579_v52 = vpop.permute.xlu1 %7857  ;;  %v10588_v33 = vpack.i.bf16 %v2452_v47, %v2450_v43  ;;  %v7894_v55 = vunpack.i.l.bf16 %v10512_v39  ;;  %v3346_v35 = vsel %vm3338_vm13, %v10114_v56, %v7850_v21  ;;  %v3345_v27 = vsel %vm3338_vm13, %v10117_v6, %v7849_v18 }
 0x2ee   : > { %8082 = vrot.lane.b32.xlu0 %v10581_v2, %s13035_s22  ;;  %v3378_v48 = vsel %vm3371_vm14, %v3345_v27, %v7854_v59  ;;  %v3379_v49 = vsel %vm3371_vm14, %v3346_v35, %v7855_v26  ;;  %v6953_v43 = vunpack.c.l.bf16 %v6987_v63  ;;  %v6954_v47 = vunpack.c.h.bf16 %v6987_v63 }
 0x2ef   : > { %8047 = vrot.lane.b32.xlu2 %v10588_v33, %s13036_s26  ;;  %v2008_v21 = vpop.f32.mrf.mxu3  ;;  %v7880_v18 = vunpack.i.h.bf16 %v10503_v61  ;;  %v7879_v26 = vunpack.i.l.bf16 %v10503_v61 }
 0x2f1   : > { %v10593_v51 = vpop.permute.xlu0 %7887  ;;  %v10595_v46 = vpop.permute.xlu2 %7942 }
 0x2f2   : > { %v7890_v8 = vunpack.i.h.bf16 %v10593_v51  ;;  %v7889_v39 = vunpack.i.l.bf16 %v10593_v51 }
 0x2f3   : > { %8057 = vrot.lane.b32.xlu1 %v10581_v2, %s13032_s17 }
 0x2f5   : > { %v7868_v44 = vpop.permute.xlu1 %7867 }
 0x2f6   : > { %8097 = vrot.lane.b32.xlu0 %v10301_v54, %s13029_s14  ;;  %v7870_v45 = vunpack.i.h.bf16 %v7868_v44 }
 0x2f7   : > { %8062 = vrot.lane.b32.xlu2 %v8061_v28, %s13030_s21 }
 0x2f9   : > { %v10608_v13 = vpop.permute.xlu0 %7897 }
 0x2fa   : > { %v10606_v62 = vpop.permute.xlu2 %7957 }
 0x2fb   : > { %8072 = vrot.lane.b32.xlu1 %v10501_v22, %s13031_s29  ;;  %v7869_v22 = vunpack.i.l.bf16 %v7868_v44 }
 0x2fd   : > { %v7873_v40 = vpop.permute.xlu1 %7872  ;;  %v3508_v44 = vsel %vm3503_vm6, %v7839_v1, %v7869_v22 }
 0x2fe   : > { %v7875_v17 = vunpack.i.h.bf16 %v7873_v40  ;;  %v7874_v57 = vunpack.i.l.bf16 %v7873_v40  ;;  %8112 = vrot.lane.b32.xlu0 %v10491_v11, %s13033_s28 }
 0x2ff   : > { %8077 = vrot.lane.b32.xlu2 %v10301_v54, %s13034_s23  ;;  %v3509_v54 = vsel %vm3503_vm6, %v7840_v16, %v7870_v45  ;;  %v3541_v16 = vsel %vm3536_vm7, %v3508_v44, %v7879_v26 }
 0x300   : > { %v3411_v56 = vsel %vm3404_vm15, %v3378_v48, %v7874_v57  ;;  %v3412_v6 = vsel %vm3404_vm15, %v3379_v49, %v7875_v17  ;;  %v3542_v17 = vsel %vm3536_vm7, %v3509_v54, %v7880_v18  ;;  %v2009_v18 = vadd.f32 %v10379_v50, %v2008_v21 }
 0x301   : > { %v3444_v53 = vsel %vm3437_vm4, %v3411_v56, %v7894_v55  ;;  %v3445_v14 = vsel %vm3437_vm4, %v3412_v6, %v7895_v12  ;;  %v10645_v12 = vpop.permute.xlu0 %7927 }
 0x302   : > { %v3477_v7 = vsel %vm3470_vm5, %v3444_v53, %v7889_v39  ;;  %v3478_v11 = vsel %vm3470_vm5, %v3445_v14, %v7890_v8  ;;  %v7973_v36 = vpop.permute.xlu2 %7972 }
 0x303   : > { %v3608_v60 = vpack.c.bf16 %v3478_v11, %v3477_v7  ;;  %v7975_v29 = vunpack.i.h.bf16 %v7973_v36  ;;  %v7974_v28 = vunpack.i.l.bf16 %v7973_v36  ;;  %v2011_v7 = vpop.f32.mrf.mxu3 }
 0x305   : > { %v7883_v59 = vpop.permute.xlu1 %7882  ;;  %3831 = vmatmul.bf16.gmra.mxu1 %v3608_v60  ;;  %v2206_v55 = vsel %vm2186_vm12, %v6954_v47, %v7975_v29  ;;  %v2205_v40 = vsel %vm2186_vm12, %v6953_v43, %v7974_v28 }
 0x306   : > { %v7885_v1 = vunpack.i.h.bf16 %v7883_v59  ;;  %v7884_v35 = vunpack.i.l.bf16 %v7883_v59  ;;  %v2279_v4 = vrot.slane %v2206_v55, 7  ;;  %v2278_v27 = vrot.slane %v2205_v40, 7 }
 0x307   : > { %v2007_v55 = vadd.f32 %v10379_v50, %v10604_v24  ;;  %v10700_v24 = vadd.f32 %v10379_v50, %v2011_v7 }
 0x308   : > { %v3574_v57 = vsel %vm3569_vm8, %v3541_v16, %v7884_v35  ;;  %v3575_v61 = vsel %vm3569_vm8, %v3542_v17, %v7885_v1  ;;  %v2371_v48 = vsel %vm481_vm0, %v2279_v4, 0.0  ;;  %v10655_v49 = vsel %vm481_vm0, %v2278_v27, %v2279_v4 }
 0x309   : > { %v10658_v63 = vsel %vm481_vm0, 0.0, %v2278_v27  ;;  %v3607_v45 = vpack.c.bf16 %v3575_v61, %v3574_v57  ;;  %v2456_v22 = vrot.slane %v2371_v48, 1  ;;  %v2531_v56 = vrot.slane %v2371_v48, 2  ;;  %v10682_v26 = vpop.permute.xlu0 %7932  ;;  %v6988_v27 = vld [vmem:[%s9969_s27 + $0x50] sm:$0xff]  }
 0x30a   : > { %v10660_v6 = vpop.permute.xlu2 %7987  ;;  %v10664_v53 = vpack.i.bf16 %v10655_v49, %v10658_v63  ;;  %v2528_v14 = vrot.slane %v10658_v63, 2  ;;  %v2529_v43 = vrot.slane %v10655_v49, 2  ;;  %v2453_v47 = vrot.slane %v10658_v63, 1 }
 0x30b   : > { %6293 = vmatmul.msk.bf16.gmra.mxu2 %vm3754_vm9, %v3607_v45  ;;  %v2454_v60 = vrot.slane %v10655_v49, 1  ;;  %v2051_v1 = vmax.f32 %v2009_v18, 0.0  ;;  %v2050_v35 = vmax.f32 %v2007_v55, 0.0  ;;  %v2013_v4 = vpop.f32.mrf.mxu3  ;;  %v6957_v45 = vunpack.c.l.bf16 %v6988_v27 }
 0x30c   : > { %8087 = vrot.lane.b32.xlu1 %v10664_v53, %s13037_s16  ;;  %v2530_v11 = vsel %vm728_vm2, %v2528_v14, %v2529_v43  ;;  %v2532_v36 = vsel %vm728_vm2, %v2529_v43, %v2531_v56  ;;  %v10703_v61 = vadd.f32 %v10379_v50, %v2013_v4  ;;  %v7920_v56 = vunpack.i.h.bf16 %v10564_v31 }
 0x30d   : > { %v10675_v44 = vpop.permute.xlu1 %7902  ;;  %v10677_v54 = vpack.i.bf16 %v2532_v36, %v2530_v11  ;;  %v2455_v29 = vsel %vm647_vm1, %v2453_v47, %v2454_v60  ;;  %v2457_v28 = vsel %vm647_vm1, %v2454_v60, %v2456_v22  ;;  %v8106_v16 = vpack.i.bf16 %v2051_v1, %v2050_v35  ;;  %v6849_v60 = vld [vmem:[%s12698_s6 + $0x38] sm:$0xff]  ;;  %v6848_v1 = vld [vmem:[%s12698_s6 + $0x30] sm:$0xff] }
 0x30e   : > { %v10686_v59 = vpack.i.bf16 %v2457_v28, %v2455_v29  ;;  %v6958_v22 = vunpack.c.h.bf16 %v6988_v27  ;;  %v7919_v14 = vunpack.i.l.bf16 %v10564_v31  ;;  %v7860_v43 = vunpack.i.h.bf16 %v10579_v52  ;;  %v6857_v31 = vld [vmem:[%s12698_s6 + $0x78] sm:$0xff]  ;;  %5069 = vmatpush.bf16.msrb.mxu3 %v6849_v60 }
 0x30f   : > { %8127 = vrot.lane.b32.xlu0 %v10677_v54, %s13035_s22  ;;  %v7859_v29 = vunpack.i.l.bf16 %v10579_v52  ;;  %v7945_v28 = vunpack.i.h.bf16 %v10595_v46  ;;  %5158 = vmatpush.bf16.msrb.mxu0 %v6857_v31  ;;  %v7865_v52 = vunpack.i.h.bf16 %v10479_v37 }
 0x310   : > { %8092 = vrot.lane.b32.xlu2 %v10686_v59, %s13036_s26 }
 0x311   : > { %v10705_v48 = vpop.permute.xlu0 %7947 }
 0x312   : > { %v10692_v40 = vpop.permute.xlu2 %8002  ;;  %5070 = vmatpush.bf16.msrb.mxu3 %v6848_v1  ;;  %v7929_v1 = vunpack.i.l.bf16 %v10645_v12 }
 0x314   : > { %8102 = vrot.lane.b32.xlu1 %v10677_v54, %s13032_s17 }
 0x315   : > { %v7913_v21 = vpop.permute.xlu1 %7912 }
 0x316   : > { %v7915_v17 = vunpack.i.h.bf16 %v7913_v21  ;;  %v7914_v57 = vunpack.i.l.bf16 %v7913_v21 }
 0x317   : > { %8142 = vrot.lane.b32.xlu0 %v10588_v33, %s13029_s14 }
 0x318   : > { %8107 = vrot.lane.b32.xlu2 %v8106_v16, %s13030_s21  ;;  %v3510_v7 = vsel %vm3503_vm6, %v7889_v39, %v7914_v57  ;;  %v3511_v50 = vsel %vm3503_vm6, %v7890_v8, %v7915_v17  ;;  %v7899_v16 = vunpack.i.l.bf16 %v10608_v13 }
 0x319   : > { %v3543_v4 = vsel %vm3536_vm7, %v3510_v7, %v7919_v14  ;;  %v3544_v27 = vsel %vm3536_vm7, %v3511_v50, %v7920_v56 }
 0x31a   : > { %v8018_v47 = vpop.permute.xlu2 %8017 }
 0x31b   : > { %v8020_v11 = vunpack.i.h.bf16 %v8018_v47  ;;  %v8019_v36 = vunpack.i.l.bf16 %v8018_v47  ;;  %v7935_v47 = vunpack.i.h.bf16 %v10682_v26 }
 0x31c   : > { %8117 = vrot.lane.b32.xlu1 %v10568_v9, %s13031_s29  ;;  %v7900_v9 = vunpack.i.h.bf16 %v10608_v13 }
 0x31d   : > { %v7923_v51 = vpop.permute.xlu1 %7922  ;;  %v2208_v8 = vsel %vm2186_vm12, %v6958_v22, %v8020_v11  ;;  %v2207_v39 = vsel %vm2186_vm12, %v6957_v45, %v8019_v36  ;;  %v6856_v45 = vld [vmem:[%s12698_s6 + $0x70] sm:$0xff]  ;;  %v6847_v11 = vld [vmem:[%s12698_s6 + $0x28] sm:$0xff] }
 0x31e   : > { %v7925_v18 = vunpack.i.h.bf16 %v7923_v51  ;;  %v7924_v55 = vunpack.i.l.bf16 %v7923_v51  ;;  %v2282_v21 = vrot.slane %v2208_v8, 7  ;;  %v2281_v35 = vrot.slane %v2207_v39, 7  ;;  %5159 = vmatpush.bf16.msrb.mxu0 %v6856_v45  ;;  %5071 = vmatpush.bf16.msrb.mxu3 %v6847_v11 }
 0x31f   : > { %8157 = vrot.lane.b32.xlu0 %v10581_v2, %s13033_s28  ;;  %v7934_v2 = vunpack.i.l.bf16 %v10682_v26  ;;  %v7944_v51 = vunpack.i.l.bf16 %v10595_v46  ;;  %v3348_v8 = vsel %vm3338_vm13, %v10209_v25, %v7900_v9  ;;  %v3347_v39 = vsel %vm3338_vm13, %v10212_v10, %v7899_v16 }
 0x320   : > { %v3576_v17 = vsel %vm3569_vm8, %v3543_v4, %v7924_v55  ;;  %v3577_v57 = vsel %vm3569_vm8, %v3544_v27, %v7925_v18  ;;  %v2372_v22 = vsel %vm481_vm0, %v2282_v21, 0.0  ;;  %v10745_v14 = vsel %vm481_vm0, %v2281_v35, %v2282_v21  ;;  %8122 = vrot.lane.b32.xlu2 %v10588_v33, %s13034_s23  ;;  %v6855_v33 = vld [vmem:[%s12698_s6 + $0x68] sm:$0xff]  ;;  %v10774_v55 = vpop.permute.xlu0 %7962 }
 0x321   : > { %v10748_v56 = vsel %vm481_vm0, 0.0, %v2281_v35  ;;  %v3609_v13 = vpack.c.bf16 %v3577_v57, %v3576_v17  ;;  %v2461_v7 = vrot.slane %v2372_v22, 1  ;;  %v2536_v50 = vrot.slane %v2372_v22, 2 }
 0x322   : > { %v10759_v36 = vpack.i.bf16 %v10745_v14, %v10748_v56  ;;  %v2533_v60 = vrot.slane %v10748_v56, 2  ;;  %v2534_v26 = vrot.slane %v10745_v14, 2  ;;  %v2458_v31 = vrot.slane %v10748_v56, 1  ;;  %5160 = vmatpush.bf16.msrb.mxu0 %v6855_v33 }
 0x323   : > { %6294 = vmatmul.msk.bf16.gmra.mxu2 %vm3754_vm9, %v3609_v13  ;;  %v7930_v18 = vunpack.i.h.bf16 %v10645_v12  ;;  %v2459_v4 = vrot.slane %v10745_v14, 1  ;;  %v3380_v25 = vsel %vm3371_vm14, %v3347_v39, %v7934_v2  ;;  %v6846_v12 = vld [vmem:[%s12698_s6 + $0x20] sm:$0xff]  ;;  %v3381_v17 = vsel %vm3371_vm14, %v3348_v8, %v7935_v47 }
 0x324   : > { %8132 = vrot.lane.b32.xlu1 %v10759_v36, %s13037_s16  ;;  %v2535_v21 = vsel %vm728_vm2, %v2533_v60, %v2534_v26  ;;  %v2537_v35 = vsel %vm728_vm2, %v2534_v26, %v2536_v50  ;;  %v3512_v47 = vsel %vm3503_vm6, %v7929_v1, %v7859_v29  ;;  %v7904_v60 = vunpack.i.l.bf16 %v10675_v44  ;;  %5072 = vmatpush.bf16.msrb.mxu3 %v6846_v12  ;;  %v6854_v8 = vld [vmem:[%s12698_s6 + $0x60] sm:$0xff] }
 0x325   : > { %v7938_v27 = vpop.permute.xlu1 %7937  ;;  %v10783_v9 = vpack.i.bf16 %v2537_v35, %v2535_v21  ;;  %v2460_v57 = vsel %vm647_vm1, %v2458_v31, %v2459_v4  ;;  %v2462_v45 = vsel %vm647_vm1, %v2459_v4, %v2461_v7  ;;  %v3513_v22 = vsel %vm3503_vm6, %v7930_v18, %v7860_v43  ;;  %v6853_v21 = vld [vmem:[%s12698_s6 + $0x58] sm:$0xff]  ;;  %v6844_v4 = vld [vmem:[%s12698_s6 + $0x10] sm:$0xff] }
 0x326   : > { %v7940_v10 = vunpack.i.h.bf16 %v7938_v27  ;;  %v7939_v16 = vunpack.i.l.bf16 %v7938_v27  ;;  %v10796_v13 = vpack.i.bf16 %v2462_v45, %v2460_v57  ;;  %v7905_v43 = vunpack.i.h.bf16 %v10675_v44  ;;  %5161 = vmatpush.bf16.msrb.mxu0 %v6854_v8 }
 0x327   : > { %8172 = vrot.lane.b32.xlu0 %v10783_v9, %s13035_s22  ;;  %v7864_v29 = vunpack.i.l.bf16 %v10479_v37  ;;  %v2053_v46 = vmax.f32 %v10703_v61, 0.0  ;;  %v6845_v37 = vld [vmem:[%s12698_s6 + $0x18] sm:$0xff]  ;;  %v2052_v39 = vmax.f32 %v10700_v24, 0.0  ;;  %v7950_v12 = vunpack.i.h.bf16 %v10705_v48 }
 0x328   : > { %v3413_v2 = vsel %vm3404_vm15, %v3380_v25, %v7939_v16  ;;  %v3414_v50 = vsel %vm3404_vm15, %v3381_v17, %v7940_v10  ;;  %8137 = vrot.lane.b32.xlu2 %v10796_v13, %s13036_s26  ;;  %v7978_v61 = vpop.permute.xlu0 %7977  ;;  %5073 = vmatpush.bf16.msrb.mxu3 %v6845_v37  ;;  %v7949_v16 = vunpack.i.l.bf16 %v10705_v48  ;;  %v7965_v17 = vunpack.i.h.bf16 %v10774_v55 }
 0x329   : > { %v3446_v7 = vsel %vm3437_vm4, %v3413_v2, %v7944_v51  ;;  %v3447_v11 = vsel %vm3437_vm4, %v3414_v50, %v7945_v28  ;;  %v3545_v44 = vsel %vm3536_vm7, %v3512_v47, %v7864_v29  ;;  %v3546_v51 = vsel %vm3536_vm7, %v3513_v22, %v7865_v52  ;;  %v6851_v52 = vld [vmem:[%s12698_s6 + $0x48] sm:$0xff] }
 0x32a   : > { %v3479_v26 = vsel %vm3470_vm5, %v3446_v7, %v7929_v1  ;;  %v3480_v31 = vsel %vm3470_vm5, %v3447_v11, %v7930_v18  ;;  %v3578_v18 = vsel %vm3569_vm8, %v3545_v44, %v7904_v60  ;;  %v3579_v1 = vsel %vm3569_vm8, %v3546_v51, %v7905_v43  ;;  %5162 = vmatpush.bf16.msrb.mxu0 %v6853_v21  ;;  %v6850_v21 = vld [vmem:[%s12698_s6 + $0x40] sm:$0xff] }
 0x32b   : > { %v3610_v33 = vpack.c.bf16 %v3480_v31, %v3479_v26  ;;  %v8151_v35 = vpack.i.bf16 %v2053_v46, %v2052_v39  ;;  %v3611_v24 = vpack.c.bf16 %v3579_v1, %v3578_v18  ;;  %v7964_v45 = vunpack.i.l.bf16 %v10774_v55  ;;  %v6843_v55 = vld [vmem:[%s12698_s6 + $0x8] sm:$0xff] }
 0x32c   : > { %8147 = vrot.lane.b32.xlu1 %v10783_v9, %s13032_s17  ;;  %5074 = vmatpush.bf16.msrb.mxu3 %v6844_v4  ;;  %v7960_v47 = vunpack.i.h.bf16 %v10606_v62  ;;  %v7980_v7 = vunpack.i.h.bf16 %v7978_v61  ;;  %v7979_v11 = vunpack.i.l.bf16 %v7978_v61  ;;  %v3350_v43 = vsel %vm3338_vm13, %v10289_v41, %v7965_v17  ;;  %v6842_v41 = vld [vmem:[%s12698_s6] sm:$0xff] }
 0x32d   : > { %v7953_v28 = vpop.permute.xlu1 %7952  ;;  %3836 = vmatmul.bf16.gmra.mxu1 %v3610_v33  ;;  %v10884_v39 = vpack.c.bf16 %v13011_v20, %v13011_v20 }
 0x32e   : > { %v7954_v27 = vunpack.i.l.bf16 %v7953_v28  ;;  %v7955_v10 = vunpack.i.h.bf16 %v7953_v28  ;;  %v7989_v28 = vunpack.i.l.bf16 %v10660_v6  ;;  %v3383_v51 = vsel %vm3371_vm14, %v3350_v43, %v7980_v7 }
 0x32f   : > { %8187 = vrot.lane.b32.xlu0 %v10686_v59, %s13029_s14  ;;  %13038 = vst [vmem:[#allocation32_spill] sm:$0xff] %v10884_v39 }
 0x330   : > { %8152 = vrot.lane.b32.xlu2 %v8151_v35, %s13030_s21  ;;  %v10844_v57 = vpop.permute.xlu0 %7992  ;;  %v3514_v22 = vsel %vm3503_vm6, %v7949_v16, %v7954_v27  ;;  %v3515_v50 = vsel %vm3503_vm6, %v7950_v12, %v7955_v10  ;;  %5075 = vmatpush.bf16.msrb.mxu3 %v6843_v55  ;;  %v10898_v27 = vpop.permute.xlu2 %8032  ;;  %v13042_v10 = vld [vmem:[#allocation9_spill] sm:$0xff] }
 0x333   : > { %6295 = vmatmul.msk.bf16.gmra.mxu2 %vm3754_vm9, %v3611_v24 }
 0x334   : > { %8162 = vrot.lane.b32.xlu1 %v10664_v53, %s13031_s29  ;;  %v7959_v53 = vunpack.i.l.bf16 %v10606_v62  ;;  %v3548_v62 = vsel %vm3536_vm7, %v3515_v50, %v7960_v47  ;;  %5076 = vmatpush.bf16.msrb.mxu3 %v6842_v41 }
 0x335   : > { %v7968_v25 = vpop.permute.xlu1 %7967 }
 0x336   : > { %v7969_v2 = vunpack.i.l.bf16 %v7968_v25  ;;  %v7970_v48 = vunpack.i.h.bf16 %v7968_v25  ;;  %v3547_v60 = vsel %vm3536_vm7, %v3514_v22, %v7959_v53  ;;  %v13041_v25 = vld [vmem:[#allocation8_spill] sm:$0xff]  ;;  %v10910_v53 = vpop.f32.mrf.mxu3 }
 0x337   : > { %8202 = vrot.lane.b32.xlu0 %v10677_v54, %s13033_s28  ;;  %v6852_v54 = vld [vmem:[%s12698_s6 + $0x50] sm:$0xff]  ;;  %6598 = vmatmul.msk.bf16.vlgmr.msrb.gmra.mxu3 %vm10888_vm3, %v10884_v39  ;;  %v10905_v17 = vpack.c.bf16 %v13042_v10, %v13041_v25 }
 0x338   : > { %8167 = vrot.lane.b32.xlu2 %v10686_v59, %s13034_s23  ;;  %v3349_v59 = vsel %vm3338_vm13, %v10292_v58, %v7964_v45  ;;  %v3580_v31 = vsel %vm3569_vm8, %v3547_v60, %v7969_v2  ;;  %5163 = vmatpush.bf16.msrb.mxu0 %v6852_v54  ;;  %v3581_v46 = vsel %vm3569_vm8, %v3548_v62, %v7970_v48  ;;  %v7990_v58 = vunpack.i.h.bf16 %v10660_v6  ;;  %v8008_v35 = vpop.permute.xlu0 %8007  ;;  %v10925_v62 = vld [vmem:[%s12697_s5] ss:$0 sm:$0xff] }
 0x339   : > { %v3382_v44 = vsel %vm3371_vm14, %v3349_v59, %v7979_v11  ;;  %v3613_v61 = vpack.c.bf16 %v3581_v46, %v3580_v31  ;;  %13043 = vst [vmem:[#allocation29_spill] sm:$0xff] %v10905_v17  ;;  %v7994_v2 = vunpack.i.l.bf16 %v10844_v57  ;;  %v8005_v11 = vunpack.i.h.bf16 %v10692_v40  ;;  %v3817_v31 = vpop.f32.mrf.mxu1 }
 0x33a   : > { %v8004_v54 = vunpack.i.l.bf16 %v10692_v40  ;;  %v8010_v46 = vunpack.i.h.bf16 %v8008_v35 }
 0x33c   : > { %5164 = vmatpush.bf16.msrb.mxu0 %v6851_v52  ;;  %v6989_v52 = vld [vmem:[%s9969_s27 + $0x58] sm:$0xff]  }
 0x33d   : > { %v7983_v26 = vpop.permute.xlu1 %7982 }
 0x33e   : > { %v7985_v29 = vunpack.i.h.bf16 %v7983_v26  ;;  %v7984_v33 = vunpack.i.l.bf16 %v7983_v26 }
 0x340   : > { %v3415_v8 = vsel %vm3404_vm15, %v3382_v44, %v7984_v33  ;;  %v3416_v37 = vsel %vm3404_vm15, %v3383_v51, %v7985_v29  ;;  %5165 = vmatpush.bf16.msrb.mxu0 %v6850_v21  ;;  %v8023_v50 = vpop.permute.xlu0 %8022  ;;  %v8009_v33 = vunpack.i.l.bf16 %v8008_v35  ;;  %v6961_v44 = vunpack.c.l.bf16 %v6989_v52 }
 0x341   : > { %v3448_v18 = vsel %vm3437_vm4, %v3415_v8, %v7989_v28  ;;  %v3449_v1 = vsel %vm3437_vm4, %v3416_v37, %v7990_v58  ;;  %v8024_v58 = vunpack.i.l.bf16 %v8023_v50  ;;  %v8025_v28 = vunpack.i.h.bf16 %v8023_v50 }
 0x342   : > { %v3481_v20 = vsel %vm3470_vm5, %v3448_v18, %v7949_v16  ;;  %v3482_v4 = vsel %vm3470_vm5, %v3449_v1, %v7950_v12  ;;  %v7995_v12 = vunpack.i.h.bf16 %v10844_v57  ;;  %v6962_v51 = vunpack.c.h.bf16 %v6989_v52  ;;  %v2018_v18 = vpop.f32.mrf.mxu3 }
 0x343   : > { %6296 = vmatmul.msk.bf16.gmra.mxu2 %vm3754_vm9, %v3613_v61  ;;  %v3612_v24 = vpack.c.bf16 %v3482_v4, %v3481_v20  ;;  %5166 = vmatmul.bf16.vlgmr.msrb.gmra.mxu0 %v10905_v17  ;;  %v3818_v8 = vadd.f32 %v10925_v62, %v3817_v31  ;;  %v8035_v37 = vunpack.i.h.bf16 %v10898_v27  ;;  %v8034_v1 = vunpack.i.l.bf16 %v10898_v27 }
 0x344   : > { %v3351_v21 = vsel %vm3338_vm13, %v10186_v0, %v8009_v33 }
 0x345   : > { %v7998_v45 = vpop.permute.xlu1 %7997  ;;  %3841 = vmatmul.bf16.gmra.mxu1 %v3612_v24  ;;  %v3352_v24 = vsel %vm3338_vm13, %v10183_v30, %v8010_v46  ;;  %v3384_v25 = vsel %vm3371_vm14, %v3351_v21, %v8024_v58 }
 0x346   : > { %v8000_v22 = vunpack.i.h.bf16 %v7998_v45  ;;  %v7999_v16 = vunpack.i.l.bf16 %v7998_v45  ;;  %v3385_v50 = vsel %vm3371_vm14, %v3352_v24, %v8025_v28 }
 0x348   : > { %v3516_v48 = vsel %vm3503_vm6, %v7994_v2, %v7999_v16  ;;  %v3517_v47 = vsel %vm3503_vm6, %v7995_v12, %v8000_v22  ;;  %v10939_v10 = vpop.permute.xlu0 %8037 }
 0x349   : > { %v10916_v7 = vpop.permute.xlu2 %8047  ;;  %v3549_v59 = vsel %vm3536_vm7, %v3516_v48, %v8004_v54  ;;  %v3550_v26 = vsel %vm3536_vm7, %v3517_v47, %v8005_v11 }
 0x34d   : > { %v8013_v55 = vpop.permute.xlu1 %8012 }
 0x34e   : > { %v8015_v43 = vunpack.i.h.bf16 %v8013_v55  ;;  %v8014_v60 = vunpack.i.l.bf16 %v8013_v55  ;;  %v10949_v55 = vld [vmem:[%s12695_s3] ss:$0 sm:$0xff] }
 0x350   : > { %v3582_v41 = vsel %vm3569_vm8, %v3549_v59, %v8014_v60  ;;  %v3583_v29 = vsel %vm3569_vm8, %v3550_v26, %v8015_v43  ;;  %v2019_v43 = vadd.f32 %v10949_v55, %v2018_v18  ;;  %v3819_v26 = vpop.f32.mrf.mxu1 }
 0x351   : > { %v3615_v40 = vpack.c.bf16 %v3583_v29, %v3582_v41  ;;  %v8063_v61 = vpop.permute.xlu2 %8062 }
 0x352   : > { %v8065_v20 = vunpack.i.h.bf16 %v8063_v61  ;;  %v8064_v4 = vunpack.i.l.bf16 %v8063_v61  ;;  %v2017_v61 = vadd.f32 %v10949_v55, %v10910_v53 }
 0x353   : > { %6297 = vmatmul.msk.bf16.gmra.mxu2 %vm3754_vm9, %v3615_v40 }
 0x354   : > { %v2210_v27 = vsel %vm2186_vm12, %v6962_v51, %v8065_v20  ;;  %v2209_v48 = vsel %vm2186_vm12, %v6961_v44, %v8064_v4 }
 0x355   : > { %v8028_v35 = vpop.permute.xlu1 %8027  ;;  %v2285_v47 = vrot.slane %v2210_v27, 7  ;;  %v2284_v11 = vrot.slane %v2209_v48, 7  ;;  %v2054_v48 = vmax.f32 %v2017_v61, 0.0 }
 0x356   : > { %v8030_v45 = vunpack.i.h.bf16 %v8028_v35  ;;  %v8029_v22 = vunpack.i.l.bf16 %v8028_v35  ;;  %v3906_v16 = vpop.f32.mrf.mxu2 }
 0x357   : > { %v3907_v0 = vadd.f32 %v3906_v16, %v3818_v8  ;;  %v2373_v31 = vsel %vm481_vm0, %v2285_v47, 0.0  ;;  %v10955_v52 = vsel %vm481_vm0, %v2284_v11, %v2285_v47  ;;  %v10958_v41 = vsel %vm481_vm0, 0.0, %v2284_v11  ;;  %v8053_v16 = vpop.permute.xlu0 %8052 }
 0x358   : > { %v3417_v54 = vsel %vm3404_vm15, %v3384_v25, %v8029_v22  ;;  %v3418_v30 = vsel %vm3404_vm15, %v3385_v50, %v8030_v45  ;;  %v2466_v33 = vrot.slane %v2373_v31, 1  ;;  %v2541_v40 = vrot.slane %v2373_v31, 2 }
 0x359   : > { %v3986_v60 = vmax.f32 %v3907_v0, 0.0  ;;  %v3450_v59 = vsel %vm3437_vm4, %v3417_v54, %v8034_v1  ;;  %v3451_v29 = vsel %vm3437_vm4, %v3418_v30, %v8035_v37  ;;  %v10963_v46 = vpack.i.bf16 %v10955_v52, %v10958_v41 }
 0x35a   : > { %v3483_v58 = vsel %vm3470_vm5, %v3450_v59, %v7994_v2  ;;  %v2538_v28 = vrot.slane %v10958_v41, 2  ;;  %v2539_v44 = vrot.slane %v10955_v52, 2  ;;  %v2463_v51 = vrot.slane %v10958_v41, 1 }
 0x35b   : > { %v2464_v8 = vrot.slane %v10955_v52, 1  ;;  %v3820_v37 = vadd.f32 %v10925_v62, %v3819_v26  ;;  %8177 = vrot.lane.b32.xlu1 %v10963_v46, %s13037_s16  ;;  %v3484_v2 = vsel %vm3470_vm5, %v3451_v29, %v7995_v12  ;;  %v4050_v18 = vrot.slane %v3986_v60, 7  ;;  %v10994_v60 = vpop.permute.xlu2 %8077 }
 0x35c   : > { %v2540_v1 = vsel %vm728_vm2, %v2538_v28, %v2539_v44  ;;  %v2542_v21 = vsel %vm728_vm2, %v2539_v44, %v2541_v40  ;;  %v3614_v25 = vpack.c.bf16 %v3484_v2, %v3483_v58  ;;  %v2055_v22 = vmax.f32 %v2019_v43, 0.0 }
 0x35d   : > { %v2465_v20 = vsel %vm647_vm1, %v2463_v51, %v2464_v8  ;;  %v10981_v35 = vpack.i.bf16 %v2542_v21, %v2540_v1  ;;  %v2467_v53 = vsel %vm647_vm1, %v2464_v8, %v2466_v33  ;;  %v8043_v24 = vpop.permute.xlu1 %8042  ;;  %v8039_v0 = vunpack.i.l.bf16 %v10939_v10 }
 0x35e   : > { %v3908_v4 = vpop.f32.mrf.mxu2  ;;  %v10984_v57 = vpack.i.bf16 %v2467_v53, %v2465_v20  ;;  %v8044_v12 = vunpack.i.l.bf16 %v8043_v24  ;;  %v8045_v50 = vunpack.i.h.bf16 %v8043_v24  ;;  %3846 = vmatmul.bf16.gmra.mxu1 %v3614_v25  ;;  %v4146_v47 = vsel %vm481_vm0, 0.0, %v4050_v18  ;;  %v3822_v25 = vpop.f32.mrf.mxu1 }
 0x35f   : > { %v3909_v45 = vadd.f32 %v3908_v4, %v3820_v37  ;;  %8217 = vrot.lane.b32.xlu0 %v10981_v35, %s13035_s22  ;;  %v8040_v11 = vunpack.i.h.bf16 %v10939_v10  ;;  %v8196_v30 = vpack.i.bf16 %v2055_v22, %v2054_v48  ;;  %v8049_v43 = vunpack.i.l.bf16 %v10916_v7 }
 0x360   : > { %8182 = vrot.lane.b32.xlu2 %v10984_v57, %s13036_s26  ;;  %v3518_v59 = vsel %vm3503_vm6, %v8039_v0, %v8044_v12  ;;  %v4315_v26 = vrot.slane %v4146_v47, 2  ;;  %v8050_v51 = vunpack.i.h.bf16 %v10916_v7  ;;  %v4208_v37 = vrot.slane %v4146_v47, 1 }
 0x361   : > { %v3987_v27 = vmax.f32 %v3909_v45, 0.0  ;;  %v3519_v31 = vsel %vm3503_vm6, %v8040_v11, %v8045_v50  ;;  %v3551_v61 = vsel %vm3536_vm7, %v3518_v59, %v8049_v43  ;;  %v8068_v45 = vpop.permute.xlu0 %8067  ;;  %v8055_v48 = vunpack.i.h.bf16 %v8053_v16 }
 0x362   : > { %v3552_v7 = vsel %vm3536_vm7, %v3519_v31, %v8050_v51  ;;  %v8054_v47 = vunpack.i.l.bf16 %v8053_v16  ;;  %v8070_v43 = vunpack.i.h.bf16 %v8068_v45  ;;  %v8069_v59 = vunpack.i.l.bf16 %v8068_v45  ;;  %v2021_v31 = vpop.f32.mrf.mxu3 }
 0x363   : > { %v4051_v54 = vrot.slane %v3987_v27, 7  ;;  %8192 = vrot.lane.b32.xlu1 %v10981_v35, %s13032_s17 }
 0x364   : > { %v3353_v16 = vsel %vm3338_vm13, %v10339_v34, %v8054_v47 }
 0x365   : > { %v4162_v29 = vsel %vm481_vm0, %v4051_v54, 0.0  ;;  %v4052_v33 = vsel %vm481_vm0, %v4050_v18, %v4051_v54  ;;  %v8058_v8 = vpop.permute.xlu1 %8057  ;;  %v3386_v51 = vsel %vm3371_vm14, %v3353_v16, %v8069_v59 }
 0x366   : > { %v4211_v40 = vrot.slane %v4162_v29, 1  ;;  %v4318_v58 = vrot.slane %v4162_v29, 2  ;;  %v4316_v28 = vrot.slane %v4052_v33, 2  ;;  %v11006_v44 = vpack.c.bf16 %v4052_v33, %v4050_v18 }
 0x367   : > { %v4209_v2 = vrot.slane %v4052_v33, 1  ;;  %v8060_v1 = vunpack.i.h.bf16 %v8058_v8  ;;  %v8059_v21 = vunpack.i.l.bf16 %v8058_v8  ;;  %8232 = vrot.lane.b32.xlu0 %v10796_v13, %s13029_s14  ;;  %v3354_v29 = vsel %vm3338_vm13, %v10336_v42, %v8055_v48 }
 0x368   : > { %6602 = vmatmul.msk.bf16.gmra.mxu3 %vm10888_vm3, %v11006_v44  ;;  %v4317_v20 = vsel %vm728_vm2, %v4315_v26, %v4316_v28  ;;  %v4319_v4 = vsel %vm728_vm2, %v4316_v28, %v4318_v58  ;;  %8197 = vrot.lane.b32.xlu2 %v8196_v30, %s13030_s21  ;;  %v3823_v30 = vadd.f32 %v10925_v62, %v3822_v25  ;;  %v6990_v58 = vld [vmem:[%s9969_s27 + $0x60] sm:$0xff]   ;;  %v8079_v8 = vunpack.i.l.bf16 %v10994_v60 }
 0x369   : > { %v4210_v18 = vsel %vm647_vm1, %v4208_v37, %v4209_v2  ;;  %v4212_v53 = vsel %vm647_vm1, %v4209_v2, %v4211_v40  ;;  %v11020_v24 = vpack.c.bf16 %v4319_v4, %v4317_v20  ;;  %v3584_v22 = vsel %vm3569_vm8, %v3551_v61, %v8059_v21  ;;  %v11045_v42 = vpop.permute.xlu0 %8082  ;;  %v3824_v4 = vpop.f32.mrf.mxu1 }
 0x36a   : > { %v3585_v12 = vsel %vm3569_vm8, %v3552_v7, %v8060_v1  ;;  %v11025_v50 = vpack.c.bf16 %v4212_v53, %v4210_v18  ;;  %v11027_v54 = vpop.permute.xlu2 %8092  ;;  %v8080_v37 = vunpack.i.h.bf16 %v10994_v60  ;;  %v6965_v1 = vunpack.c.l.bf16 %v6990_v58 }
 0x36b   : > { %v3617_v27 = vpack.c.bf16 %v3585_v12, %v3584_v22  ;;  %8207 = vrot.lane.b32.xlu1 %v10759_v36, %s13031_s29  ;;  %v3387_v36 = vsel %vm3371_vm14, %v3354_v29, %v8070_v43  ;;  %v6966_v21 = vunpack.c.h.bf16 %v6990_v58  ;;  %v3825_v45 = vadd.f32 %v10925_v62, %v3824_v4 }
 0x36c   : > { %5171 = vmatmul.bf16.gmra.mxu0 %v11025_v50 }
 0x36d   : > { %6298 = vmatmul.msk.bf16.gmra.mxu2 %vm3754_vm9, %v3617_v27  ;;  %v8073_v26 = vpop.permute.xlu1 %8072 }
 0x36e   : > { %v8075_v33 = vunpack.i.h.bf16 %v8073_v26  ;;  %v8074_v40 = vunpack.i.l.bf16 %v8073_v26  ;;  %v3911_v28 = vpop.f32.mrf.mxu2 }
 0x36f   : > { %8247 = vrot.lane.b32.xlu0 %v10783_v9, %s13033_s28  ;;  %v3912_v61 = vadd.f32 %v3911_v28, %v3823_v30  ;;  %v2023_v30 = vpop.f32.mrf.mxu3 }
 0x370   : > { %8212 = vrot.lane.b32.xlu2 %v10796_v13, %s13034_s23  ;;  %v3420_v34 = vsel %vm3404_vm15, %v3387_v36, %v8075_v33  ;;  %v3419_v2 = vsel %vm3404_vm15, %v3386_v51, %v8074_v40 }
 0x371   : > { %v3452_v20 = vsel %vm3437_vm4, %v3419_v2, %v8079_v8  ;;  %v3453_v9 = vsel %vm3437_vm4, %v3420_v34, %v8080_v37  ;;  %v3988_v25 = vmax.f32 %v3912_v61, 0.0  ;;  %v11073_v58 = vpop.permute.xlu0 %8097  ;;  %v2024_v37 = vadd.f32 %v10949_v55, %v2023_v30 }
 0x372   : > { %v8108_v7 = vpop.permute.xlu2 %8107  ;;  %v3485_v60 = vsel %vm3470_vm5, %v3452_v20, %v8039_v0  ;;  %v3486_v13 = vsel %vm3470_vm5, %v3453_v9, %v8040_v11  ;;  %v8084_v30 = vunpack.i.l.bf16 %v11045_v42 }
 0x373   : > { %v8110_v18 = vunpack.i.h.bf16 %v8108_v7  ;;  %v8109_v53 = vunpack.i.l.bf16 %v8108_v7  ;;  %v3616_v27 = vpack.c.bf16 %v3486_v13, %v3485_v60  ;;  %v4053_v59 = vrot.slane %v3988_v25, 7 }
 0x374   : > { %v2022_v7 = vadd.f32 %v10949_v55, %v2021_v31  ;;  %v2057_v13 = vmax.f32 %v2024_v37, 0.0 }
 0x375   : > { %v2212_v22 = vsel %vm2186_vm12, %v6966_v21, %v8110_v18  ;;  %v2211_v12 = vsel %vm2186_vm12, %v6965_v1, %v8109_v53  ;;  %3851 = vmatmul.bf16.gmra.mxu1 %v3616_v27  ;;  %v4147_v34 = vsel %vm481_vm0, 0.0, %v4053_v59 }
 0x376   : > { %v2288_v48 = vrot.slane %v2212_v22, 7  ;;  %v2287_v47 = vrot.slane %v2211_v12, 7  ;;  %v3913_v43 = vpop.f32.mrf.mxu2 }
 0x377   : > { %v3914_v0 = vadd.f32 %v3913_v43, %v3825_v45  ;;  %v4213_v45 = vrot.slane %v4147_v34, 1  ;;  %v8085_v43 = vunpack.i.h.bf16 %v11045_v42 }
 0x378   : > { %v2374_v26 = vsel %vm481_vm0, %v2288_v48, 0.0  ;;  %v11064_v10 = vsel %vm481_vm0, %v2287_v47, %v2288_v48  ;;  %v11067_v11 = vsel %vm481_vm0, 0.0, %v2287_v47  ;;  %v2056_v47 = vmax.f32 %v2022_v7, 0.0 }
 0x379   : > { %v2471_v29 = vrot.slane %v2374_v26, 1  ;;  %v2546_v16 = vrot.slane %v2374_v26, 2  ;;  %v3989_v33 = vmax.f32 %v3914_v0, 0.0  ;;  %v11071_v40 = vpack.i.bf16 %v11064_v10, %v11067_v11 }
 0x37a   : > { %v11075_v28 = vpop.permute.xlu2 %8122  ;;  %v2543_v51 = vrot.slane %v11067_v11, 2  ;;  %v2544_v36 = vrot.slane %v11064_v10, 2  ;;  %v2468_v8 = vrot.slane %v11067_v11, 1  ;;  %v2469_v61 = vrot.slane %v11064_v10, 1 }
 0x37b   : > { %v4054_v2 = vrot.slane %v3989_v33, 7  ;;  %8222 = vrot.lane.b32.xlu1 %v11071_v40, %s13037_s16  ;;  %v4320_v26 = vrot.slane %v4147_v34, 2 }
 0x37c   : > { %v2545_v1 = vsel %vm728_vm2, %v2543_v51, %v2544_v36  ;;  %v2547_v21 = vsel %vm728_vm2, %v2544_v36, %v2546_v16  ;;  %v2470_v20 = vsel %vm647_vm1, %v2468_v8, %v2469_v61  ;;  %v2472_v4 = vsel %vm647_vm1, %v2469_v61, %v2471_v29  ;;  %v8113_v36 = vpop.permute.xlu0 %8112 }
 0x37d   : > { %v4163_v9 = vsel %vm481_vm0, %v4054_v2, 0.0  ;;  %v11091_v60 = vpack.i.bf16 %v2547_v21, %v2545_v1  ;;  %v11093_v18 = vpack.i.bf16 %v2472_v4, %v2470_v20  ;;  %v4055_v12 = vsel %vm481_vm0, %v4053_v59, %v4054_v2 }
 0x37e   : > { %v8088_v53 = vpop.permute.xlu1 %8087  ;;  %v4216_v25 = vrot.slane %v4163_v9, 1  ;;  %v4323_v22 = vrot.slane %v4163_v9, 2  ;;  %v4214_v27 = vrot.slane %v4055_v12, 1  ;;  %v4321_v48 = vrot.slane %v4055_v12, 2  ;;  %v6991_v9 = vld [vmem:[%s9969_s27 + $0x68] sm:$0xff]  }
 0x37f   : > { %8262 = vrot.lane.b32.xlu0 %v11091_v60, %s13035_s22  ;;  %8227 = vrot.lane.b32.xlu2 %v11093_v18, %s13036_s26  ;;  %v8090_v55 = vunpack.i.h.bf16 %v8088_v53  ;;  %v8089_v31 = vunpack.i.l.bf16 %v8088_v53  ;;  %v11101_v0 = vpack.c.bf16 %v4055_v12, %v4053_v59  ;;  %v8241_v51 = vpack.i.bf16 %v2057_v13, %v2056_v47  ;;  %v3827_v53 = vpop.f32.mrf.mxu1 }
 0x380   : > { %v4215_v16 = vsel %vm647_vm1, %v4213_v45, %v4214_v27  ;;  %v4217_v33 = vsel %vm647_vm1, %v4214_v27, %v4216_v25  ;;  %v4322_v37 = vsel %vm728_vm2, %v4320_v26, %v4321_v48  ;;  %v4324_v34 = vsel %vm728_vm2, %v4321_v48, %v4323_v22 }
 0x381   : > { %6606 = vmatmul.msk.bf16.gmra.mxu3 %vm10888_vm3, %v11101_v0  ;;  %v11113_v59 = vpack.c.bf16 %v4217_v33, %v4215_v16  ;;  %v3521_v8 = vsel %vm3503_vm6, %v8085_v43, %v8090_v55  ;;  %v3520_v61 = vsel %vm3503_vm6, %v8084_v30, %v8089_v31  ;;  %v8095_v2 = vunpack.i.h.bf16 %v11027_v54 }
 0x382   : > { %v11104_v29 = vpop.permute.xlu2 %8137  ;;  %v8094_v1 = vunpack.i.l.bf16 %v11027_v54  ;;  %v11126_v20 = vpack.c.bf16 %v4324_v34, %v4322_v37  ;;  %v8099_v54 = vunpack.i.l.bf16 %v11073_v58  ;;  %v6969_v55 = vunpack.c.l.bf16 %v6991_v9 }
 0x383   : > { %8237 = vrot.lane.b32.xlu1 %v11091_v60, %s13032_s17  ;;  %13044 = vst [vmem:[#allocation7_spill] sm:$0xff] %v11113_v59  ;;  %5176 = vmatmul.bf16.gmra.mxu0 %v11113_v59  ;;  %v3554_v13 = vsel %vm3536_vm7, %v3521_v8, %v8095_v2  ;;  %v6970_v31 = vunpack.c.h.bf16 %v6991_v9  ;;  %v3828_v27 = vadd.f32 %v10925_v62, %v3827_v53  ;;  %v8100_v47 = vunpack.i.h.bf16 %v11073_v58 }
 0x384   : > { %13045 = vst [vmem:[#allocation35_spill] sm:$0xff] %v11126_v20  ;;  %v3553_v25 = vsel %vm3536_vm7, %v3520_v61, %v8094_v1  ;;  %v8114_v26 = vunpack.i.l.bf16 %v8113_v36  ;;  %v8115_v8 = vunpack.i.h.bf16 %v8113_v36  ;;  %v11144_v61 = vpop.permute.xlu0 %8127 }
 0x386   : > { %v8103_v21 = vpop.permute.xlu1 %8102 }
 0x387   : > { %v8105_v4 = vunpack.i.h.bf16 %v8103_v21  ;;  %v8104_v7 = vunpack.i.l.bf16 %v8103_v21  ;;  %8277 = vrot.lane.b32.xlu0 %v10984_v57, %s13029_s14  ;;  %8242 = vrot.lane.b32.xlu2 %v8241_v51, %s13030_s21  ;;  %v3355_v51 = vsel %vm3338_vm13, %v10273_v3, %v8099_v54 }
 0x388   : > { %v3388_v53 = vsel %vm3371_vm14, %v3355_v51, %v8114_v26 }
 0x389   : > { %v3586_v45 = vsel %vm3569_vm8, %v3553_v25, %v8104_v7  ;;  %v3587_v22 = vsel %vm3569_vm8, %v3554_v13, %v8105_v4 }
 0x38a   : > { %v3619_v12 = vpack.c.bf16 %v3587_v22, %v3586_v45  ;;  %v8153_v48 = vpop.permute.xlu2 %8152  ;;  %v3829_v22 = vpop.f32.mrf.mxu1 }
 0x38b   : > { %v8155_v16 = vunpack.i.h.bf16 %v8153_v48  ;;  %v8154_v33 = vunpack.i.l.bf16 %v8153_v48  ;;  %8252 = vrot.lane.b32.xlu1 %v10963_v46, %s13031_s29  ;;  %v3356_v46 = vsel %vm3338_vm13, %v10270_v38, %v8100_v47  ;;  %v8125_v38 = vunpack.i.h.bf16 %v11075_v28 }
 0x38c   : > { %6299 = vmatmul.msk.bf16.gmra.mxu2 %vm3754_vm9, %v3619_v12  ;;  %v3389_v3 = vsel %vm3371_vm14, %v3356_v46, %v8115_v8  ;;  %v8129_v46 = vunpack.i.l.bf16 %v11144_v61 }
 0x38d   : > { %v2214_v34 = vsel %vm2186_vm12, %v6970_v31, %v8155_v16  ;;  %v2213_v2 = vsel %vm2186_vm12, %v6969_v55, %v8154_v33  ;;  %v3830_v16 = vadd.f32 %v10925_v62, %v3829_v22 }
 0x38e   : > { %v3916_v37 = vpop.f32.mrf.mxu2  ;;  %v8118_v58 = vpop.permute.xlu1 %8117  ;;  %v2291_v21 = vrot.slane %v2214_v34, 7  ;;  %v2290_v4 = vrot.slane %v2213_v2, 7 }
 0x38f   : > { %v3917_v1 = vadd.f32 %v3916_v37, %v3828_v27  ;;  %v8120_v7 = vunpack.i.h.bf16 %v8118_v58  ;;  %v8119_v9 = vunpack.i.l.bf16 %v8118_v58  ;;  %8292 = vrot.lane.b32.xlu0 %v11071_v40, %s13031_s29  ;;  %8257 = vrot.lane.b32.xlu2 %v10984_v57, %s13034_s23  ;;  %v8124_v57 = vunpack.i.l.bf16 %v11075_v28  ;;  %v11180_v37 = vpop.permute.xlu0 %8142 }
 0x390   : > { %v2375_v36 = vsel %vm481_vm0, %v2291_v21, 0.0  ;;  %v11158_v25 = vsel %vm481_vm0, %v2290_v4, %v2291_v21  ;;  %v11161_v13 = vsel %vm481_vm0, 0.0, %v2290_v4 }
 0x391   : > { %v2476_v54 = vrot.slane %v2375_v36, 1  ;;  %v3422_v45 = vsel %vm3404_vm15, %v3389_v3, %v8120_v7  ;;  %v3421_v40 = vsel %vm3404_vm15, %v3388_v53, %v8119_v9  ;;  %v3990_v12 = vmax.f32 %v3917_v1, 0.0 }
 0x392   : > { %v11169_v55 = vpack.i.bf16 %v11158_v25, %v11161_v13  ;;  %v2473_v31 = vrot.slane %v11161_v13, 1  ;;  %v2474_v27 = vrot.slane %v11158_v25, 1  ;;  %v3454_v48 = vsel %vm3437_vm4, %v3421_v40, %v8124_v57 }
 0x393   : > { %v3455_v47 = vsel %vm3437_vm4, %v3422_v45, %v8125_v38  ;;  %v2551_v28 = vrot.slane %v2375_v36, 2  ;;  %v4056_v34 = vrot.slane %v3990_v12, 7  ;;  %v3487_v1 = vsel %vm3470_vm5, %v3454_v48, %v8084_v30  ;;  %v3832_v12 = vpop.f32.mrf.mxu1 }
 0x394   : > { %8267 = vrot.lane.b32.xlu1 %v11169_v55, %s13037_s16  ;;  %v2475_v33 = vsel %vm647_vm1, %v2473_v31, %v2474_v27  ;;  %v2477_v51 = vsel %vm647_vm1, %v2474_v27, %v2476_v54  ;;  %v3488_v21 = vsel %vm3470_vm5, %v3455_v47, %v8085_v43  ;;  %v2548_v7 = vrot.slane %v11161_v13, 2 }
 0x395   : > { %v11182_v2 = vpack.i.bf16 %v2477_v51, %v2475_v33  ;;  %v2549_v9 = vrot.slane %v11158_v25, 2  ;;  %v3618_v3 = vpack.c.bf16 %v3488_v21, %v3487_v1  ;;  %v8130_v36 = vunpack.i.h.bf16 %v11144_v61 }
 0x396   : > { %v3918_v26 = vpop.f32.mrf.mxu2  ;;  %v8133_v8 = vpop.permute.xlu1 %8132  ;;  %v4148_v42 = vsel %vm481_vm0, 0.0, %v4056_v34  ;;  %v8139_v45 = vunpack.i.l.bf16 %v11104_v29  ;;  %v8140_v57 = vunpack.i.h.bf16 %v11104_v29 }
 0x397   : > { %v8134_v58 = vunpack.i.l.bf16 %v8133_v8  ;;  %v3919_v4 = vadd.f32 %v3918_v26, %v3830_v16  ;;  %8272 = vrot.lane.b32.xlu2 %v11182_v2, %s13036_s26  ;;  %v8135_v53 = vunpack.i.h.bf16 %v8133_v8  ;;  %v2550_v30 = vsel %vm728_vm2, %v2548_v7, %v2549_v9  ;;  %3856 = vmatmul.bf16.gmra.mxu1 %v3618_v3 }
 0x398   : > { %v2552_v54 = vsel %vm728_vm2, %v2549_v9, %v2551_v28  ;;  %v4218_v27 = vrot.slane %v4148_v42, 1  ;;  %v4325_v7 = vrot.slane %v4148_v42, 2  ;;  %v3833_v3 = vadd.f32 %v10925_v62, %v3832_v12 }
 0x399   : > { %v3991_v38 = vmax.f32 %v3919_v4, 0.0  ;;  %v3522_v43 = vsel %vm3503_vm6, %v8129_v46, %v8134_v58  ;;  %v11203_v22 = vpack.i.bf16 %v2552_v54, %v2550_v30  ;;  %v3523_v31 = vsel %vm3503_vm6, %v8130_v36, %v8135_v53  ;;  %v8158_v4 = vpop.permute.xlu0 %8157 }
 0x39a   : > { %v3555_v26 = vsel %vm3536_vm7, %v3522_v43, %v8139_v45  ;;  %v3556_v8 = vsel %vm3536_vm7, %v3523_v31, %v8140_v57  ;;  %v8144_v42 = vunpack.i.l.bf16 %v11180_v37  ;;  %v8160_v45 = vunpack.i.h.bf16 %v8158_v4  ;;  %v8168_v31 = vpop.permute.xlu2 %8167 }
 0x39b   : > { %v4057_v40 = vrot.slane %v3991_v38, 7  ;;  %v8145_v38 = vunpack.i.h.bf16 %v11180_v37 }
 0x39c   : > { %8282 = vrot.lane.b32.xlu1 %v11203_v22, %s13032_s17 }
 0x39d   : > { %v4164_v48 = vsel %vm481_vm0, %v4057_v40, 0.0  ;;  %v4058_v16 = vsel %vm481_vm0, %v4056_v34, %v4057_v40  ;;  %v8159_v40 = vunpack.i.l.bf16 %v8158_v4 }
 0x39e   : > { %v8148_v47 = vpop.permute.xlu1 %8147  ;;  %v4221_v28 = vrot.slane %v4164_v48, 1  ;;  %v4328_v33 = vrot.slane %v4164_v48, 2  ;;  %v4219_v58 = vrot.slane %v4058_v16, 1  ;;  %v4326_v1 = vrot.slane %v4058_v16, 2 }
 0x39f   : > { %v8150_v51 = vunpack.i.h.bf16 %v8148_v47  ;;  %v8149_v29 = vunpack.i.l.bf16 %v8148_v47  ;;  %v11215_v21 = vpack.c.bf16 %v4058_v16, %v4056_v34  ;;  %8287 = vrot.lane.b32.xlu2 %v10981_v35, %s13033_s28  ;;  %v3834_v16 = vpop.f32.mrf.mxu1 }
 0x3a0   : > { %v4220_v34 = vsel %vm647_vm1, %v4218_v27, %v4219_v58  ;;  %v4222_v43 = vsel %vm647_vm1, %v4219_v58, %v4221_v28  ;;  %v4327_v35 = vsel %vm728_vm2, %v4325_v7, %v4326_v1  ;;  %v4329_v54 = vsel %vm728_vm2, %v4326_v1, %v4328_v33 }
 0x3a1   : > { %13046 = vst [vmem:[#allocation41_spill] sm:$0xff] %v11215_v21  ;;  %v3588_v9 = vsel %vm3569_vm8, %v3555_v26, %v8149_v29  ;;  %v3589_v53 = vsel %vm3569_vm8, %v3556_v8, %v8150_v51  ;;  %6610 = vmatmul.msk.bf16.gmra.mxu3 %vm10888_vm3, %v11215_v21  ;;  %v11232_v57 = vpack.c.bf16 %v4222_v43, %v4220_v34  ;;  %v8170_v8 = vunpack.i.h.bf16 %v8168_v31 }
 0x3a2   : > { %v3621_v30 = vpack.c.bf16 %v3589_v53, %v3588_v9  ;;  %v11234_v12 = vpack.c.bf16 %v4329_v54, %v4327_v35  ;;  %v3358_v27 = vsel %vm3338_vm13, %v10559_v19, %v8145_v38  ;;  %v3357_v26 = vsel %vm3338_vm13, %v10562_v23, %v8144_v42 }
 0x3a3   : > { %13047 = vst [vmem:[#allocation38_spill] sm:$0xff] %v11232_v57  ;;  %5181 = vmatmul.bf16.gmra.mxu0 %v11232_v57  ;;  %v3390_v51 = vsel %vm3371_vm14, %v3357_v26, %v8159_v40  ;;  %v3391_v29 = vsel %vm3371_vm14, %v3358_v27, %v8160_v45  ;;  %v8169_v58 = vunpack.i.l.bf16 %v8168_v31  ;;  %v3835_v9 = vadd.f32 %v10925_v62, %v3834_v16 }
 0x3a4   : > { %6300 = vmatmul.msk.bf16.gmra.mxu2 %vm3754_vm9, %v3621_v30  ;;  %13048 = vst [vmem:[#allocation49_spill] sm:$0xff] %v11234_v12  ;;  %8297 = vrot.lane.b32.xlu1 %v11093_v18, %s13034_s23 }
 0x3a6   : > { %v3921_v48 = vpop.f32.mrf.mxu2  ;;  %v8163_v37 = vpop.permute.xlu1 %8162 }
 0x3a7   : > { %v3922_v47 = vadd.f32 %v3921_v48, %v3833_v3  ;;  %v8165_v28 = vunpack.i.h.bf16 %v8163_v37  ;;  %v8164_v33 = vunpack.i.l.bf16 %v8163_v37  ;;  %8302 = vrot.lane.b32.xlu2 %v11203_v22, %s13035_s22 }
 0x3a9   : > { %v3423_v19 = vsel %vm3404_vm15, %v3390_v51, %v8164_v33  ;;  %v3424_v1 = vsel %vm3404_vm15, %v3391_v29, %v8165_v28  ;;  %v3992_v4 = vmax.f32 %v3922_v47, 0.0 }
 0x3aa   : > { %v3456_v7 = vsel %vm3437_vm4, %v3423_v19, %v8169_v58  ;;  %v3457_v23 = vsel %vm3437_vm4, %v3424_v1, %v8170_v8  ;;  %v3837_v43 = vpop.f32.mrf.mxu1 }
 0x3ab   : > { %v3489_v53 = vsel %vm3470_vm5, %v3456_v7, %v8129_v46  ;;  %v4059_v3 = vrot.slane %v3992_v4, 7  ;;  %v3490_v38 = vsel %vm3470_vm5, %v3457_v23, %v8130_v36  ;;  %v3838_v40 = vadd.f32 %v10925_v62, %v3837_v43 }
 0x3ac   : > { %v3620_v34 = vpack.c.bf16 %v3490_v38, %v3489_v53 }
 0x3ad   : > { %v4149_v54 = vsel %vm481_vm0, 0.0, %v4059_v3 }
 0x3ae   : > { %v3923_v30 = vpop.f32.mrf.mxu2  ;;  %3861 = vmatmul.bf16.gmra.mxu1 %v3620_v34  ;;  %v4223_v46 = vrot.slane %v4149_v54, 1  ;;  %v4330_v31 = vrot.slane %v4149_v54, 2 }
 0x3af   : > { %v3924_v42 = vadd.f32 %v3923_v30, %v3835_v9  ;;  %8317 = vrot.lane.b32.xlu2 %v11093_v18, %s13029_s14 }
 0x3b1   : > { %v3993_v35 = vmax.f32 %v3924_v42, 0.0 }
 0x3b2   : > { %v3839_v19 = vpop.f32.mrf.mxu1 }
 0x3b3   : > { %v4060_v45 = vrot.slane %v3993_v35, 7  ;;  %v3840_v7 = vadd.f32 %v10925_v62, %v3839_v19 }
 0x3b5   : > { %v4165_v61 = vsel %vm481_vm0, %v4060_v45, 0.0  ;;  %v4061_v36 = vsel %vm481_vm0, %v4059_v3, %v4060_v45 }
 0x3b6   : > { %v4226_v48 = vrot.slane %v4165_v61, 1  ;;  %v4333_v27 = vrot.slane %v4165_v61, 2  ;;  %v3926_v37 = vpop.f32.mrf.mxu2  ;;  %v4224_v47 = vrot.slane %v4061_v36, 1  ;;  %v4331_v26 = vrot.slane %v4061_v36, 2  ;;  %v11288_v61 = vpop.permute.xlu0 %8172 }
 0x3b7   : > { %v3927_v16 = vadd.f32 %v3926_v37, %v3838_v40  ;;  %v11264_v28 = vpack.c.bf16 %v4061_v36, %v4059_v3  ;;  %8332 = vrot.lane.b32.xlu2 %v11169_v55, %s13031_s29  ;;  %v6992_v3 = vld [vmem:[%s9969_s27 + $0x70] sm:$0xff]  }
 0x3b8   : > { %v4225_v33 = vsel %vm647_vm1, %v4223_v46, %v4224_v47  ;;  %v4227_v18 = vsel %vm647_vm1, %v4224_v47, %v4226_v48  ;;  %v4332_v51 = vsel %vm728_vm2, %v4330_v31, %v4331_v26  ;;  %v4334_v29 = vsel %vm728_vm2, %v4331_v26, %v4333_v27 }
 0x3b9   : > { %13049 = vst [vmem:[#allocation48_spill] sm:$0xff] %v11264_v28  ;;  %6614 = vmatmul.msk.bf16.gmra.mxu3 %vm10888_vm3, %v11264_v28  ;;  %v11273_v8 = vpack.c.bf16 %v4227_v18, %v4225_v33  ;;  %v11275_v58 = vpack.c.bf16 %v4334_v29, %v4332_v51  ;;  %v3994_v1 = vmax.f32 %v3927_v16, 0.0  ;;  %v6973_v42 = vunpack.c.l.bf16 %v6992_v3 }
 0x3ba   : > { %v11280_v4 = vpop.permute.xlu2 %8182  ;;  %v6974_v43 = vunpack.c.h.bf16 %v6992_v3 }
 0x3bb   : > { %13050 = vst [vmem:[#allocation17_spill] sm:$0xff] %v11273_v8  ;;  %5186 = vmatmul.bf16.gmra.mxu0 %v11273_v8  ;;  %v4062_v9 = vrot.slane %v3994_v1, 7 }
 0x3bc   : > { %13051 = vst [vmem:[#allocation14_spill] sm:$0xff] %v11275_v58 }
 0x3bd   : > { %v4150_v34 = vsel %vm481_vm0, 0.0, %v4062_v9 }
 0x3be   : > { %v3928_v23 = vpop.f32.mrf.mxu2  ;;  %v4228_v36 = vrot.slane %v4150_v34, 1 }
 0x3bf   : > { %v3929_v53 = vadd.f32 %v3928_v23, %v3840_v7 }
 0x3c1   : > { %v3995_v38 = vmax.f32 %v3929_v53, 0.0 }
 0x3c2   : > { %v3842_v30 = vpop.f32.mrf.mxu1  ;;  %v8198_v55 = vpop.permute.xlu2 %8197 }
 0x3c3   : > { %v4063_v35 = vrot.slane %v3995_v38, 7  ;;  %v3843_v54 = vadd.f32 %v10925_v62, %v3842_v30  ;;  %v8200_v45 = vunpack.i.h.bf16 %v8198_v55  ;;  %v8199_v40 = vunpack.i.l.bf16 %v8198_v55 }
 0x3c5   : > { %v4166_v46 = vsel %vm481_vm0, %v4063_v35, 0.0  ;;  %v4064_v31 = vsel %vm481_vm0, %v4062_v9, %v4063_v35  ;;  %v2216_v47 = vsel %vm2186_vm12, %v6974_v43, %v8200_v45  ;;  %v2215_v26 = vsel %vm2186_vm12, %v6973_v42, %v8199_v40 }
 0x3c6   : > { %v4231_v48 = vrot.slane %v4166_v46, 1  ;;  %v3931_v27 = vpop.f32.mrf.mxu2  ;;  %v4229_v37 = vrot.slane %v4064_v31, 1  ;;  %v11292_v33 = vpack.c.bf16 %v4064_v31, %v4062_v9  ;;  %v2294_v18 = vrot.slane %v2216_v47, 7 }
 0x3c7   : > { %v3932_v16 = vadd.f32 %v3931_v27, %v3843_v54  ;;  %v2293_v51 = vrot.slane %v2215_v26, 7  ;;  %v4336_v27 = vrot.slane %v4064_v31, 2  ;;  %v4335_v47 = vrot.slane %v4150_v34, 2 }
 0x3c8   : > { %13052 = vst [vmem:[#allocation12_spill] sm:$0xff] %v11292_v33  ;;  %v4230_v29 = vsel %vm647_vm1, %v4228_v36, %v4229_v37  ;;  %v4232_v19 = vsel %vm647_vm1, %v4229_v37, %v4231_v48  ;;  %v2376_v7 = vsel %vm481_vm0, %v2294_v18, 0.0  ;;  %v4338_v26 = vrot.slane %v4166_v46, 2 }
 0x3c9   : > { %6618 = vmatmul.msk.bf16.gmra.mxu3 %vm10888_vm3, %v11292_v33  ;;  %v11299_v1 = vpack.c.bf16 %v4232_v19, %v4230_v29  ;;  %v11303_v23 = vsel %vm481_vm0, %v2293_v51, %v2294_v18  ;;  %v11306_v9 = vsel %vm481_vm0, 0.0, %v2293_v51  ;;  %v3996_v53 = vmax.f32 %v3932_v16, 0.0  ;;  %v11324_v29 = vpop.permute.xlu0 %8187 }
 0x3ca   : > { %v3844_v3 = vpop.f32.mrf.mxu1  ;;  %v2481_v38 = vrot.slane %v2376_v7, 1  ;;  %v11310_v30 = vpack.i.bf16 %v11303_v23, %v11306_v9  ;;  %v2556_v42 = vrot.slane %v2376_v7, 2  ;;  %v2478_v43 = vrot.slane %v11306_v9, 1 }
 0x3cb   : > { %13053 = vst [vmem:[#allocation54_spill] sm:$0xff] %v11299_v1  ;;  %5191 = vmatmul.bf16.gmra.mxu0 %v11299_v1  ;;  %v2479_v35 = vrot.slane %v11303_v23, 1  ;;  %v2553_v55 = vrot.slane %v11306_v9, 2  ;;  %v3845_v54 = vadd.f32 %v10925_v62, %v3844_v3  ;;  %v2554_v45 = vrot.slane %v11303_v23, 2  ;;  %v11359_v1 = vpop.f32.mrf.mxu0 }
 0x3cc   : > { %8307 = vrot.lane.b32.xlu0 %v11310_v30, %s13037_s16  ;;  %v4065_v40 = vrot.slane %v3996_v53, 7  ;;  %v12814_v31 = vunpack.i.h.bf16 %v11288_v61  ;;  %v12815_v34 = vunpack.i.l.bf16 %v11288_v61 }
 0x3cd   : > { %v2480_v36 = vsel %vm647_vm1, %v2478_v43, %v2479_v35  ;;  %v2482_v48 = vsel %vm647_vm1, %v2479_v35, %v2481_v38  ;;  %v8178_v18 = vpop.permute.xlu1 %8177  ;;  %v2555_v62 = vsel %vm728_vm2, %v2553_v55, %v2554_v45  ;;  %v2557_v53 = vsel %vm728_vm2, %v2554_v45, %v2556_v42  ;;  %v11335_v35 = vpop.permute.xlu2 %8212 }
 0x3ce   : > { %v3933_v37 = vpop.f32.mrf.mxu2  ;;  %v11322_v16 = vpack.i.bf16 %v2482_v48, %v2480_v36  ;;  %v8180_v19 = vunpack.i.h.bf16 %v8178_v18  ;;  %v8179_v7 = vunpack.i.l.bf16 %v8178_v18  ;;  %v4151_v46 = vsel %vm481_vm0, 0.0, %v4065_v40 }
 0x3cf   : > { %v3934_v51 = vadd.f32 %v3933_v37, %v3845_v54  ;;  %v4337_v38 = vsel %vm728_vm2, %v4335_v47, %v4336_v27  ;;  %v8185_v43 = vunpack.i.h.bf16 %v11280_v4  ;;  %v11337_v54 = vpack.i.bf16 %v2557_v53, %v2555_v62 }
 0x3d0   : > { %8312 = vrot.lane.b32.xlu1 %v11322_v16, %s13036_s26  ;;  %v8184_v42 = vunpack.i.l.bf16 %v11280_v4  ;;  %v3525_v45 = vsel %vm3503_vm6, %v12814_v31, %v8180_v19  ;;  %v3524_v36 = vsel %vm3503_vm6, %v12815_v34, %v8179_v7  ;;  %v4339_v48 = vsel %vm728_vm2, %v4336_v27, %v4338_v26  ;;  %v11357_v34 = vpop.f32.mrf.mxu3 }
 0x3d1   : > { %v3997_v3 = vmax.f32 %v3934_v51, 0.0  ;;  %v4233_v37 = vrot.slane %v4151_v46, 1  ;;  %v11351_v51 = vpack.c.bf16 %v4339_v48, %v4337_v38  ;;  %v3558_v27 = vsel %vm3536_vm7, %v3525_v45, %v8185_v43 }
 0x3d2   : > { %v3557_v7 = vsel %vm3536_vm7, %v3524_v36, %v8184_v42 }
 0x3d3   : > { %v4066_v55 = vrot.slane %v3997_v3, 7  ;;  %13054 = vst [vmem:[#allocation20_spill] sm:$0xff] %v11351_v51  ;;  %v4340_v3 = vrot.slane %v4151_v46, 2 }
 0x3d4   : > { %8322 = vrot.lane.b32.xlu0 %v11337_v54, %s13032_s17 }
 0x3d5   : > { %v4167_v47 = vsel %vm481_vm0, %v4066_v55, 0.0  ;;  %v4067_v18 = vsel %vm481_vm0, %v4065_v40, %v4066_v55  ;;  %v8193_v31 = vpop.permute.xlu1 %8192 }
 0x3d6   : > { %v4236_v4 = vrot.slane %v4167_v47, 1  ;;  %v4343_v62 = vrot.slane %v4167_v47, 2  ;;  %v4234_v53 = vrot.slane %v4067_v18, 1  ;;  %v4341_v19 = vrot.slane %v4067_v18, 2 }
 0x3d7   : > { %v11355_v26 = vpack.c.bf16 %v4067_v18, %v4065_v40  ;;  %v8195_v39 = vunpack.i.h.bf16 %v8193_v31  ;;  %v8194_v17 = vunpack.i.l.bf16 %v8193_v31  ;;  %v8203_v31 = vpop.permute.xlu0 %8202  ;;  %v8189_v47 = vunpack.i.l.bf16 %v11324_v29 }
 0x3d8   : > { %v4235_v38 = vsel %vm647_vm1, %v4233_v37, %v4234_v53  ;;  %v4237_v55 = vsel %vm647_vm1, %v4234_v53, %v4236_v4  ;;  %8327 = vrot.lane.b32.xlu1 %v11091_v60, %s13033_s28  ;;  %v4342_v40 = vsel %vm728_vm2, %v4340_v3, %v4341_v19  ;;  %v4344_v43 = vsel %vm728_vm2, %v4341_v19, %v4343_v62  ;;  %v11387_v62 = vld [vmem:[%s12697_s5] ss:$0 sm:$0xff]  ;;  %v6993_v19 = vld [vmem:[%s9969_s27 + $0x78] sm:$0xff]  }
 0x3d9   : > { %13055 = vst [vmem:[#allocation18_spill] sm:$0xff] %v11355_v26  ;;  %6622 = vmatmul.msk.bf16.gmra.mxu3 %vm10888_vm3, %v11355_v26  ;;  %v11368_v46 = vpack.c.bf16 %v4237_v55, %v4235_v38  ;;  %v3590_v42 = vsel %vm3569_vm8, %v3557_v7, %v8194_v17  ;;  %v3591_v45 = vsel %vm3569_vm8, %v3558_v27, %v8195_v39  ;;  %v11376_v60 = vpop.permute.xlu2 %8227  ;;  %v8190_v37 = vunpack.i.h.bf16 %v11324_v29  ;;  %v3936_v7 = vpop.f32.mrf.mxu2 }
 0x3da   : > { %v11374_v36 = vpack.c.bf16 %v4344_v43, %v4342_v40  ;;  %v3623_v48 = vpack.c.bf16 %v3591_v45, %v3590_v42  ;;  %v8205_v18 = vunpack.i.h.bf16 %v8203_v31  ;;  %v8204_v4 = vunpack.i.l.bf16 %v8203_v31  ;;  %v11401_v42 = vpop.f32.mrf.mxu3 }
 0x3db   : > { %13056 = vst [vmem:[#allocation19_spill] sm:$0xff] %v11368_v46  ;;  %5196 = vmatmul.bf16.gmra.mxu0 %v11368_v46  ;;  %v3847_v17 = vpop.f32.mrf.mxu1  ;;  %v3360_v29 = vsel %vm3338_vm13, %v10655_v49, %v8190_v37  ;;  %v3359_v3 = vsel %vm3338_vm13, %v10658_v63, %v8189_v47  ;;  %v8215_v43 = vunpack.i.h.bf16 %v11335_v35  ;;  %v8214_v31 = vunpack.i.l.bf16 %v11335_v35  ;;  %v11405_v37 = vpop.f32.mrf.mxu0 }
 0x3dc   : > { %13057 = vst [vmem:[#allocation46_spill] sm:$0xff] %v11374_v36  ;;  %8337 = vrot.lane.b32.xlu0 %v11182_v2, %s13034_s23  ;;  %6301 = vmatmul.msk.bf16.gmra.mxu2 %vm3754_vm9, %v3623_v48  ;;  %v3848_v53 = vadd.f32 %v11387_v62, %v3847_v17  ;;  %v3392_v55 = vsel %vm3371_vm14, %v3359_v3, %v8204_v4  ;;  %v6977_v45 = vunpack.c.l.bf16 %v6993_v19  ;;  %v6978_v48 = vunpack.c.h.bf16 %v6993_v19 }
 0x3dd   : > { %v8208_v39 = vpop.permute.xlu1 %8207  ;;  %v3393_v40 = vsel %vm3371_vm14, %v3360_v29, %v8205_v18  ;;  %v13058_v3 = vunpack.i.l.bf16 %v11288_v61 }
 0x3de   : > { %v8210_v27 = vunpack.i.h.bf16 %v8208_v39  ;;  %v8209_v38 = vunpack.i.l.bf16 %v8208_v39  ;;  %v3937_v18 = vadd.f32 %v3936_v7, %v3848_v53 }
 0x3df   : > { %v11407_v47 = vpop.permute.xlu0 %8217 }
 0x3e0   : > { %8342 = vrot.lane.b32.xlu1 %v11337_v54, %s13035_s22  ;;  %v3426_v49 = vsel %vm3404_vm15, %v3393_v40, %v8210_v27  ;;  %v3425_v63 = vsel %vm3404_vm15, %v3392_v55, %v8209_v38  ;;  %v13059_v38 = vunpack.i.h.bf16 %v11288_v61  ;;  %v3998_v7 = vmax.f32 %v3937_v18, 0.0 }
 0x3e1   : > { %v8243_v4 = vpop.permute.xlu2 %8242  ;;  %v3458_v17 = vsel %vm3437_vm4, %v3425_v63, %v8214_v31  ;;  %v3459_v35 = vsel %vm3437_vm4, %v3426_v49, %v8215_v43  ;;  %v11422_v43 = vld [vmem:[%s12699_s7] ss:$0 sm:$0xff] }
 0x3e2   : > { %v8245_v39 = vunpack.i.h.bf16 %v8243_v4  ;;  %v8244_v29 = vunpack.i.l.bf16 %v8243_v4  ;;  %v3491_v27 = vsel %vm3470_vm5, %v3458_v17, %v13058_v3  ;;  %v3492_v19 = vsel %vm3470_vm5, %v3459_v35, %v13059_v38  ;;  %v3938_v17 = vpop.f32.mrf.mxu2  ;;  %v6873_v38 = vld [vmem:[%s12698_s6 + $0xf8] sm:$0xff] }
 0x3e3   : > { %v3849_v53 = vpop.f32.mrf.mxu1  ;;  %v3622_v63 = vpack.c.bf16 %v3492_v19, %v3491_v27  ;;  %v4068_v35 = vrot.slane %v3998_v7, 7  ;;  %5336 = vmatpush.bf16.msra.mxu1 %v6873_v38 }
 0x3e4   : > { %v2218_v55 = vsel %vm2186_vm12, %v6978_v48, %v8245_v39  ;;  %v2217_v40 = vsel %vm2186_vm12, %v6977_v45, %v8244_v29  ;;  %v3850_v49 = vadd.f32 %v11387_v62, %v3849_v53  ;;  %vm5935_vm12 = vcmask 1041408  }
 0x3e5   : > { %v2297_v46 = vrot.slane %v2218_v55, 7  ;;  %v2296_v31 = vrot.slane %v2217_v40, 7  ;;  %3866 = vmatmul.bf16.gmra.mxu1 %v3622_v63 }
 0x3e6   : > { %v3939_v39 = vadd.f32 %v3938_v17, %v3850_v49 }
 0x3e7   : > { %v2377_v61 = vsel %vm481_vm0, %v2297_v46, 0.0  ;;  %v2298_v4 = vsel %vm481_vm0, %v2296_v31, %v2297_v46  ;;  %v2361_v48 = vsel %vm481_vm0, 0.0, %v2296_v31 }
 0x3e8   : > { %8357 = vrot.lane.b32.xlu1 %v11182_v2, %s13029_s14  ;;  %v2563_v45 = vrot.slane %v2377_v61, 1  ;;  %v2560_v18 = vrot.slane %v2361_v48, 1  ;;  %v11430_v29 = vpack.i.bf16 %v2298_v4, %v2361_v48  ;;  %v2561_v3 = vrot.slane %v2298_v4, 1  ;;  %v11436_v2 = vpop.permute.xlu0 %8232 }
 0x3e9   : > { %v2568_v46 = vrot.slane %v2377_v61, 2  ;;  %v2565_v19 = vrot.slane %v2361_v48, 2  ;;  %v2566_v40 = vrot.slane %v2298_v4, 2  ;;  %v3999_v53 = vmax.f32 %v3939_v39, 0.0  ;;  %v5172_v63 = vpop.f32.mrf.mxu0  ;;  %v6865_v39 = vld [vmem:[%s12698_s6 + $0xb8] sm:$0xff] }
 0x3ea   : > { %8347 = vrot.lane.b32.xlu2 %v11430_v29, %s13037_s16  ;;  %v2562_v7 = vsel %vm647_vm1, %v2560_v18, %v2561_v3  ;;  %v2564_v31 = vsel %vm647_vm1, %v2561_v3, %v2563_v45  ;;  %v4152_v61 = vsel %vm481_vm0, 0.0, %v4068_v35  ;;  %v12826_v3 = vunpack.i.h.bf16 %v11407_v47  ;;  %5247 = vmatpush.bf16.msra.mxu2 %v6865_v39 }
 0x3eb   : > { %v5083_v27 = vpop.f32.mrf.mxu3  ;;  %v11442_v49 = vpack.i.bf16 %v2564_v31, %v2562_v7  ;;  %v4069_v48 = vrot.slane %v3999_v53, 7  ;;  %v2567_v18 = vsel %vm728_vm2, %v2565_v19, %v2566_v40  ;;  %v2569_v45 = vsel %vm728_vm2, %v2566_v40, %v2568_v46 }
 0x3ec   : > { %v5084_v55 = vadd.f32 %v11422_v43, %v5083_v27  ;;  %v4238_v53 = vrot.slane %v4152_v61, 1  ;;  %v8361_v8 = vpack.i.bf16 %v2569_v45, %v2567_v18  ;;  %v12829_v46 = vunpack.i.l.bf16 %v11407_v47 }
 0x3ed   : > { %v8223_v4 = vpop.permute.xlu1 %8222  ;;  %8352 = vrot.lane.b32.xlu0 %v11442_v49, %s13036_s26  ;;  %v4168_v27 = vsel %vm481_vm0, %v4069_v48, 0.0  ;;  %v4345_v40 = vrot.slane %v4152_v61, 2 }
 0x3ee   : > { %v11444_v17 = vadd.f32 %v5172_v63, %v5084_v55  ;;  %v8225_v38 = vunpack.i.h.bf16 %v8223_v4  ;;  %v4070_v55 = vsel %vm481_vm0, %v4068_v35, %v4069_v48  ;;  %v4241_v7 = vrot.slane %v4168_v27, 1 }
 0x3ef   : > { %v4348_v31 = vrot.slane %v4168_v27, 2  ;;  %v8224_v63 = vunpack.i.l.bf16 %v8223_v4  ;;  %v4239_v57 = vrot.slane %v4070_v55, 1  ;;  %v4346_v19 = vrot.slane %v4070_v55, 2 }
 0x3f0   : > { %13060 = vst [vmem:[#allocation59_spill] sm:$0xff] %v11444_v17  ;;  %8372 = vrot.lane.b32.xlu1 %v11310_v30, %s13031_s29  ;;  %v11459_v17 = vpack.c.bf16 %v4070_v55, %v4068_v35  ;;  %v3527_v30 = vsel %vm3503_vm6, %v12826_v3, %v8225_v38  ;;  %v6881_v35 = vld [vmem:[%s12698_s6 + $0x138] sm:$0xff]  ;;  %v3941_v39 = vpop.f32.mrf.mxu2  ;;  %v8230_v55 = vunpack.i.h.bf16 %v11376_v60 }
 0x3f1   : > { %v4240_v48 = vsel %vm647_vm1, %v4238_v53, %v4239_v57  ;;  %v4242_v4 = vsel %vm647_vm1, %v4239_v57, %v4241_v7  ;;  %v3526_v61 = vsel %vm3503_vm6, %v12829_v46, %v8224_v63  ;;  %v4347_v27 = vsel %vm728_vm2, %v4345_v40, %v4346_v19  ;;  %v8248_v53 = vpop.permute.xlu0 %8247  ;;  %5425 = vmatpush.bf16.msra.mxu3 %v6881_v35  ;;  %v8258_v46 = vpop.permute.xlu2 %8257 }
 0x3f2   : > { %13061 = vst [vmem:[#allocation67_spill] sm:$0xff] %v11459_v17  ;;  %8362 = vrot.lane.b32.xlu2 %v8361_v8, %s13032_s17  ;;  %6626 = vmatmul.msk.bf16.gmra.mxu3 %vm10888_vm3, %v11459_v17  ;;  %v11477_v18 = vpack.c.bf16 %v4242_v4, %v4240_v48  ;;  %v3852_v45 = vpop.f32.mrf.mxu1  ;;  %v4349_v38 = vsel %vm728_vm2, %v4346_v19, %v4348_v31  ;;  %v8229_v57 = vunpack.i.l.bf16 %v11376_v60  ;;  %v8235_v35 = vunpack.i.h.bf16 %v11436_v2 }
 0x3f3   : > { %v3853_v3 = vadd.f32 %v11387_v62, %v3852_v45  ;;  %v11484_v59 = vpack.c.bf16 %v4349_v38, %v4347_v27  ;;  %v3560_v60 = vsel %vm3536_vm7, %v3527_v30, %v8230_v55  ;;  %v8249_v27 = vunpack.i.l.bf16 %v8248_v53 }
 0x3f4   : > { %13062 = vst [vmem:[#allocation15_spill] sm:$0xff] %v11477_v18  ;;  %5201 = vmatmul.bf16.gmra.mxu0 %v11477_v18  ;;  %v3559_v31 = vsel %vm3536_vm7, %v3526_v61, %v8229_v57 }
 0x3f5   : > { %v8238_v7 = vpop.permute.xlu1 %8237  ;;  %13063 = vst [vmem:[#allocation16_spill] sm:$0xff] %v11484_v59  ;;  %8367 = vrot.lane.b32.xlu0 %v11203_v22, %s13033_s28  ;;  %v3942_v19 = vadd.f32 %v3941_v39, %v3853_v3  ;;  %v8234_v22 = vunpack.i.l.bf16 %v11436_v2  ;;  %v3362_v3 = vsel %vm3338_vm13, %v10745_v14, %v8235_v35  ;;  %v11516_v35 = vpop.f32.mrf.mxu0 }
 0x3f6   : > { %v8240_v63 = vunpack.i.h.bf16 %v8238_v7  ;;  %v8239_v48 = vunpack.i.l.bf16 %v8238_v7  ;;  %v8250_v7 = vunpack.i.h.bf16 %v8248_v53  ;;  %v11508_v53 = vpop.f32.mrf.mxu3 }
 0x3f7   : > { %v4000_v38 = vmax.f32 %v3942_v19, 0.0  ;;  %v3361_v30 = vsel %vm3338_vm13, %v10748_v56, %v8234_v22  ;;  %v8259_v56 = vunpack.i.l.bf16 %v8258_v46 }
 0x3f8   : > { %8387 = vrot.lane.b32.xlu1 %v11337_v54, %s13033_s28  ;;  %v3592_v40 = vsel %vm3569_vm8, %v3559_v31, %v8239_v48  ;;  %v3593_v4 = vsel %vm3569_vm8, %v3560_v60, %v8240_v63  ;;  %v3394_v55 = vsel %vm3371_vm14, %v3361_v30, %v8249_v27  ;;  %v3943_v63 = vpop.f32.mrf.mxu2  ;;  %v3395_v14 = vsel %vm3371_vm14, %v3362_v3, %v8250_v7 }
 0x3f9   : > { %v3625_v45 = vpack.c.bf16 %v3593_v4, %v3592_v40  ;;  %v11504_v61 = vpop.permute.xlu0 %8262  ;;  %v4071_v57 = vrot.slane %v4000_v38, 7  ;;  %v8260_v60 = vunpack.i.h.bf16 %v8258_v46  ;;  %v13064_v38 = vunpack.i.l.bf16 %v11407_v47  ;;  %v8273_v30 = vpop.permute.xlu2 %8272 }
 0x3fa   : > { %8377 = vrot.lane.b32.xlu2 %v11322_v16, %s13034_s23  ;;  %v3854_v54 = vpop.f32.mrf.mxu1 }
 0x3fb   : > { %6302 = vmatmul.msk.bf16.gmra.mxu2 %vm3754_vm9, %v3625_v45  ;;  %v3855_v39 = vadd.f32 %v11387_v62, %v3854_v54  ;;  %v4153_v27 = vsel %vm481_vm0, 0.0, %v4071_v57 }
 0x3fd   : > { %v8253_v2 = vpop.permute.xlu1 %8252  ;;  %8382 = vrot.lane.b32.xlu0 %v11322_v16, %s13029_s14  ;;  %v3944_v19 = vadd.f32 %v3943_v63, %v3855_v39 }
 0x3fe   : > { %v8255_v48 = vunpack.i.h.bf16 %v8253_v2  ;;  %v8254_v31 = vunpack.i.l.bf16 %v8253_v2  ;;  %v4243_v2 = vrot.slane %v4153_v27, 1 }
 0x3ff   : > { %v4001_v22 = vmax.f32 %v3944_v19, 0.0 }
 0x400   : > { %8402 = vrot.lane.b32.xlu1 %v8361_v8, %s13035_s22  ;;  %v3428_v40 = vsel %vm3404_vm15, %v3395_v14, %v8255_v48  ;;  %v3427_v4 = vsel %vm3404_vm15, %v3394_v55, %v8254_v31  ;;  %v13065_v8 = vunpack.i.h.bf16 %v11407_v47 }
 0x401   : > { %v3460_v45 = vsel %vm3437_vm4, %v3427_v4, %v8259_v56  ;;  %v3461_v16 = vsel %vm3437_vm4, %v3428_v40, %v8260_v60  ;;  %v4072_v54 = vrot.slane %v4001_v22, 7  ;;  %v4350_v56 = vrot.slane %v4153_v27, 2  ;;  %v8278_v40 = vpop.permute.xlu0 %8277  ;;  %v5177_v22 = vpop.f32.mrf.mxu0 }
 0x402   : > { %v3493_v46 = vsel %vm3470_vm5, %v3460_v45, %v13064_v38  ;;  %v3494_v7 = vsel %vm3470_vm5, %v3461_v16, %v13065_v8  ;;  %8392 = vrot.lane.b32.xlu2 %v11430_v29, %s13031_s29  ;;  %v6889_v8 = vld [vmem:[%s12698_s6 + $0x178] sm:$0xff] }
 0x403   : > { %v3624_v3 = vpack.c.bf16 %v3494_v7, %v3493_v46  ;;  %v4073_v39 = vsel %vm481_vm0, %v4071_v57, %v4072_v54  ;;  %v4169_v55 = vsel %vm481_vm0, %v4072_v54, 0.0  ;;  %v6872_v46 = vld [vmem:[%s12698_s6 + $0xf0] sm:$0xff]  ;;  %v8265_v54 = vunpack.i.h.bf16 %v11504_v61  ;;  %5514 = vmatpush.bf16.msra.mxu0 %v6889_v8 }
 0x404   : > { %v4246_v63 = vrot.slane %v4169_v55, 1  ;;  %v4353_v48 = vrot.slane %v4169_v55, 2  ;;  %v5088_v31 = vpop.f32.mrf.mxu3  ;;  %v11533_v14 = vpack.c.bf16 %v4073_v39, %v4071_v57  ;;  %v4244_v60 = vrot.slane %v4073_v39, 1  ;;  %5337 = vmatpush.bf16.msra.mxu1 %v6872_v46  ;;  %v6864_v46 = vld [vmem:[%s12698_s6 + $0xb0] sm:$0xff] }
 0x405   : > { %3871 = vmatmul.bf16.gmra.mxu1 %v3624_v3  ;;  %8397 = vrot.lane.b32.xlu0 %v11442_v49, %s13034_s23  ;;  %v5089_v29 = vadd.f32 %v11422_v43, %v5088_v31  ;;  %v4351_v19 = vrot.slane %v4073_v39, 2  ;;  %v8264_v3 = vunpack.i.l.bf16 %v11504_v61  ;;  %v8275_v39 = vunpack.i.h.bf16 %v8273_v30  ;;  %v6880_v8 = vld [vmem:[%s12698_s6 + $0x130] sm:$0xff]  ;;  %s338_s23 = sand.u32 1, %s8515_s10  }
 0x406   : > { %v8268_v47 = vpop.permute.xlu1 %8267  ;;  %13066 = vst [vmem:[#allocation11_spill] sm:$0xff] %v11533_v14  ;;  %6630 = vmatmul.msk.bf16.gmra.mxu3 %vm10888_vm3, %v11533_v14  ;;  %v4245_v4 = vsel %vm647_vm1, %v4243_v2, %v4244_v60  ;;  %v4247_v49 = vsel %vm647_vm1, %v4244_v60, %v4246_v63  ;;  %v8274_v55 = vunpack.i.l.bf16 %v8273_v30  ;;  %5248 = vmatpush.bf16.msra.mxu2 %v6864_v46 }
 0x407   : > { %v11543_v57 = vpack.c.bf16 %v4247_v49, %v4245_v4  ;;  %v4352_v45 = vsel %vm728_vm2, %v4350_v56, %v4351_v19  ;;  %v8270_v16 = vunpack.i.h.bf16 %v8268_v47  ;;  %v8269_v27 = vunpack.i.l.bf16 %v8268_v47  ;;  %v8288_v47 = vpop.permute.xlu2 %8287  ;;  %5426 = vmatpush.bf16.msra.mxu3 %v6880_v8 }
 0x408   : > { %8417 = vrot.lane.b32.xlu1 %v13010_v5, %s13032_s17  ;;  %v4354_v38 = vsel %vm728_vm2, %v4351_v19, %v4353_v48  ;;  %v11547_v5 = vadd.f32 %v5177_v22, %v5089_v29  ;;  %v8280_v48 = vunpack.i.h.bf16 %v8278_v40  ;;  %v8279_v56 = vunpack.i.l.bf16 %v8278_v40  ;;  %s6210_s17 = sshll.u32 %s338_s23, 8 }
 0x409   : > { %13067 = vst [vmem:[#allocation60_spill] sm:$0xff] %v11543_v57  ;;  %5206 = vmatmul.bf16.gmra.mxu0 %v11543_v57  ;;  %v11558_v7 = vpack.c.bf16 %v4354_v38, %v4352_v45  ;;  %v3529_v2 = vsel %vm3503_vm6, %v8265_v54, %v8270_v16  ;;  %v8293_v19 = vpop.permute.xlu0 %8292  ;;  %v8290_v22 = vunpack.i.h.bf16 %v8288_v47  ;;  %v8289_v30 = vunpack.i.l.bf16 %v8288_v47  ;;  %s12541_s14 = scalar_lea.vmem [#allocation2], %s6210_s17 }
 0x40a   : > { %8407 = vrot.lane.b32.xlu2 %v9946_v15, %s13037_s16  ;;  %v3528_v15 = vsel %vm3503_vm6, %v8264_v3, %v8269_v27  ;;  %v3562_v61 = vsel %vm3536_vm7, %v3529_v2, %v8275_v39  ;;  %v3363_v16 = vsel %vm3338_vm13, %v10958_v41, %v8279_v56  ;;  %v8295_v27 = vunpack.i.h.bf16 %v8293_v19 }
 0x40b   : > { %13068 = vst [vmem:[#allocation64_spill] sm:$0xff] %v11558_v7  ;;  %v3561_v29 = vsel %vm3536_vm7, %v3528_v15, %v8274_v55  ;;  %v8294_v40 = vunpack.i.l.bf16 %v8293_v19  ;;  %v3396_v39 = vsel %vm3371_vm14, %v3363_v16, %v8289_v30  ;;  %v11590_v19 = vpop.f32.mrf.mxu0 }
 0x40d   : > { %8412 = vrot.lane.b32.xlu0 %v13008_v32, %s13036_s26  ;;  %v3364_v32 = vsel %vm3338_vm13, %v10955_v52, %v8280_v48  ;;  %v3429_v48 = vsel %vm3404_vm15, %v3396_v39, %v8294_v40  ;;  %s6129_s26 = sshll.u32 %s12541_s14, 4  ;;  %s6130_s26 = int_to_ptr.vmem [resolvable:$true] %s6129_s26 }
 0x40e   : > { %v8283_v63 = vpop.permute.xlu1 %8282  ;;  %v3397_v2 = vsel %vm3371_vm14, %v3364_v32, %v8290_v22 }
 0x40f   : > { %v8285_v31 = vunpack.i.h.bf16 %v8283_v63  ;;  %v8284_v60 = vunpack.i.l.bf16 %v8283_v63  ;;  %v3946_v38 = vpop.f32.mrf.mxu2  ;;  %v3430_v47 = vsel %vm3404_vm15, %v3397_v2, %v8295_v27 }
 0x411   : > { %v3594_v4 = vsel %vm3569_vm8, %v3561_v29, %v8284_v60  ;;  %v3595_v49 = vsel %vm3569_vm8, %v3562_v61, %v8285_v31 }
 0x412   : > { %v3627_v45 = vpack.c.bf16 %v3595_v49, %v3594_v4  ;;  %v11592_v4 = vpop.f32.mrf.mxu3 }
 0x414   : > { %6303 = vmatmul.msk.bf16.gmra.mxu2 %vm3754_vm9, %v3627_v45  ;;  %v3857_v52 = vpop.f32.mrf.mxu1 }
 0x415   : > { %v3858_v41 = vadd.f32 %v11387_v62, %v3857_v52 }
 0x416   : > { %v8298_v15 = vpop.permute.xlu1 %8297 }
 0x417   : > { %v8300_v55 = vunpack.i.h.bf16 %v8298_v15  ;;  %v8299_v63 = vunpack.i.l.bf16 %v8298_v15  ;;  %v3947_v31 = vadd.f32 %v3946_v38, %v3858_v41  ;;  %v3948_v16 = vpop.f32.mrf.mxu2 }
 0x419   : > { %v3462_v60 = vsel %vm3437_vm4, %v3429_v48, %v8299_v63  ;;  %v3463_v56 = vsel %vm3437_vm4, %v3430_v47, %v8300_v55  ;;  %v4002_v22 = vmax.f32 %v3947_v31, 0.0 }
 0x41a   : > { %v3495_v29 = vsel %vm3470_vm5, %v3462_v60, %v8264_v3  ;;  %v3496_v61 = vsel %vm3470_vm5, %v3463_v56, %v8265_v54 }
 0x41b   : > { %v3626_v49 = vpack.c.bf16 %v3496_v61, %v3495_v29  ;;  %v4074_v30 = vrot.slane %v4002_v22, 7  ;;  %v6871_v22 = vld [vmem:[%s12698_s6 + $0xe8] sm:$0xff] }
 0x41c   : > { %v3859_v45 = vpop.f32.mrf.mxu1  ;;  %5338 = vmatpush.bf16.msra.mxu1 %v6871_v22 }
 0x41d   : > { %3876 = vmatmul.bf16.gmra.mxu1 %v3626_v49  ;;  %v3860_v32 = vadd.f32 %v11387_v62, %v3859_v45  ;;  %v4154_v3 = vsel %vm481_vm0, 0.0, %v4074_v30  ;;  %v6888_v45 = vld [vmem:[%s12698_s6 + $0x170] sm:$0xff] }
 0x41e   : > { %v4248_v52 = vrot.slane %v4154_v3, 1  ;;  %v4355_v47 = vrot.slane %v4154_v3, 2  ;;  %5515 = vmatpush.bf16.msra.mxu0 %v6888_v45 }
 0x41f   : > { %v3949_v27 = vadd.f32 %v3948_v16, %v3860_v32 }
 0x420   : > { %v5182_v38 = vpop.f32.mrf.mxu0 }
 0x421   : > { %v4003_v40 = vmax.f32 %v3949_v27, 0.0 }
 0x423   : > { %v4075_v8 = vrot.slane %v4003_v40, 7 }
 0x424   : > { %v5093_v46 = vpop.f32.mrf.mxu3 }
 0x425   : > { %v5094_v54 = vadd.f32 %v11422_v43, %v5093_v46  ;;  %v4076_v15 = vsel %vm481_vm0, %v4074_v30, %v4075_v8  ;;  %v4170_v39 = vsel %vm481_vm0, %v4075_v8, 0.0  ;;  %v6863_v46 = vld [vmem:[%s12698_s6 + $0xa8] sm:$0xff] }
 0x426   : > { %v4251_v41 = vrot.slane %v4170_v39, 1  ;;  %v4358_v55 = vrot.slane %v4170_v39, 2  ;;  %v11601_v63 = vpack.c.bf16 %v4076_v15, %v4074_v30  ;;  %v4249_v48 = vrot.slane %v4076_v15, 1  ;;  %5249 = vmatpush.bf16.msra.mxu2 %v6863_v46 }
 0x427   : > { %v11597_v2 = vadd.f32 %v5182_v38, %v5094_v54  ;;  %v4356_v31 = vrot.slane %v4076_v15, 2  ;;  %v3951_v29 = vpop.f32.mrf.mxu2  ;;  %v11632_v15 = vpop.permute.xlu2 %8302 }
 0x428   : > { %13069 = vst [vmem:[#allocation22_spill] sm:$0xff] %v11601_v63  ;;  %6634 = vmatmul.msk.bf16.gmra.mxu3 %vm10888_vm3, %v11601_v63  ;;  %v4250_v60 = vsel %vm647_vm1, %v4248_v52, %v4249_v48  ;;  %v4252_v56 = vsel %vm647_vm1, %v4249_v48, %v4251_v41  ;;  %v11622_v40 = vpop.f32.mrf.mxu0  ;;  %v6879_v52 = vld [vmem:[%s12698_s6 + $0x128] sm:$0xff] }
 0x429   : > { %v11608_v61 = vpack.c.bf16 %v4252_v56, %v4250_v60  ;;  %v4357_v32 = vsel %vm728_vm2, %v4355_v47, %v4356_v31  ;;  %v4359_v30 = vsel %vm728_vm2, %v4356_v31, %v4358_v55  ;;  %13072 = vst [vmem:[#allocation57_spill] sm:$0xff] %v11622_v40  ;;  %5427 = vmatpush.bf16.msra.mxu3 %v6879_v52 }
 0x42a   : > { %v11619_v27 = vpack.c.bf16 %v4359_v30, %v4357_v32 }
 0x42b   : > { %13070 = vst [vmem:[#allocation21_spill] sm:$0xff] %v11608_v61  ;;  %v3862_v49 = vpop.f32.mrf.mxu1  ;;  %5211 = vmatmul.bf16.gmra.mxu0 %v11608_v61 }
 0x42c   : > { %v3863_v16 = vadd.f32 %v11387_v62, %v3862_v49  ;;  %13071 = vst [vmem:[#allocation13_spill] sm:$0xff] %v11619_v27  ;;  %v11627_v3 = vpop.f32.mrf.mxu3 }
 0x42d   : > { %13073 = vst [vmem:[#allocation68_spill] sm:$0xff] %v11627_v3 }
 0x42e   : > { %v3952_v38 = vadd.f32 %v3951_v29, %v3863_v16 }
 0x42f   : > { %v3953_v41 = vpop.f32.mrf.mxu2 }
 0x430   : > { %v4004_v54 = vmax.f32 %v3952_v38, 0.0 }
 0x432   : > { %v4077_v48 = vrot.slane %v4004_v54, 7  ;;  %v8318_v54 = vpop.permute.xlu2 %8317 }
 0x433   : > { %v3864_v8 = vpop.f32.mrf.mxu1 }
 0x434   : > { %v3865_v39 = vadd.f32 %v11387_v62, %v3864_v8  ;;  %v4155_v56 = vsel %vm481_vm0, 0.0, %v4077_v48 }
 0x435   : > { %v4253_v16 = vrot.slane %v4155_v56, 1  ;;  %v4360_v52 = vrot.slane %v4155_v56, 2 }
 0x436   : > { %v3954_v47 = vadd.f32 %v3953_v41, %v3865_v39 }
 0x438   : > { %v5187_v55 = vpop.f32.mrf.mxu0  ;;  %v4005_v31 = vmax.f32 %v3954_v47, 0.0 }
 0x43a   : > { %v4078_v29 = vrot.slane %v4005_v31, 7 }
 0x43c   : > { %v5098_v60 = vpop.f32.mrf.mxu3  ;;  %v4079_v22 = vsel %vm481_vm0, %v4077_v48, %v4078_v29  ;;  %v4171_v45 = vsel %vm481_vm0, %v4078_v29, 0.0 }
 0x43d   : > { %v5099_v49 = vadd.f32 %v11422_v43, %v5098_v60  ;;  %v4256_v38 = vrot.slane %v4171_v45, 1  ;;  %v4363_v46 = vrot.slane %v4171_v45, 2  ;;  %v11643_v39 = vpack.c.bf16 %v4079_v22, %v4077_v48 }
 0x43e   : > { %v8308_v32 = vpop.permute.xlu0 %8307  ;;  %v4254_v41 = vrot.slane %v4079_v22, 1  ;;  %v4361_v47 = vrot.slane %v4079_v22, 2 }
 0x43f   : > { %v11639_v30 = vadd.f32 %v5187_v55, %v5099_v49  ;;  %13076 = vst [vmem:[#allocation47_spill] sm:$0xff] %v11643_v39  ;;  %6638 = vmatmul.msk.bf16.gmra.mxu3 %vm10888_vm3, %v11643_v39  ;;  %v8310_v45 = vunpack.i.h.bf16 %v8308_v32  ;;  %v8309_v61 = vunpack.i.l.bf16 %v8308_v32 }
 0x440   : > { %v11641_v8 = vpop.f32.mrf.mxu0  ;;  %v4255_v60 = vsel %vm647_vm1, %v4253_v16, %v4254_v41  ;;  %v4257_v55 = vsel %vm647_vm1, %v4254_v41, %v4256_v38  ;;  %v4362_v29 = vsel %vm728_vm2, %v4360_v52, %v4361_v47  ;;  %v4364_v49 = vsel %vm728_vm2, %v4361_v47, %v4363_v46 }
 0x441   : > { %13074 = vst [vmem:[#allocation27_spill] sm:$0xff] %v11639_v30  ;;  %v11652_v56 = vpack.c.bf16 %v4257_v55, %v4255_v60  ;;  %v11656_v22 = vpack.c.bf16 %v4364_v49, %v4362_v29  ;;  %v8304_v16 = vunpack.i.l.bf16 %v11632_v15  ;;  %v8320_v47 = vunpack.i.h.bf16 %v8318_v54 }
 0x442   : > { %13075 = vst [vmem:[#allocation28_spill] sm:$0xff] %v11641_v8  ;;  %v8313_v31 = vpop.permute.xlu1 %8312  ;;  %v8305_v8 = vunpack.i.h.bf16 %v11632_v15  ;;  %v8319_v60 = vunpack.i.l.bf16 %v8318_v54 }
 0x443   : > { %13077 = vst [vmem:[#allocation61_spill] sm:$0xff] %v11652_v56  ;;  %v8315_v57 = vunpack.i.h.bf16 %v8313_v31  ;;  %v8314_v18 = vunpack.i.l.bf16 %v8313_v31  ;;  %5216 = vmatmul.bf16.gmra.mxu0 %v11652_v56  ;;  %v3530_v46 = vsel %vm3503_vm6, %v8304_v16, %v8309_v61  ;;  %v3366_v61 = vsel %vm3338_vm13, %v11064_v10, %v8320_v47  ;;  %v6870_v10 = vld [vmem:[%s12698_s6 + $0xe0] sm:$0xff] }
 0x444   : > { %v11654_v48 = vpop.f32.mrf.mxu3  ;;  %13079 = vst [vmem:[#allocation25_spill] sm:$0xff] %v11656_v22  ;;  %v3531_v52 = vsel %vm3503_vm6, %v8305_v8, %v8310_v45  ;;  %v3365_v54 = vsel %vm3338_vm13, %v11067_v11, %v8319_v60  ;;  %v6887_v11 = vld [vmem:[%s12698_s6 + $0x168] sm:$0xff]  ;;  %5339 = vmatpush.bf16.msra.mxu1 %v6870_v10 }
 0x445   : > { %13078 = vst [vmem:[#allocation26_spill] sm:$0xff] %v11654_v48  ;;  %v3564_v55 = vsel %vm3536_vm7, %v3531_v52, %v8315_v57  ;;  %v3563_v29 = vsel %vm3536_vm7, %v3530_v46, %v8314_v18  ;;  %v8333_v48 = vpop.permute.xlu2 %8332  ;;  %5516 = vmatpush.bf16.msra.mxu0 %v6887_v11 }
 0x446   : > { %v8323_v38 = vpop.permute.xlu0 %8322  ;;  %v8335_v52 = vunpack.i.h.bf16 %v8333_v48  ;;  %v8334_v46 = vunpack.i.l.bf16 %v8333_v48 }
 0x447   : > { %v8325_v32 = vunpack.i.h.bf16 %v8323_v38  ;;  %v8324_v41 = vunpack.i.l.bf16 %v8323_v38 }
 0x448   : > { %v5192_v15 = vpop.f32.mrf.mxu0 }
 0x449   : > { %v3596_v31 = vsel %vm3569_vm8, %v3563_v29, %v8324_v41  ;;  %v3597_v49 = vsel %vm3569_vm8, %v3564_v55, %v8325_v32 }
 0x44a   : > { %v3629_v56 = vpack.c.bf16 %v3597_v49, %v3596_v31  ;;  %v8328_v30 = vpop.permute.xlu1 %8327 }
 0x44b   : > { %v8330_v40 = vunpack.i.h.bf16 %v8328_v30  ;;  %v8329_v45 = vunpack.i.l.bf16 %v8328_v30  ;;  %v13182_v6 = vld [vmem:[#allocation25_spill] sm:$0xff] }
 0x44c   : > { %v5103_v3 = vpop.f32.mrf.mxu3  ;;  %6304 = vmatmul.msk.bf16.gmra.mxu2 %vm3754_vm9, %v3629_v56 }
 0x44d   : > { %v5104_v18 = vadd.f32 %v11422_v43, %v5103_v3  ;;  %v3399_v57 = vsel %vm3371_vm14, %v3366_v61, %v8330_v40  ;;  %v3398_v38 = vsel %vm3371_vm14, %v3365_v54, %v8329_v45  ;;  %v8348_v47 = vpop.permute.xlu2 %8347  ;;  %v6862_v61 = vld [vmem:[%s12698_s6 + $0xa0] sm:$0xff] }
 0x44e   : > { %v8338_v32 = vpop.permute.xlu0 %8337  ;;  %v3431_v3 = vsel %vm3404_vm15, %v3398_v38, %v8334_v46  ;;  %v3432_v40 = vsel %vm3404_vm15, %v3399_v57, %v8335_v52  ;;  %v6878_v54 = vld [vmem:[%s12698_s6 + $0x120] sm:$0xff]  ;;  %5250 = vmatpush.bf16.msra.mxu2 %v6862_v61 }
 0x44f   : > { %v11675_v41 = vadd.f32 %v5192_v15, %v5104_v18  ;;  %v8340_v30 = vunpack.i.h.bf16 %v8338_v32  ;;  %v8339_v55 = vunpack.i.l.bf16 %v8338_v32  ;;  %5428 = vmatpush.bf16.msra.mxu3 %v6878_v54 }
 0x450   : > { %v11691_v15 = vpop.f32.mrf.mxu0 }
 0x451   : > { %v3464_v56 = vsel %vm3437_vm4, %v3431_v3, %v8339_v55  ;;  %v3465_v48 = vsel %vm3437_vm4, %v3432_v40, %v8340_v30  ;;  %v8350_v30 = vunpack.i.h.bf16 %v8348_v47  ;;  %v8349_v55 = vunpack.i.l.bf16 %v8348_v47 }
 0x452   : > { %v11687_v60 = vpop.permute.xlu1 %8342  ;;  %v3497_v29 = vsel %vm3470_vm5, %v3464_v56, %v8304_v16  ;;  %v3498_v31 = vsel %vm3470_vm5, %v3465_v48, %v8305_v8 }
 0x453   : > { %v3628_v49 = vpack.c.bf16 %v3498_v31, %v3497_v29  ;;  %v8345_v46 = vunpack.i.h.bf16 %v11687_v60  ;;  %v8344_v32 = vunpack.i.l.bf16 %v11687_v60 }
 0x454   : > { %v11693_v45 = vpop.f32.mrf.mxu3 }
 0x455   : > { %3881 = vmatmul.bf16.gmra.mxu1 %v3628_v49  ;;  %v8363_v57 = vpop.permute.xlu2 %8362  ;;  %v3533_v29 = vsel %vm3503_vm6, %v8345_v46, %v8350_v30  ;;  %v3532_v31 = vsel %vm3503_vm6, %v8344_v32, %v8349_v55 }
 0x456   : > { %v8365_v56 = vunpack.i.h.bf16 %v8363_v57  ;;  %v8364_v48 = vunpack.i.l.bf16 %v8363_v57  ;;  %v6869_v57 = vld [vmem:[%s12698_s6 + $0xd8] sm:$0xff] }
 0x457   : > { %5340 = vmatpush.bf16.msra.mxu1 %v6869_v57 }
 0x458   : > { %v5197_v38 = vpop.f32.mrf.mxu0 }
 0x45a   : > { %v8358_v18 = vpop.permute.xlu1 %8357 }
 0x45b   : > { %v8359_v55 = vunpack.i.l.bf16 %v8358_v18 }
 0x45c   : > { %v5108_v16 = vpop.f32.mrf.mxu3 }
 0x45d   : > { %v5109_v8 = vadd.f32 %v11422_v43, %v5108_v16  ;;  %v8378_v30 = vpop.permute.xlu2 %8377 }
 0x45f   : > { %v11702_v52 = vadd.f32 %v5197_v38, %v5109_v8  ;;  %v8353_v10 = vpop.permute.xlu0 %8352  ;;  %v3956_v54 = vpop.f32.mrf.mxu2  ;;  %v8360_v8 = vunpack.i.h.bf16 %v8358_v18 }
 0x460   : > { %v8355_v11 = vunpack.i.h.bf16 %v8353_v10  ;;  %v8354_v3 = vunpack.i.l.bf16 %v8353_v10 }
 0x461   : > { %13080 = vst [vmem:[#allocation24_spill] sm:$0xff] %v11702_v52 }
 0x462   : > { %v8373_v40 = vpop.permute.xlu1 %8372  ;;  %v3565_v49 = vsel %vm3536_vm7, %v3532_v31, %v8354_v3  ;;  %v3566_v61 = vsel %vm3536_vm7, %v3533_v29, %v8355_v11  ;;  %v3867_v16 = vpop.f32.mrf.mxu1  ;;  %v3368_v3 = vsel %vm3338_vm13, %v11158_v25, %v8360_v8  ;;  %v3367_v29 = vsel %vm3338_vm13, %v11161_v13, %v8359_v55  ;;  %v6868_v8 = vld [vmem:[%s12698_s6 + $0xd0] sm:$0xff]  ;;  %v6861_v13 = vld [vmem:[%s12698_s6 + $0x98] sm:$0xff] }
 0x463   : > { %v3598_v60 = vsel %vm3569_vm8, %v3565_v49, %v8364_v48  ;;  %v3599_v47 = vsel %vm3569_vm8, %v3566_v61, %v8365_v56  ;;  %v3868_v38 = vadd.f32 %v11387_v62, %v3867_v16  ;;  %v8375_v31 = vunpack.i.h.bf16 %v8373_v40  ;;  %5341 = vmatpush.bf16.msra.mxu1 %v6868_v8  ;;  %5251 = vmatpush.bf16.msra.mxu2 %v6861_v13 }
 0x464   : > { %v3631_v10 = vpack.c.bf16 %v3599_v47, %v3598_v60  ;;  %v8374_v49 = vunpack.i.l.bf16 %v8373_v40  ;;  %v8380_v16 = vunpack.i.h.bf16 %v8378_v30  ;;  %v8379_v60 = vunpack.i.l.bf16 %v8378_v30  ;;  %v6886_v30 = vld [vmem:[%s12698_s6 + $0x160] sm:$0xff] }
 0x465   : > { %v3957_v52 = vadd.f32 %v3956_v54, %v3868_v38  ;;  %5517 = vmatpush.bf16.msra.mxu0 %v6886_v30 }
 0x466   : > { %6305 = vmatmul.msk.bf16.gmra.mxu2 %vm3754_vm9, %v3631_v10 }
 0x467   : > { %v8368_v11 = vpop.permute.xlu0 %8367  ;;  %v4006_v61 = vmax.f32 %v3957_v52, 0.0 }
 0x468   : > { %v8370_v48 = vunpack.i.h.bf16 %v8368_v11  ;;  %v8369_v56 = vunpack.i.l.bf16 %v8368_v11  ;;  %v3958_v11 = vpop.f32.mrf.mxu2 }
 0x469   : > { %v4080_v55 = vrot.slane %v4006_v61, 7 }
 0x46a   : > { %v3400_v18 = vsel %vm3371_vm14, %v3367_v29, %v8369_v56  ;;  %v3401_v54 = vsel %vm3371_vm14, %v3368_v3, %v8370_v48  ;;  %v8388_v47 = vpop.permute.xlu1 %8387  ;;  %v3869_v25 = vpop.f32.mrf.mxu1 }
 0x46b   : > { %v3433_v38 = vsel %vm3404_vm15, %v3400_v18, %v8374_v49  ;;  %v3434_v10 = vsel %vm3404_vm15, %v3401_v54, %v8375_v31  ;;  %v3870_v52 = vadd.f32 %v11387_v62, %v3869_v25  ;;  %v11737_v3 = vpop.f32.mrf.mxu3  ;;  %v6867_v62 = vld [vmem:[%s12698_s6 + $0xc8] sm:$0xff]  ;;  %v8393_v49 = vpop.permute.xlu2 %8392  ;;  %v8390_v25 = vunpack.i.h.bf16 %v8388_v47 }
 0x46c   : > { %v3466_v40 = vsel %vm3437_vm4, %v3433_v38, %v8379_v60  ;;  %v3467_v57 = vsel %vm3437_vm4, %v3434_v10, %v8380_v16  ;;  %13081 = vst [vmem:[#allocation53_spill] sm:$0xff] %v11737_v3  ;;  %v11744_v60 = vpop.f32.mrf.mxu0  ;;  %5342 = vmatpush.bf16.msra.mxu1 %v6867_v62  ;;  %v8394_v38 = vunpack.i.l.bf16 %v8393_v49  ;;  %v8389_v8 = vunpack.i.l.bf16 %v8388_v47 }
 0x46d   : > { %v3499_v48 = vsel %vm3470_vm5, %v3466_v40, %v8344_v32  ;;  %v3500_v56 = vsel %vm3470_vm5, %v3467_v57, %v8345_v46  ;;  %v3959_v29 = vadd.f32 %v3958_v11, %v3870_v52  ;;  %13082 = vst [vmem:[#allocation62_spill] sm:$0xff] %v11744_v60  ;;  %v4156_v32 = vsel %vm481_vm0, 0.0, %v4080_v55  ;;  %v6860_v40 = vld [vmem:[%s12698_s6 + $0x90] sm:$0xff]  ;;  %v6866_v57 = vld [vmem:[%s12698_s6 + $0xc0] sm:$0xff] }
 0x46e   : > { %v3630_v31 = vpack.c.bf16 %v3500_v56, %v3499_v48  ;;  %v8395_v46 = vunpack.i.h.bf16 %v8393_v49  ;;  %v4258_v30 = vrot.slane %v4156_v32, 1  ;;  %v4365_v11 = vrot.slane %v4156_v32, 2  ;;  %5252 = vmatpush.bf16.msra.mxu2 %v6860_v40 }
 0x46f   : > { %v8383_v16 = vpop.permute.xlu0 %8382  ;;  %v4007_v61 = vmax.f32 %v3959_v29, 0.0 }
 0x470   : > { %v8385_v18 = vunpack.i.h.bf16 %v8383_v16  ;;  %v8384_v54 = vunpack.i.l.bf16 %v8383_v16  ;;  %3886 = vmatmul.bf16.gmra.mxu1 %v3630_v31  ;;  %v6859_v16 = vld [vmem:[%s12698_s6 + $0x88] sm:$0xff] }
 0x471   : > { %v4081_v10 = vrot.slane %v4007_v61, 7  ;;  %5343 = vmatpush.bf16.msra.mxu1 %v6866_v57 }
 0x472   : > { %v3370_v13 = vsel %vm3338_vm13, %v11303_v23, %v8385_v18  ;;  %v3369_v52 = vsel %vm3338_vm13, %v11306_v9, %v8384_v54  ;;  %v8403_v56 = vpop.permute.xlu1 %8402  ;;  %v6877_v23 = vld [vmem:[%s12698_s6 + $0x118] sm:$0xff]  ;;  %5253 = vmatpush.bf16.msra.mxu2 %v6859_v16 }
 0x473   : > { %v4082_v48 = vsel %vm481_vm0, %v4080_v55, %v4081_v10  ;;  %v4172_v47 = vsel %vm481_vm0, %v4081_v10, 0.0  ;;  %v3402_v61 = vsel %vm3371_vm14, %v3369_v52, %v8389_v8  ;;  %v3403_v18 = vsel %vm3371_vm14, %v3370_v13, %v8390_v25  ;;  %5429 = vmatpush.bf16.msra.mxu3 %v6877_v23 }
 0x474   : > { %v4261_v9 = vrot.slane %v4172_v47, 1  ;;  %v4368_v62 = vrot.slane %v4172_v47, 2  ;;  %v11762_v31 = vpack.c.bf16 %v4082_v48, %v4080_v55  ;;  %v4259_v49 = vrot.slane %v4082_v48, 1  ;;  %v5202_v57 = vpop.f32.mrf.mxu0 }
 0x475   : > { %v5113_v29 = vpop.f32.mrf.mxu3  ;;  %v4366_v32 = vrot.slane %v4082_v48, 2  ;;  %v8405_v10 = vunpack.i.h.bf16 %v8403_v56  ;;  %v8404_v47 = vunpack.i.l.bf16 %v8403_v56  ;;  %v3435_v13 = vsel %vm3404_vm15, %v3402_v61, %v8394_v38  ;;  %v6858_v56 = vld [vmem:[%s12698_s6 + $0x80] sm:$0xff] }
 0x476   : > { %13083 = vst [vmem:[#allocation30_spill] sm:$0xff] %v11762_v31  ;;  %v5114_v54 = vadd.f32 %v11422_v43, %v5113_v29  ;;  %6642 = vmatmul.msk.bf16.gmra.mxu3 %vm10888_vm3, %v11762_v31  ;;  %v4260_v55 = vsel %vm647_vm1, %v4258_v30, %v4259_v49  ;;  %v4262_v40 = vsel %vm647_vm1, %v4259_v49, %v4261_v9  ;;  %v8408_v9 = vpop.permute.xlu2 %8407 }
 0x477   : > { %v8398_v60 = vpop.permute.xlu0 %8397  ;;  %v11775_v52 = vpack.c.bf16 %v4262_v40, %v4260_v55  ;;  %v4367_v25 = vsel %vm728_vm2, %v4365_v11, %v4366_v32  ;;  %v3436_v48 = vsel %vm3404_vm15, %v3403_v18, %v8395_v46  ;;  %v4369_v30 = vsel %vm728_vm2, %v4366_v32, %v4368_v62  ;;  %5254 = vmatpush.bf16.msra.mxu2 %v6858_v56  ;;  %v11802_v56 = vld [vmem:[%s12697_s5] ss:$0 sm:$0xff] }
 0x478   : > { %v8400_v3 = vunpack.i.h.bf16 %v8398_v60  ;;  %v8399_v8 = vunpack.i.l.bf16 %v8398_v60  ;;  %v11784_v23 = vadd.f32 %v5202_v57, %v5114_v54  ;;  %v11789_v11 = vpack.c.bf16 %v4369_v30, %v4367_v25 }
 0x479   : > { %13084 = vst [vmem:[#allocation31_spill] sm:$0xff] %v11775_v52  ;;  %5221 = vmatmul.bf16.gmra.mxu0 %v11775_v52  ;;  %v8410_v16 = vunpack.i.h.bf16 %v8408_v9  ;;  %v8409_v61 = vunpack.i.l.bf16 %v8408_v9 }
 0x47a   : > { %v3468_v60 = vsel %vm3437_vm4, %v3435_v13, %v8399_v8  ;;  %v3469_v29 = vsel %vm3437_vm4, %v3436_v48, %v8400_v3  ;;  %13085 = vst [vmem:[#allocation23_spill] sm:$0xff] %v11789_v11  ;;  %v8418_v49 = vpop.permute.xlu1 %8417 }
 0x47b   : > { %v3501_v46 = vsel %vm3470_vm5, %v3468_v60, %v8404_v47  ;;  %v3502_v38 = vsel %vm3470_vm5, %v3469_v29, %v8405_v10  ;;  %v8420_v54 = vunpack.i.h.bf16 %v8418_v49  ;;  %v8419_v32 = vunpack.i.l.bf16 %v8418_v49 }
 0x47c   : > { %v3632_v62 = vpack.c.bf16 %v3502_v38, %v3501_v46  ;;  %v3535_v3 = vsel %vm3503_vm6, %v8405_v10, %v8410_v16  ;;  %v3534_v57 = vsel %vm3503_vm6, %v8404_v47, %v8409_v61  ;;  %v11807_v47 = vpop.f32.mrf.mxu0 }
 0x47d   : > { %v11795_v13 = vpop.f32.mrf.mxu3 }
 0x47e   : > { %v3961_v8 = vpop.f32.mrf.mxu2 }
 0x47f   : > { %v8413_v18 = vpop.permute.xlu0 %8412 }
 0x480   : > { %v8415_v55 = vunpack.i.h.bf16 %v8413_v18  ;;  %v8414_v40 = vunpack.i.l.bf16 %v8413_v18  ;;  %3891 = vmatmul.bf16.gmra.mxu1 %v3632_v62 }
 0x482   : > { %v3872_v25 = vpop.f32.mrf.mxu1  ;;  %v3567_v48 = vsel %vm3536_vm7, %v3534_v57, %v8414_v40  ;;  %v3568_v30 = vsel %vm3536_vm7, %v3535_v3, %v8415_v55 }
 0x483   : > { %v3873_v9 = vadd.f32 %v11802_v56, %v3872_v25  ;;  %v3600_v60 = vsel %vm3569_vm8, %v3567_v48, %v8419_v32  ;;  %v3601_v10 = vsel %vm3569_vm8, %v3568_v30, %v8420_v54  ;;  %v6885_v54 = vld [vmem:[%s12698_s6 + $0x158] sm:$0xff]  ;;  %v13086_v30 = vld [vmem:[#allocation42_spill] sm:$0xff] }
 0x484   : > { %v3633_v29 = vpack.c.bf16 %v3601_v10, %v3600_v60  ;;  %5518 = vmatpush.bf16.msra.mxu0 %v6885_v54  ;;  %v6876_v10 = vld [vmem:[%s12698_s6 + $0x110] sm:$0xff] }
 0x485   : > { %v3962_v46 = vadd.f32 %v3961_v8, %v3873_v9  ;;  %v13087_v9 = vld [vmem:[#allocation43_spill] sm:$0xff]  ;;  %5430 = vmatpush.bf16.msra.mxu3 %v6876_v10 }
 0x486   : > { %6306 = vmatmul.msk.bf16.gmra.mxu2 %vm3754_vm9, %v3633_v29  ;;  %v3963_v62 = vpop.f32.mrf.mxu2  ;;  %v5207_v40 = vpop.f32.mrf.mxu0  ;;  %v11825_v60 = vpack.c.bf16 %v13087_v9, %v13086_v30 }
 0x487   : > { %v4008_v38 = vmax.f32 %v3962_v46, 0.0 }
 0x488   : > { %13088 = vst [vmem:[#allocation45_spill] sm:$0xff] %v11825_v60 }
 0x489   : > { %v5118_v61 = vpop.f32.mrf.mxu3  ;;  %v4083_v32 = vrot.slane %v4008_v38, 7 }
 0x48a   : > { %v3874_v49 = vpop.f32.mrf.mxu1  ;;  %v5119_v18 = vadd.f32 %v11422_v43, %v5118_v61 }
 0x48b   : > { %v3875_v16 = vadd.f32 %v11802_v56, %v3874_v49  ;;  %v4157_v25 = vsel %vm481_vm0, 0.0, %v4083_v32 }
 0x48c   : > { %v11815_v3 = vadd.f32 %v5207_v40, %v5119_v18  ;;  %v4263_v49 = vrot.slane %v4157_v25, 1 }
 0x48d   : > { %v3964_v55 = vadd.f32 %v3963_v62, %v3875_v16 }
 0x48f   : > { %v4009_v57 = vmax.f32 %v3964_v55, 0.0 }
 0x490   : > { %6662 = vmatmul.msk.bf16.vlgmr.msra.gmra.mxu1 %vm10888_vm3, %v11006_v44  ;;  %v4370_v44 = vrot.slane %v4157_v25, 2 }
 0x491   : > { %v4084_v8 = vrot.slane %v4009_v57, 7 }
 0x493   : > { %v4085_v43 = vsel %vm481_vm0, %v4083_v32, %v4084_v8  ;;  %v4173_v48 = vsel %vm481_vm0, %v4084_v8, 0.0 }
 0x494   : > { %v4266_v29 = vrot.slane %v4173_v48, 1  ;;  %v4373_v46 = vrot.slane %v4173_v48, 2  ;;  %v11830_v38 = vpack.c.bf16 %v4085_v43, %v4083_v32  ;;  %v4264_v16 = vrot.slane %v4085_v43, 1 }
 0x495   : > { %v4371_v61 = vrot.slane %v4085_v43, 2 }
 0x496   : > { %13089 = vst [vmem:[#allocation51_spill] sm:$0xff] %v11830_v38  ;;  %6646 = vmatmul.msk.bf16.gmra.mxu3 %vm10888_vm3, %v11830_v38  ;;  %5255 = vmatmul.bf16.vlgmr.msra.gmra.mxu2 %v11825_v60  ;;  %v4265_v62 = vsel %vm647_vm1, %v4263_v49, %v4264_v16  ;;  %v4267_v18 = vsel %vm647_vm1, %v4264_v16, %v4266_v29 }
 0x497   : > { %v4372_v55 = vsel %vm728_vm2, %v4370_v44, %v4371_v61  ;;  %v4374_v40 = vsel %vm728_vm2, %v4371_v61, %v4373_v46  ;;  %v11840_v54 = vpack.c.bf16 %v4267_v18, %v4265_v62  ;;  %v3966_v57 = vpop.f32.mrf.mxu2  ;;  %v11850_v46 = vpop.f32.mrf.mxu3  ;;  %v6884_v62 = vld [vmem:[%s12698_s6 + $0x150] sm:$0xff] }
 0x498   : > { %v11842_v32 = vpack.c.bf16 %v4374_v40, %v4372_v55  ;;  %v11853_v44 = vpop.f32.mrf.mxu0  ;;  %5519 = vmatpush.bf16.msra.mxu0 %v6884_v62 }
 0x499   : > { %13090 = vst [vmem:[#allocation10_spill] sm:$0xff] %v11840_v54  ;;  %5226 = vmatmul.bf16.gmra.mxu0 %v11840_v54 }
 0x49a   : > { %13091 = vst [vmem:[#allocation50_spill] sm:$0xff] %v11842_v32  ;;  %v3877_v8 = vpop.f32.mrf.mxu1 }
 0x49b   : > { %v3878_v25 = vadd.f32 %v11802_v56, %v3877_v8 }
 0x49d   : > { %v3967_v43 = vadd.f32 %v3966_v57, %v3878_v25 }
 0x49f   : > { %v4010_v48 = vmax.f32 %v3967_v43, 0.0  ;;  %v3968_v29 = vpop.f32.mrf.mxu2 }
 0x4a0   : > { %6666 = vmatmul.msk.bf16.gmra.mxu1 %vm10888_vm3, %v11101_v0 }
 0x4a1   : > { %v4086_v10 = vrot.slane %v4010_v48, 7 }
 0x4a2   : > { %v3879_v30 = vpop.f32.mrf.mxu1 }
 0x4a3   : > { %v3880_v9 = vadd.f32 %v11802_v56, %v3879_v30  ;;  %v4158_v61 = vsel %vm481_vm0, 0.0, %v4086_v10 }
 0x4a4   : > { %v4268_v55 = vrot.slane %v4158_v61, 1  ;;  %v4375_v30 = vrot.slane %v4158_v61, 2 }
 0x4a5   : > { %v3969_v49 = vadd.f32 %v3968_v29, %v3880_v9 }
 0x4a6   : > { %5260 = vmatmul.bf16.gmra.mxu2 %v11020_v24 }
 0x4a7   : > { %v4011_v16 = vmax.f32 %v3969_v49, 0.0  ;;  %v11866_v49 = vld [vmem:[%s12699_s7] ss:$0 sm:$0xff] }
 0x4a9   : > { %v4087_v18 = vrot.slane %v4011_v16, 7 }
 0x4ab   : > { %v4088_v40 = vsel %vm481_vm0, %v4086_v10, %v4087_v18  ;;  %v4174_v57 = vsel %vm481_vm0, %v4087_v18, 0.0  ;;  %v5123_v9 = vpop.f32.mrf.mxu3  ;;  %v5212_v18 = vpop.f32.mrf.mxu0 }
 0x4ac   : > { %v4271_v8 = vrot.slane %v4174_v57, 1  ;;  %v4378_v25 = vrot.slane %v4174_v57, 2  ;;  %v11861_v43 = vpack.c.bf16 %v4088_v40, %v4086_v10  ;;  %v4269_v48 = vrot.slane %v4088_v40, 1 }
 0x4ad   : > { %v4376_v29 = vrot.slane %v4088_v40, 2  ;;  %v5124_v16 = vadd.f32 %v11866_v49, %v5123_v9 }
 0x4ae   : > { %13092 = vst [vmem:[#allocation44_spill] sm:$0xff] %v11861_v43  ;;  %6650 = vmatmul.msk.bf16.gmra.mxu3 %vm10888_vm3, %v11861_v43  ;;  %v4270_v62 = vsel %vm647_vm1, %v4268_v55, %v4269_v48  ;;  %v4272_v10 = vsel %vm647_vm1, %v4269_v48, %v4271_v8  ;;  %v6875_v55 = vld [vmem:[%s12698_s6 + $0x108] sm:$0xff] }
 0x4af   : > { %v11874_v57 = vpack.c.bf16 %v4272_v10, %v4270_v62  ;;  %v4377_v61 = vsel %vm728_vm2, %v4375_v30, %v4376_v29  ;;  %v4379_v40 = vsel %vm728_vm2, %v4376_v29, %v4378_v25  ;;  %v11883_v60 = vadd.f32 %v5212_v18, %v5124_v16  ;;  %5431 = vmatpush.bf16.msra.mxu3 %v6875_v55  ;;  %v6883_v62 = vld [vmem:[%s12698_s6 + $0x148] sm:$0xff] }
 0x4b0   : > { %6670 = vmatmul.msk.bf16.gmra.mxu1 %vm10888_vm3, %v11215_v21  ;;  %v11881_v9 = vpack.c.bf16 %v4379_v40, %v4377_v61  ;;  %5520 = vmatpush.bf16.msra.mxu0 %v6883_v62 }
 0x4b1   : > { %13093 = vst [vmem:[#allocation6_spill] sm:$0xff] %v11874_v57  ;;  %5231 = vmatmul.bf16.gmra.mxu0 %v11874_v57 }
 0x4b2   : > { %13094 = vst [vmem:[#allocation55_spill] sm:$0xff] %v11883_v60 }
 0x4b3   : > { %v11890_v8 = vpop.f32.mrf.mxu3  ;;  %v11892_v25 = vpop.f32.mrf.mxu0 }
 0x4b4   : > { %13095 = vst [vmem:[#allocation58_spill] sm:$0xff] %v11890_v8 }
 0x4b5   : > { %13096 = vst [vmem:[#allocation69_spill] sm:$0xff] %v11892_v25 }
 0x4b6   : > { %5265 = vmatmul.bf16.gmra.mxu2 %v11126_v20 }
 0x4c0   : > { %6674 = vmatmul.msk.bf16.gmra.mxu1 %vm10888_vm3, %v11264_v28  ;;  %v5217_v29 = vpop.f32.mrf.mxu0 }
 0x4c2   : > { %v5128_v48 = vpop.f32.mrf.mxu3 }
 0x4c3   : > { %v5129_v30 = vadd.f32 %v11866_v49, %v5128_v48  ;;  %v6874_v48 = vld [vmem:[%s12698_s6 + $0x100] sm:$0xff] }
 0x4c4   : > { %5432 = vmatpush.bf16.msra.mxu3 %v6874_v48 }
 0x4c5   : > { %v11899_v16 = vadd.f32 %v5217_v29, %v5129_v30 }
 0x4c6   : > { %5270 = vmatmul.bf16.gmra.mxu2 %v11234_v12 }
 0x4c7   : > { %13097 = vst [vmem:[#allocation52_spill] sm:$0xff] %v11899_v16 }
 0x4cf   : > { %v3971_v10 = vpop.f32.mrf.mxu2 }
 0x4d0   : > { %6678 = vmatmul.msk.bf16.gmra.mxu1 %vm10888_vm3, %v11292_v33 }
 0x4d2   : > { %v3882_v18 = vpop.f32.mrf.mxu1 }
 0x4d3   : > { %v3883_v61 = vadd.f32 %v11802_v56, %v3882_v18 }
 0x4d5   : > { %v3972_v40 = vadd.f32 %v3971_v10, %v3883_v61 }
 0x4d6   : > { %5275 = vmatmul.bf16.gmra.mxu2 %v11275_v58 }
 0x4d7   : > { %v4012_v55 = vmax.f32 %v3972_v40, 0.0  ;;  %v3973_v57 = vpop.f32.mrf.mxu2 }
 0x4d9   : > { %v4089_v62 = vrot.slane %v4012_v55, 7 }
 0x4da   : > { %v3884_v30 = vpop.f32.mrf.mxu1 }
 0x4db   : > { %v3885_v29 = vadd.f32 %v11802_v56, %v3884_v30  ;;  %v4159_v33 = vsel %vm481_vm0, 0.0, %v4089_v62 }
 0x4dc   : > { %v4273_v10 = vrot.slane %v4159_v33, 1  ;;  %v4380_v48 = vrot.slane %v4159_v33, 2 }
 0x4dd   : > { %v3974_v54 = vadd.f32 %v3973_v57, %v3885_v29 }
 0x4df   : > { %v4013_v16 = vmax.f32 %v3974_v54, 0.0 }
 0x4e0   : > { %6682 = vmatmul.msk.bf16.gmra.mxu1 %vm10888_vm3, %v11355_v26 }
 0x4e1   : > { %v4090_v28 = vrot.slane %v4013_v16, 7 }
 0x4e3   : > { %v4091_v18 = vsel %vm481_vm0, %v4089_v62, %v4090_v28  ;;  %v4175_v61 = vsel %vm481_vm0, %v4090_v28, 0.0 }
 0x4e4   : > { %v4276_v40 = vrot.slane %v4175_v61, 1  ;;  %v4383_v52 = vrot.slane %v4175_v61, 2  ;;  %v11919_v30 = vpack.c.bf16 %v4091_v18, %v4089_v62  ;;  %v4274_v55 = vrot.slane %v4091_v18, 1 }
 0x4e5   : > { %v4381_v57 = vrot.slane %v4091_v18, 2 }
 0x4e6   : > { %13098 = vst [vmem:[#allocation36_spill] sm:$0xff] %v11919_v30  ;;  %6654 = vmatmul.msk.bf16.gmra.mxu3 %vm10888_vm3, %v11919_v30  ;;  %v4275_v54 = vsel %vm647_vm1, %v4273_v10, %v4274_v55  ;;  %v4277_v16 = vsel %vm647_vm1, %v4274_v55, %v4276_v40  ;;  %5280 = vmatmul.bf16.gmra.mxu2 %v11351_v51  ;;  %v6882_v10 = vld [vmem:[%s12698_s6 + $0x140] sm:$0xff]  ;;  %v11947_v40 = vpop.f32.mrf.mxu3 }
 0x4e7   : > { %v11926_v29 = vpack.c.bf16 %v4277_v16, %v4275_v54  ;;  %v4382_v26 = vsel %vm728_vm2, %v4380_v48, %v4381_v57  ;;  %v4384_v28 = vsel %vm728_vm2, %v4381_v57, %v4383_v52  ;;  %v6897_v52 = vld [vmem:[%s12698_s6 + $0x1b8] sm:$0xff]  ;;  %13100 = vst [vmem:[#allocation56_spill] sm:$0xff] %v11947_v40  ;;  %5521 = vmatpush.bf16.msra.mxu0 %v6882_v10  ;;  %v11949_v48 = vpop.f32.mrf.mxu0 }
 0x4e8   : > { %v11931_v62 = vpack.c.bf16 %v4384_v28, %v4382_v26  ;;  %v6905_v26 = vld [vmem:[%s12698_s6 + $0x1f8] sm:$0xff]  ;;  %13101 = vst [vmem:[#allocation63_spill] sm:$0xff] %v11949_v48  ;;  %5603 = vmatpush.bf16.msrb.mxu2 %v6897_v52 }
 0x4e9   : > { %13099 = vst [vmem:[#allocation37_spill] sm:$0xff] %v11926_v29  ;;  %5236 = vmatmul.bf16.gmra.mxu0 %v11926_v29  ;;  %v3976_v33 = vpop.f32.mrf.mxu2  ;;  %5692 = vmatpush.bf16.msrb.mxu1 %v6905_v26 }
 0x4ed   : > { %v3887_v18 = vpop.f32.mrf.mxu1 }
 0x4ee   : > { %v3888_v61 = vadd.f32 %v11802_v56, %v3887_v18  ;;  %v6913_v18 = vld [vmem:[%s12698_s6 + $0x238] sm:$0xff] }
 0x4ef   : > { %5781 = vmatpush.bf16.msrb.mxu3 %v6913_v18 }
 0x4f0   : > { %v3977_v25 = vadd.f32 %v3976_v33, %v3888_v61  ;;  %6686 = vmatmul.msk.bf16.gmra.mxu1 %vm10888_vm3, %v11459_v17 }
 0x4f1   : > { %v3978_v28 = vpop.f32.mrf.mxu2 }
 0x4f2   : > { %v4014_v55 = vmax.f32 %v3977_v25, 0.0 }
 0x4f4   : > { %v4092_v16 = vrot.slane %v4014_v55, 7 }
 0x4f5   : > { %v3889_v57 = vpop.f32.mrf.mxu1 }
 0x4f6   : > { %v3890_v54 = vadd.f32 %v11802_v56, %v3889_v57  ;;  %5285 = vmatmul.bf16.gmra.mxu2 %v11374_v36  ;;  %v4160_v25 = vsel %vm481_vm0, 0.0, %v4092_v16  ;;  %v5222_v52 = vpop.f32.mrf.mxu0 }
 0x4f7   : > { %v4278_v48 = vrot.slane %v4160_v25, 1  ;;  %v4385_v60 = vrot.slane %v4160_v25, 2 }
 0x4f8   : > { %v3979_v33 = vadd.f32 %v3978_v28, %v3890_v54 }
 0x4f9   : > { %v5133_v17 = vpop.f32.mrf.mxu3 }
 0x4fa   : > { %v4015_v61 = vmax.f32 %v3979_v33, 0.0  ;;  %v5134_v10 = vadd.f32 %v11866_v49, %v5133_v17 }
 0x4fc   : > { %v4093_v26 = vrot.slane %v4015_v61, 7  ;;  %v11958_v57 = vadd.f32 %v5222_v52, %v5134_v10 }
 0x4fd   : > { %v3892_v29 = vpop.f32.mrf.mxu1 }
 0x4fe   : > { %13102 = vst [vmem:[#allocation65_spill] sm:$0xff] %v11958_v57  ;;  %v4094_v55 = vsel %vm481_vm0, %v4092_v16, %v4093_v26  ;;  %v4176_v54 = vsel %vm481_vm0, %v4093_v26, 0.0  ;;  %v5081_v57 = vadd.f32 %v11866_v49, %v11401_v42 }
 0x4ff   : > { %v4281_v28 = vrot.slane %v4176_v54, 1  ;;  %v4388_v40 = vrot.slane %v4176_v54, 2  ;;  %v11962_v8 = vpack.c.bf16 %v4094_v55, %v4092_v16  ;;  %v4279_v33 = vrot.slane %v4094_v55, 1 }
 0x500   : > { %6690 = vmatmul.msk.bf16.gmra.mxu1 %vm10888_vm3, %v11533_v14  ;;  %v4386_v17 = vrot.slane %v4094_v55, 2  ;;  %v3893_v55 = vadd.f32 %v11802_v56, %v3892_v29  ;;  %v6896_v29 = vld [vmem:[%s12698_s6 + $0x1b0] sm:$0xff]  ;;  %v5170_v42 = vadd.f32 %v11405_v37, %v5081_v57  ;;  %v6903_v37 = vld [vmem:[%s12698_s6 + $0x1e8] sm:$0xff] }
 0x501   : > { %13103 = vst [vmem:[#allocation33_spill] sm:$0xff] %v11962_v8  ;;  %6658 = vmatmul.msk.bf16.gmra.mxu3 %vm10888_vm3, %v11962_v8  ;;  %v4280_v18 = vsel %vm647_vm1, %v4278_v48, %v4279_v33  ;;  %v4282_v61 = vsel %vm647_vm1, %v4279_v33, %v4281_v28  ;;  %v6904_v48 = vld [vmem:[%s12698_s6 + $0x1f0] sm:$0xff]  ;;  %5604 = vmatpush.bf16.msrb.mxu2 %v6896_v29  ;;  %v11994_v33 = vpop.f32.mrf.mxu3 }
 0x502   : > { %v11972_v10 = vpack.c.bf16 %v4282_v61, %v4280_v18  ;;  %v4387_v16 = vsel %vm728_vm2, %v4385_v60, %v4386_v17  ;;  %v4389_v26 = vsel %vm728_vm2, %v4386_v17, %v4388_v40  ;;  %v11987_v60 = vld [vmem:[%s12700_s8] sm:$0x3]  ;;  %5693 = vmatpush.bf16.msrb.mxu1 %v6904_v48  ;;  %13105 = vst [vmem:[#allocation39_spill] sm:$0xff] %v11994_v33  ;;  %v12001_v61 = vpop.f32.mrf.mxu0 }
 0x503   : > { %v11976_v25 = vpack.c.bf16 %v4389_v26, %v4387_v16  ;;  %6787 = vmatpush.msk.msrb.mxu0 %vm5935_vm12, %v11987_v60  ;;  %13106 = vst [vmem:[#allocation40_spill] sm:$0xff] %v12001_v61 }
 0x504   : > { %13104 = vst [vmem:[#allocation34_spill] sm:$0xff] %v11972_v10  ;;  %5241 = vmatmul.bf16.gmra.mxu0 %v11972_v10 }
 0x505   : > { %v3894_v52 = vpop.f32.mrf.mxu1 }
 0x506   : > { %5290 = vmatmul.bf16.gmra.mxu2 %v11484_v59  ;;  %v3895_v17 = vadd.f32 %v11802_v56, %v3894_v52  ;;  %5694 = vmatpush.bf16.msrb.mxu1 %v6903_v37 }
 0x509   : > { %v3981_v54 = vpop.f32.mrf.mxu2 }
 0x50a   : > { %v3982_v14 = vadd.f32 %v3981_v54, %v3893_v55  ;;  %v5079_v55 = vadd.f32 %v11866_v49, %v11357_v34 }
 0x50c   : > { %v4016_v28 = vmax.f32 %v3982_v14, 0.0  ;;  %v6912_v14 = vld [vmem:[%s12698_s6 + $0x230] sm:$0xff] }
 0x50d   : > { %v5345_v40 = vpop.f32.mrf.mxu1  ;;  %5782 = vmatpush.bf16.msrb.mxu3 %v6912_v14 }
 0x50e   : > { %v12003_v16 = vrot.slane %v4016_v28, 7  ;;  %v5168_v28 = vadd.f32 %v11359_v1, %v5079_v55 }
 0x510   : > { %6694 = vmatmul.msk.bf16.gmra.mxu1 %vm10888_vm3, %v11601_v63 }
 0x511   : > { %v3983_v18 = vpop.f32.mrf.mxu2  ;;  %5433 = vmatmul.bf16.vlgmr.msra.gmra.mxu3 %v11025_v50  ;;  %v4161_v50 = vsel %vm481_vm0, 0.0, %v12003_v16 }
 0x512   : > { %v3984_v26 = vadd.f32 %v3983_v18, %v3895_v17  ;;  %v4424_v17 = vrot.slane %v4161_v50, 1  ;;  %v4431_v63 = vrot.slane %v4161_v50, 2 }
 0x514   : > { %v4017_v56 = vmax.f32 %v3984_v26, 0.0  ;;  %5522 = vmatmul.bf16.vlgmr.msra.gmra.mxu0 %v11020_v24 }
 0x515   : > { %v5347_v52 = vpop.f32.mrf.mxu1 }
 0x516   : > { %v4096_v54 = vrot.slane %v4017_v56, 7  ;;  %5295 = vmatmul.bf16.gmra.mxu2 %v11558_v7  ;;  %v5227_v10 = vpop.f32.mrf.mxu0 }
 0x518   : > { %v12016_v48 = vsel %vm481_vm0, %v12003_v16, %v4096_v54  ;;  %v4177_v29 = vsel %vm481_vm0, %v4096_v54, 0.0  ;;  %vm13149_vm0 = vcmask 15360  }
 0x519   : > { %v5138_v34 = vpop.f32.mrf.mxu3  ;;  %v4427_v18 = vrot.slane %v4177_v29, 1  ;;  %v4434_v24 = vrot.slane %v4177_v29, 2  ;;  %v5256_v26 = vpop.f32.mrf.mxu2  ;;  %v4425_v61 = vrot.slane %v12016_v48, 1  ;;  %v4432_v33 = vrot.slane %v12016_v48, 2  ;;  %vm13155_vm13 = vmmov %vm13149_vm0 }
 0x51a   : > { %v5139_v14 = vadd.f32 %v11866_v49, %v5138_v34  ;;  %v5257_v56 = vadd.f32 %v5256_v26, %v5168_v28  ;;  %vm13157_vm14 = vmmov %vm13149_vm0 }
 0x51b   : > { %v4426_v55 = vsel %vm647_vm1, %v4424_v17, %v4425_v61  ;;  %v4428_v29 = vsel %vm647_vm1, %v4425_v61, %v4427_v18  ;;  %v4433_v34 = vsel %vm728_vm2, %v4431_v63, %v4432_v33  ;;  %v4435_v28 = vsel %vm728_vm2, %v4432_v33, %v4434_v24  ;;  %v13108_v24 = vld [vmem:[#allocation59_spill] sm:$0xff]  ;;  %vm13151_vm1 = vmmov %vm13149_vm0 }
 0x51c   : > { %v12025_v54 = vadd.f32 %v5227_v10, %v5139_v14  ;;  %v12027_v1 = vadd.f32 %v5345_v40, %v5257_v56  ;;  %v12032_v21 = vpack.c.bf16 %v4428_v29, %v4426_v55  ;;  %v12035_v26 = vpack.c.bf16 %v4435_v28, %v4433_v34  ;;  %v13107_v40 = vld [vmem:[#allocation7_spill] sm:$0xff]  ;;  %vm13153_vm2 = vmmov %vm13149_vm0 }
 0x51d   : > { %v5350_v50 = vpop.f32.mrf.mxu1  ;;  %v5086_v56 = vadd.f32 %v11866_v49, %v11508_v53  ;;  %v6895_v29 = vld [vmem:[%s12698_s6 + $0x1a8] sm:$0xff]  ;;  %vm13159_vm15 = vmmov %vm13149_vm0 }
 0x51e   : > { %v12052_v57 = vpop.f32.mrf.mxu0  ;;  %5605 = vmatpush.bf16.msrb.mxu2 %v6895_v29  ;;  %v5091_v29 = vadd.f32 %v11866_v49, %v11592_v4  ;;  %vm13161_vm4 = vmmov %vm13149_vm0 }
 0x51f   : > { %v5175_v34 = vadd.f32 %v11516_v35, %v5086_v56  ;;  %vm13164_vm5 = vmmov %vm13149_vm0 }
 0x520   : > { %6698 = vmatmul.msk.bf16.gmra.mxu1 %vm10888_vm3, %v11643_v39  ;;  %vm13166_vm6 = vmmov %vm13149_vm0 }
 0x521   : > { %v5258_v10 = vpop.f32.mrf.mxu2  ;;  %5438 = vmatmul.bf16.gmra.mxu3 %v13107_v40  ;;  %v12046_v33 = vpop.f32.mrf.mxu3  ;;  %vm13168_vm7 = vmmov %vm13149_vm0 }
 0x522   : > { %v5259_v17 = vadd.f32 %v5258_v10, %v5170_v42  ;;  %v13109_v10 = vld [vmem:[#allocation38_spill] sm:$0xff]  ;;  %vm13170_vm8 = vmmov %vm13149_vm0 }
 0x523   : > { %vm13172_vm9 = vmmov %vm13149_vm0 }
 0x524   : > { %5527 = vmatmul.bf16.gmra.mxu0 %v11126_v20  ;;  %v12043_v63 = vadd.f32 %v5347_v52, %v5259_v17  ;;  %v6911_v17 = vld [vmem:[%s12698_s6 + $0x228] sm:$0xff]  ;;  %vm13174_vm10 = vmmov %vm13149_vm0 }
 0x525   : > { %v5352_v61 = vpop.f32.mrf.mxu1  ;;  %5783 = vmatpush.bf16.msrb.mxu3 %v6911_v17  ;;  %vm13176_vm11 = vmmov %vm13149_vm0 }
 0x526   : > { %5300 = vmatmul.bf16.gmra.mxu2 %v11619_v27 }
 0x529   : > { %v5261_v18 = vpop.f32.mrf.mxu2 }
 0x52a   : > { %v5262_v14 = vadd.f32 %v5261_v18, %v13108_v24 }
 0x52c   : > { %v12056_v52 = vadd.f32 %v5350_v50, %v5262_v14 }
 0x52d   : > { %v5355_v55 = vpop.f32.mrf.mxu1 }
 0x52e   : > { %v5232_v18 = vpop.f32.mrf.mxu0 }
 0x530   : > { %6702 = vmatmul.msk.bf16.gmra.mxu1 %vm10888_vm3, %v11762_v31  ;;  %v5106_v31 = vadd.f32 %v11866_v49, %v11693_v45 }
 0x531   : > { %v5143_v28 = vpop.f32.mrf.mxu3  ;;  %v5263_v42 = vpop.f32.mrf.mxu2  ;;  %5443 = vmatmul.bf16.gmra.mxu3 %v13109_v10 }
 0x532   : > { %v5144_v53 = vadd.f32 %v11866_v49, %v5143_v28  ;;  %v5264_v50 = vadd.f32 %v5263_v42, %v5175_v34 }
 0x534   : > { %5532 = vmatmul.bf16.gmra.mxu0 %v11234_v12  ;;  %v12071_v24 = vadd.f32 %v5352_v61, %v5264_v50  ;;  %v12073_v14 = vadd.f32 %v5232_v18, %v5144_v53  ;;  %v5180_v61 = vadd.f32 %v11590_v19, %v5091_v29  ;;  %v13110_v53 = vld [vmem:[#allocation17_spill] sm:$0xff]  ;;  %v6902_v18 = vld [vmem:[%s12698_s6 + $0x1e0] sm:$0xff] }
 0x535   : > { %v5357_v35 = vpop.f32.mrf.mxu1  ;;  %5695 = vmatpush.bf16.msrb.mxu1 %v6902_v18 }
 0x536   : > { %5305 = vmatmul.bf16.gmra.mxu2 %v11656_v22 }
 0x539   : > { %v5266_v37 = vpop.f32.mrf.mxu2 }
 0x53a   : > { %v5267_v56 = vadd.f32 %v5266_v37, %v11547_v5  ;;  %v13111_v37 = vld [vmem:[#allocation68_spill] sm:$0xff] }
 0x53b   : > { %v5096_v19 = vadd.f32 %v11866_v49, %v13111_v37 }
 0x53c   : > { %v12079_v34 = vadd.f32 %v5355_v55, %v5267_v56 }
 0x53d   : > { %v5360_v28 = vpop.f32.mrf.mxu1 }
 0x540   : > { %6706 = vmatmul.msk.bf16.gmra.mxu1 %vm10888_vm3, %v11830_v38 }
 0x541   : > { %v5268_v42 = vpop.f32.mrf.mxu2  ;;  %5448 = vmatmul.bf16.gmra.mxu3 %v13110_v53 }
 0x542   : > { %v5269_v50 = vadd.f32 %v5268_v42, %v5180_v61 }
 0x544   : > { %5537 = vmatmul.bf16.gmra.mxu0 %v11275_v58  ;;  %v12087_v17 = vadd.f32 %v5357_v35, %v5269_v50  ;;  %v6894_v35 = vld [vmem:[%s12698_s6 + $0x1a0] sm:$0xff]  ;;  %v13117_v58 = vld [vmem:[#allocation19_spill] sm:$0xff] }
 0x545   : > { %v5362_v5 = vpop.f32.mrf.mxu1  ;;  %5606 = vmatpush.bf16.msrb.mxu2 %v6894_v35  ;;  %v13113_v50 = vld [vmem:[#allocation54_spill] sm:$0xff]  ;;  %v13114_v35 = vld [vmem:[#allocation27_spill] sm:$0xff] }
 0x546   : > { %5310 = vmatmul.bf16.gmra.mxu2 %v11789_v11 }
 0x549   : > { %v5271_v4 = vpop.f32.mrf.mxu2 }
 0x54a   : > { %v5272_v55 = vadd.f32 %v5271_v4, %v11597_v2  ;;  %v13112_v2 = vld [vmem:[#allocation57_spill] sm:$0xff] }
 0x54b   : > { %v5185_v61 = vadd.f32 %v13112_v2, %v5096_v19  ;;  %v13115_v19 = vld [vmem:[#allocation26_spill] sm:$0xff] }
 0x54c   : > { %v12096_v56 = vadd.f32 %v5360_v28, %v5272_v55  ;;  %v6910_v28 = vld [vmem:[%s12698_s6 + $0x220] sm:$0xff]  ;;  %v5101_v2 = vadd.f32 %v11866_v49, %v13115_v19  ;;  %v6900_v19 = vld [vmem:[%s12698_s6 + $0x1d0] sm:$0xff] }
 0x54d   : > { %v5365_v29 = vpop.f32.mrf.mxu1  ;;  %5784 = vmatpush.bf16.msrb.mxu3 %v6910_v28  ;;  %v12124_v28 = vpop.f32.mrf.mxu0 }
 0x550   : > { %6710 = vmatmul.msk.bf16.gmra.mxu1 %vm10888_vm3, %v11861_v43 }
 0x551   : > { %v5273_v42 = vpop.f32.mrf.mxu2  ;;  %5453 = vmatmul.bf16.gmra.mxu3 %v13113_v50 }
 0x552   : > { %v5274_v4 = vadd.f32 %v5273_v42, %v5185_v61  ;;  %v12118_v42 = vpop.f32.mrf.mxu3 }
 0x554   : > { %5542 = vmatmul.bf16.gmra.mxu0 %v11351_v51  ;;  %v12110_v55 = vadd.f32 %v5362_v5, %v5274_v4  ;;  %v13116_v5 = vld [vmem:[#allocation28_spill] sm:$0xff] }
 0x555   : > { %v5367_v18 = vpop.f32.mrf.mxu1  ;;  %v5190_v4 = vadd.f32 %v13116_v5, %v5101_v2 }
 0x556   : > { %5315 = vmatmul.bf16.gmra.mxu2 %v11842_v32 }
 0x559   : > { %v5276_v37 = vpop.f32.mrf.mxu2 }
 0x55a   : > { %v5277_v43 = vadd.f32 %v5276_v37, %v13114_v35 }
 0x55c   : > { %v12116_v38 = vadd.f32 %v5365_v29, %v5277_v43  ;;  %v6901_v43 = vld [vmem:[%s12698_s6 + $0x1d8] sm:$0xff] }
 0x55d   : > { %v5370_v61 = vpop.f32.mrf.mxu1  ;;  %5696 = vmatpush.bf16.msrb.mxu1 %v6901_v43 }
 0x560   : > { %6714 = vmatmul.msk.bf16.gmra.mxu1 %vm10888_vm3, %v11919_v30  ;;  %v6892_v30 = vld [vmem:[%s12698_s6 + $0x190] sm:$0xff] }
 0x561   : > { %v5278_v51 = vpop.f32.mrf.mxu2  ;;  %5458 = vmatmul.bf16.gmra.mxu3 %v13117_v58  ;;  %5697 = vmatpush.bf16.msrb.mxu1 %v6900_v19 }
 0x562   : > { %v5279_v37 = vadd.f32 %v5278_v51, %v5190_v4  ;;  %v6893_v51 = vld [vmem:[%s12698_s6 + $0x198] sm:$0xff] }
 0x563   : > { %5607 = vmatpush.bf16.msrb.mxu2 %v6893_v51 }
 0x564   : > { %5547 = vmatmul.bf16.gmra.mxu0 %v11374_v36  ;;  %v12131_v29 = vadd.f32 %v5367_v18, %v5279_v37  ;;  %v6899_v37 = vld [vmem:[%s12698_s6 + $0x1c8] sm:$0xff] }
 0x565   : > { %v5372_v35 = vpop.f32.mrf.mxu1  ;;  %5698 = vmatpush.bf16.msrb.mxu1 %v6899_v37 }
 0x566   : > { %5320 = vmatmul.bf16.gmra.mxu2 %v11881_v9  ;;  %v5237_v4 = vpop.f32.mrf.mxu0 }
 0x567   : > { %5608 = vmatpush.bf16.msrb.mxu2 %v6892_v30  ;;  %v13118_v30 = vld [vmem:[#allocation15_spill] sm:$0xff] }
 0x569   : > { %v5148_v2 = vpop.f32.mrf.mxu3  ;;  %v5281_v43 = vpop.f32.mrf.mxu2 }
 0x56a   : > { %v5149_v5 = vadd.f32 %v11866_v49, %v5148_v2  ;;  %v5282_v18 = vadd.f32 %v5281_v43, %v11675_v41  ;;  %v6898_v41 = vld [vmem:[%s12698_s6 + $0x1c0] sm:$0xff]  ;;  %v6891_v2 = vld [vmem:[%s12698_s6 + $0x188] sm:$0xff] }
 0x56b   : > { %5609 = vmatpush.bf16.msrb.mxu2 %v6891_v2  ;;  %5699 = vmatpush.bf16.msrb.mxu1 %v6898_v41  ;;  %v6890_v43 = vld [vmem:[%s12698_s6 + $0x180] sm:$0xff]  ;;  %v13119_v41 = vld [vmem:[#allocation24_spill] sm:$0xff] }
 0x56c   : > { %v12148_v36 = vadd.f32 %v5237_v4, %v5149_v5  ;;  %v12152_v19 = vadd.f32 %v5370_v61, %v5282_v18  ;;  %v5195_v5 = vadd.f32 %v11691_v15, %v5106_v31  ;;  %v6909_v4 = vld [vmem:[%s12698_s6 + $0x218] sm:$0xff] }
 0x56d   : > { %v5375_v51 = vpop.f32.mrf.mxu1  ;;  %5785 = vmatpush.bf16.msrb.mxu3 %v6909_v4 }
 0x56e   : > { %v12177_v18 = vpop.f32.mrf.mxu0 }
 0x56f   : > { %7000 = vmatpush.msk.msra.mxu1 %vm5935_vm12, %v11987_v60  ;;  %5610 = vmatpush.bf16.msrb.mxu2 %v6890_v43  ;;  %vm13179_vm12 = vmmov %vm13149_vm0 }
 0x570   : > { %6718 = vmatmul.msk.bf16.gmra.mxu1 %vm10888_vm3, %v11962_v8 }
 0x571   : > { %v5283_v45 = vpop.f32.mrf.mxu2  ;;  %5463 = vmatmul.bf16.gmra.mxu3 %v13118_v30  ;;  %v12182_v8 = vpop.f32.mrf.mxu3 }
 0x572   : > { %v5284_v61 = vadd.f32 %v5283_v45, %v5195_v5  ;;  %v13120_v5 = vld [vmem:[#allocation53_spill] sm:$0xff] }
 0x573   : > { %v5111_v45 = vadd.f32 %v11866_v49, %v13120_v5 }
 0x574   : > { %5552 = vmatmul.bf16.gmra.mxu0 %v11484_v59  ;;  %v12174_v15 = vadd.f32 %v5372_v35, %v5284_v61  ;;  %v12188_v35 = vpack.c.bf16 %v12016_v48, %v12003_v16  ;;  %v13122_v61 = vld [vmem:[#allocation62_spill] sm:$0xff] }
 0x575   : > { %v5377_v31 = vpop.f32.mrf.mxu1  ;;  %v5200_v4 = vadd.f32 %v13122_v61, %v5111_v45  ;;  %v5116_v61 = vadd.f32 %v11866_v49, %v11795_v13 }
 0x576   : > { %5325 = vmatmul.bf16.gmra.mxu2 %v11931_v62  ;;  %13121 = vst [vmem:[#allocation70_spill] sm:$0xff] %v12188_v35 }
 0x579   : > { %v5286_v37 = vpop.f32.mrf.mxu2 }
 0x57a   : > { %v5287_v2 = vadd.f32 %v5286_v37, %v13119_v41  ;;  %v13123_v41 = vld [vmem:[#allocation60_spill] sm:$0xff] }
 0x57c   : > { %v12184_v60 = vadd.f32 %v5375_v51, %v5287_v2 }
 0x57d   : > { %v5380_v59 = vpop.f32.mrf.mxu1 }
 0x580   : > { %6722 = vmatmul.msk.bf16.gmra.mxu1 %vm10888_vm3, %v12188_v35 }
 0x581   : > { %v5242_v43 = vpop.f32.mrf.mxu0  ;;  %v5288_v37 = vpop.f32.mrf.mxu2  ;;  %5468 = vmatmul.bf16.gmra.mxu3 %v13123_v41 }
 0x582   : > { %v5289_v5 = vadd.f32 %v5288_v37, %v5200_v4 }
 0x584   : > { %v5153_v12 = vpop.f32.mrf.mxu3  ;;  %5557 = vmatmul.bf16.gmra.mxu0 %v11558_v7  ;;  %v12196_v51 = vadd.f32 %v5377_v31, %v5289_v5 }
 0x585   : > { %v5154_v2 = vadd.f32 %v11866_v49, %v5153_v12  ;;  %v5382_v16 = vpop.f32.mrf.mxu1  ;;  %v5205_v12 = vadd.f32 %v11807_v47, %v5116_v61 }
 0x586   : > { %5330 = vmatmul.bf16.gmra.mxu2 %v11976_v25 }
 0x587   : > { %v12200_v48 = vadd.f32 %v5242_v43, %v5154_v2  ;;  %v13124_v2 = vld [vmem:[#allocation21_spill] sm:$0xff] }
 0x589   : > { %v5244_v35 = vpop.f32.mrf.mxu0  ;;  %v5291_v39 = vpop.f32.mrf.mxu2 }
 0x58a   : > { %v5292_v45 = vadd.f32 %v5291_v39, %v11784_v23  ;;  %v6908_v23 = vld [vmem:[%s12698_s6 + $0x210] sm:$0xff] }
 0x58b   : > { %5786 = vmatpush.bf16.msrb.mxu3 %v6908_v23  ;;  %v13125_v23 = vld [vmem:[#allocation61_spill] sm:$0xff] }
 0x58c   : > { %v5155_v4 = vpop.f32.mrf.mxu3  ;;  %v12205_v37 = vadd.f32 %v5380_v59, %v5292_v45 }
 0x58d   : > { %v5156_v31 = vadd.f32 %v11866_v49, %v5155_v4  ;;  %v5385_v5 = vpop.f32.mrf.mxu1 }
 0x58f   : > { %v12208_v7 = vadd.f32 %v5244_v35, %v5156_v31  ;;  %v5121_v31 = vadd.f32 %v11866_v49, %v11850_v46 }
 0x590   : > { %5700 = vmatmul.bf16.vlgmr.msrb.gmra.mxu1 %v13107_v40 }
 0x591   : > { %v5293_v43 = vpop.f32.mrf.mxu2  ;;  %5473 = vmatmul.bf16.gmra.mxu3 %v13124_v2  ;;  %v5523_v20 = vpop.f32.mrf.mxu0 }
 0x592   : > { %v5294_v39 = vadd.f32 %v5293_v43, %v5205_v12 }
 0x594   : > { %v5434_v59 = vpop.f32.mrf.mxu3  ;;  %5562 = vmatmul.bf16.gmra.mxu0 %v11619_v27  ;;  %v12217_v13 = vadd.f32 %v5382_v16, %v5294_v39 }
 0x595   : > { %v5435_v35 = vadd.f32 %v5434_v59, %v12027_v1  ;;  %v5387_v40 = vpop.f32.mrf.mxu1 }
 0x596   : > { %6726 = vmatmul.msk.bf16.vlgmr.msrb.gmra.mxu2 %vm10888_vm3, %v11101_v0  ;;  %v5210_v0 = vadd.f32 %v11853_v44, %v5121_v31 }
 0x597   : > { %v12223_v47 = vadd.f32 %v5523_v20, %v5435_v35 }
 0x599   : > { %v5296_v45 = vpop.f32.mrf.mxu2  ;;  %v5525_v61 = vpop.f32.mrf.mxu0 }
 0x59a   : > { %v5297_v4 = vadd.f32 %v5296_v45, %v11815_v3  ;;  %v13126_v45 = vld [vmem:[#allocation41_spill] sm:$0xff] }
 0x59c   : > { %v5436_v12 = vpop.f32.mrf.mxu3  ;;  %v12228_v43 = vadd.f32 %v5385_v5, %v5297_v4  ;;  %v13127_v4 = vld [vmem:[#allocation55_spill] sm:$0xff] }
 0x59d   : > { %v5437_v16 = vadd.f32 %v5436_v12, %v12043_v63  ;;  %v5390_v1 = vpop.f32.mrf.mxu1  ;;  %v13128_v12 = vld [vmem:[#allocation58_spill] sm:$0xff] }
 0x59f   : > { %v12231_v39 = vadd.f32 %v5525_v61, %v5437_v16  ;;  %v5126_v16 = vadd.f32 %v11866_v49, %v13128_v12 }
 0x5a0   : > { %5705 = vmatmul.bf16.gmra.mxu1 %v13109_v10 }
 0x5a1   : > { %v5298_v20 = vpop.f32.mrf.mxu2  ;;  %5478 = vmatmul.bf16.gmra.mxu3 %v13125_v23  ;;  %v5528_v59 = vpop.f32.mrf.mxu0 }
 0x5a2   : > { %v5299_v3 = vadd.f32 %v5298_v20, %v5210_v0 }
 0x5a4   : > { %v5439_v35 = vpop.f32.mrf.mxu3  ;;  %5567 = vmatmul.bf16.gmra.mxu0 %v11656_v22  ;;  %v12237_v46 = vadd.f32 %v5387_v40, %v5299_v3 }
 0x5a5   : > { %v5440_v5 = vadd.f32 %v5439_v35, %v12056_v52  ;;  %v5392_v63 = vpop.f32.mrf.mxu1  ;;  %v13129_v35 = vld [vmem:[#allocation69_spill] sm:$0xff] }
 0x5a6   : > { %6730 = vmatmul.msk.bf16.gmra.mxu2 %vm10888_vm3, %v13126_v45  ;;  %v13130_v45 = vld [vmem:[#allocation31_spill] sm:$0xff] }
 0x5a7   : > { %v12243_v10 = vadd.f32 %v5528_v59, %v5440_v5  ;;  %v5215_v59 = vadd.f32 %v13129_v35, %v5126_v16 }
 0x5a9   : > { %v5301_v44 = vpop.f32.mrf.mxu2  ;;  %v5530_v61 = vpop.f32.mrf.mxu0 }
 0x5aa   : > { %v5302_v31 = vadd.f32 %v5301_v44, %v13127_v4  ;;  %v6907_v4 = vld [vmem:[%s12698_s6 + $0x208] sm:$0xff] }
 0x5ab   : > { %5787 = vmatpush.bf16.msrb.mxu3 %v6907_v4 }
 0x5ac   : > { %v5441_v0 = vpop.f32.mrf.mxu3  ;;  %v12248_v20 = vadd.f32 %v5390_v1, %v5302_v31  ;;  %v13131_v31 = vld [vmem:[#allocation48_spill] sm:$0xff] }
 0x5ad   : > { %v5442_v40 = vadd.f32 %v5441_v0, %v12071_v24  ;;  %v5395_v52 = vpop.f32.mrf.mxu1 }
 0x5af   : > { %v12251_v3 = vadd.f32 %v5530_v61, %v5442_v40  ;;  %v13132_v40 = vld [vmem:[#allocation52_spill] sm:$0xff] }
 0x5b0   : > { %5710 = vmatmul.bf16.gmra.mxu1 %v13110_v53 }
 0x5b1   : > { %v5303_v5 = vpop.f32.mrf.mxu2  ;;  %5483 = vmatmul.bf16.gmra.mxu3 %v13130_v45  ;;  %v5533_v22 = vpop.f32.mrf.mxu0 }
 0x5b2   : > { %v5304_v44 = vadd.f32 %v5303_v5, %v5215_v59  ;;  %v13133_v59 = vld [vmem:[#allocation56_spill] sm:$0xff] }
 0x5b3   : > { %v5131_v5 = vadd.f32 %v11866_v49, %v13133_v59 }
 0x5b4   : > { %v5444_v1 = vpop.f32.mrf.mxu3  ;;  %5572 = vmatmul.bf16.gmra.mxu0 %v11789_v11  ;;  %v12260_v24 = vadd.f32 %v5392_v63, %v5304_v44 }
 0x5b5   : > { %v5445_v61 = vadd.f32 %v5444_v1, %v12079_v34  ;;  %v5397_v53 = vpop.f32.mrf.mxu1  ;;  %v13134_v1 = vld [vmem:[#allocation63_spill] sm:$0xff] }
 0x5b6   : > { %6734 = vmatmul.msk.bf16.gmra.mxu2 %vm10888_vm3, %v13131_v31  ;;  %v13135_v31 = vld [vmem:[#allocation10_spill] sm:$0xff] }
 0x5b7   : > { %v12266_v12 = vadd.f32 %v5533_v22, %v5445_v61  ;;  %v5220_v22 = vadd.f32 %v13134_v1, %v5131_v5  ;;  %v13138_v5 = vld [vmem:[#allocation65_spill] sm:$0xff]  ;;  %v13139_v1 = vld [vmem:[#allocation39_spill] sm:$0xff] }
 0x5b9   : > { %v5306_v16 = vpop.f32.mrf.mxu2  ;;  %v5535_v0 = vpop.f32.mrf.mxu0 }
 0x5ba   : > { %v5307_v35 = vadd.f32 %v5306_v16, %v13132_v40 }
 0x5bc   : > { %v5446_v11 = vpop.f32.mrf.mxu3  ;;  %v12271_v4 = vadd.f32 %v5395_v52, %v5307_v35 }
 0x5bd   : > { %v5447_v63 = vadd.f32 %v5446_v11, %v12087_v17  ;;  %v5400_v34 = vpop.f32.mrf.mxu1  ;;  %v13136_v17 = vld [vmem:[#allocation12_spill] sm:$0xff] }
 0x5bf   : > { %v12274_v44 = vadd.f32 %v5535_v0, %v5447_v63 }
 0x5c0   : > { %5715 = vmatmul.bf16.gmra.mxu1 %v13113_v50 }
 0x5c1   : > { %v5308_v61 = vpop.f32.mrf.mxu2  ;;  %5488 = vmatmul.bf16.gmra.mxu3 %v13135_v31  ;;  %v5538_v27 = vpop.f32.mrf.mxu0 }
 0x5c2   : > { %v5309_v16 = vadd.f32 %v5308_v61, %v5220_v22  ;;  %v5136_v22 = vadd.f32 %v11866_v49, %v13139_v1 }
 0x5c4   : > { %v5449_v40 = vpop.f32.mrf.mxu3  ;;  %5577 = vmatmul.bf16.gmra.mxu0 %v11842_v32  ;;  %v12280_v59 = vadd.f32 %v5397_v53, %v5309_v16 }
 0x5c5   : > { %v5450_v52 = vadd.f32 %v5449_v40, %v12096_v56  ;;  %v5402_v11 = vpop.f32.mrf.mxu1  ;;  %v13140_v40 = vld [vmem:[#allocation40_spill] sm:$0xff] }
 0x5c6   : > { %6738 = vmatmul.msk.bf16.gmra.mxu2 %vm10888_vm3, %v13136_v17  ;;  %v13141_v17 = vld [vmem:[#allocation6_spill] sm:$0xff] }
 0x5c7   : > { %v12286_v50 = vadd.f32 %v5538_v27, %v5450_v52  ;;  %v5225_v27 = vadd.f32 %v13140_v40, %v5136_v22  ;;  %v5141_v40 = vadd.f32 %v11866_v49, %v12046_v33 }
 0x5c9   : > { %13137 = vst [vmem:[#allocation66_spill] sm:$0xff] %v12286_v50  ;;  %v5311_v0 = vpop.f32.mrf.mxu2  ;;  %v5540_v35 = vpop.f32.mrf.mxu0 }
 0x5ca   : > { %v5312_v63 = vadd.f32 %v5311_v0, %v13138_v5  ;;  %v6906_v5 = vld [vmem:[%s12698_s6 + $0x200] sm:$0xff] }
 0x5cb   : > { %5788 = vmatpush.bf16.msrb.mxu3 %v6906_v5 }
 0x5cc   : > { %v5451_v61 = vpop.f32.mrf.mxu3  ;;  %v12291_v32 = vadd.f32 %v5400_v34, %v5312_v63  ;;  %v13142_v63 = vld [vmem:[#allocation18_spill] sm:$0xff] }
 0x5cd   : > { %v5452_v53 = vadd.f32 %v5451_v61, %v12110_v55  ;;  %v5405_v56 = vpop.f32.mrf.mxu1 }
 0x5cf   : > { %v12294_v16 = vadd.f32 %v5540_v35, %v5452_v53 }
 0x5d0   : > { %5720 = vmatmul.bf16.gmra.mxu1 %v13117_v58 }
 0x5d1   : > { %v5313_v52 = vpop.f32.mrf.mxu2  ;;  %5493 = vmatmul.bf16.gmra.mxu3 %v13141_v17  ;;  %v5543_v50 = vpop.f32.mrf.mxu0 }
 0x5d2   : > { %v5314_v0 = vadd.f32 %v5313_v52, %v5225_v27 }
 0x5d4   : > { %v5454_v34 = vpop.f32.mrf.mxu3  ;;  %5582 = vmatmul.bf16.gmra.mxu0 %v11881_v9  ;;  %v12303_v55 = vadd.f32 %v5402_v11, %v5314_v0 }
 0x5d5   : > { %v5455_v35 = vadd.f32 %v5454_v34, %v12116_v38  ;;  %v5407_v58 = vpop.f32.mrf.mxu1  ;;  %v13143_v34 = vld [vmem:[#allocation37_spill] sm:$0xff] }
 0x5d6   : > { %6742 = vmatmul.msk.bf16.gmra.mxu2 %vm10888_vm3, %v13142_v63 }
 0x5d7   : > { %v12309_v1 = vadd.f32 %v5543_v50, %v5455_v35  ;;  %v5230_v50 = vadd.f32 %v12052_v57, %v5141_v40  ;;  %v5146_v40 = vadd.f32 %v11866_v49, %v12118_v42 }
 0x5d9   : > { %v5316_v22 = vpop.f32.mrf.mxu2  ;;  %v5545_v61 = vpop.f32.mrf.mxu0 }
 0x5da   : > { %v5317_v53 = vadd.f32 %v5316_v22, %v12025_v54  ;;  %v13144_v22 = vld [vmem:[#allocation67_spill] sm:$0xff] }
 0x5dc   : > { %v5456_v27 = vpop.f32.mrf.mxu3  ;;  %v12314_v52 = vadd.f32 %v5405_v56, %v5317_v53 }
 0x5dd   : > { %v5457_v11 = vadd.f32 %v5456_v27, %v12131_v29  ;;  %v5410_v38 = vpop.f32.mrf.mxu1 }
 0x5df   : > { %v12317_v0 = vadd.f32 %v5545_v61, %v5457_v11 }
 0x5e0   : > { %5725 = vmatmul.bf16.gmra.mxu1 %v13118_v30 }
 0x5e1   : > { %v5318_v5 = vpop.f32.mrf.mxu2  ;;  %5498 = vmatmul.bf16.gmra.mxu3 %v13143_v34  ;;  %v5548_v35 = vpop.f32.mrf.mxu0 }
 0x5e2   : > { %v5319_v54 = vadd.f32 %v5318_v5, %v5230_v50  ;;  %v5235_v5 = vadd.f32 %v12124_v28, %v5146_v40 }
 0x5e4   : > { %v5459_v63 = vpop.f32.mrf.mxu3  ;;  %5587 = vmatmul.bf16.gmra.mxu0 %v11931_v62  ;;  %v12323_v33 = vadd.f32 %v5407_v58, %v5319_v54  ;;  %v13145_v54 = vld [vmem:[#allocation34_spill] sm:$0xff] }
 0x5e5   : > { %v5460_v56 = vadd.f32 %v5459_v63, %v12152_v19  ;;  %v5412_v29 = vpop.f32.mrf.mxu1 }
 0x5e6   : > { %6746 = vmatmul.msk.bf16.gmra.mxu2 %vm10888_vm3, %v13144_v22  ;;  %v13146_v22 = vld [vmem:[#allocation11_spill] sm:$0xff] }
 0x5e7   : > { %v12329_v30 = vadd.f32 %v5548_v35, %v5460_v56 }
 0x5e9   : > { %v5321_v57 = vpop.f32.mrf.mxu2  ;;  %v5550_v61 = vpop.f32.mrf.mxu0 }
 0x5ea   : > { %v5322_v53 = vadd.f32 %v5321_v57, %v12073_v14 }
 0x5ec   : > { %v5461_v27 = vpop.f32.mrf.mxu3  ;;  %v12334_v11 = vadd.f32 %v5410_v38, %v5322_v53  ;;  %v5151_v53 = vadd.f32 %v11866_v49, %v12182_v8 }
 0x5ed   : > { %v5462_v58 = vadd.f32 %v5461_v27, %v12174_v15  ;;  %v5415_v19 = vpop.f32.mrf.mxu1 }
 0x5ef   : > { %v12337_v50 = vadd.f32 %v5550_v61, %v5462_v58 }
 0x5f0   : > { %5730 = vmatmul.bf16.gmra.mxu1 %v13123_v41 }
 0x5f1   : > { %v5323_v35 = vpop.f32.mrf.mxu2  ;;  %5503 = vmatmul.bf16.gmra.mxu3 %v13145_v54  ;;  %v5553_v63 = vpop.f32.mrf.mxu0 }
 0x5f2   : > { %v5324_v14 = vadd.f32 %v5323_v35, %v5235_v5  ;;  %v5240_v5 = vadd.f32 %v12177_v18, %v5151_v53 }
 0x5f4   : > { %v5464_v56 = vpop.f32.mrf.mxu3  ;;  %5592 = vmatmul.bf16.gmra.mxu0 %v11976_v25  ;;  %v12343_v42 = vadd.f32 %v5412_v29, %v5324_v14 }
 0x5f5   : > { %v5465_v38 = vadd.f32 %v5464_v56, %v12184_v60  ;;  %v5417_v15 = vpop.f32.mrf.mxu1 }
 0x5f6   : > { %6750 = vmatmul.msk.bf16.gmra.mxu2 %vm10888_vm3, %v13146_v22 }
 0x5f7   : > { %v12349_v41 = vadd.f32 %v5553_v63, %v5465_v38 }
 0x5f9   : > { %v5326_v28 = vpop.f32.mrf.mxu2  ;;  %v5555_v57 = vpop.f32.mrf.mxu0 }
 0x5fa   : > { %v5327_v61 = vadd.f32 %v5326_v28, %v12148_v36 }
 0x5fc   : > { %v5466_v40 = vpop.f32.mrf.mxu3  ;;  %v12354_v27 = vadd.f32 %v5415_v19, %v5327_v61  ;;  %v13147_v19 = vld [vmem:[#allocation22_spill] sm:$0xff] }
 0x5fd   : > { %v5467_v29 = vadd.f32 %v5466_v40, %v12196_v51  ;;  %v5420_v60 = vpop.f32.mrf.mxu1  ;;  %v13148_v40 = vld [vmem:[#allocation35_spill] sm:$0xff] }
 0x5ff   : > { %v12357_v58 = vadd.f32 %v5555_v57, %v5467_v29 }
 0x600   : > { %5735 = vmatmul.bf16.gmra.mxu1 %v13124_v2 }
 0x601   : > { %v5328_v35 = vpop.f32.mrf.mxu2  ;;  %5508 = vmatmul.bf16.gmra.mxu3 %v12032_v21  ;;  %v5558_v63 = vpop.f32.mrf.mxu0 }
 0x602   : > { %v5329_v36 = vadd.f32 %v5328_v35, %v5240_v5  ;;  %v8429_v35 = vld [vmem:[%s8665_s25] sm:$0xff] }
 0x604   : > { %v5469_v14 = vpop.f32.mrf.mxu3  ;;  %5597 = vmatmul.bf16.gmra.mxu0 %v12035_v26  ;;  %v12363_v49 = vadd.f32 %v5417_v15, %v5329_v36 }
 0x605   : > { %v5470_v8 = vadd.f32 %v5469_v14, %v12205_v37  ;;  %v5422_v51 = vpop.f32.mrf.mxu1 }
 0x606   : > { %6754 = vmatmul.msk.bf16.gmra.mxu2 %vm10888_vm3, %v13147_v19  ;;  %v8430_v19 = vld [vmem:[%s8665_s25 + $0x8] sm:$0xff] }
 0x607   : > { %v12369_v2 = vadd.f32 %v5558_v63, %v5470_v8  ;;  %v13150_v63 = vld [vmem:[#allocation47_spill] sm:$0xff] }
 0x609   : > { %v5331_v18 = vpop.f32.mrf.mxu2  ;;  %v5560_v56 = vpop.f32.mrf.mxu0 }
 0x60a   : > { %v5332_v38 = vadd.f32 %v5331_v18, %v12200_v48 }
 0x60c   : > { %v5471_v22 = vpop.f32.mrf.mxu3  ;;  %v12372_v28 = vadd.f32 %v5420_v60, %v5332_v38 }
 0x60d   : > { %v5472_v15 = vadd.f32 %v5471_v22, %v12217_v13  ;;  %v5701_v57 = vpop.f32.mrf.mxu1 }
 0x60f   : > { %v12375_v61 = vadd.f32 %v5560_v56, %v5472_v15  ;;  %v13152_v15 = vld [vmem:[#allocation49_spill] sm:$0xff] }
 0x610   : > { %5740 = vmatmul.bf16.gmra.mxu1 %v13125_v23 }
 0x611   : > { %v5333_v37 = vpop.f32.mrf.mxu2  ;;  %v5563_v53 = vpop.f32.mrf.mxu0  ;;  %5789 = vmatmul.bf16.vlgmr.msrb.gmra.mxu3 %v13148_v40 }
 0x612   : > { %v5334_v29 = vadd.f32 %v5333_v37, %v12208_v7 }
 0x614   : > { %v5474_v5 = vpop.f32.mrf.mxu3  ;;  %6788 = vmatmul.msk.f32.vlgmr.msrb.gmra.mxu0 %vm13149_vm0, %v8429_v35  ;;  %v12382_v48 = vadd.f32 %v5422_v51, %v5334_v29  ;;  %v13154_v29 = vld [vmem:[#allocation30_spill] sm:$0xff] }
 0x615   : > { %v5475_v13 = vadd.f32 %v5474_v5, %v12228_v43  ;;  %v5703_v60 = vpop.f32.mrf.mxu1 }
 0x616   : > { %6758 = vmatmul.msk.bf16.gmra.mxu2 %vm10888_vm3, %v13150_v63  ;;  %v8432_v63 = vld [vmem:[%s8665_s25 + $0x18] sm:$0xff] }
 0x617   : > { %v12388_v23 = vadd.f32 %v5563_v53, %v5475_v13  ;;  %v8431_v53 = vld [vmem:[%s8665_s25 + $0x10] sm:$0xff] }
 0x619   : > { %v5565_v36 = vpop.f32.mrf.mxu0  ;;  %v5612_v14 = vpop.f32.mrf.mxu2 }
 0x61a   : > { %v5613_v7 = vadd.f32 %v5612_v14, %v12223_v47 }
 0x61c   : > { %v5476_v8 = vpop.f32.mrf.mxu3  ;;  %6789 = vmatmul.msk.f32.gmra.mxu0 %vm13151_vm1, %v8430_v19  ;;  %v12393_v51 = vadd.f32 %v5701_v57, %v5613_v7  ;;  %v13156_v19 = vld [vmem:[#allocation14_spill] sm:$0xff]  ;;  %vm13181_vm1 = vmmov %vm13149_vm0 }
 0x61d   : > { %v5477_v43 = vadd.f32 %v5476_v8, %v12237_v46  ;;  %v5706_v18 = vpop.f32.mrf.mxu1 }
 0x61f   : > { %v12396_v56 = vadd.f32 %v5565_v36, %v5477_v43 }
 0x620   : > { %5745 = vmatmul.bf16.gmra.mxu1 %v13130_v45 }
 0x621   : > { %v5568_v38 = vpop.f32.mrf.mxu0  ;;  %v5614_v22 = vpop.f32.mrf.mxu2  ;;  %5794 = vmatmul.bf16.gmra.mxu3 %v13152_v15 }
 0x622   : > { %v5615_v47 = vadd.f32 %v5614_v22, %v12231_v39  ;;  %v13158_v22 = vld [vmem:[#allocation51_spill] sm:$0xff] }
 0x624   : > { %v5479_v37 = vpop.f32.mrf.mxu3  ;;  %6790 = vmatmul.msk.f32.gmra.mxu0 %vm13153_vm2, %v8431_v53  ;;  %v12403_v57 = vadd.f32 %v5703_v60, %v5615_v47  ;;  %vm13184_vm2 = vmmov %vm13149_vm0 }
 0x625   : > { %v5480_v46 = vadd.f32 %v5479_v37, %v12248_v20  ;;  %v5708_v40 = vpop.f32.mrf.mxu1 }
 0x626   : > { %6762 = vmatmul.msk.bf16.gmra.mxu2 %vm10888_vm3, %v13154_v29 }
 0x627   : > { %v12409_v45 = vadd.f32 %v5568_v38, %v5480_v46  ;;  %v8433_v38 = vld [vmem:[%s8665_s25 + $0x20] sm:$0xff]  ;;  %v8434_v46 = vld [vmem:[%s8665_s25 + $0x28] sm:$0xff] }
 0x629   : > { %v5570_v5 = vpop.f32.mrf.mxu0  ;;  %v5617_v35 = vpop.f32.mrf.mxu2 }
 0x62a   : > { %v5618_v39 = vadd.f32 %v5617_v35, %v12243_v10 }
 0x62c   : > { %v5481_v13 = vpop.f32.mrf.mxu3  ;;  %6791 = vmatmul.msk.f32.gmra.mxu0 %vm13155_vm13, %v8432_v63  ;;  %v12414_v60 = vadd.f32 %v5706_v18, %v5618_v39  ;;  %v13160_v39 = vld [vmem:[#allocation20_spill] sm:$0xff]  ;;  %vm13185_vm13 = vmmov %vm13149_vm0 }
 0x62d   : > { %v5482_v20 = vadd.f32 %v5481_v13, %v12260_v24  ;;  %v5711_v14 = vpop.f32.mrf.mxu1 }
 0x62f   : > { %v12417_v36 = vadd.f32 %v5570_v5, %v5482_v20  ;;  %v8435_v20 = vld [vmem:[%s8665_s25 + $0x30] sm:$0xff] }
 0x630   : > { %5750 = vmatmul.bf16.gmra.mxu1 %v13135_v31 }
 0x631   : > { %v5573_v7 = vpop.f32.mrf.mxu0  ;;  %v5619_v8 = vpop.f32.mrf.mxu2  ;;  %5799 = vmatmul.bf16.gmra.mxu3 %v13156_v19 }
 0x632   : > { %v5620_v10 = vadd.f32 %v5619_v8, %v12251_v3 }
 0x634   : > { %v5484_v43 = vpop.f32.mrf.mxu3  ;;  %6792 = vmatmul.msk.f32.gmra.mxu0 %vm13157_vm14, %v8433_v38  ;;  %v12424_v18 = vadd.f32 %v5708_v40, %v5620_v10  ;;  %v13163_v10 = vld [vmem:[#allocation66_spill] sm:$0xff]  ;;  %v8436_v38 = vld [vmem:[%s8665_s25 + $0x38] sm:$0xff]  ;;  %vm13187_vm14 = vmmov %vm13149_vm0 }
 0x635   : > { %v5485_v24 = vadd.f32 %v5484_v43, %v12271_v4  ;;  %v5713_v37 = vpop.f32.mrf.mxu1 }
 0x636   : > { %6766 = vmatmul.msk.bf16.gmra.mxu2 %vm10888_vm3, %v13158_v22 }
 0x637   : > { %v12430_v31 = vadd.f32 %v5573_v7, %v5485_v24  ;;  %v13162_v7 = vld [vmem:[#allocation44_spill] sm:$0xff] }
 0x639   : > { %v5575_v15 = vpop.f32.mrf.mxu0  ;;  %v5622_v47 = vpop.f32.mrf.mxu2 }
 0x63a   : > { %v5623_v3 = vadd.f32 %v5622_v47, %v12266_v12 }
 0x63c   : > { %v5486_v53 = vpop.f32.mrf.mxu3  ;;  %6793 = vmatmul.msk.f32.gmra.mxu0 %vm13159_vm15, %v8434_v46  ;;  %v12435_v40 = vadd.f32 %v5711_v14, %v5623_v3  ;;  %v13165_v3 = vld [vmem:[#allocation46_spill] sm:$0xff]  ;;  %vm13188_vm15 = vmmov %vm13149_vm0 }
 0x63d   : > { %v5487_v4 = vadd.f32 %v5486_v53, %v12280_v59  ;;  %v5716_v12 = vpop.f32.mrf.mxu1 }
 0x63f   : > { %v12438_v29 = vadd.f32 %v5575_v15, %v5487_v4  ;;  %v8437_v4 = vld [vmem:[%s8665_s25 + $0x40] sm:$0xff] }
 0x640   : > { %5755 = vmatmul.bf16.gmra.mxu1 %v13141_v17 }
 0x641   : > { %v5578_v5 = vpop.f32.mrf.mxu0  ;;  %v5624_v35 = vpop.f32.mrf.mxu2  ;;  %5804 = vmatmul.bf16.gmra.mxu3 %v13160_v39 }
 0x642   : > { %v5625_v13 = vadd.f32 %v5624_v35, %v12274_v44  ;;  %v13167_v35 = vld [vmem:[#allocation36_spill] sm:$0xff] }
 0x644   : > { %v5489_v63 = vpop.f32.mrf.mxu3  ;;  %6794 = vmatmul.msk.f32.gmra.mxu0 %vm13161_vm4, %v8435_v20  ;;  %v12445_v14 = vadd.f32 %v5713_v37, %v5625_v13  ;;  %v8438_v20 = vld [vmem:[%s8665_s25 + $0x48] sm:$0xff]  ;;  %vm13190_vm4 = vmmov %vm13149_vm0 }
 0x645   : > { %v5490_v59 = vadd.f32 %v5489_v63, %v12291_v32  ;;  %v5718_v32 = vpop.f32.mrf.mxu1 }
 0x646   : > { %6770 = vmatmul.msk.bf16.gmra.mxu2 %vm10888_vm3, %v13162_v7 }
 0x647   : > { %v12451_v17 = vadd.f32 %v5578_v5, %v5490_v59 }
 0x649   : > { %v5580_v8 = vpop.f32.mrf.mxu0  ;;  %v5627_v19 = vpop.f32.mrf.mxu2 }
 0x64a   : > { %v5628_v44 = vadd.f32 %v5627_v19, %v13163_v10  ;;  %v13169_v10 = vld [vmem:[#allocation16_spill] sm:$0xff] }
 0x64c   : > { %v5491_v43 = vpop.f32.mrf.mxu3  ;;  %6795 = vmatmul.msk.f32.gmra.mxu0 %vm13164_vm5, %v8436_v38  ;;  %v12456_v24 = vadd.f32 %v5716_v12, %v5628_v44  ;;  %v8439_v38 = vld [vmem:[%s8665_s25 + $0x50] sm:$0xff]  ;;  %vm13191_vm5 = vmmov %vm13149_vm0 }
 0x64d   : > { %v5492_v22 = vadd.f32 %v5491_v43, %v12303_v55  ;;  %v5721_v39 = vpop.f32.mrf.mxu1 }
 0x64f   : > { %v12459_v15 = vadd.f32 %v5580_v8, %v5492_v22 }
 0x650   : > { %5760 = vmatmul.bf16.gmra.mxu1 %v13143_v34 }
 0x651   : > { %v5583_v47 = vpop.f32.mrf.mxu0  ;;  %v5629_v37 = vpop.f32.mrf.mxu2  ;;  %5809 = vmatmul.bf16.gmra.mxu3 %v13165_v3 }
 0x652   : > { %v5630_v53 = vadd.f32 %v5629_v37, %v12294_v16 }
 0x654   : > { %v5494_v46 = vpop.f32.mrf.mxu3  ;;  %6796 = vmatmul.msk.f32.gmra.mxu0 %vm13166_vm6, %v8437_v4  ;;  %v12466_v5 = vadd.f32 %v5718_v32, %v5630_v53  ;;  %v13171_v32 = vld [vmem:[#allocation33_spill] sm:$0xff]  ;;  %vm13192_vm6 = vmmov %vm13149_vm0 }
 0x655   : > { %v5495_v55 = vadd.f32 %v5494_v46, %v12314_v52 }
 0x656   : > { %6774 = vmatmul.msk.bf16.gmra.mxu2 %vm10888_vm3, %v13167_v35 }
 0x657   : > { %v12472_v34 = vadd.f32 %v5583_v47, %v5495_v55  ;;  %v8441_v55 = vld [vmem:[%s8665_s25 + $0x60] sm:$0xff] }
 0x659   : > { %v5585_v13 = vpop.f32.mrf.mxu0  ;;  %v5632_v12 = vpop.f32.mrf.mxu2 }
 0x65a   : > { %v5633_v16 = vadd.f32 %v5632_v12, %v12309_v1  ;;  %v5723_v1 = vpop.f32.mrf.mxu1 }
 0x65c   : > { %v5496_v63 = vpop.f32.mrf.mxu3  ;;  %6797 = vmatmul.msk.f32.gmra.mxu0 %vm13168_vm7, %v8438_v20  ;;  %v12477_v59 = vadd.f32 %v5721_v39, %v5633_v16  ;;  %v13175_v39 = vld [vmem:[#allocation70_spill] sm:$0xff]  ;;  %v13177_v20 = vld [vmem:[#allocation29_spill] sm:$0xff]  ;;  %vm13193_vm7 = vmmov %vm13149_vm0 }
 0x65d   : > { %v5497_v52 = vadd.f32 %v5496_v63, %v12323_v33 }
 0x65f   : > { %v12480_v7 = vadd.f32 %v5585_v13, %v5497_v52  ;;  %v13178_v52 = vld [vmem:[#allocation13_spill] sm:$0xff] }
 0x660   : > { %5765 = vmatmul.bf16.gmra.mxu1 %v13145_v54 }
 0x661   : > { %v5588_v8 = vpop.f32.mrf.mxu0  ;;  %v5634_v19 = vpop.f32.mrf.mxu2  ;;  %5814 = vmatmul.bf16.gmra.mxu3 %v13169_v10 }
 0x662   : > { %v5635_v44 = vadd.f32 %v5634_v19, %v12317_v0  ;;  %v8440_v0 = vld [vmem:[%s8665_s25 + $0x58] sm:$0xff]  ;;  %v8443_v19 = vld [vmem:[%s8665_s25 + $0x70] sm:$0xff] }
 0x664   : > { %v5499_v43 = vpop.f32.mrf.mxu3  ;;  %6798 = vmatmul.msk.f32.gmra.mxu0 %vm13170_vm8, %v8439_v38  ;;  %v12487_v22 = vadd.f32 %v5723_v1, %v5635_v44  ;;  %v13180_v44 = vld [vmem:[#allocation32_spill] sm:$0xff]  ;;  %v8444_v38 = vld [vmem:[%s8665_s25 + $0x78] sm:$0xff]  ;;  %vm13194_vm8 = vmmov %vm13149_vm0 }
 0x665   : > { %v5500_v33 = vadd.f32 %v5499_v43, %v12334_v11  ;;  %v13173_v11 = vld [vmem:[#allocation64_spill] sm:$0xff] }
 0x666   : > { %6778 = vmatmul.msk.bf16.gmra.mxu2 %vm10888_vm3, %v13171_v32 }
 0x667   : > { %v12493_v54 = vadd.f32 %v5588_v8, %v5500_v33 }
 0x669   : > { %v5590_v47 = vpop.f32.mrf.mxu0 }
 0x66c   : > { %v5501_v37 = vpop.f32.mrf.mxu3  ;;  %6799 = vmatmul.msk.f32.gmra.mxu0 %vm13172_vm9, %v8440_v0  ;;  %v8446_v0 = vld [vmem:[%s8665_s25 + $0x80] sm:$0xff]  ;;  %vm13195_vm9 = vmmov %vm13149_vm0 }
 0x66d   : > { %v5502_v3 = vadd.f32 %v5501_v37, %v12343_v42 }
 0x66f   : > { %v12498_v53 = vadd.f32 %v5590_v47, %v5502_v3  ;;  %v8445_v47 = vld [vmem:[%s8665_s25 + $0xf0] sm:$0xff] }
 0x670   : > { %5770 = vmatmul.bf16.gmra.mxu1 %v12032_v21  ;;  %v8442_v21 = vld [vmem:[%s8665_s25 + $0x68] sm:$0xff] }
 0x671   : > { %v5593_v46 = vpop.f32.mrf.mxu0  ;;  %5819 = vmatmul.bf16.gmra.mxu3 %v13173_v11 }
 0x674   : > { %v5504_v4 = vpop.f32.mrf.mxu3  ;;  %6800 = vmatmul.msk.f32.gmra.mxu0 %vm13174_vm10, %v8441_v55  ;;  %v8448_v55 = vld [vmem:[%s8665_s25 + $0x88] sm:$0xff]  ;;  %vm13196_vm10 = vmmov %vm13149_vm0 }
 0x675   : > { %v5505_v35 = vadd.f32 %v5504_v4, %v12354_v27 }
 0x676   : > { %6782 = vmatmul.msk.bf16.gmra.mxu2 %vm10888_vm3, %v13175_v39  ;;  %v13186_v39 = vld [vmem:[#allocation23_spill] sm:$0xff] }
 0x677   : > { %v12508_v13 = vadd.f32 %v5593_v46, %v5505_v35  ;;  %v8447_v46 = vld [vmem:[%s8665_s25 + $0xf8] sm:$0xff] }
 0x679   : > { %v5595_v42 = vpop.f32.mrf.mxu0 }
 0x67c   : > { %v5506_v12 = vpop.f32.mrf.mxu3  ;;  %6801 = vmatmul.msk.f32.gmra.mxu0 %vm13176_vm11, %v8442_v21  ;;  %v8449_v21 = vld [vmem:[%s8665_s25 + $0x90] sm:$0xff]  ;;  %vm13197_vm11 = vmmov %vm13149_vm0 }
 0x67d   : > { %v5507_v16 = vadd.f32 %v5506_v12, %v12363_v49 }
 0x67f   : > { %v12513_v63 = vadd.f32 %v5595_v42, %v5507_v16 }
 0x680   : > { %5775 = vmatmul.bf16.gmra.mxu1 %v13177_v20 }
 0x681   : > { %v5598_v27 = vpop.f32.mrf.mxu0  ;;  %5824 = vmatmul.bf16.gmra.mxu3 %v13178_v52  ;;  %v12553_v52 = vpop.f32.mrf.mxu1 }
 0x684   : > { %v5509_v8 = vpop.f32.mrf.mxu3  ;;  %6802 = vmatmul.msk.f32.gmra.mxu0 %vm13179_vm12, %v8443_v19  ;;  %vm13198_vm12 = vmmov %vm13149_vm0 }
 0x685   : > { %v5510_v10 = vadd.f32 %v5509_v8, %v12372_v28  ;;  %v8450_v8 = vld [vmem:[%s8665_s25 + $0x98] sm:$0xff] }
 0x686   : > { %6786 = vmatmul.msk.bf16.gmra.mxu2 %vm10888_vm3, %v13180_v44  ;;  %vm13183_vm3 = vmmov %vm13149_vm0  ;;  %v13189_v44 = vld [vmem:[#allocation50_spill] sm:$0xff] }
 0x687   : > { %v12523_v49 = vadd.f32 %v5598_v27, %v5510_v10 }
 0x689   : > { %v5600_v1 = vpop.f32.mrf.mxu0 }
 0x68c   : > { %v5511_v43 = vpop.f32.mrf.mxu3  ;;  %6803 = vmatmul.msk.f32.gmra.mxu0 %vm13149_vm0, %v8444_v38 }
 0x68d   : > { %v5512_v33 = vadd.f32 %v5511_v43, %v12382_v48  ;;  %v12560_v43 = vpop.f32.mrf.mxu1 }
 0x68f   : > { %v12528_v32 = vadd.f32 %v5600_v1, %v5512_v33  ;;  %v8451_v33 = vld [vmem:[%s8665_s25 + $0xa0] sm:$0xff] }
 0x690   : > { %6818 = vmatmul.msk.f32.vlgmr.msra.gmra.mxu1 %vm13181_vm1, %v8445_v47 }
 0x691   : > { %5829 = vmatmul.bf16.gmra.mxu3 %v13182_v6  ;;  %v5956_v28 = vpop.f32.mrf.mxu0 }
 0x694   : > { %v5790_v37 = vpop.f32.mrf.mxu3  ;;  %6804 = vmatmul.msk.f32.gmra.mxu0 %vm13183_vm3, %v8446_v0  ;;  %v8452_v0 = vld [vmem:[%s8665_s25 + $0xa8] sm:$0xff] }
 0x695   : > { %v5791_v3 = vadd.f32 %v5790_v37, %v12393_v51 }
 0x697   : > { %v6052_v48 = vadd.f32 %v5956_v28, %v5791_v3 }
 0x698   : > { %6819 = vmatmul.msk.f32.gmra.mxu1 %vm13184_vm2, %v8447_v46 }
 0x699   : > { %6084 = vst [vmem:[%s12541_s14] sm:$0xff] %v6052_v48  ;;  %v5959_v11 = vpop.f32.mrf.mxu0  ;;  %v12569_v48 = vpop.f32.mrf.mxu1 }
 0x69c   : > { %v5792_v4 = vpop.f32.mrf.mxu3  ;;  %6805 = vmatmul.msk.f32.gmra.mxu0 %vm13185_vm13, %v8448_v55 }
 0x69d   : > { %v5793_v35 = vadd.f32 %v5792_v4, %v12403_v57  ;;  %v8453_v4 = vld [vmem:[%s8665_s25 + $0xb0] sm:$0xff] }
 0x69f   : > { %v6053_v51 = vadd.f32 %v5959_v11, %v5793_v35 }
 0x6a1   : > { %6085 = vst [vmem:[%s12541_s14 + $0x8] sm:$0xff] %v6053_v51  ;;  %5834 = vmatmul.bf16.gmra.mxu3 %v13186_v39  ;;  %v5962_v42 = vpop.f32.mrf.mxu0  ;;  %v12576_v39 = vpop.f32.mrf.mxu1 }
 0x6a4   : > { %v5795_v12 = vpop.f32.mrf.mxu3  ;;  %6806 = vmatmul.msk.f32.gmra.mxu0 %vm13187_vm14, %v8449_v21 }
 0x6a5   : > { %v5796_v16 = vadd.f32 %v5795_v12, %v12414_v60  ;;  %v5637_v60 = vpop.f32.mrf.mxu2  ;;  %v8454_v12 = vld [vmem:[%s8665_s25 + $0xb8] sm:$0xff] }
 0x6a7   : > { %v6054_v20 = vadd.f32 %v5962_v42, %v5796_v16 }
 0x6a9   : > { %6086 = vst [vmem:[%s12541_s14 + $0x10] sm:$0xff] %v6054_v20  ;;  %v5965_v27 = vpop.f32.mrf.mxu0  ;;  %v12584_v20 = vpop.f32.mrf.mxu1 }
 0x6ac   : > { %v5797_v57 = vpop.f32.mrf.mxu3  ;;  %6807 = vmatmul.msk.f32.gmra.mxu0 %vm13188_vm15, %v8450_v8 }
 0x6ad   : > { %v5798_v19 = vadd.f32 %v5797_v57, %v12424_v18  ;;  %v5639_v28 = vpop.f32.mrf.mxu2  ;;  %v8455_v57 = vld [vmem:[%s8665_s25 + $0xc0] sm:$0xff] }
 0x6af   : > { %v6055_v10 = vadd.f32 %v5965_v27, %v5798_v19 }
 0x6b1   : > { %6087 = vst [vmem:[%s12541_s14 + $0x18] sm:$0xff] %v6055_v10  ;;  %5839 = vmatmul.bf16.gmra.mxu3 %v13189_v44  ;;  %v5968_v1 = vpop.f32.mrf.mxu0  ;;  %v12590_v44 = vpop.f32.mrf.mxu1 }
 0x6b4   : > { %v5800_v38 = vpop.f32.mrf.mxu3  ;;  %6808 = vmatmul.msk.f32.gmra.mxu0 %vm13190_vm4, %v8451_v33  ;;  %v5638_v33 = vadd.f32 %v5637_v60, %v12329_v30 }
 0x6b5   : > { %v5801_v47 = vadd.f32 %v5800_v38, %v12435_v40  ;;  %v5642_v35 = vpop.f32.mrf.mxu2  ;;  %v8456_v38 = vld [vmem:[%s8665_s25 + $0xc8] sm:$0xff] }
 0x6b7   : > { %v6056_v6 = vadd.f32 %v5968_v1, %v5801_v47 }
 0x6b9   : > { %6088 = vst [vmem:[%s12541_s14 + $0x20] sm:$0xff] %v6056_v6  ;;  %v5971_v18 = vpop.f32.mrf.mxu0  ;;  %v5727_v6 = vadd.f32 %v12553_v52, %v5638_v33 }
 0x6bc   : > { %v5802_v37 = vpop.f32.mrf.mxu3  ;;  %6809 = vmatmul.msk.f32.gmra.mxu0 %vm13191_vm5, %v8452_v0  ;;  %v8457_v0 = vld [vmem:[%s8665_s25 + $0xd0] sm:$0xff] }
 0x6bd   : > { %v5803_v3 = vadd.f32 %v5802_v37, %v12445_v14  ;;  %v5644_v16 = vpop.f32.mrf.mxu2 }
 0x6bf   : > { %v6057_v46 = vadd.f32 %v5971_v18, %v5803_v3 }
 0x6c1   : > { %6089 = vst [vmem:[%s12541_s14 + $0x28] sm:$0xff] %v6057_v46  ;;  %5844 = vmatmul.bf16.gmra.mxu3 %v11881_v9  ;;  %v5974_v11 = vpop.f32.mrf.mxu0  ;;  %v5741_v46 = vpop.f32.mrf.mxu1 }
 0x6c4   : > { %v5805_v40 = vpop.f32.mrf.mxu3  ;;  %6810 = vmatmul.msk.f32.gmra.mxu0 %vm13192_vm6, %v8453_v4 }
 0x6c5   : > { %v5806_v55 = vadd.f32 %v5805_v40, %v12456_v24  ;;  %v5647_v10 = vpop.f32.mrf.mxu2  ;;  %v8458_v40 = vld [vmem:[%s8665_s25 + $0xd8] sm:$0xff] }
 0x6c7   : > { %v6058_v51 = vadd.f32 %v5974_v11, %v5806_v55  ;;  %v5643_v55 = vadd.f32 %v5642_v35, %v12349_v41 }
 0x6c9   : > { %6090 = vst [vmem:[%s12541_s14 + $0x30] sm:$0xff] %v6058_v51  ;;  %v5977_v14 = vpop.f32.mrf.mxu0 }
 0x6cc   : > { %v5807_v42 = vpop.f32.mrf.mxu3  ;;  %6811 = vmatmul.msk.f32.gmra.mxu0 %vm13193_vm7, %v8454_v12 }
 0x6cd   : > { %v5808_v9 = vadd.f32 %v5807_v42, %v12466_v5  ;;  %v5649_v18 = vpop.f32.mrf.mxu2 }
 0x6ce   : > { %v5650_v33 = vadd.f32 %v5649_v18, %v12375_v61 }
 0x6cf   : > { %v6059_v21 = vadd.f32 %v5977_v14, %v5808_v9  ;;  %v5743_v14 = vpop.f32.mrf.mxu1  ;;  %v5645_v9 = vadd.f32 %v5644_v16, %v12357_v58 }
 0x6d1   : > { %6091 = vst [vmem:[%s12541_s14 + $0x38] sm:$0xff] %v6059_v21  ;;  %5849 = vmatmul.bf16.gmra.mxu3 %v11931_v62  ;;  %v5980_v24 = vpop.f32.mrf.mxu0 }
 0x6d4   : > { %v5810_v27 = vpop.f32.mrf.mxu3  ;;  %6812 = vmatmul.msk.f32.gmra.mxu0 %vm13194_vm8, %v8455_v57 }
 0x6d5   : > { %v5811_v8 = vadd.f32 %v5810_v27, %v12477_v59  ;;  %v5652_v4 = vpop.f32.mrf.mxu2  ;;  %v5734_v27 = vadd.f32 %v12576_v39, %v5645_v9 }
 0x6d7   : > { %v6060_v19 = vadd.f32 %v5980_v24, %v5811_v8  ;;  %v5746_v35 = vpop.f32.mrf.mxu1  ;;  %v5648_v8 = vadd.f32 %v5647_v10, %v12369_v2 }
 0x6d9   : > { %6092 = vst [vmem:[%s12541_s14 + $0x40] sm:$0xff] %v6060_v19  ;;  %v5983_v5 = vpop.f32.mrf.mxu0 }
 0x6dc   : > { %v5812_v1 = vpop.f32.mrf.mxu3  ;;  %6813 = vmatmul.msk.f32.gmra.mxu0 %vm13195_vm9, %v8456_v38 }
 0x6dd   : > { %v5813_v62 = vadd.f32 %v5812_v1, %v12487_v22  ;;  %v5640_v22 = vadd.f32 %v5639_v28, %v12337_v50  ;;  %v5732_v28 = vadd.f32 %v12569_v48, %v5643_v55  ;;  %v5654_v24 = vpop.f32.mrf.mxu2  ;;  %v5737_v1 = vadd.f32 %v12584_v20, %v5648_v8 }
 0x6de   : > { %v5655_v18 = vadd.f32 %v5654_v24, %v12396_v56 }
 0x6df   : > { %v6061_v47 = vadd.f32 %v5983_v5, %v5813_v62  ;;  %v5729_v60 = vadd.f32 %v12560_v43, %v5640_v22  ;;  %v8459_v43 = vld [vmem:[%s8665_s25 + $0xe0] sm:$0xff]  ;;  %v13199_v5 = vld [vmem:[#allocation45_spill] sm:$0xff]  ;;  %v5748_v38 = vpop.f32.mrf.mxu1 }
 0x6e1   : > { %6093 = vst [vmem:[%s12541_s14 + $0x48] sm:$0xff] %v6061_v47  ;;  %5854 = vmatmul.bf16.gmra.mxu3 %v11976_v25  ;;  %v5986_v59 = vpop.f32.mrf.mxu0 }
 0x6e4   : > { %v5815_v37 = vpop.f32.mrf.mxu3  ;;  %6814 = vmatmul.msk.f32.gmra.mxu0 %vm13196_vm10, %v8457_v0 }
 0x6e5   : > { %v5816_v3 = vadd.f32 %v5815_v37, %v5727_v6  ;;  %v5657_v16 = vpop.f32.mrf.mxu2  ;;  %v5739_v6 = vadd.f32 %v12590_v44, %v5650_v33 }
 0x6e7   : > { %v6062_v11 = vadd.f32 %v5986_v59, %v5816_v3  ;;  %v5751_v0 = vpop.f32.mrf.mxu1  ;;  %v5653_v3 = vadd.f32 %v5652_v4, %v12388_v23  ;;  %v5658_v23 = vadd.f32 %v5657_v16, %v12409_v45 }
 0x6e9   : > { %6094 = vst [vmem:[%s12541_s14 + $0x50] sm:$0xff] %v6062_v11  ;;  %v5989_v30 = vpop.f32.mrf.mxu0  ;;  %v5742_v11 = vadd.f32 %v5741_v46, %v5653_v3 }
 0x6ec   : > { %v5817_v25 = vpop.f32.mrf.mxu3  ;;  %6815 = vmatmul.msk.f32.gmra.mxu0 %vm13197_vm11, %v8458_v40 }
 0x6ed   : > { %v5818_v52 = vadd.f32 %v5817_v25, %v5729_v60  ;;  %v5659_v2 = vpop.f32.mrf.mxu2 }
 0x6ee   : > { %v5660_v56 = vadd.f32 %v5659_v2, %v12417_v36 }
 0x6ef   : > { %v6063_v51 = vadd.f32 %v5989_v30, %v5818_v52  ;;  %v5753_v40 = vpop.f32.mrf.mxu1  ;;  %v5744_v52 = vadd.f32 %v5743_v14, %v5655_v18 }
 0x6f0   : > { %v5749_v14 = vadd.f32 %v5748_v38, %v5660_v56 }
 0x6f1   : > { %6095 = vst [vmem:[%s12541_s14 + $0x58] sm:$0xff] %v6063_v51  ;;  %5859 = vmatmul.bf16.gmra.mxu3 %v12035_v26  ;;  %v5992_v50 = vpop.f32.mrf.mxu0  ;;  %v8460_v26 = vld [vmem:[%s8665_s25 + $0xe8] sm:$0xff]  ;;  %s6914_s25 = sshll.u32 %s8617_s13, 8  ;;  %s6117_s13 = scalar_lea.sflag [#allocation3], %s338_s23 }
 0x6f2   : > { %s6128_s22 = scalar_lea.hbm %s12701_s9, %s6914_s25 }
 0x6f3   : > { %s6131_s16 = sshll.u32 %s6128_s22, 4  ;;  %s6132_s16 = int_to_ptr.hbm [resolvable:$true] %s6131_s16 }
 0x6f4   : > { %v5820_v42 = vpop.f32.mrf.mxu3  ;;  %6816 = vmatmul.msk.f32.gmra.mxu0 %vm13198_vm12, %v8459_v43  ;;  %s8475_s27 = sshra.s32 %s6132_s16, 4  ;;  %s8476_s27 = int_to_ptr.hbm [resolvable:$true] %s8475_s27 }
 0x6f5   : > { %v5821_v12 = vadd.f32 %v5820_v42, %v5732_v28  ;;  %v5662_v61 = vpop.f32.mrf.mxu2  ;;  %v5747_v42 = vadd.f32 %v5746_v35, %v5658_v23  ;;  %s8477_s24 = scalar_lea.hbm %s8476_s27, 256  ;;  %p8482_p0 = scmp.lt.s32.totalorder %s8476_s27, %s12701_s9 }
 0x6f6   : > { %p8478_p11 = scmp.ne.s32.totalorder %s8476_s27, %s8477_s24  ;;  %p8483_p1 = scmp.lt.s32.totalorder %s8481_s4, %s8477_s24 }
 0x6f7   : > { %v6064_v21 = vadd.f32 %v5992_v50, %v5821_v12  ;;  %v5756_v46 = vpop.f32.mrf.mxu1 }
 0x6f8   : > { %p8479_p12 = pnand %p8478_p11, %p8634_p5  ;;  %p8484_p2 = por %p8483_p1, %p8482_p0 }
 0x6f9   : > { %6096 = vst [vmem:[%s12541_s14 + $0x60] sm:$0xff] %v6064_v21  ;;  %v5995_v41 = vpop.f32.mrf.mxu0 }
 0x6fa   : > { %p8480_p13 = pneg %p8479_p12 }
 0x6fc   : > { %v5822_v57 = vpop.f32.mrf.mxu3  ;;  %6817 = vmatmul.msk.f32.gmra.mxu0 %vm13149_vm0, %v8460_v26  ;;  %p8485_p3 = pnand %p8484_p2, %p8480_p13 }
 0x6fd   : > { %v5823_v48 = vadd.f32 %v5822_v57, %v5734_v27  ;;  %v5664_v50 = vpop.f32.mrf.mxu2  ;;  %v5663_v57 = vadd.f32 %v5662_v61, %v12430_v31 }
 0x6ff   : > { %v6065_v19 = vadd.f32 %v5995_v41, %v5823_v48  ;;  %v5758_v41 = vpop.f32.mrf.mxu1  ;;  %v5752_v8 = vadd.f32 %v5751_v0, %v5663_v57 }
 0x701   : > { %6097 = vst [vmem:[%s12541_s14 + $0x68] sm:$0xff] %v6065_v19  ;;  %5864 = vmatmul.bf16.gmra.mxu3 %v13199_v5  ;;  %v5998_v58 = vpop.f32.mrf.mxu0 }
 0x704   : > { %v5825_v62 = vpop.f32.mrf.mxu3 }
 0x705   : > { %v5826_v39 = vadd.f32 %v5825_v62, %v5737_v1  ;;  %v5667_v24 = vpop.f32.mrf.mxu2 }
 0x706   : > { %v5668_v31 = vadd.f32 %v5667_v24, %v12451_v17 }
 0x707   : > { %v6066_v47 = vadd.f32 %v5998_v58, %v5826_v39  ;;  %v5761_v36 = vpop.f32.mrf.mxu1  ;;  %v5665_v58 = vadd.f32 %v5664_v50, %v12438_v29 }
 0x708   : > { %v5757_v2 = vadd.f32 %v5756_v46, %v5668_v31 }
 0x709   : > { %6098 = vst [vmem:[%s12541_s14 + $0x70] sm:$0xff] %v6066_v47  ;;  %v6001_v59 = vpop.f32.mrf.mxu0  ;;  %v5754_v38 = vadd.f32 %v5753_v40, %v5665_v58 }
 0x70c   : > { %v5827_v10 = vpop.f32.mrf.mxu3 }
 0x70d   : > { %v5828_v37 = vadd.f32 %v5827_v10, %v5739_v6  ;;  %v5669_v35 = vpop.f32.mrf.mxu2 }
 0x70e   : > { %v5670_v29 = vadd.f32 %v5669_v35, %v12459_v15 }
 0x70f   : > { %v6067_v22 = vadd.f32 %v6001_v59, %v5828_v37  ;;  %v5763_v59 = vpop.f32.mrf.mxu1 }
 0x711   : > { %6099 = vst [vmem:[%s12541_s14 + $0x78] sm:$0xff] %v6067_v22  ;;  %v6004_v20 = vpop.f32.mrf.mxu0 }
 0x714   : > { %v5830_v30 = vpop.f32.mrf.mxu3 }
 0x715   : > { %v5831_v60 = vadd.f32 %v5830_v30, %v5742_v11  ;;  %v5672_v33 = vpop.f32.mrf.mxu2  ;;  %v5759_v11 = vadd.f32 %v5758_v41, %v5670_v29 }
 0x716   : > { %v5673_v17 = vadd.f32 %v5672_v33, %v12472_v34 }
 0x717   : > { %v6068_v25 = vadd.f32 %v6004_v20, %v5831_v60  ;;  %v5766_v20 = vpop.f32.mrf.mxu1 }
 0x718   : > { %v5762_v40 = vadd.f32 %v5761_v36, %v5673_v17 }
 0x719   : > { %6100 = vst [vmem:[%s12541_s14 + $0x80] sm:$0xff] %v6068_v25  ;;  %v6007_v44 = vpop.f32.mrf.mxu0 }
 0x71c   : > { %v5832_v55 = vpop.f32.mrf.mxu3 }
 0x71d   : > { %v5833_v51 = vadd.f32 %v5832_v55, %v5744_v52  ;;  %v5674_v3 = vpop.f32.mrf.mxu2 }
 0x71e   : > { %v5675_v55 = vadd.f32 %v5674_v3, %v12480_v7 }
 0x71f   : > { %v6069_v4 = vadd.f32 %v6007_v44, %v5833_v51  ;;  %v5768_v44 = vpop.f32.mrf.mxu1 }
 0x721   : > { %6101 = vst [vmem:[%s12541_s14 + $0x88] sm:$0xff] %v6069_v4  ;;  %v6010_v28 = vpop.f32.mrf.mxu0  ;;  %v5764_v4 = vadd.f32 %v5763_v59, %v5675_v55 }
 0x724   : > { %v5835_v43 = vpop.f32.mrf.mxu3 }
 0x725   : > { %v5836_v12 = vadd.f32 %v5835_v43, %v5747_v42  ;;  %v5677_v25 = vpop.f32.mrf.mxu2 }
 0x726   : > { %v5678_v42 = vadd.f32 %v5677_v25, %v12493_v54 }
 0x727   : > { %v6070_v9 = vadd.f32 %v6010_v28, %v5836_v12  ;;  %v5771_v34 = vpop.f32.mrf.mxu1 }
 0x728   : > { %v5767_v56 = vadd.f32 %v5766_v20, %v5678_v42 }
 0x729   : > { %6102 = vst [vmem:[%s12541_s14 + $0x90] sm:$0xff] %v6070_v9  ;;  %v6013_v21 = vpop.f32.mrf.mxu0 }
 0x72c   : > { %v5837_v27 = vpop.f32.mrf.mxu3 }
 0x72d   : > { %v5838_v45 = vadd.f32 %v5837_v27, %v5749_v14  ;;  %v5679_v50 = vpop.f32.mrf.mxu2 }
 0x72e   : > { %v5680_v7 = vadd.f32 %v5679_v50, %v12498_v53 }
 0x72f   : > { %v6071_v26 = vadd.f32 %v6013_v21, %v5838_v45  ;;  %v5773_v41 = vpop.f32.mrf.mxu1 }
 0x730   : > { %v5769_v45 = vadd.f32 %v5768_v44, %v5680_v7 }
 0x731   : > { %6103 = vst [vmem:[%s12541_s14 + $0x98] sm:$0xff] %v6071_v26  ;;  %v6016_v48 = vpop.f32.mrf.mxu0 }
 0x734   : > { %v5840_v19 = vpop.f32.mrf.mxu3 }
 0x735   : > { %v5841_v5 = vadd.f32 %v5840_v19, %v5752_v8  ;;  %v5682_v24 = vpop.f32.mrf.mxu2 }
 0x736   : > { %v5683_v54 = vadd.f32 %v5682_v24, %v12508_v13 }
 0x737   : > { %v6072_v16 = vadd.f32 %v6016_v48, %v5841_v5  ;;  %v5776_v35 = vpop.f32.mrf.mxu1 }
 0x738   : > { %v5772_v5 = vadd.f32 %v5771_v34, %v5683_v54 }
 0x739   : > { %6104 = vst [vmem:[%s12541_s14 + $0xa0] sm:$0xff] %v6072_v16  ;;  %v6019_v1 = vpop.f32.mrf.mxu0 }
 0x73c   : > { %v5842_v62 = vpop.f32.mrf.mxu3 }
 0x73d   : > { %v5843_v39 = vadd.f32 %v5842_v62, %v5754_v38  ;;  %v5684_v8 = vpop.f32.mrf.mxu2 }
 0x73e   : > { %v5685_v53 = vadd.f32 %v5684_v8, %v12513_v63 }
 0x73f   : > { %v6073_v47 = vadd.f32 %v6019_v1, %v5843_v39  ;;  %v5778_v38 = vpop.f32.mrf.mxu1 }
 0x740   : > { %v5774_v62 = vadd.f32 %v5773_v41, %v5685_v53 }
 0x741   : > { %6105 = vst [vmem:[%s12541_s14 + $0xa8] sm:$0xff] %v6073_v47  ;;  %v6022_v6 = vpop.f32.mrf.mxu0 }
 0x744   : > { %v5845_v10 = vpop.f32.mrf.mxu3 }
 0x745   : > { %v5846_v37 = vadd.f32 %v5845_v10, %v5757_v2  ;;  %v5687_v1 = vpop.f32.mrf.mxu2 }
 0x746   : > { %v5688_v31 = vadd.f32 %v5687_v1, %v12523_v49 }
 0x747   : > { %v6074_v0 = vadd.f32 %v6022_v6, %v5846_v37  ;;  %v6046_v59 = vpop.f32.mrf.mxu1 }
 0x748   : > { %v5777_v6 = vadd.f32 %v5776_v35, %v5688_v31 }
 0x749   : > { %6106 = vst [vmem:[%s12541_s14 + $0xb0] sm:$0xff] %v6074_v0  ;;  %v6025_v22 = vpop.f32.mrf.mxu0 }
 0x74c   : > { %v5847_v30 = vpop.f32.mrf.mxu3 }
 0x74d   : > { %v5848_v60 = vadd.f32 %v5847_v30, %v5759_v11  ;;  %v5689_v2 = vpop.f32.mrf.mxu2 }
 0x74e   : > { %v5690_v37 = vadd.f32 %v5689_v2, %v12528_v32 }
 0x74f   : > { %v6075_v61 = vadd.f32 %v6025_v22, %v5848_v60  ;;  %v6049_v3 = vpop.f32.mrf.mxu1 }
 0x750   : > { %v5779_v49 = vadd.f32 %v5778_v38, %v5690_v37 }
 0x751   : > { %6107 = vst [vmem:[%s12541_s14 + $0xb8] sm:$0xff] %v6075_v61  ;;  %v6028_v18 = vpop.f32.mrf.mxu0 }
 0x754   : > { %v5850_v52 = vpop.f32.mrf.mxu3 }
 0x755   : > { %v5851_v15 = vadd.f32 %v5850_v52, %v5762_v40 }
 0x757   : > { %v6076_v51 = vadd.f32 %v6028_v18, %v5851_v15 }
 0x759   : > { %6108 = vst [vmem:[%s12541_s14 + $0xc0] sm:$0xff] %v6076_v51  ;;  %v6031_v23 = vpop.f32.mrf.mxu0 }
 0x75c   : > { %v5852_v28 = vpop.f32.mrf.mxu3 }
 0x75d   : > { %v5853_v46 = vadd.f32 %v5852_v28, %v5764_v4 }
 0x75f   : > { %v6077_v43 = vadd.f32 %v6031_v23, %v5853_v46 }
 0x761   : > { %6109 = vst [vmem:[%s12541_s14 + $0xc8] sm:$0xff] %v6077_v43  ;;  %v6034_v12 = vpop.f32.mrf.mxu0 }
 0x764   : > { %v5855_v9 = vpop.f32.mrf.mxu3 }
 0x765   : > { %v5856_v21 = vadd.f32 %v5855_v9, %v5767_v56 }
 0x767   : > { %v6078_v14 = vadd.f32 %v6034_v12, %v5856_v21 }
 0x769   : > { %6110 = vst [vmem:[%s12541_s14 + $0xd0] sm:$0xff] %v6078_v14  ;;  %v6037_v27 = vpop.f32.mrf.mxu0 }
 0x76c   : > { %v5857_v57 = vpop.f32.mrf.mxu3 }
 0x76d   : > { %v5858_v26 = vadd.f32 %v5857_v57, %v5769_v45 }
 0x76f   : > { %v6079_v48 = vadd.f32 %v6037_v27, %v5858_v26 }
 0x771   : > { %6111 = vst [vmem:[%s12541_s14 + $0xd8] sm:$0xff] %v6079_v48  ;;  %v6040_v19 = vpop.f32.mrf.mxu0 }
 0x774   : > { %v5860_v36 = vpop.f32.mrf.mxu3 }
 0x775   : > { %v5861_v58 = vadd.f32 %v5860_v36, %v5772_v5 }
 0x777   : > { %v6080_v16 = vadd.f32 %v6040_v19, %v5861_v58 }
 0x779   : > { %6112 = vst [vmem:[%s12541_s14 + $0xe0] sm:$0xff] %v6080_v16  ;;  %v6043_v13 = vpop.f32.mrf.mxu0 }
 0x77c   : > { %v5862_v39 = vpop.f32.mrf.mxu3 }
 0x77d   : > { %v5863_v33 = vadd.f32 %v5862_v39, %v5774_v62 }
 0x77f   : > { %v6081_v47 = vadd.f32 %v6043_v13, %v5863_v33 }
 0x781   : > { %6113 = vst [vmem:[%s12541_s14 + $0xe8] sm:$0xff] %v6081_v47 }
 0x784   : > { %v5865_v10 = vpop.f32.mrf.mxu3 }
 0x785   : > { %v5866_v63 = vadd.f32 %v5865_v10, %v5777_v6 }
 0x787   : > { %v6082_v29 = vadd.f32 %v6046_v59, %v5866_v63 }
 0x789   : > { %6114 = vst [vmem:[%s12541_s14 + $0xf0] sm:$0xff] %v6082_v29 }
 0x78c   : > { %v5867_v0 = vpop.f32.mrf.mxu3 }
 0x78d   : > { %v5868_v22 = vadd.f32 %v5867_v0, %v5779_v49 }
 0x78f   : > { %v6083_v20 = vadd.f32 %v6049_v3, %v5868_v22 }
 0x791   : > { %6115 = vst [vmem:[%s12541_s14 + $0xf8] sm:$0xff] %v6083_v20 }
 0x792   : > { %8488 = shalt.err (!%p8485_p3)
}
 0x793   : > { %s8545_s0 = smov 128   ;;  %s13200_s23 = smov 8  }
 0x794   : > { %7001 = dma.vmem_to_hbm [thread:$0]  (%p8634_p5), %s6130_s26, 4096, %s6132_s16, %s6117_s13, %s8545_s0, %s8545_s0, %s13200_s23  }
 0x795 PF: > { %p7007_p4 = scmp.ge.s32.totalorder %s8523_s12, 2  ;;  %s6146_s17 = sand.u32 1, %s8511_s30  }
 0x796   : > { %s6147_s14 = scalar_lea.sflag [#allocation3], %s6146_s17 }
 0x797   : > { %p7004_p7 = pnand %p7007_p4, %p8638_p6 }
 0x799   : > { %p7005_p8 = pneg %p7004_p7 }
 0x79b   : > { %8506 = dma.done.wait (%p7005_p8), %s6147_s14, 4096  }
 0x79c   : > { %8508 = vsyncadd (%p7005_p8), %s6147_s14, 4294963200  ;;  %s13201_s25 = sld [smem:[#allocation5_spill]]  ;;  %p19_p9 = scmp.ge.s32.totalorder %s8621_s15, 4  }
 0x79d   : > { %s13202_s30 = smov %s8515_s10  ;;  %s13203_s10 = smov %s8519_s11 }
 0x79e   : > { %s13205_s12 = smov %s8621_s15  ;;  %21 = sbr.rel (!%p19_p9) target bundleno = 8 (0x8), region = 94 }
 0x7a2   : > { %s13204_s11 = smov %s13201_s25 }
 0x7a3   :  { %6153 = vsyncpa [#allocation3], 1 }
 0x7a4   :  { %6155 = vsyncpa [#allocation3 + $0x1], 1 }

</bundles_post_ra>
